<compile_context>
chip_gen: v7x
topology: tpu7x:2x2x1
jax: 0.10.0
libtpu: 0.0.40
codegen_flags: <defaults>
</compile_context>

<pallas_src>
import functools
import math

import jax
import jax.numpy as jnp
from jax import lax
from jax.experimental import pallas as pl
from jax.experimental.pallas import tpu as pltpu


# ----------------------------------------------------------------------------
# Blocked matmul kernel (in_proj / out_proj), bf16 MXU with f32 accumulation.
# ----------------------------------------------------------------------------
def _matmul_kernel(a_ref, b_ref, o_ref, acc_ref):
    @pl.when(pl.program_id(2) == 0)
    def _():
        acc_ref[...] = jnp.zeros_like(acc_ref)

    # bf16 casts inside the kernel: no bf16 activation copies ever hit HBM.
    acc_ref[...] += jnp.dot(a_ref[...].astype(jnp.bfloat16),
                            b_ref[...].astype(jnp.bfloat16),
                            preferred_element_type=jnp.float32)

    @pl.when(pl.program_id(2) == pl.num_programs(2) - 1)
    def _():
        o_ref[...] = acc_ref[...].astype(o_ref.dtype)


def _pick_tile(dim, prefs=(512, 256, 128)):
    for p in prefs:
        if dim % p == 0:
            return p
    return dim


def pallas_linear(x, w, *, out_dtype=jnp.float32):
    """x: (M, K) @ w: (K, N) -> (M, N) in out_dtype."""
    M, K = x.shape
    K2, N = w.shape
    assert K == K2
    tm, tn, tk = _pick_tile(M), _pick_tile(N), _pick_tile(K)
    return pl.pallas_call(
        _matmul_kernel,
        out_shape=jax.ShapeDtypeStruct((M, N), out_dtype),
        grid=(M // tm, N // tn, K // tk),
        in_specs=[pl.BlockSpec((tm, tk), lambda i, j, k: (i, k)),
                  pl.BlockSpec((tk, tn), lambda i, j, k: (k, j))],
        out_specs=pl.BlockSpec((tm, tn), lambda i, j, k: (i, j)),
        scratch_shapes=[pltpu.VMEM((tm, tn), jnp.float32)],
        compiler_params=pltpu.CompilerParams(
            dimension_semantics=("parallel", "parallel", "arbitrary"),
            vmem_limit_bytes=32 * 1024 * 1024),
    )(x, w)


# ----------------------------------------------------------------------------
# Fused six-branch Mamba kernel (grid over batch, all branches in one body).
# ----------------------------------------------------------------------------
def _softplus(x):
    # matches torch.nn.functional.softplus (threshold=20)
    return jnp.where(x > 20.0, x, jnp.log1p(jnp.exp(jnp.minimum(x, 20.0))))


def _fused_kernel(xz_ref, cw_ref, cb_ref, wf_ref, dtb_ref, at_ref, dsk_ref,
                  o_ref,
                  x_scr, pad_scr, u_scr, delta_scr, bc_scr, y_scr, oacc_scr,
                  *, L, DI, d_conv, d_state, tb, ns_list):
    """One batch element; computes and accumulates all six scan branches.

    xz_ref : (1, L, 2*DI) bf16     in_proj output (x | z), original order
    cw_ref : (6, d_conv, DI) f32   depthwise conv weights
    cb_ref : (6, 1, DI) f32        conv biases
    wf_ref : (6, DI, DI+128) bf16  fused [W_delta | W_bc | 0-pad] projection
    dtb_ref: (6, 1, DI) f32        dt_proj bias (pre-softplus)
    at_ref : (6, N, DI) f32        A^T = (-exp(A_log))^T
    dsk_ref: (6, 1, DI) f32        D (skip)
    o_ref  : (1, L, DI) bf16       gated sum of the six branches
    """
    N = d_state
    pad = d_conv - 1
    nblk = L // tb

    oacc_scr[...] = jnp.zeros_like(oacc_scr)
    x_scr[...] = xz_ref[0, :, 0:DI].astype(jnp.float32)
    if pad > 0:
        pad_scr[0:pad, :] = jnp.zeros((pad, DI), jnp.float32)
        pad_scr[L + pad:L + 2 * pad, :] = jnp.zeros((pad, DI), jnp.float32)

    # Branch pairs: (identity fwd/bwd), (small-slice fwd/bwd), (big-slice fwd/bwd)
    for p, ns in enumerate(ns_list):
        run = L // ns
        # Build the slice-interleaved (or identity) sequence once per pair via
        # strided reads (no L x L permutation matmul, no flipped copies).
        if ns == 1:
            pad_scr[pad:pad + L, :] = x_scr[...]
        else:
            for i in range(run):
                pad_scr[pad + i * ns:pad + (i + 1) * ns, :] = \
                    x_scr[pl.ds(i, ns, run), :]

        for d in range(2):  # 0: causal conv + forward scan, 1: reversed
            br = 2 * p + d
            fwd = (d == 0)

            # depthwise conv1d (+ bias) + SiLU; bwd = reversed taps on the
            # right-padded window (equivalent to flip -> causal conv -> flip).
            w = cw_ref[br]                               # (d_conv, DI)
            base = 0 if fwd else pad
            conv = jnp.zeros((L, DI), jnp.float32)
            for k in range(d_conv):
                kk = k if fwd else d_conv - 1 - k
                conv = conv + w[kk:kk + 1, :] * pad_scr[base + k:base + k + L, :]
            conv = conv + cb_ref[br]
            u = conv * jax.nn.sigmoid(conv)              # (L, DI) f32
            u_scr[...] = u

            # Single fused MXU pass: [delta_pre | B | C | pad] = u @ W_fused
            proj = jnp.dot(u.astype(jnp.bfloat16), wf_ref[br],
                           preferred_element_type=jnp.float32)   # (L, DI+128)
            delta_scr[...] = _softplus(proj[:, 0:DI] + dtb_ref[br])
            bc_scr[...] = proj[:, DI:DI + 2 * N]

            a3 = at_ref[br][None, :, :]                  # (1, N, DI)
            d_skip = dsk_ref[br]                         # (1, DI)

            # Time-blocked selective scan: fori_loop over blocks, only the
            # tb-step recurrence unrolled; per-step live state is (1, N, DI).
            def blk_body(j, s, *, fwd=fwd, d=d, a3=a3, d_skip=d_skip):
                blk = j if fwd else nblk - 1 - j
                t0 = pl.multiple_of(blk * tb, tb)
                d_blk = delta_scr[pl.ds(t0, tb), :]      # (tb, DI)
                u_blk = u_scr[pl.ds(t0, tb), :]
                bc_blk = bc_scr[pl.ds(t0, tb), :]        # (tb, 2N)
                du_blk = d_blk * u_blk
                rows = [None] * tb
                order = range(tb) if fwd else range(tb - 1, -1, -1)
                for t_ in order:
                    d_row = d_blk[t_:t_ + 1, :]                      # (1, DI)
                    du_row = du_blk[t_:t_ + 1, :]
                    b_row = bc_blk[t_:t_ + 1, 0:N]                   # (1, N)
                    c_row = bc_blk[t_:t_ + 1, N:2 * N]
                    dA = jnp.exp(d_row[:, None, :] * a3)             # (1,N,DI)
                    dBu = du_row[:, None, :] * b_row[:, :, None]     # (1,N,DI)
                    s = dA * s + dBu
                    rows[t_] = jnp.sum(c_row[:, :, None] * s, axis=1)  # (1,DI)
                y_blk = jnp.concatenate(rows, axis=0) + u_blk * d_skip
                if d == 0:
                    y_scr[pl.ds(t0, tb), :] = y_blk
                else:   # second direction of the pair accumulates in place
                    y_scr[pl.ds(t0, tb), :] = y_scr[pl.ds(t0, tb), :] + y_blk
                return s

            lax.fori_loop(0, nblk, blk_body,
                          jnp.zeros((1, N, DI), jnp.float32))

        # Scatter the pair's (fwd + bwd) outputs back to original time order
        # and accumulate; the inverse of interleave(ns) is interleave(L//ns).
        if ns == 1:
            oacc_scr[...] = oacc_scr[...] + y_scr[...]
        else:
            for c in range(ns):
                oacc_scr[c * run:(c + 1) * run, :] = (
                    oacc_scr[c * run:(c + 1) * run, :]
                    + y_scr[pl.ds(c, run, ns), :])

    # Gating with silu(z) commutes with the time bijections -> apply once, in
    # original order, to the f32 accumulator; single bf16 writeback.
    z = xz_ref[0, :, DI:2 * DI].astype(jnp.float32)
    o_ref[0] = (oacc_scr[...] * (z * jax.nn.sigmoid(z))).astype(o_ref.dtype)


def fused_branches(xz, a_t, p, *, d_inner, d_conv, d_state, ns_small, ns_big,
                   tb):
    B, L, two_di = xz.shape
    DI = d_inner
    assert two_di == 2 * DI
    WF = DI + 128
    assert p["W_fused"].shape[-1] == WF
    Lp2 = L + 2 * (d_conv - 1)
    kern = functools.partial(_fused_kernel, L=L, DI=DI, d_conv=d_conv,
                             d_state=d_state, tb=tb,
                             ns_list=(1, ns_small, ns_big))

    def full_spec(shape):
        # Constant block index: parameters DMA'd once, stay VMEM-resident.
        return pl.BlockSpec(shape, lambda b: (0,) * len(shape))

    return pl.pallas_call(
        kern,
        out_shape=jax.ShapeDtypeStruct((B, L, DI), jnp.bfloat16),
        grid=(B,),
        in_specs=[
            pl.BlockSpec((1, L, 2 * DI), lambda b: (b, 0, 0)),   # xz
            full_spec((6, d_conv, DI)),                          # conv_w
            full_spec((6, 1, DI)),                               # conv_b
            full_spec((6, DI, WF)),                              # W_fused
            full_spec((6, 1, DI)),                               # dt_bias
            full_spec((6, d_state, DI)),                         # A^T
            full_spec((6, 1, DI)),                               # D
        ],
        out_specs=pl.BlockSpec((1, L, DI), lambda b: (b, 0, 0)),
        scratch_shapes=[
            pltpu.VMEM((L, DI), jnp.float32),            # x (f32)
            pltpu.VMEM((Lp2, DI), jnp.float32),          # padded permuted seq
            pltpu.VMEM((L, DI), jnp.float32),            # u = silu(conv)
            pltpu.VMEM((L, DI), jnp.float32),            # delta
            pltpu.VMEM((L, 2 * d_state), jnp.float32),   # B | C
            pltpu.VMEM((L, DI), jnp.float32),            # per-pair scan out
            pltpu.VMEM((L, DI), jnp.float32),            # f32 branch accum
        ],
        compiler_params=pltpu.CompilerParams(
            dimension_semantics=("parallel",),
            vmem_limit_bytes=64 * 1024 * 1024),
    )(xz, p["conv_w"], p["conv_b"], p["W_fused"], p["dt_bias"], a_t, p["D"])


# ----------------------------------------------------------------------------
# Full forward
# ----------------------------------------------------------------------------
def mamba_forward(hidden, params, *, d_inner, d_conv, d_state,
                  nslices_small, nslices_big):
    """hidden: (B, L, d_model) f32; d_inner is the lane-padded inner width."""
    B, L, Dm = hidden.shape
    assert L % nslices_small == 0 and L % nslices_big == 0

    # in_proj (no bias); bf16 activations written back.
    xz = pallas_linear(hidden.reshape(B * L, Dm), params["in_proj_wT"],
                       out_dtype=jnp.bfloat16).reshape(B, L, 2 * d_inner)

    a_t = -jnp.exp(params["A_log_T"])                    # (6, N, d_inner)

    tb = next(c for c in (8, 4, 2, 1) if L % c == 0)
    y = fused_branches(xz, a_t, params, d_inner=d_inner, d_conv=d_conv,
                       d_state=d_state, ns_small=nslices_small,
                       ns_big=nslices_big, tb=tb)

    # out_proj (no bias)
    out = pallas_linear(y.reshape(B * L, d_inner), params["out_proj_wT"],
                        out_dtype=jnp.float32).reshape(B, L, Dm)
    return out


# ----------------------------------------------------------------------------
# Deterministic parameter construction (mirrors the module's __init__ shapes),
# zero-padded so the kernel-facing d_inner is a multiple of 128 lanes.
# ----------------------------------------------------------------------------
def _round_up(x, m):
    return ((x + m - 1) // m) * m


def make_branch_params(key, *, d_inner, di_pad, d_conv, dt_rank, d_state,
                       dt_min=0.001, dt_max=0.1, dt_init_floor=1e-4):
    assert 2 * d_state <= 128
    ks = jax.random.split(key, 5)
    conv_w = jnp.zeros((d_conv, di_pad), jnp.float32).at[:, :d_inner].set(
        jax.random.normal(ks[0], (d_conv, d_inner), jnp.float32) * 0.1)
    conv_b = jnp.zeros((1, di_pad), jnp.float32).at[:, :d_inner].set(
        jax.random.normal(ks[1], (1, d_inner), jnp.float32) * 0.1)
    x_proj_wT = (jax.random.normal(ks[2], (d_inner, dt_rank + 2 * d_state),
                                   jnp.float32) * (d_inner ** -0.5))
    dt_std = dt_rank ** -0.5
    dt_proj_wT = jax.random.uniform(ks[3], (dt_rank, d_inner), jnp.float32,
                                    minval=-dt_std, maxval=dt_std)
    dt = jnp.exp(jax.random.uniform(ks[4], (d_inner,), jnp.float32)
                 * (math.log(dt_max) - math.log(dt_min)) + math.log(dt_min))
    dt = jnp.maximum(dt, dt_init_floor)
    inv_dt = dt + jnp.log(-jnp.expm1(-dt))               # inverse softplus

    # Fused projection weight: [W_delta (DI,DI) | W_bc (DI,2N) | zero pad]
    w_delta = x_proj_wT[:, :dt_rank] @ dt_proj_wT        # (d_inner, d_inner)
    w_bc = x_proj_wT[:, dt_rank:]                        # (d_inner, 2*d_state)
    wf = jnp.zeros((di_pad, di_pad + 128), jnp.float32)
    wf = wf.at[:d_inner, :d_inner].set(w_delta)
    wf = wf.at[:d_inner, di_pad:di_pad + 2 * d_state].set(w_bc)

    dt_bias = jnp.zeros((1, di_pad), jnp.float32).at[:, :d_inner].set(inv_dt)
    a_log = jnp.tile(jnp.log(jnp.arange(1, d_state + 1, dtype=jnp.float32))
                     [:, None], (1, d_inner))
    a_log_t = jnp.zeros((d_state, di_pad), jnp.float32).at[:, :d_inner].set(a_log)
    d_skip = jnp.zeros((1, di_pad), jnp.float32).at[:, :d_inner].set(1.0)
    return dict(conv_w=conv_w, conv_b=conv_b,
                W_fused=wf.astype(jnp.bfloat16),
                dt_bias=dt_bias, A_log_T=a_log_t, D=d_skip)


def make_params(key, *, d_model, d_state, d_conv, expand, dt_rank):
    d_inner = expand * d_model
    di_pad = max(_round_up(d_inner, 128), 128)
    keys = jax.random.split(key, 8)

    w_in = jax.random.normal(keys[0], (d_model, 2 * d_inner),
                             jnp.float32) * (d_model ** -0.5)
    in_proj = jnp.zeros((d_model, 2 * di_pad), jnp.float32)
    in_proj = in_proj.at[:, :d_inner].set(w_in[:, :d_inner])            # x cols
    in_proj = in_proj.at[:, di_pad:di_pad + d_inner].set(w_in[:, d_inner:])  # z

    w_out = jax.random.normal(keys[1], (d_inner, d_model),
                              jnp.float32) * (d_inner ** -0.5)
    out_proj = jnp.zeros((di_pad, d_model), jnp.float32).at[:d_inner].set(w_out)

    params = {"in_proj_wT": in_proj.astype(jnp.bfloat16),
              "out_proj_wT": out_proj.astype(jnp.bfloat16)}
    branches = [make_branch_params(k, d_inner=d_inner, di_pad=di_pad,
                                   d_conv=d_conv, dt_rank=dt_rank,
                                   d_state=d_state)
                for k in keys[2:8]]
    for name in branches[0]:
        params[name] = jnp.stack([b[name] for b in branches], axis=0)
    return params, di_pad


# ----------------------------------------------------------------------------
if __name__ == "__main__":
    # Small shapes consistent with the module: d_model=32 -> d_inner=64
    # (lane-padded to 128 internally), dt_rank=ceil(32/16)=2, d_state=16,
    # d_conv=4.  nslices chosen so they divide the sequence length.
    B, L, d_model = 2, 16, 32
    d_state, d_conv, expand = 16, 4, 2
    dt_rank = math.ceil(d_model / 16)
    nslices_small, nslices_big = 4, 2

    key = jax.random.PRNGKey(0)
    k_param, k_x = jax.random.split(key)
    params, d_inner_pad = make_params(k_param, d_model=d_model,
                                      d_state=d_state, d_conv=d_conv,
                                      expand=expand, dt_rank=dt_rank)
    hidden = jax.random.normal(k_x, (B, L, d_model), jnp.float32)

    fwd = jax.jit(functools.partial(
        mamba_forward, d_inner=d_inner_pad, d_conv=d_conv, d_state=d_state,
        nslices_small=nslices_small, nslices_big=nslices_big))

    out = fwd(hidden, params)
    jax.block_until_ready(out)
    assert out.shape == (B, L, d_model), out.shape
    assert bool(jnp.all(jnp.isfinite(out)))
    print("KERNEL_OK")
</pallas_src>

<mosaic_0001>
module attributes {stable_mosaic.version = 11 : i64} {
  func.func @_matmul_kernel(%arg0: i32, %arg1: i32, %arg2: i32, %arg3: memref<32x32xf32, #tpu.memory_space<vmem>>, %arg4: memref<32x256xbf16, #tpu.memory_space<vmem>>, %arg5: memref<32x256xbf16, #tpu.memory_space<vmem>>, %arg6: memref<32x256xf32, #tpu.memory_space<vmem>>) attributes {dimension_semantics = [#tpu.dimension_semantics<parallel>, #tpu.dimension_semantics<parallel>, #tpu.dimension_semantics<arbitrary>], iteration_bounds = array<i64: 1, 1, 1>, scalar_prefetch = 0 : i64, scratch_operands = 1 : i64, tpu.core_type = #tpu.core_type<tc>, window_params = [{transform_indices = @transform_0, window_bounds = array<i64: 32, 32>}, {transform_indices = @transform_1, window_bounds = array<i64: 32, 256>}, {transform_indices = @transform_2, window_bounds = array<i64: 32, 256>}]} {
    %c0_i32 = arith.constant 0 : i32
    %0 = arith.cmpi eq, %arg2, %c0_i32 : i32
    %1 = arith.extui %0 : i1 to i32
    %c0_i32_0 = arith.constant 0 : i32
    %2 = arith.cmpi ne, %1, %c0_i32_0 : i32
    scf.if %2 {
      %cst_10 = arith.constant 0.000000e+00 : f32
      %13 = vector.broadcast %cst_10 : f32 to vector<32x256xf32>
      %c0_11 = arith.constant 0 : index
      %c0_12 = arith.constant 0 : index
      %14 = vector.load %arg6[%c0_11, %c0_12] : memref<32x256xf32, #tpu.memory_space<vmem>>, vector<32x256xf32>
      tpu.vector_store %arg6[%c0_11, %c0_12], %13 {strides = array<i32>} : memref<32x256xf32, #tpu.memory_space<vmem>>, vector<32x256xf32>,
    } else {
    }
    %c0 = arith.constant 0 : index
    %c0_1 = arith.constant 0 : index
    %3 = vector.load %arg6[%c0, %c0_1] : memref<32x256xf32, #tpu.memory_space<vmem>>, vector<32x256xf32>
    %c0_2 = arith.constant 0 : index
    %c0_3 = arith.constant 0 : index
    %4 = vector.load %arg3[%c0_2, %c0_3] : memref<32x32xf32, #tpu.memory_space<vmem>>, vector<32x32xf32>
    %5 = arith.truncf %4 : vector<32x32xf32> to vector<32x32xbf16>
    %c0_4 = arith.constant 0 : index
    %c0_5 = arith.constant 0 : index
    %6 = vector.load %arg4[%c0_4, %c0_5] : memref<32x256xbf16, #tpu.memory_space<vmem>>, vector<32x256xbf16>
    %cst = arith.constant dense<0.000000e+00> : vector<32x256xf32>
    %7 = tpu.matmul %5, %6, %cst {dimension_numbers = #tpu.dot_dimension_numbers<[1], [0], [0], [1], [0, 0, 1, 1], [], []>} : vector<32x32xbf16>, vector<32x256xbf16>, vector<32x256xf32> -> vector<32x256xf32>
    %8 = arith.addf %3, %7 : vector<32x256xf32>
    %c0_6 = arith.constant 0 : index
    %c0_7 = arith.constant 0 : index
    %9 = vector.load %arg6[%c0_6, %c0_7] : memref<32x256xf32, #tpu.memory_space<vmem>>, vector<32x256xf32>
    tpu.vector_store %arg6[%c0_6, %c0_7], %8 {strides = array<i32>} : memref<32x256xf32, #tpu.memory_space<vmem>>, vector<32x256xf32>,
    %c0_i32_8 = arith.constant 0 : i32
    %10 = arith.cmpi eq, %arg2, %c0_i32_8 : i32
    %11 = arith.extui %10 : i1 to i32
    %c0_i32_9 = arith.constant 0 : i32
    %12 = arith.cmpi ne, %11, %c0_i32_9 : i32
    scf.if %12 {
      %c0_10 = arith.constant 0 : index
      %c0_11 = arith.constant 0 : index
      %13 = vector.load %arg6[%c0_10, %c0_11] : memref<32x256xf32, #tpu.memory_space<vmem>>, vector<32x256xf32>
      %14 = arith.truncf %13 : vector<32x256xf32> to vector<32x256xbf16>
      %c0_12 = arith.constant 0 : index
      %c0_13 = arith.constant 0 : index
      %15 = vector.load %arg5[%c0_12, %c0_13] : memref<32x256xbf16, #tpu.memory_space<vmem>>, vector<32x256xbf16>
      tpu.vector_store %arg5[%c0_12, %c0_13], %14 {strides = array<i32>} : memref<32x256xbf16, #tpu.memory_space<vmem>>, vector<32x256xbf16>,
    } else {
    }
    return
  }
  func.func @transform_0(%arg0: i32, %arg1: i32, %arg2: i32) -> (i32, i32) {
    %c0_i32 = arith.constant 0 : i32
    return %arg0, %arg2 : i32, i32
  }
  func.func @transform_1(%arg0: i32, %arg1: i32, %arg2: i32) -> (i32, i32) {
    %c0_i32 = arith.constant 0 : i32
    return %arg2, %arg1 : i32, i32
  }
  func.func @transform_2(%arg0: i32, %arg1: i32, %arg2: i32) -> (i32, i32) {
    %c0_i32 = arith.constant 0 : i32
    return %arg0, %arg1 : i32, i32
  }
}

module attributes {stable_mosaic.version = 11 : i64} {
  func.func @_fused_kernel(%arg0: i32, %arg1: memref<1x16x256xbf16, #tpu.memory_space<vmem>>, %arg2: memref<6x4x128xf32, #tpu.memory_space<vmem>>, %arg3: memref<6x1x128xf32, #tpu.memory_space<vmem>>, %arg4: memref<6x128x256xbf16, #tpu.memory_space<vmem>>, %arg5: memref<6x1x128xf32, #tpu.memory_space<vmem>>, %arg6: memref<6x16x128xf32, #tpu.memory_space<vmem>>, %arg7: memref<6x1x128xf32, #tpu.memory_space<vmem>>, %arg8: memref<1x16x128xbf16, #tpu.memory_space<vmem>>, %arg9: memref<16x128xf32, #tpu.memory_space<vmem>>, %arg10: memref<22x128xf32, #tpu.memory_space<vmem>>, %arg11: memref<16x128xf32, #tpu.memory_space<vmem>>, %arg12: memref<16x128xf32, #tpu.memory_space<vmem>>, %arg13: memref<16x32xf32, #tpu.memory_space<vmem>>, %arg14: memref<16x128xf32, #tpu.memory_space<vmem>>, %arg15: memref<16x128xf32, #tpu.memory_space<vmem>>) attributes {dimension_semantics = [#tpu.dimension_semantics<parallel>], iteration_bounds = array<i64: 2>, scalar_prefetch = 0 : i64, scratch_operands = 7 : i64, tpu.core_type = #tpu.core_type<tc>, window_params = [{transform_indices = @transform_0, window_bounds = array<i64: 1, 16, 256>}, {pipeline_mode = #tpu.pipeline_mode<synchronous>, transform_indices = @transform_1, window_bounds = array<i64: 6, 4, 128>}, {pipeline_mode = #tpu.pipeline_mode<synchronous>, transform_indices = @transform_2, window_bounds = array<i64: 6, 1, 128>}, {pipeline_mode = #tpu.pipeline_mode<synchronous>, transform_indices = @transform_3, window_bounds = array<i64: 6, 128, 256>}, {pipeline_mode = #tpu.pipeline_mode<synchronous>, transform_indices = @transform_4, window_bounds = array<i64: 6, 1, 128>}, {pipeline_mode = #tpu.pipeline_mode<synchronous>, transform_indices = @transform_5, window_bounds = array<i64: 6, 16, 128>}, {pipeline_mode = #tpu.pipeline_mode<synchronous>, transform_indices = @transform_6, window_bounds = array<i64: 6, 1, 128>}, {transform_indices = @transform_7, window_bounds = array<i64: 1, 16, 128>}]} {
    %cst = arith.constant 0.000000e+00 : f32
    %0 = vector.broadcast %cst : f32 to vector<16x128xf32>
    %c0 = arith.constant 0 : index
    %c0_0 = arith.constant 0 : index
    %1 = vector.load %arg15[%c0, %c0_0] : memref<16x128xf32, #tpu.memory_space<vmem>>, vector<16x128xf32>
    tpu.vector_store %arg15[%c0, %c0_0], %0 {strides = array<i32>} : memref<16x128xf32, #tpu.memory_space<vmem>>, vector<16x128xf32>,
    %c0_1 = arith.constant 0 : index
    %c0_2 = arith.constant 0 : index
    %c0_3 = arith.constant 0 : index
    %2 = vector.load %arg1[%c0_1, %c0_2, %c0_3] : memref<1x16x256xbf16, #tpu.memory_space<vmem>>, vector<1x16x128xbf16>
    %3 = vector.shape_cast %2 : vector<1x16x128xbf16> to vector<16x128xbf16>
    %4 = arith.extf %3 : vector<16x128xbf16> to vector<16x128xf32>
    %c0_4 = arith.constant 0 : index
    %c0_5 = arith.constant 0 : index
    %5 = vector.load %arg9[%c0_4, %c0_5] : memref<16x128xf32, #tpu.memory_space<vmem>>, vector<16x128xf32>
    tpu.vector_store %arg9[%c0_4, %c0_5], %4 {strides = array<i32>} : memref<16x128xf32, #tpu.memory_space<vmem>>, vector<16x128xf32>,
    %cst_6 = arith.constant 0.000000e+00 : f32
    %6 = vector.broadcast %cst_6 : f32 to vector<3x128xf32>
    %c0_7 = arith.constant 0 : index
    %c0_8 = arith.constant 0 : index
    %7 = vector.load %arg10[%c0_7, %c0_8] : memref<22x128xf32, #tpu.memory_space<vmem>>, vector<3x128xf32>
    tpu.vector_store %arg10[%c0_7, %c0_8], %6 {strides = array<i32>} : memref<22x128xf32, #tpu.memory_space<vmem>>, vector<3x128xf32>,
    %cst_9 = arith.constant 0.000000e+00 : f32
    %8 = vector.broadcast %cst_9 : f32 to vector<3x128xf32>
    %c19 = arith.constant 19 : index
    %c0_10 = arith.constant 0 : index
    %9 = vector.load %arg10[%c19, %c0_10] : memref<22x128xf32, #tpu.memory_space<vmem>>, vector<3x128xf32>
    tpu.vector_store %arg10[%c19, %c0_10], %8 {strides = array<i32>} : memref<22x128xf32, #tpu.memory_space<vmem>>, vector<3x128xf32>,
    %c0_11 = arith.constant 0 : index
    %c0_12 = arith.constant 0 : index
    %10 = vector.load %arg9[%c0_11, %c0_12] : memref<16x128xf32, #tpu.memory_space<vmem>>, vector<16x128xf32>
    %c3 = arith.constant 3 : index
    %c0_13 = arith.constant 0 : index
    %11 = vector.load %arg10[%c3, %c0_13] : memref<22x128xf32, #tpu.memory_space<vmem>>, vector<16x128xf32>
    tpu.vector_store %arg10[%c3, %c0_13], %10 {strides = array<i32>} : memref<22x128xf32, #tpu.memory_space<vmem>>, vector<16x128xf32>,
    %c0_14 = arith.constant 0 : index
    %c0_15 = arith.constant 0 : index
    %c0_16 = arith.constant 0 : index
    %12 = vector.load %arg2[%c0_14, %c0_15, %c0_16] : memref<6x4x128xf32, #tpu.memory_space<vmem>>, vector<1x4x128xf32>
    %13 = vector.shape_cast %12 : vector<1x4x128xf32> to vector<4x128xf32>
    %cst_17 = arith.constant 0.000000e+00 : f32
    %14 = vector.broadcast %cst_17 : f32 to vector<16x128xf32>
    %15 = vector.extract_strided_slice %13 {offsets = [0, 0], sizes = [1, 128], strides = [1, 1]} : vector<4x128xf32> to vector<1x128xf32>
    %c0_18 = arith.constant 0 : index
    %c0_19 = arith.constant 0 : index
    %16 = vector.load %arg10[%c0_18, %c0_19] : memref<22x128xf32, #tpu.memory_space<vmem>>, vector<16x128xf32>
    %17 = vector.broadcast %15 : vector<1x128xf32> to vector<16x128xf32>
    %18 = arith.mulf %17, %16 : vector<16x128xf32>
    %19 = arith.addf %14, %18 : vector<16x128xf32>
    %20 = vector.extract_strided_slice %13 {offsets = [1, 0], sizes = [1, 128], strides = [1, 1]} : vector<4x128xf32> to vector<1x128xf32>
    %c1 = arith.constant 1 : index
    %c0_20 = arith.constant 0 : index
    %21 = vector.load %arg10[%c1, %c0_20] : memref<22x128xf32, #tpu.memory_space<vmem>>, vector<16x128xf32>
    %22 = vector.broadcast %20 : vector<1x128xf32> to vector<16x128xf32>
    %23 = arith.mulf %22, %21 : vector<16x128xf32>
    %24 = arith.addf %19, %23 : vector<16x128xf32>
    %25 = vector.extract_strided_slice %13 {offsets = [2, 0], sizes = [1, 128], strides = [1, 1]} : vector<4x128xf32> to vector<1x128xf32>
    %c2 = arith.constant 2 : index
    %c0_21 = arith.constant 0 : index
    %26 = vector.load %arg10[%c2, %c0_21] : memref<22x128xf32, #tpu.memory_space<vmem>>, vector<16x128xf32>
    %27 = vector.broadcast %25 : vector<1x128xf32> to vector<16x128xf32>
    %28 = arith.mulf %27, %26 : vector<16x128xf32>
    %29 = arith.addf %24, %28 : vector<16x128xf32>
    %30 = vector.extract_strided_slice %13 {offsets = [3, 0], sizes = [1, 128], strides = [1, 1]} : vector<4x128xf32> to vector<1x128xf32>
    %c3_22 = arith.constant 3 : index
    %c0_23 = arith.constant 0 : index
    %31 = vector.load %arg10[%c3_22, %c0_23] : memref<22x128xf32, #tpu.memory_space<vmem>>, vector<16x128xf32>
    %32 = vector.broadcast %30 : vector<1x128xf32> to vector<16x128xf32>
    %33 = arith.mulf %32, %31 : vector<16x128xf32>
    %34 = arith.addf %29, %33 : vector<16x128xf32>
    %c0_24 = arith.constant 0 : index
    %c0_25 = arith.constant 0 : index
    %c0_26 = arith.constant 0 : index
    %35 = vector.load %arg3[%c0_24, %c0_25, %c0_26] : memref<6x1x128xf32, #tpu.memory_space<vmem>>, vector<1x1x128xf32>
    %36 = vector.shape_cast %35 : vector<1x1x128xf32> to vector<1x128xf32>
    %37 = vector.broadcast %36 : vector<1x128xf32> to vector<16x128xf32>
    %38 = arith.addf %34, %37 : vector<16x128xf32>
    %39 = arith.negf %38 : vector<16x128xf32>
    %40 = math.exp %39 : vector<16x128xf32>
    %cst_27 = arith.constant 1.000000e+00 : f32
    %41 = vector.broadcast %cst_27 : f32 to vector<16x128xf32>
    %42 = arith.addf %41, %40 : vector<16x128xf32>
    %43 = arith.divf %41, %42 : vector<16x128xf32>
    %44 = arith.mulf %38, %43 : vector<16x128xf32>
    %c0_28 = arith.constant 0 : index
    %c0_29 = arith.constant 0 : index
    %45 = vector.load %arg11[%c0_28, %c0_29] : memref<16x128xf32, #tpu.memory_space<vmem>>, vector<16x128xf32>
    tpu.vector_store %arg11[%c0_28, %c0_29], %44 {strides = array<i32>} : memref<16x128xf32, #tpu.memory_space<vmem>>, vector<16x128xf32>,
    %46 = arith.truncf %44 : vector<16x128xf32> to vector<16x128xbf16>
    %c0_30 = arith.constant 0 : index
    %c0_31 = arith.constant 0 : index
    %c0_32 = arith.constant 0 : index
    %47 = vector.load %arg4[%c0_30, %c0_31, %c0_32] : memref<6x128x256xbf16, #tpu.memory_space<vmem>>, vector<1x128x256xbf16>
    %48 = vector.shape_cast %47 : vector<1x128x256xbf16> to vector<128x256xbf16>
    %cst_33 = arith.constant dense<0.000000e+00> : vector<16x256xf32>
    %49 = tpu.matmul %46, %48, %cst_33 {dimension_numbers = #tpu.dot_dimension_numbers<[1], [0], [0], [1], [0, 0, 1, 1], [], []>} : vector<16x128xbf16>, vector<128x256xbf16>, vector<16x256xf32> -> vector<16x256xf32>
    %50 = vector.extract_strided_slice %49 {offsets = [0, 0], sizes = [16, 128], strides = [1, 1]} : vector<16x256xf32> to vector<16x128xf32>
    %c0_34 = arith.constant 0 : index
    %c0_35 = arith.constant 0 : index
    %c0_36 = arith.constant 0 : index
    %51 = vector.load %arg5[%c0_34, %c0_35, %c0_36] : memref<6x1x128xf32, #tpu.memory_space<vmem>>, vector<1x1x128xf32>
    %52 = vector.shape_cast %51 : vector<1x1x128xf32> to vector<1x128xf32>
    %53 = vector.broadcast %52 : vector<1x128xf32> to vector<16x128xf32>
    %54 = arith.addf %50, %53 : vector<16x128xf32>
    %cst_37 = arith.constant 2.000000e+01 : f32
    %55 = vector.broadcast %cst_37 : f32 to vector<16x128xf32>
    %56 = arith.cmpf ogt, %54, %55 : vector<16x128xf32>
    %cst_38 = arith.constant 2.000000e+01 : f32
    %57 = vector.broadcast %cst_38 : f32 to vector<16x128xf32>
    %58 = arith.minimumf %54, %57 : vector<16x128xf32>
    %59 = math.exp %58 : vector<16x128xf32>
    %60 = math.log1p %59 : vector<16x128xf32>
    %61 = arith.select %56, %54, %60 : vector<16x128xi1>, vector<16x128xf32>
    %c0_39 = arith.constant 0 : index
    %c0_40 = arith.constant 0 : index
    %62 = vector.load %arg12[%c0_39, %c0_40] : memref<16x128xf32, #tpu.memory_space<vmem>>, vector<16x128xf32>
    tpu.vector_store %arg12[%c0_39, %c0_40], %61 {strides = array<i32>} : memref<16x128xf32, #tpu.memory_space<vmem>>, vector<16x128xf32>,
    %63 = vector.extract_strided_slice %49 {offsets = [0, 128], sizes = [16, 32], strides = [1, 1]} : vector<16x256xf32> to vector<16x32xf32>
    %c0_41 = arith.constant 0 : index
    %c0_42 = arith.constant 0 : index
    %64 = vector.load %arg13[%c0_41, %c0_42] : memref<16x32xf32, #tpu.memory_space<vmem>>, vector<16x32xf32>
    tpu.vector_store %arg13[%c0_41, %c0_42], %63 {strides = array<i32>} : memref<16x32xf32, #tpu.memory_space<vmem>>, vector<16x32xf32>,
    %c0_43 = arith.constant 0 : index
    %c0_44 = arith.constant 0 : index
    %c0_45 = arith.constant 0 : index
    %65 = vector.load %arg6[%c0_43, %c0_44, %c0_45] : memref<6x16x128xf32, #tpu.memory_space<vmem>>, vector<1x16x128xf32>
    %66 = vector.shape_cast %65 : vector<1x16x128xf32> to vector<16x128xf32>
    %67 = vector.shape_cast %66 : vector<16x128xf32> to vector<1x16x128xf32>
    %c0_46 = arith.constant 0 : index
    %c0_47 = arith.constant 0 : index
    %c0_48 = arith.constant 0 : index
    %68 = vector.load %arg7[%c0_46, %c0_47, %c0_48] : memref<6x1x128xf32, #tpu.memory_space<vmem>>, vector<1x1x128xf32>
    %69 = vector.shape_cast %68 : vector<1x1x128xf32> to vector<1x128xf32>
    %cst_49 = arith.constant 0.000000e+00 : f32
    %70 = vector.broadcast %cst_49 : f32 to vector<1x16x128xf32>
    %c0_i32 = arith.constant 0 : i32
    %c2_i32 = arith.constant 2 : i32
    %71 = arith.addi %c0_i32, %c2_i32 : i32
    %c1_i32 = arith.constant 1 : i32
    %72 = scf.for %arg16 = %c0_i32 to %71 step %c1_i32 iter_args(%arg17 = %70) -> (vector<1x16x128xf32>)  : i32 {
      %c8_i32 = arith.constant 8 : i32
      %445 = arith.muli %arg16, %c8_i32 : i32
      %446 = tpu.assume_multiple %445, 8 : i32
      %447 = arith.index_cast %446 : i32 to index
      %c0_348 = arith.constant 0 : index
      %448 = vector.load %arg12[%447, %c0_348] : memref<16x128xf32, #tpu.memory_space<vmem>>, vector<8x128xf32>
      %449 = arith.index_cast %446 : i32 to index
      %c0_349 = arith.constant 0 : index
      %450 = vector.load %arg11[%449, %c0_349] : memref<16x128xf32, #tpu.memory_space<vmem>>, vector<8x128xf32>
      %451 = arith.index_cast %446 : i32 to index
      %c0_350 = arith.constant 0 : index
      %452 = vector.load %arg13[%451, %c0_350] : memref<16x32xf32, #tpu.memory_space<vmem>>, vector<8x32xf32>
      %453 = arith.mulf %448, %450 : vector<8x128xf32>
      %454 = vector.extract_strided_slice %448 {offsets = [0, 0], sizes = [1, 128], strides = [1, 1]} : vector<8x128xf32> to vector<1x128xf32>
      %455 = vector.extract_strided_slice %453 {offsets = [0, 0], sizes = [1, 128], strides = [1, 1]} : vector<8x128xf32> to vector<1x128xf32>
      %456 = vector.extract_strided_slice %452 {offsets = [0, 0], sizes = [1, 16], strides = [1, 1]} : vector<8x32xf32> to vector<1x16xf32>
      %457 = vector.extract_strided_slice %452 {offsets = [0, 16], sizes = [1, 16], strides = [1, 1]} : vector<8x32xf32> to vector<1x16xf32>
      %458 = vector.shape_cast %454 : vector<1x128xf32> to vector<1x1x128xf32>
      %459 = vector.broadcast %458 : vector<1x1x128xf32> to vector<1x16x128xf32>
      %460 = arith.mulf %459, %67 : vector<1x16x128xf32>
      %461 = math.exp %460 : vector<1x16x128xf32>
      %462 = vector.shape_cast %455 : vector<1x128xf32> to vector<1x1x128xf32>
      %463 = vector.shape_cast %456 : vector<1x16xf32> to vector<1x16x1xf32>
      %464 = vector.broadcast %462 : vector<1x1x128xf32> to vector<1x16x128xf32>
      %465 = vector.broadcast %463 : vector<1x16x1xf32> to vector<1x16x128xf32>
      %466 = arith.mulf %464, %465 : vector<1x16x128xf32>
      %467 = arith.mulf %461, %arg17 : vector<1x16x128xf32>
      %468 = arith.addf %467, %466 : vector<1x16x128xf32>
      %469 = vector.shape_cast %457 : vector<1x16xf32> to vector<1x16x1xf32>
      %470 = vector.broadcast %469 : vector<1x16x1xf32> to vector<1x16x128xf32>
      %471 = arith.mulf %470, %468 : vector<1x16x128xf32>
      %cst_351 = arith.constant dense<0.000000e+00> : vector<1x128xf32>
      %472 = vector.multi_reduction <add>, %471, %cst_351 [1] : vector<1x16x128xf32> to vector<1x128xf32>
      %473 = vector.extract_strided_slice %448 {offsets = [1, 0], sizes = [1, 128], strides = [1, 1]} : vector<8x128xf32> to vector<1x128xf32>
      %474 = vector.extract_strided_slice %453 {offsets = [1, 0], sizes = [1, 128], strides = [1, 1]} : vector<8x128xf32> to vector<1x128xf32>
      %475 = vector.extract_strided_slice %452 {offsets = [1, 0], sizes = [1, 16], strides = [1, 1]} : vector<8x32xf32> to vector<1x16xf32>
      %476 = vector.extract_strided_slice %452 {offsets = [1, 16], sizes = [1, 16], strides = [1, 1]} : vector<8x32xf32> to vector<1x16xf32>
      %477 = vector.shape_cast %473 : vector<1x128xf32> to vector<1x1x128xf32>
      %478 = vector.broadcast %477 : vector<1x1x128xf32> to vector<1x16x128xf32>
      %479 = arith.mulf %478, %67 : vector<1x16x128xf32>
      %480 = math.exp %479 : vector<1x16x128xf32>
      %481 = vector.shape_cast %474 : vector<1x128xf32> to vector<1x1x128xf32>
      %482 = vector.shape_cast %475 : vector<1x16xf32> to vector<1x16x1xf32>
      %483 = vector.broadcast %481 : vector<1x1x128xf32> to vector<1x16x128xf32>
      %484 = vector.broadcast %482 : vector<1x16x1xf32> to vector<1x16x128xf32>
      %485 = arith.mulf %483, %484 : vector<1x16x128xf32>
      %486 = arith.mulf %480, %468 : vector<1x16x128xf32>
      %487 = arith.addf %486, %485 : vector<1x16x128xf32>
      %488 = vector.shape_cast %476 : vector<1x16xf32> to vector<1x16x1xf32>
      %489 = vector.broadcast %488 : vector<1x16x1xf32> to vector<1x16x128xf32>
      %490 = arith.mulf %489, %487 : vector<1x16x128xf32>
      %cst_352 = arith.constant dense<0.000000e+00> : vector<1x128xf32>
      %491 = vector.multi_reduction <add>, %490, %cst_352 [1] : vector<1x16x128xf32> to vector<1x128xf32>
      %492 = vector.extract_strided_slice %448 {offsets = [2, 0], sizes = [1, 128], strides = [1, 1]} : vector<8x128xf32> to vector<1x128xf32>
      %493 = vector.extract_strided_slice %453 {offsets = [2, 0], sizes = [1, 128], strides = [1, 1]} : vector<8x128xf32> to vector<1x128xf32>
      %494 = vector.extract_strided_slice %452 {offsets = [2, 0], sizes = [1, 16], strides = [1, 1]} : vector<8x32xf32> to vector<1x16xf32>
      %495 = vector.extract_strided_slice %452 {offsets = [2, 16], sizes = [1, 16], strides = [1, 1]} : vector<8x32xf32> to vector<1x16xf32>
      %496 = vector.shape_cast %492 : vector<1x128xf32> to vector<1x1x128xf32>
      %497 = vector.broadcast %496 : vector<1x1x128xf32> to vector<1x16x128xf32>
      %498 = arith.mulf %497, %67 : vector<1x16x128xf32>
      %499 = math.exp %498 : vector<1x16x128xf32>
      %500 = vector.shape_cast %493 : vector<1x128xf32> to vector<1x1x128xf32>
      %501 = vector.shape_cast %494 : vector<1x16xf32> to vector<1x16x1xf32>
      %502 = vector.broadcast %500 : vector<1x1x128xf32> to vector<1x16x128xf32>
      %503 = vector.broadcast %501 : vector<1x16x1xf32> to vector<1x16x128xf32>
      %504 = arith.mulf %502, %503 : vector<1x16x128xf32>
      %505 = arith.mulf %499, %487 : vector<1x16x128xf32>
      %506 = arith.addf %505, %504 : vector<1x16x128xf32>
      %507 = vector.shape_cast %495 : vector<1x16xf32> to vector<1x16x1xf32>
      %508 = vector.broadcast %507 : vector<1x16x1xf32> to vector<1x16x128xf32>
      %509 = arith.mulf %508, %506 : vector<1x16x128xf32>
      %cst_353 = arith.constant dense<0.000000e+00> : vector<1x128xf32>
      %510 = vector.multi_reduction <add>, %509, %cst_353 [1] : vector<1x16x128xf32> to vector<1x128xf32>
      %511 = vector.extract_strided_slice %448 {offsets = [3, 0], sizes = [1, 128], strides = [1, 1]} : vector<8x128xf32> to vector<1x128xf32>
      %512 = vector.extract_strided_slice %453 {offsets = [3, 0], sizes = [1, 128], strides = [1, 1]} : vector<8x128xf32> to vector<1x128xf32>
      %513 = vector.extract_strided_slice %452 {offsets = [3, 0], sizes = [1, 16], strides = [1, 1]} : vector<8x32xf32> to vector<1x16xf32>
      %514 = vector.extract_strided_slice %452 {offsets = [3, 16], sizes = [1, 16], strides = [1, 1]} : vector<8x32xf32> to vector<1x16xf32>
      %515 = vector.shape_cast %511 : vector<1x128xf32> to vector<1x1x128xf32>
      %516 = vector.broadcast %515 : vector<1x1x128xf32> to vector<1x16x128xf32>
      %517 = arith.mulf %516, %67 : vector<1x16x128xf32>
      %518 = math.exp %517 : vector<1x16x128xf32>
      %519 = vector.shape_cast %512 : vector<1x128xf32> to vector<1x1x128xf32>
      %520 = vector.shape_cast %513 : vector<1x16xf32> to vector<1x16x1xf32>
      %521 = vector.broadcast %519 : vector<1x1x128xf32> to vector<1x16x128xf32>
      %522 = vector.broadcast %520 : vector<1x16x1xf32> to vector<1x16x128xf32>
      %523 = arith.mulf %521, %522 : vector<1x16x128xf32>
      %524 = arith.mulf %518, %506 : vector<1x16x128xf32>
      %525 = arith.addf %524, %523 : vector<1x16x128xf32>
      %526 = vector.shape_cast %514 : vector<1x16xf32> to vector<1x16x1xf32>
      %527 = vector.broadcast %526 : vector<1x16x1xf32> to vector<1x16x128xf32>
      %528 = arith.mulf %527, %525 : vector<1x16x128xf32>
      %cst_354 = arith.constant dense<0.000000e+00> : vector<1x128xf32>
      %529 = vector.multi_reduction <add>, %528, %cst_354 [1] : vector<1x16x128xf32> to vector<1x128xf32>
      %530 = vector.extract_strided_slice %448 {offsets = [4, 0], sizes = [1, 128], strides = [1, 1]} : vector<8x128xf32> to vector<1x128xf32>
      %531 = vector.extract_strided_slice %453 {offsets = [4, 0], sizes = [1, 128], strides = [1, 1]} : vector<8x128xf32> to vector<1x128xf32>
      %532 = vector.extract_strided_slice %452 {offsets = [4, 0], sizes = [1, 16], strides = [1, 1]} : vector<8x32xf32> to vector<1x16xf32>
      %533 = vector.extract_strided_slice %452 {offsets = [4, 16], sizes = [1, 16], strides = [1, 1]} : vector<8x32xf32> to vector<1x16xf32>
      %534 = vector.shape_cast %530 : vector<1x128xf32> to vector<1x1x128xf32>
      %535 = vector.broadcast %534 : vector<1x1x128xf32> to vector<1x16x128xf32>
      %536 = arith.mulf %535, %67 : vector<1x16x128xf32>
      %537 = math.exp %536 : vector<1x16x128xf32>
      %538 = vector.shape_cast %531 : vector<1x128xf32> to vector<1x1x128xf32>
      %539 = vector.shape_cast %532 : vector<1x16xf32> to vector<1x16x1xf32>
      %540 = vector.broadcast %538 : vector<1x1x128xf32> to vector<1x16x128xf32>
      %541 = vector.broadcast %539 : vector<1x16x1xf32> to vector<1x16x128xf32>
      %542 = arith.mulf %540, %541 : vector<1x16x128xf32>
      %543 = arith.mulf %537, %525 : vector<1x16x128xf32>
      %544 = arith.addf %543, %542 : vector<1x16x128xf32>
      %545 = vector.shape_cast %533 : vector<1x16xf32> to vector<1x16x1xf32>
      %546 = vector.broadcast %545 : vector<1x16x1xf32> to vector<1x16x128xf32>
      %547 = arith.mulf %546, %544 : vector<1x16x128xf32>
      %cst_355 = arith.constant dense<0.000000e+00> : vector<1x128xf32>
      %548 = vector.multi_reduction <add>, %547, %cst_355 [1] : vector<1x16x128xf32> to vector<1x128xf32>
      %549 = vector.extract_strided_slice %448 {offsets = [5, 0], sizes = [1, 128], strides = [1, 1]} : vector<8x128xf32> to vector<1x128xf32>
      %550 = vector.extract_strided_slice %453 {offsets = [5, 0], sizes = [1, 128], strides = [1, 1]} : vector<8x128xf32> to vector<1x128xf32>
      %551 = vector.extract_strided_slice %452 {offsets = [5, 0], sizes = [1, 16], strides = [1, 1]} : vector<8x32xf32> to vector<1x16xf32>
      %552 = vector.extract_strided_slice %452 {offsets = [5, 16], sizes = [1, 16], strides = [1, 1]} : vector<8x32xf32> to vector<1x16xf32>
      %553 = vector.shape_cast %549 : vector<1x128xf32> to vector<1x1x128xf32>
      %554 = vector.broadcast %553 : vector<1x1x128xf32> to vector<1x16x128xf32>
      %555 = arith.mulf %554, %67 : vector<1x16x128xf32>
      %556 = math.exp %555 : vector<1x16x128xf32>
      %557 = vector.shape_cast %550 : vector<1x128xf32> to vector<1x1x128xf32>
      %558 = vector.shape_cast %551 : vector<1x16xf32> to vector<1x16x1xf32>
      %559 = vector.broadcast %557 : vector<1x1x128xf32> to vector<1x16x128xf32>
      %560 = vector.broadcast %558 : vector<1x16x1xf32> to vector<1x16x128xf32>
      %561 = arith.mulf %559, %560 : vector<1x16x128xf32>
      %562 = arith.mulf %556, %544 : vector<1x16x128xf32>
      %563 = arith.addf %562, %561 : vector<1x16x128xf32>
      %564 = vector.shape_cast %552 : vector<1x16xf32> to vector<1x16x1xf32>
      %565 = vector.broadcast %564 : vector<1x16x1xf32> to vector<1x16x128xf32>
      %566 = arith.mulf %565, %563 : vector<1x16x128xf32>
      %cst_356 = arith.constant dense<0.000000e+00> : vector<1x128xf32>
      %567 = vector.multi_reduction <add>, %566, %cst_356 [1] : vector<1x16x128xf32> to vector<1x128xf32>
      %568 = vector.extract_strided_slice %448 {offsets = [6, 0], sizes = [1, 128], strides = [1, 1]} : vector<8x128xf32> to vector<1x128xf32>
      %569 = vector.extract_strided_slice %453 {offsets = [6, 0], sizes = [1, 128], strides = [1, 1]} : vector<8x128xf32> to vector<1x128xf32>
      %570 = vector.extract_strided_slice %452 {offsets = [6, 0], sizes = [1, 16], strides = [1, 1]} : vector<8x32xf32> to vector<1x16xf32>
      %571 = vector.extract_strided_slice %452 {offsets = [6, 16], sizes = [1, 16], strides = [1, 1]} : vector<8x32xf32> to vector<1x16xf32>
      %572 = vector.shape_cast %568 : vector<1x128xf32> to vector<1x1x128xf32>
      %573 = vector.broadcast %572 : vector<1x1x128xf32> to vector<1x16x128xf32>
      %574 = arith.mulf %573, %67 : vector<1x16x128xf32>
      %575 = math.exp %574 : vector<1x16x128xf32>
      %576 = vector.shape_cast %569 : vector<1x128xf32> to vector<1x1x128xf32>
      %577 = vector.shape_cast %570 : vector<1x16xf32> to vector<1x16x1xf32>
      %578 = vector.broadcast %576 : vector<1x1x128xf32> to vector<1x16x128xf32>
      %579 = vector.broadcast %577 : vector<1x16x1xf32> to vector<1x16x128xf32>
      %580 = arith.mulf %578, %579 : vector<1x16x128xf32>
      %581 = arith.mulf %575, %563 : vector<1x16x128xf32>
      %582 = arith.addf %581, %580 : vector<1x16x128xf32>
      %583 = vector.shape_cast %571 : vector<1x16xf32> to vector<1x16x1xf32>
      %584 = vector.broadcast %583 : vector<1x16x1xf32> to vector<1x16x128xf32>
      %585 = arith.mulf %584, %582 : vector<1x16x128xf32>
      %cst_357 = arith.constant dense<0.000000e+00> : vector<1x128xf32>
      %586 = vector.multi_reduction <add>, %585, %cst_357 [1] : vector<1x16x128xf32> to vector<1x128xf32>
      %587 = vector.extract_strided_slice %448 {offsets = [7, 0], sizes = [1, 128], strides = [1, 1]} : vector<8x128xf32> to vector<1x128xf32>
      %588 = vector.extract_strided_slice %453 {offsets = [7, 0], sizes = [1, 128], strides = [1, 1]} : vector<8x128xf32> to vector<1x128xf32>
      %589 = vector.extract_strided_slice %452 {offsets = [7, 0], sizes = [1, 16], strides = [1, 1]} : vector<8x32xf32> to vector<1x16xf32>
      %590 = vector.extract_strided_slice %452 {offsets = [7, 16], sizes = [1, 16], strides = [1, 1]} : vector<8x32xf32> to vector<1x16xf32>
      %591 = vector.shape_cast %587 : vector<1x128xf32> to vector<1x1x128xf32>
      %592 = vector.broadcast %591 : vector<1x1x128xf32> to vector<1x16x128xf32>
      %593 = arith.mulf %592, %67 : vector<1x16x128xf32>
      %594 = math.exp %593 : vector<1x16x128xf32>
      %595 = vector.shape_cast %588 : vector<1x128xf32> to vector<1x1x128xf32>
      %596 = vector.shape_cast %589 : vector<1x16xf32> to vector<1x16x1xf32>
      %597 = vector.broadcast %595 : vector<1x1x128xf32> to vector<1x16x128xf32>
      %598 = vector.broadcast %596 : vector<1x16x1xf32> to vector<1x16x128xf32>
      %599 = arith.mulf %597, %598 : vector<1x16x128xf32>
      %600 = arith.mulf %594, %582 : vector<1x16x128xf32>
      %601 = arith.addf %600, %599 : vector<1x16x128xf32>
      %602 = vector.shape_cast %590 : vector<1x16xf32> to vector<1x16x1xf32>
      %603 = vector.broadcast %602 : vector<1x16x1xf32> to vector<1x16x128xf32>
      %604 = arith.mulf %603, %601 : vector<1x16x128xf32>
      %cst_358 = arith.constant dense<0.000000e+00> : vector<1x128xf32>
      %605 = vector.multi_reduction <add>, %604, %cst_358 [1] : vector<1x16x128xf32> to vector<1x128xf32>
      %606 = tpu.concatenate %472, %491, %510, %529, %548, %567, %586, %605 in 0 : vector<1x128xf32>, vector<1x128xf32>, vector<1x128xf32>, vector<1x128xf32>, vector<1x128xf32>, vector<1x128xf32>, vector<1x128xf32>, vector<1x128xf32> -> vector<8x128xf32>
      %607 = vector.broadcast %69 : vector<1x128xf32> to vector<8x128xf32>
      %608 = arith.mulf %450, %607 : vector<8x128xf32>
      %609 = arith.addf %606, %608 : vector<8x128xf32>
      %610 = arith.index_cast %446 : i32 to index
      %c0_359 = arith.constant 0 : index
      %611 = vector.load %arg14[%610, %c0_359] : memref<16x128xf32, #tpu.memory_space<vmem>>, vector<8x128xf32>
      tpu.vector_store %arg14[%610, %c0_359], %609 {strides = array<i32>} : memref<16x128xf32, #tpu.memory_space<vmem>>, vector<8x128xf32>,
      scf.yield %601 : vector<1x16x128xf32>
    }
    %c2_i32_50 = arith.constant 2 : i32
    %c1_51 = arith.constant 1 : index
    %c0_52 = arith.constant 0 : index
    %c0_53 = arith.constant 0 : index
    %73 = vector.load %arg2[%c1_51, %c0_52, %c0_53] : memref<6x4x128xf32, #tpu.memory_space<vmem>>, vector<1x4x128xf32>
    %74 = vector.shape_cast %73 : vector<1x4x128xf32> to vector<4x128xf32>
    %cst_54 = arith.constant 0.000000e+00 : f32
    %75 = vector.broadcast %cst_54 : f32 to vector<16x128xf32>
    %76 = vector.extract_strided_slice %74 {offsets = [3, 0], sizes = [1, 128], strides = [1, 1]} : vector<4x128xf32> to vector<1x128xf32>
    %c3_55 = arith.constant 3 : index
    %c0_56 = arith.constant 0 : index
    %77 = vector.load %arg10[%c3_55, %c0_56] : memref<22x128xf32, #tpu.memory_space<vmem>>, vector<16x128xf32>
    %78 = vector.broadcast %76 : vector<1x128xf32> to vector<16x128xf32>
    %79 = arith.mulf %78, %77 : vector<16x128xf32>
    %80 = arith.addf %75, %79 : vector<16x128xf32>
    %81 = vector.extract_strided_slice %74 {offsets = [2, 0], sizes = [1, 128], strides = [1, 1]} : vector<4x128xf32> to vector<1x128xf32>
    %c4 = arith.constant 4 : index
    %c0_57 = arith.constant 0 : index
    %82 = vector.load %arg10[%c4, %c0_57] : memref<22x128xf32, #tpu.memory_space<vmem>>, vector<16x128xf32>
    %83 = vector.broadcast %81 : vector<1x128xf32> to vector<16x128xf32>
    %84 = arith.mulf %83, %82 : vector<16x128xf32>
    %85 = arith.addf %80, %84 : vector<16x128xf32>
    %86 = vector.extract_strided_slice %74 {offsets = [1, 0], sizes = [1, 128], strides = [1, 1]} : vector<4x128xf32> to vector<1x128xf32>
    %c5 = arith.constant 5 : index
    %c0_58 = arith.constant 0 : index
    %87 = vector.load %arg10[%c5, %c0_58] : memref<22x128xf32, #tpu.memory_space<vmem>>, vector<16x128xf32>
    %88 = vector.broadcast %86 : vector<1x128xf32> to vector<16x128xf32>
    %89 = arith.mulf %88, %87 : vector<16x128xf32>
    %90 = arith.addf %85, %89 : vector<16x128xf32>
    %91 = vector.extract_strided_slice %74 {offsets = [0, 0], sizes = [1, 128], strides = [1, 1]} : vector<4x128xf32> to vector<1x128xf32>
    %c6 = arith.constant 6 : index
    %c0_59 = arith.constant 0 : index
    %92 = vector.load %arg10[%c6, %c0_59] : memref<22x128xf32, #tpu.memory_space<vmem>>, vector<16x128xf32>
    %93 = vector.broadcast %91 : vector<1x128xf32> to vector<16x128xf32>
    %94 = arith.mulf %93, %92 : vector<16x128xf32>
    %95 = arith.addf %90, %94 : vector<16x128xf32>
    %c1_60 = arith.constant 1 : index
    %c0_61 = arith.constant 0 : index
    %c0_62 = arith.constant 0 : index
    %96 = vector.load %arg3[%c1_60, %c0_61, %c0_62] : memref<6x1x128xf32, #tpu.memory_space<vmem>>, vector<1x1x128xf32>
    %97 = vector.shape_cast %96 : vector<1x1x128xf32> to vector<1x128xf32>
    %98 = vector.broadcast %97 : vector<1x128xf32> to vector<16x128xf32>
    %99 = arith.addf %95, %98 : vector<16x128xf32>
    %100 = arith.negf %99 : vector<16x128xf32>
    %101 = math.exp %100 : vector<16x128xf32>
    %cst_63 = arith.constant 1.000000e+00 : f32
    %102 = vector.broadcast %cst_63 : f32 to vector<16x128xf32>
    %103 = arith.addf %102, %101 : vector<16x128xf32>
    %104 = arith.divf %102, %103 : vector<16x128xf32>
    %105 = arith.mulf %99, %104 : vector<16x128xf32>
    %c0_64 = arith.constant 0 : index
    %c0_65 = arith.constant 0 : index
    %106 = vector.load %arg11[%c0_64, %c0_65] : memref<16x128xf32, #tpu.memory_space<vmem>>, vector<16x128xf32>
    tpu.vector_store %arg11[%c0_64, %c0_65], %105 {strides = array<i32>} : memref<16x128xf32, #tpu.memory_space<vmem>>, vector<16x128xf32>,
    %107 = arith.truncf %105 : vector<16x128xf32> to vector<16x128xbf16>
    %c1_66 = arith.constant 1 : index
    %c0_67 = arith.constant 0 : index
    %c0_68 = arith.constant 0 : index
    %108 = vector.load %arg4[%c1_66, %c0_67, %c0_68] : memref<6x128x256xbf16, #tpu.memory_space<vmem>>, vector<1x128x256xbf16>
    %109 = vector.shape_cast %108 : vector<1x128x256xbf16> to vector<128x256xbf16>
    %cst_69 = arith.constant dense<0.000000e+00> : vector<16x256xf32>
    %110 = tpu.matmul %107, %109, %cst_69 {dimension_numbers = #tpu.dot_dimension_numbers<[1], [0], [0], [1], [0, 0, 1, 1], [], []>} : vector<16x128xbf16>, vector<128x256xbf16>, vector<16x256xf32> -> vector<16x256xf32>
    %111 = vector.extract_strided_slice %110 {offsets = [0, 0], sizes = [16, 128], strides = [1, 1]} : vector<16x256xf32> to vector<16x128xf32>
    %c1_70 = arith.constant 1 : index
    %c0_71 = arith.constant 0 : index
    %c0_72 = arith.constant 0 : index
    %112 = vector.load %arg5[%c1_70, %c0_71, %c0_72] : memref<6x1x128xf32, #tpu.memory_space<vmem>>, vector<1x1x128xf32>
    %113 = vector.shape_cast %112 : vector<1x1x128xf32> to vector<1x128xf32>
    %114 = vector.broadcast %113 : vector<1x128xf32> to vector<16x128xf32>
    %115 = arith.addf %111, %114 : vector<16x128xf32>
    %cst_73 = arith.constant 2.000000e+01 : f32
    %116 = vector.broadcast %cst_73 : f32 to vector<16x128xf32>
    %117 = arith.cmpf ogt, %115, %116 : vector<16x128xf32>
    %cst_74 = arith.constant 2.000000e+01 : f32
    %118 = vector.broadcast %cst_74 : f32 to vector<16x128xf32>
    %119 = arith.minimumf %115, %118 : vector<16x128xf32>
    %120 = math.exp %119 : vector<16x128xf32>
    %121 = math.log1p %120 : vector<16x128xf32>
    %122 = arith.select %117, %115, %121 : vector<16x128xi1>, vector<16x128xf32>
    %c0_75 = arith.constant 0 : index
    %c0_76 = arith.constant 0 : index
    %123 = vector.load %arg12[%c0_75, %c0_76] : memref<16x128xf32, #tpu.memory_space<vmem>>, vector<16x128xf32>
    tpu.vector_store %arg12[%c0_75, %c0_76], %122 {strides = array<i32>} : memref<16x128xf32, #tpu.memory_space<vmem>>, vector<16x128xf32>,
    %124 = vector.extract_strided_slice %110 {offsets = [0, 128], sizes = [16, 32], strides = [1, 1]} : vector<16x256xf32> to vector<16x32xf32>
    %c0_77 = arith.constant 0 : index
    %c0_78 = arith.constant 0 : index
    %125 = vector.load %arg13[%c0_77, %c0_78] : memref<16x32xf32, #tpu.memory_space<vmem>>, vector<16x32xf32>
    tpu.vector_store %arg13[%c0_77, %c0_78], %124 {strides = array<i32>} : memref<16x32xf32, #tpu.memory_space<vmem>>, vector<16x32xf32>,
    %c1_79 = arith.constant 1 : index
    %c0_80 = arith.constant 0 : index
    %c0_81 = arith.constant 0 : index
    %126 = vector.load %arg6[%c1_79, %c0_80, %c0_81] : memref<6x16x128xf32, #tpu.memory_space<vmem>>, vector<1x16x128xf32>
    %127 = vector.shape_cast %126 : vector<1x16x128xf32> to vector<16x128xf32>
    %128 = vector.shape_cast %127 : vector<16x128xf32> to vector<1x16x128xf32>
    %c1_82 = arith.constant 1 : index
    %c0_83 = arith.constant 0 : index
    %c0_84 = arith.constant 0 : index
    %129 = vector.load %arg7[%c1_82, %c0_83, %c0_84] : memref<6x1x128xf32, #tpu.memory_space<vmem>>, vector<1x1x128xf32>
    %130 = vector.shape_cast %129 : vector<1x1x128xf32> to vector<1x128xf32>
    %cst_85 = arith.constant 0.000000e+00 : f32
    %131 = vector.broadcast %cst_85 : f32 to vector<1x16x128xf32>
    %c0_i32_86 = arith.constant 0 : i32
    %c2_i32_87 = arith.constant 2 : i32
    %132 = arith.addi %c0_i32_86, %c2_i32_87 : i32
    %c1_i32_88 = arith.constant 1 : i32
    %133 = scf.for %arg16 = %c0_i32_86 to %132 step %c1_i32_88 iter_args(%arg17 = %131) -> (vector<1x16x128xf32>)  : i32 {
      %c1_i32_348 = arith.constant 1 : i32
      %445 = arith.subi %c1_i32_348, %arg16 : i32
      %c8_i32 = arith.constant 8 : i32
      %446 = arith.muli %445, %c8_i32 : i32
      %447 = tpu.assume_multiple %446, 8 : i32
      %448 = arith.index_cast %447 : i32 to index
      %c0_349 = arith.constant 0 : index
      %449 = vector.load %arg12[%448, %c0_349] : memref<16x128xf32, #tpu.memory_space<vmem>>, vector<8x128xf32>
      %450 = arith.index_cast %447 : i32 to index
      %c0_350 = arith.constant 0 : index
      %451 = vector.load %arg11[%450, %c0_350] : memref<16x128xf32, #tpu.memory_space<vmem>>, vector<8x128xf32>
      %452 = arith.index_cast %447 : i32 to index
      %c0_351 = arith.constant 0 : index
      %453 = vector.load %arg13[%452, %c0_351] : memref<16x32xf32, #tpu.memory_space<vmem>>, vector<8x32xf32>
      %454 = arith.mulf %449, %451 : vector<8x128xf32>
      %455 = vector.extract_strided_slice %449 {offsets = [7, 0], sizes = [1, 128], strides = [1, 1]} : vector<8x128xf32> to vector<1x128xf32>
      %456 = vector.extract_strided_slice %454 {offsets = [7, 0], sizes = [1, 128], strides = [1, 1]} : vector<8x128xf32> to vector<1x128xf32>
      %457 = vector.extract_strided_slice %453 {offsets = [7, 0], sizes = [1, 16], strides = [1, 1]} : vector<8x32xf32> to vector<1x16xf32>
      %458 = vector.extract_strided_slice %453 {offsets = [7, 16], sizes = [1, 16], strides = [1, 1]} : vector<8x32xf32> to vector<1x16xf32>
      %459 = vector.shape_cast %455 : vector<1x128xf32> to vector<1x1x128xf32>
      %460 = vector.broadcast %459 : vector<1x1x128xf32> to vector<1x16x128xf32>
      %461 = arith.mulf %460, %128 : vector<1x16x128xf32>
      %462 = math.exp %461 : vector<1x16x128xf32>
      %463 = vector.shape_cast %456 : vector<1x128xf32> to vector<1x1x128xf32>
      %464 = vector.shape_cast %457 : vector<1x16xf32> to vector<1x16x1xf32>
      %465 = vector.broadcast %463 : vector<1x1x128xf32> to vector<1x16x128xf32>
      %466 = vector.broadcast %464 : vector<1x16x1xf32> to vector<1x16x128xf32>
      %467 = arith.mulf %465, %466 : vector<1x16x128xf32>
      %468 = arith.mulf %462, %arg17 : vector<1x16x128xf32>
      %469 = arith.addf %468, %467 : vector<1x16x128xf32>
      %470 = vector.shape_cast %458 : vector<1x16xf32> to vector<1x16x1xf32>
      %471 = vector.broadcast %470 : vector<1x16x1xf32> to vector<1x16x128xf32>
      %472 = arith.mulf %471, %469 : vector<1x16x128xf32>
      %cst_352 = arith.constant dense<0.000000e+00> : vector<1x128xf32>
      %473 = vector.multi_reduction <add>, %472, %cst_352 [1] : vector<1x16x128xf32> to vector<1x128xf32>
      %474 = vector.extract_strided_slice %449 {offsets = [6, 0], sizes = [1, 128], strides = [1, 1]} : vector<8x128xf32> to vector<1x128xf32>
      %475 = vector.extract_strided_slice %454 {offsets = [6, 0], sizes = [1, 128], strides = [1, 1]} : vector<8x128xf32> to vector<1x128xf32>
      %476 = vector.extract_strided_slice %453 {offsets = [6, 0], sizes = [1, 16], strides = [1, 1]} : vector<8x32xf32> to vector<1x16xf32>
      %477 = vector.extract_strided_slice %453 {offsets = [6, 16], sizes = [1, 16], strides = [1, 1]} : vector<8x32xf32> to vector<1x16xf32>
      %478 = vector.shape_cast %474 : vector<1x128xf32> to vector<1x1x128xf32>
      %479 = vector.broadcast %478 : vector<1x1x128xf32> to vector<1x16x128xf32>
      %480 = arith.mulf %479, %128 : vector<1x16x128xf32>
      %481 = math.exp %480 : vector<1x16x128xf32>
      %482 = vector.shape_cast %475 : vector<1x128xf32> to vector<1x1x128xf32>
      %483 = vector.shape_cast %476 : vector<1x16xf32> to vector<1x16x1xf32>
      %484 = vector.broadcast %482 : vector<1x1x128xf32> to vector<1x16x128xf32>
      %485 = vector.broadcast %483 : vector<1x16x1xf32> to vector<1x16x128xf32>
      %486 = arith.mulf %484, %485 : vector<1x16x128xf32>
      %487 = arith.mulf %481, %469 : vector<1x16x128xf32>
      %488 = arith.addf %487, %486 : vector<1x16x128xf32>
      %489 = vector.shape_cast %477 : vector<1x16xf32> to vector<1x16x1xf32>
      %490 = vector.broadcast %489 : vector<1x16x1xf32> to vector<1x16x128xf32>
      %491 = arith.mulf %490, %488 : vector<1x16x128xf32>
      %cst_353 = arith.constant dense<0.000000e+00> : vector<1x128xf32>
      %492 = vector.multi_reduction <add>, %491, %cst_353 [1] : vector<1x16x128xf32> to vector<1x128xf32>
      %493 = vector.extract_strided_slice %449 {offsets = [5, 0], sizes = [1, 128], strides = [1, 1]} : vector<8x128xf32> to vector<1x128xf32>
      %494 = vector.extract_strided_slice %454 {offsets = [5, 0], sizes = [1, 128], strides = [1, 1]} : vector<8x128xf32> to vector<1x128xf32>
      %495 = vector.extract_strided_slice %453 {offsets = [5, 0], sizes = [1, 16], strides = [1, 1]} : vector<8x32xf32> to vector<1x16xf32>
      %496 = vector.extract_strided_slice %453 {offsets = [5, 16], sizes = [1, 16], strides = [1, 1]} : vector<8x32xf32> to vector<1x16xf32>
      %497 = vector.shape_cast %493 : vector<1x128xf32> to vector<1x1x128xf32>
      %498 = vector.broadcast %497 : vector<1x1x128xf32> to vector<1x16x128xf32>
      %499 = arith.mulf %498, %128 : vector<1x16x128xf32>
      %500 = math.exp %499 : vector<1x16x128xf32>
      %501 = vector.shape_cast %494 : vector<1x128xf32> to vector<1x1x128xf32>
      %502 = vector.shape_cast %495 : vector<1x16xf32> to vector<1x16x1xf32>
      %503 = vector.broadcast %501 : vector<1x1x128xf32> to vector<1x16x128xf32>
      %504 = vector.broadcast %502 : vector<1x16x1xf32> to vector<1x16x128xf32>
      %505 = arith.mulf %503, %504 : vector<1x16x128xf32>
      %506 = arith.mulf %500, %488 : vector<1x16x128xf32>
      %507 = arith.addf %506, %505 : vector<1x16x128xf32>
      %508 = vector.shape_cast %496 : vector<1x16xf32> to vector<1x16x1xf32>
      %509 = vector.broadcast %508 : vector<1x16x1xf32> to vector<1x16x128xf32>
      %510 = arith.mulf %509, %507 : vector<1x16x128xf32>
      %cst_354 = arith.constant dense<0.000000e+00> : vector<1x128xf32>
      %511 = vector.multi_reduction <add>, %510, %cst_354 [1] : vector<1x16x128xf32> to vector<1x128xf32>
      %512 = vector.extract_strided_slice %449 {offsets = [4, 0], sizes = [1, 128], strides = [1, 1]} : vector<8x128xf32> to vector<1x128xf32>
      %513 = vector.extract_strided_slice %454 {offsets = [4, 0], sizes = [1, 128], strides = [1, 1]} : vector<8x128xf32> to vector<1x128xf32>
      %514 = vector.extract_strided_slice %453 {offsets = [4, 0], sizes = [1, 16], strides = [1, 1]} : vector<8x32xf32> to vector<1x16xf32>
      %515 = vector.extract_strided_slice %453 {offsets = [4, 16], sizes = [1, 16], strides = [1, 1]} : vector<8x32xf32> to vector<1x16xf32>
      %516 = vector.shape_cast %512 : vector<1x128xf32> to vector<1x1x128xf32>
      %517 = vector.broadcast %516 : vector<1x1x128xf32> to vector<1x16x128xf32>
      %518 = arith.mulf %517, %128 : vector<1x16x128xf32>
      %519 = math.exp %518 : vector<1x16x128xf32>
      %520 = vector.shape_cast %513 : vector<1x128xf32> to vector<1x1x128xf32>
      %521 = vector.shape_cast %514 : vector<1x16xf32> to vector<1x16x1xf32>
      %522 = vector.broadcast %520 : vector<1x1x128xf32> to vector<1x16x128xf32>
      %523 = vector.broadcast %521 : vector<1x16x1xf32> to vector<1x16x128xf32>
      %524 = arith.mulf %522, %523 : vector<1x16x128xf32>
      %525 = arith.mulf %519, %507 : vector<1x16x128xf32>
      %526 = arith.addf %525, %524 : vector<1x16x128xf32>
      %527 = vector.shape_cast %515 : vector<1x16xf32> to vector<1x16x1xf32>
      %528 = vector.broadcast %527 : vector<1x16x1xf32> to vector<1x16x128xf32>
      %529 = arith.mulf %528, %526 : vector<1x16x128xf32>
      %cst_355 = arith.constant dense<0.000000e+00> : vector<1x128xf32>
      %530 = vector.multi_reduction <add>, %529, %cst_355 [1] : vector<1x16x128xf32> to vector<1x128xf32>
      %531 = vector.extract_strided_slice %449 {offsets = [3, 0], sizes = [1, 128], strides = [1, 1]} : vector<8x128xf32> to vector<1x128xf32>
      %532 = vector.extract_strided_slice %454 {offsets = [3, 0], sizes = [1, 128], strides = [1, 1]} : vector<8x128xf32> to vector<1x128xf32>
      %533 = vector.extract_strided_slice %453 {offsets = [3, 0], sizes = [1, 16], strides = [1, 1]} : vector<8x32xf32> to vector<1x16xf32>
      %534 = vector.extract_strided_slice %453 {offsets = [3, 16], sizes = [1, 16], strides = [1, 1]} : vector<8x32xf32> to vector<1x16xf32>
      %535 = vector.shape_cast %531 : vector<1x128xf32> to vector<1x1x128xf32>
      %536 = vector.broadcast %535 : vector<1x1x128xf32> to vector<1x16x128xf32>
      %537 = arith.mulf %536, %128 : vector<1x16x128xf32>
      %538 = math.exp %537 : vector<1x16x128xf32>
      %539 = vector.shape_cast %532 : vector<1x128xf32> to vector<1x1x128xf32>
      %540 = vector.shape_cast %533 : vector<1x16xf32> to vector<1x16x1xf32>
      %541 = vector.broadcast %539 : vector<1x1x128xf32> to vector<1x16x128xf32>
      %542 = vector.broadcast %540 : vector<1x16x1xf32> to vector<1x16x128xf32>
      %543 = arith.mulf %541, %542 : vector<1x16x128xf32>
      %544 = arith.mulf %538, %526 : vector<1x16x128xf32>
      %545 = arith.addf %544, %543 : vector<1x16x128xf32>
      %546 = vector.shape_cast %534 : vector<1x16xf32> to vector<1x16x1xf32>
      %547 = vector.broadcast %546 : vector<1x16x1xf32> to vector<1x16x128xf32>
      %548 = arith.mulf %547, %545 : vector<1x16x128xf32>
      %cst_356 = arith.constant dense<0.000000e+00> : vector<1x128xf32>
      %549 = vector.multi_reduction <add>, %548, %cst_356 [1] : vector<1x16x128xf32> to vector<1x128xf32>
      %550 = vector.extract_strided_slice %449 {offsets = [2, 0], sizes = [1, 128], strides = [1, 1]} : vector<8x128xf32> to vector<1x128xf32>
      %551 = vector.extract_strided_slice %454 {offsets = [2, 0], sizes = [1, 128], strides = [1, 1]} : vector<8x128xf32> to vector<1x128xf32>
      %552 = vector.extract_strided_slice %453 {offsets = [2, 0], sizes = [1, 16], strides = [1, 1]} : vector<8x32xf32> to vector<1x16xf32>
      %553 = vector.extract_strided_slice %453 {offsets = [2, 16], sizes = [1, 16], strides = [1, 1]} : vector<8x32xf32> to vector<1x16xf32>
      %554 = vector.shape_cast %550 : vector<1x128xf32> to vector<1x1x128xf32>
      %555 = vector.broadcast %554 : vector<1x1x128xf32> to vector<1x16x128xf32>
      %556 = arith.mulf %555, %128 : vector<1x16x128xf32>
      %557 = math.exp %556 : vector<1x16x128xf32>
      %558 = vector.shape_cast %551 : vector<1x128xf32> to vector<1x1x128xf32>
      %559 = vector.shape_cast %552 : vector<1x16xf32> to vector<1x16x1xf32>
      %560 = vector.broadcast %558 : vector<1x1x128xf32> to vector<1x16x128xf32>
      %561 = vector.broadcast %559 : vector<1x16x1xf32> to vector<1x16x128xf32>
      %562 = arith.mulf %560, %561 : vector<1x16x128xf32>
      %563 = arith.mulf %557, %545 : vector<1x16x128xf32>
      %564 = arith.addf %563, %562 : vector<1x16x128xf32>
      %565 = vector.shape_cast %553 : vector<1x16xf32> to vector<1x16x1xf32>
      %566 = vector.broadcast %565 : vector<1x16x1xf32> to vector<1x16x128xf32>
      %567 = arith.mulf %566, %564 : vector<1x16x128xf32>
      %cst_357 = arith.constant dense<0.000000e+00> : vector<1x128xf32>
      %568 = vector.multi_reduction <add>, %567, %cst_357 [1] : vector<1x16x128xf32> to vector<1x128xf32>
      %569 = vector.extract_strided_slice %449 {offsets = [1, 0], sizes = [1, 128], strides = [1, 1]} : vector<8x128xf32> to vector<1x128xf32>
      %570 = vector.extract_strided_slice %454 {offsets = [1, 0], sizes = [1, 128], strides = [1, 1]} : vector<8x128xf32> to vector<1x128xf32>
      %571 = vector.extract_strided_slice %453 {offsets = [1, 0], sizes = [1, 16], strides = [1, 1]} : vector<8x32xf32> to vector<1x16xf32>
      %572 = vector.extract_strided_slice %453 {offsets = [1, 16], sizes = [1, 16], strides = [1, 1]} : vector<8x32xf32> to vector<1x16xf32>
      %573 = vector.shape_cast %569 : vector<1x128xf32> to vector<1x1x128xf32>
      %574 = vector.broadcast %573 : vector<1x1x128xf32> to vector<1x16x128xf32>
      %575 = arith.mulf %574, %128 : vector<1x16x128xf32>
      %576 = math.exp %575 : vector<1x16x128xf32>
      %577 = vector.shape_cast %570 : vector<1x128xf32> to vector<1x1x128xf32>
      %578 = vector.shape_cast %571 : vector<1x16xf32> to vector<1x16x1xf32>
      %579 = vector.broadcast %577 : vector<1x1x128xf32> to vector<1x16x128xf32>
      %580 = vector.broadcast %578 : vector<1x16x1xf32> to vector<1x16x128xf32>
      %581 = arith.mulf %579, %580 : vector<1x16x128xf32>
      %582 = arith.mulf %576, %564 : vector<1x16x128xf32>
      %583 = arith.addf %582, %581 : vector<1x16x128xf32>
      %584 = vector.shape_cast %572 : vector<1x16xf32> to vector<1x16x1xf32>
      %585 = vector.broadcast %584 : vector<1x16x1xf32> to vector<1x16x128xf32>
      %586 = arith.mulf %585, %583 : vector<1x16x128xf32>
      %cst_358 = arith.constant dense<0.000000e+00> : vector<1x128xf32>
      %587 = vector.multi_reduction <add>, %586, %cst_358 [1] : vector<1x16x128xf32> to vector<1x128xf32>
      %588 = vector.extract_strided_slice %449 {offsets = [0, 0], sizes = [1, 128], strides = [1, 1]} : vector<8x128xf32> to vector<1x128xf32>
      %589 = vector.extract_strided_slice %454 {offsets = [0, 0], sizes = [1, 128], strides = [1, 1]} : vector<8x128xf32> to vector<1x128xf32>
      %590 = vector.extract_strided_slice %453 {offsets = [0, 0], sizes = [1, 16], strides = [1, 1]} : vector<8x32xf32> to vector<1x16xf32>
      %591 = vector.extract_strided_slice %453 {offsets = [0, 16], sizes = [1, 16], strides = [1, 1]} : vector<8x32xf32> to vector<1x16xf32>
      %592 = vector.shape_cast %588 : vector<1x128xf32> to vector<1x1x128xf32>
      %593 = vector.broadcast %592 : vector<1x1x128xf32> to vector<1x16x128xf32>
      %594 = arith.mulf %593, %128 : vector<1x16x128xf32>
      %595 = math.exp %594 : vector<1x16x128xf32>
      %596 = vector.shape_cast %589 : vector<1x128xf32> to vector<1x1x128xf32>
      %597 = vector.shape_cast %590 : vector<1x16xf32> to vector<1x16x1xf32>
      %598 = vector.broadcast %596 : vector<1x1x128xf32> to vector<1x16x128xf32>
      %599 = vector.broadcast %597 : vector<1x16x1xf32> to vector<1x16x128xf32>
      %600 = arith.mulf %598, %599 : vector<1x16x128xf32>
      %601 = arith.mulf %595, %583 : vector<1x16x128xf32>
      %602 = arith.addf %601, %600 : vector<1x16x128xf32>
      %603 = vector.shape_cast %591 : vector<1x16xf32> to vector<1x16x1xf32>
      %604 = vector.broadcast %603 : vector<1x16x1xf32> to vector<1x16x128xf32>
      %605 = arith.mulf %604, %602 : vector<1x16x128xf32>
      %cst_359 = arith.constant dense<0.000000e+00> : vector<1x128xf32>
      %606 = vector.multi_reduction <add>, %605, %cst_359 [1] : vector<1x16x128xf32> to vector<1x128xf32>
      %607 = tpu.concatenate %606, %587, %568, %549, %530, %511, %492, %473 in 0 : vector<1x128xf32>, vector<1x128xf32>, vector<1x128xf32>, vector<1x128xf32>, vector<1x128xf32>, vector<1x128xf32>, vector<1x128xf32>, vector<1x128xf32> -> vector<8x128xf32>
      %608 = vector.broadcast %130 : vector<1x128xf32> to vector<8x128xf32>
      %609 = arith.mulf %451, %608 : vector<8x128xf32>
      %610 = arith.addf %607, %609 : vector<8x128xf32>
      %611 = arith.index_cast %447 : i32 to index
      %c0_360 = arith.constant 0 : index
      %612 = vector.load %arg14[%611, %c0_360] : memref<16x128xf32, #tpu.memory_space<vmem>>, vector<8x128xf32>
      %613 = arith.addf %612, %610 : vector<8x128xf32>
      %614 = arith.index_cast %447 : i32 to index
      %c0_361 = arith.constant 0 : index
      %615 = vector.load %arg14[%614, %c0_361] : memref<16x128xf32, #tpu.memory_space<vmem>>, vector<8x128xf32>
      tpu.vector_store %arg14[%614, %c0_361], %613 {strides = array<i32>} : memref<16x128xf32, #tpu.memory_space<vmem>>, vector<8x128xf32>,
      scf.yield %602 : vector<1x16x128xf32>
    }
    %c2_i32_89 = arith.constant 2 : i32
    %c0_90 = arith.constant 0 : index
    %c0_91 = arith.constant 0 : index
    %134 = vector.load %arg15[%c0_90, %c0_91] : memref<16x128xf32, #tpu.memory_space<vmem>>, vector<16x128xf32>
    %c0_92 = arith.constant 0 : index
    %c0_93 = arith.constant 0 : index
    %135 = vector.load %arg14[%c0_92, %c0_93] : memref<16x128xf32, #tpu.memory_space<vmem>>, vector<16x128xf32>
    %136 = arith.addf %134, %135 : vector<16x128xf32>
    %c0_94 = arith.constant 0 : index
    %c0_95 = arith.constant 0 : index
    %137 = vector.load %arg15[%c0_94, %c0_95] : memref<16x128xf32, #tpu.memory_space<vmem>>, vector<16x128xf32>
    tpu.vector_store %arg15[%c0_94, %c0_95], %136 {strides = array<i32>} : memref<16x128xf32, #tpu.memory_space<vmem>>, vector<16x128xf32>,
    %c0_96 = arith.constant 0 : index
    %c0_97 = arith.constant 0 : index
    %138 = tpu.strided_load %arg9[%c0_96, %c0_97] {strides = array<i32: 4, 1>} : memref<16x128xf32, #tpu.memory_space<vmem>>, vector<4x128xf32>
    %c3_98 = arith.constant 3 : index
    %c0_99 = arith.constant 0 : index
    %139 = vector.load %arg10[%c3_98, %c0_99] : memref<22x128xf32, #tpu.memory_space<vmem>>, vector<4x128xf32>
    tpu.vector_store %arg10[%c3_98, %c0_99], %138 {strides = array<i32>} : memref<22x128xf32, #tpu.memory_space<vmem>>, vector<4x128xf32>,
    %c1_100 = arith.constant 1 : index
    %c0_101 = arith.constant 0 : index
    %140 = tpu.strided_load %arg9[%c1_100, %c0_101] {strides = array<i32: 4, 1>} : memref<16x128xf32, #tpu.memory_space<vmem>>, vector<4x128xf32>
    %c7 = arith.constant 7 : index
    %c0_102 = arith.constant 0 : index
    %141 = vector.load %arg10[%c7, %c0_102] : memref<22x128xf32, #tpu.memory_space<vmem>>, vector<4x128xf32>
    tpu.vector_store %arg10[%c7, %c0_102], %140 {strides = array<i32>} : memref<22x128xf32, #tpu.memory_space<vmem>>, vector<4x128xf32>,
    %c2_103 = arith.constant 2 : index
    %c0_104 = arith.constant 0 : index
    %142 = tpu.strided_load %arg9[%c2_103, %c0_104] {strides = array<i32: 4, 1>} : memref<16x128xf32, #tpu.memory_space<vmem>>, vector<4x128xf32>
    %c11 = arith.constant 11 : index
    %c0_105 = arith.constant 0 : index
    %143 = vector.load %arg10[%c11, %c0_105] : memref<22x128xf32, #tpu.memory_space<vmem>>, vector<4x128xf32>
    tpu.vector_store %arg10[%c11, %c0_105], %142 {strides = array<i32>} : memref<22x128xf32, #tpu.memory_space<vmem>>, vector<4x128xf32>,
    %c3_106 = arith.constant 3 : index
    %c0_107 = arith.constant 0 : index
    %144 = tpu.strided_load %arg9[%c3_106, %c0_107] {strides = array<i32: 4, 1>} : memref<16x128xf32, #tpu.memory_space<vmem>>, vector<4x128xf32>
    %c15 = arith.constant 15 : index
    %c0_108 = arith.constant 0 : index
    %145 = vector.load %arg10[%c15, %c0_108] : memref<22x128xf32, #tpu.memory_space<vmem>>, vector<4x128xf32>
    tpu.vector_store %arg10[%c15, %c0_108], %144 {strides = array<i32>} : memref<22x128xf32, #tpu.memory_space<vmem>>, vector<4x128xf32>,
    %c2_109 = arith.constant 2 : index
    %c0_110 = arith.constant 0 : index
    %c0_111 = arith.constant 0 : index
    %146 = vector.load %arg2[%c2_109, %c0_110, %c0_111] : memref<6x4x128xf32, #tpu.memory_space<vmem>>, vector<1x4x128xf32>
    %147 = vector.shape_cast %146 : vector<1x4x128xf32> to vector<4x128xf32>
    %cst_112 = arith.constant 0.000000e+00 : f32
    %148 = vector.broadcast %cst_112 : f32 to vector<16x128xf32>
    %149 = vector.extract_strided_slice %147 {offsets = [0, 0], sizes = [1, 128], strides = [1, 1]} : vector<4x128xf32> to vector<1x128xf32>
    %c0_113 = arith.constant 0 : index
    %c0_114 = arith.constant 0 : index
    %150 = vector.load %arg10[%c0_113, %c0_114] : memref<22x128xf32, #tpu.memory_space<vmem>>, vector<16x128xf32>
    %151 = vector.broadcast %149 : vector<1x128xf32> to vector<16x128xf32>
    %152 = arith.mulf %151, %150 : vector<16x128xf32>
    %153 = arith.addf %148, %152 : vector<16x128xf32>
    %154 = vector.extract_strided_slice %147 {offsets = [1, 0], sizes = [1, 128], strides = [1, 1]} : vector<4x128xf32> to vector<1x128xf32>
    %c1_115 = arith.constant 1 : index
    %c0_116 = arith.constant 0 : index
    %155 = vector.load %arg10[%c1_115, %c0_116] : memref<22x128xf32, #tpu.memory_space<vmem>>, vector<16x128xf32>
    %156 = vector.broadcast %154 : vector<1x128xf32> to vector<16x128xf32>
    %157 = arith.mulf %156, %155 : vector<16x128xf32>
    %158 = arith.addf %153, %157 : vector<16x128xf32>
    %159 = vector.extract_strided_slice %147 {offsets = [2, 0], sizes = [1, 128], strides = [1, 1]} : vector<4x128xf32> to vector<1x128xf32>
    %c2_117 = arith.constant 2 : index
    %c0_118 = arith.constant 0 : index
    %160 = vector.load %arg10[%c2_117, %c0_118] : memref<22x128xf32, #tpu.memory_space<vmem>>, vector<16x128xf32>
    %161 = vector.broadcast %159 : vector<1x128xf32> to vector<16x128xf32>
    %162 = arith.mulf %161, %160 : vector<16x128xf32>
    %163 = arith.addf %158, %162 : vector<16x128xf32>
    %164 = vector.extract_strided_slice %147 {offsets = [3, 0], sizes = [1, 128], strides = [1, 1]} : vector<4x128xf32> to vector<1x128xf32>
    %c3_119 = arith.constant 3 : index
    %c0_120 = arith.constant 0 : index
    %165 = vector.load %arg10[%c3_119, %c0_120] : memref<22x128xf32, #tpu.memory_space<vmem>>, vector<16x128xf32>
    %166 = vector.broadcast %164 : vector<1x128xf32> to vector<16x128xf32>
    %167 = arith.mulf %166, %165 : vector<16x128xf32>
    %168 = arith.addf %163, %167 : vector<16x128xf32>
    %c2_121 = arith.constant 2 : index
    %c0_122 = arith.constant 0 : index
    %c0_123 = arith.constant 0 : index
    %169 = vector.load %arg3[%c2_121, %c0_122, %c0_123] : memref<6x1x128xf32, #tpu.memory_space<vmem>>, vector<1x1x128xf32>
    %170 = vector.shape_cast %169 : vector<1x1x128xf32> to vector<1x128xf32>
    %171 = vector.broadcast %170 : vector<1x128xf32> to vector<16x128xf32>
    %172 = arith.addf %168, %171 : vector<16x128xf32>
    %173 = arith.negf %172 : vector<16x128xf32>
    %174 = math.exp %173 : vector<16x128xf32>
    %cst_124 = arith.constant 1.000000e+00 : f32
    %175 = vector.broadcast %cst_124 : f32 to vector<16x128xf32>
    %176 = arith.addf %175, %174 : vector<16x128xf32>
    %177 = arith.divf %175, %176 : vector<16x128xf32>
    %178 = arith.mulf %172, %177 : vector<16x128xf32>
    %c0_125 = arith.constant 0 : index
    %c0_126 = arith.constant 0 : index
    %179 = vector.load %arg11[%c0_125, %c0_126] : memref<16x128xf32, #tpu.memory_space<vmem>>, vector<16x128xf32>
    tpu.vector_store %arg11[%c0_125, %c0_126], %178 {strides = array<i32>} : memref<16x128xf32, #tpu.memory_space<vmem>>, vector<16x128xf32>,
    %180 = arith.truncf %178 : vector<16x128xf32> to vector<16x128xbf16>
    %c2_127 = arith.constant 2 : index
    %c0_128 = arith.constant 0 : index
    %c0_129 = arith.constant 0 : index
    %181 = vector.load %arg4[%c2_127, %c0_128, %c0_129] : memref<6x128x256xbf16, #tpu.memory_space<vmem>>, vector<1x128x256xbf16>
    %182 = vector.shape_cast %181 : vector<1x128x256xbf16> to vector<128x256xbf16>
    %cst_130 = arith.constant dense<0.000000e+00> : vector<16x256xf32>
    %183 = tpu.matmul %180, %182, %cst_130 {dimension_numbers = #tpu.dot_dimension_numbers<[1], [0], [0], [1], [0, 0, 1, 1], [], []>} : vector<16x128xbf16>, vector<128x256xbf16>, vector<16x256xf32> -> vector<16x256xf32>
    %184 = vector.extract_strided_slice %183 {offsets = [0, 0], sizes = [16, 128], strides = [1, 1]} : vector<16x256xf32> to vector<16x128xf32>
    %c2_131 = arith.constant 2 : index
    %c0_132 = arith.constant 0 : index
    %c0_133 = arith.constant 0 : index
    %185 = vector.load %arg5[%c2_131, %c0_132, %c0_133] : memref<6x1x128xf32, #tpu.memory_space<vmem>>, vector<1x1x128xf32>
    %186 = vector.shape_cast %185 : vector<1x1x128xf32> to vector<1x128xf32>
    %187 = vector.broadcast %186 : vector<1x128xf32> to vector<16x128xf32>
    %188 = arith.addf %184, %187 : vector<16x128xf32>
    %cst_134 = arith.constant 2.000000e+01 : f32
    %189 = vector.broadcast %cst_134 : f32 to vector<16x128xf32>
    %190 = arith.cmpf ogt, %188, %189 : vector<16x128xf32>
    %cst_135 = arith.constant 2.000000e+01 : f32
    %191 = vector.broadcast %cst_135 : f32 to vector<16x128xf32>
    %192 = arith.minimumf %188, %191 : vector<16x128xf32>
    %193 = math.exp %192 : vector<16x128xf32>
    %194 = math.log1p %193 : vector<16x128xf32>
    %195 = arith.select %190, %188, %194 : vector<16x128xi1>, vector<16x128xf32>
    %c0_136 = arith.constant 0 : index
    %c0_137 = arith.constant 0 : index
    %196 = vector.load %arg12[%c0_136, %c0_137] : memref<16x128xf32, #tpu.memory_space<vmem>>, vector<16x128xf32>
    tpu.vector_store %arg12[%c0_136, %c0_137], %195 {strides = array<i32>} : memref<16x128xf32, #tpu.memory_space<vmem>>, vector<16x128xf32>,
    %197 = vector.extract_strided_slice %183 {offsets = [0, 128], sizes = [16, 32], strides = [1, 1]} : vector<16x256xf32> to vector<16x32xf32>
    %c0_138 = arith.constant 0 : index
    %c0_139 = arith.constant 0 : index
    %198 = vector.load %arg13[%c0_138, %c0_139] : memref<16x32xf32, #tpu.memory_space<vmem>>, vector<16x32xf32>
    tpu.vector_store %arg13[%c0_138, %c0_139], %197 {strides = array<i32>} : memref<16x32xf32, #tpu.memory_space<vmem>>, vector<16x32xf32>,
    %c2_140 = arith.constant 2 : index
    %c0_141 = arith.constant 0 : index
    %c0_142 = arith.constant 0 : index
    %199 = vector.load %arg6[%c2_140, %c0_141, %c0_142] : memref<6x16x128xf32, #tpu.memory_space<vmem>>, vector<1x16x128xf32>
    %200 = vector.shape_cast %199 : vector<1x16x128xf32> to vector<16x128xf32>
    %201 = vector.shape_cast %200 : vector<16x128xf32> to vector<1x16x128xf32>
    %c2_143 = arith.constant 2 : index
    %c0_144 = arith.constant 0 : index
    %c0_145 = arith.constant 0 : index
    %202 = vector.load %arg7[%c2_143, %c0_144, %c0_145] : memref<6x1x128xf32, #tpu.memory_space<vmem>>, vector<1x1x128xf32>
    %203 = vector.shape_cast %202 : vector<1x1x128xf32> to vector<1x128xf32>
    %cst_146 = arith.constant 0.000000e+00 : f32
    %204 = vector.broadcast %cst_146 : f32 to vector<1x16x128xf32>
    %c0_i32_147 = arith.constant 0 : i32
    %c2_i32_148 = arith.constant 2 : i32
    %205 = arith.addi %c0_i32_147, %c2_i32_148 : i32
    %c1_i32_149 = arith.constant 1 : i32
    %206 = scf.for %arg16 = %c0_i32_147 to %205 step %c1_i32_149 iter_args(%arg17 = %204) -> (vector<1x16x128xf32>)  : i32 {
      %c8_i32 = arith.constant 8 : i32
      %445 = arith.muli %arg16, %c8_i32 : i32
      %446 = tpu.assume_multiple %445, 8 : i32
      %447 = arith.index_cast %446 : i32 to index
      %c0_348 = arith.constant 0 : index
      %448 = vector.load %arg12[%447, %c0_348] : memref<16x128xf32, #tpu.memory_space<vmem>>, vector<8x128xf32>
      %449 = arith.index_cast %446 : i32 to index
      %c0_349 = arith.constant 0 : index
      %450 = vector.load %arg11[%449, %c0_349] : memref<16x128xf32, #tpu.memory_space<vmem>>, vector<8x128xf32>
      %451 = arith.index_cast %446 : i32 to index
      %c0_350 = arith.constant 0 : index
      %452 = vector.load %arg13[%451, %c0_350] : memref<16x32xf32, #tpu.memory_space<vmem>>, vector<8x32xf32>
      %453 = arith.mulf %448, %450 : vector<8x128xf32>
      %454 = vector.extract_strided_slice %448 {offsets = [0, 0], sizes = [1, 128], strides = [1, 1]} : vector<8x128xf32> to vector<1x128xf32>
      %455 = vector.extract_strided_slice %453 {offsets = [0, 0], sizes = [1, 128], strides = [1, 1]} : vector<8x128xf32> to vector<1x128xf32>
      %456 = vector.extract_strided_slice %452 {offsets = [0, 0], sizes = [1, 16], strides = [1, 1]} : vector<8x32xf32> to vector<1x16xf32>
      %457 = vector.extract_strided_slice %452 {offsets = [0, 16], sizes = [1, 16], strides = [1, 1]} : vector<8x32xf32> to vector<1x16xf32>
      %458 = vector.shape_cast %454 : vector<1x128xf32> to vector<1x1x128xf32>
      %459 = vector.broadcast %458 : vector<1x1x128xf32> to vector<1x16x128xf32>
      %460 = arith.mulf %459, %201 : vector<1x16x128xf32>
      %461 = math.exp %460 : vector<1x16x128xf32>
      %462 = vector.shape_cast %455 : vector<1x128xf32> to vector<1x1x128xf32>
      %463 = vector.shape_cast %456 : vector<1x16xf32> to vector<1x16x1xf32>
      %464 = vector.broadcast %462 : vector<1x1x128xf32> to vector<1x16x128xf32>
      %465 = vector.broadcast %463 : vector<1x16x1xf32> to vector<1x16x128xf32>
      %466 = arith.mulf %464, %465 : vector<1x16x128xf32>
      %467 = arith.mulf %461, %arg17 : vector<1x16x128xf32>
      %468 = arith.addf %467, %466 : vector<1x16x128xf32>
      %469 = vector.shape_cast %457 : vector<1x16xf32> to vector<1x16x1xf32>
      %470 = vector.broadcast %469 : vector<1x16x1xf32> to vector<1x16x128xf32>
      %471 = arith.mulf %470, %468 : vector<1x16x128xf32>
      %cst_351 = arith.constant dense<0.000000e+00> : vector<1x128xf32>
      %472 = vector.multi_reduction <add>, %471, %cst_351 [1] : vector<1x16x128xf32> to vector<1x128xf32>
      %473 = vector.extract_strided_slice %448 {offsets = [1, 0], sizes = [1, 128], strides = [1, 1]} : vector<8x128xf32> to vector<1x128xf32>
      %474 = vector.extract_strided_slice %453 {offsets = [1, 0], sizes = [1, 128], strides = [1, 1]} : vector<8x128xf32> to vector<1x128xf32>
      %475 = vector.extract_strided_slice %452 {offsets = [1, 0], sizes = [1, 16], strides = [1, 1]} : vector<8x32xf32> to vector<1x16xf32>
      %476 = vector.extract_strided_slice %452 {offsets = [1, 16], sizes = [1, 16], strides = [1, 1]} : vector<8x32xf32> to vector<1x16xf32>
      %477 = vector.shape_cast %473 : vector<1x128xf32> to vector<1x1x128xf32>
      %478 = vector.broadcast %477 : vector<1x1x128xf32> to vector<1x16x128xf32>
      %479 = arith.mulf %478, %201 : vector<1x16x128xf32>
      %480 = math.exp %479 : vector<1x16x128xf32>
      %481 = vector.shape_cast %474 : vector<1x128xf32> to vector<1x1x128xf32>
      %482 = vector.shape_cast %475 : vector<1x16xf32> to vector<1x16x1xf32>
      %483 = vector.broadcast %481 : vector<1x1x128xf32> to vector<1x16x128xf32>
      %484 = vector.broadcast %482 : vector<1x16x1xf32> to vector<1x16x128xf32>
      %485 = arith.mulf %483, %484 : vector<1x16x128xf32>
      %486 = arith.mulf %480, %468 : vector<1x16x128xf32>
      %487 = arith.addf %486, %485 : vector<1x16x128xf32>
      %488 = vector.shape_cast %476 : vector<1x16xf32> to vector<1x16x1xf32>
      %489 = vector.broadcast %488 : vector<1x16x1xf32> to vector<1x16x128xf32>
      %490 = arith.mulf %489, %487 : vector<1x16x128xf32>
      %cst_352 = arith.constant dense<0.000000e+00> : vector<1x128xf32>
      %491 = vector.multi_reduction <add>, %490, %cst_352 [1] : vector<1x16x128xf32> to vector<1x128xf32>
      %492 = vector.extract_strided_slice %448 {offsets = [2, 0], sizes = [1, 128], strides = [1, 1]} : vector<8x128xf32> to vector<1x128xf32>
      %493 = vector.extract_strided_slice %453 {offsets = [2, 0], sizes = [1, 128], strides = [1, 1]} : vector<8x128xf32> to vector<1x128xf32>
      %494 = vector.extract_strided_slice %452 {offsets = [2, 0], sizes = [1, 16], strides = [1, 1]} : vector<8x32xf32> to vector<1x16xf32>
      %495 = vector.extract_strided_slice %452 {offsets = [2, 16], sizes = [1, 16], strides = [1, 1]} : vector<8x32xf32> to vector<1x16xf32>
      %496 = vector.shape_cast %492 : vector<1x128xf32> to vector<1x1x128xf32>
      %497 = vector.broadcast %496 : vector<1x1x128xf32> to vector<1x16x128xf32>
      %498 = arith.mulf %497, %201 : vector<1x16x128xf32>
      %499 = math.exp %498 : vector<1x16x128xf32>
      %500 = vector.shape_cast %493 : vector<1x128xf32> to vector<1x1x128xf32>
      %501 = vector.shape_cast %494 : vector<1x16xf32> to vector<1x16x1xf32>
      %502 = vector.broadcast %500 : vector<1x1x128xf32> to vector<1x16x128xf32>
      %503 = vector.broadcast %501 : vector<1x16x1xf32> to vector<1x16x128xf32>
      %504 = arith.mulf %502, %503 : vector<1x16x128xf32>
      %505 = arith.mulf %499, %487 : vector<1x16x128xf32>
      %506 = arith.addf %505, %504 : vector<1x16x128xf32>
      %507 = vector.shape_cast %495 : vector<1x16xf32> to vector<1x16x1xf32>
      %508 = vector.broadcast %507 : vector<1x16x1xf32> to vector<1x16x128xf32>
      %509 = arith.mulf %508, %506 : vector<1x16x128xf32>
      %cst_353 = arith.constant dense<0.000000e+00> : vector<1x128xf32>
      %510 = vector.multi_reduction <add>, %509, %cst_353 [1] : vector<1x16x128xf32> to vector<1x128xf32>
      %511 = vector.extract_strided_slice %448 {offsets = [3, 0], sizes = [1, 128], strides = [1, 1]} : vector<8x128xf32> to vector<1x128xf32>
      %512 = vector.extract_strided_slice %453 {offsets = [3, 0], sizes = [1, 128], strides = [1, 1]} : vector<8x128xf32> to vector<1x128xf32>
      %513 = vector.extract_strided_slice %452 {offsets = [3, 0], sizes = [1, 16], strides = [1, 1]} : vector<8x32xf32> to vector<1x16xf32>
      %514 = vector.extract_strided_slice %452 {offsets = [3, 16], sizes = [1, 16], strides = [1, 1]} : vector<8x32xf32> to vector<1x16xf32>
      %515 = vector.shape_cast %511 : vector<1x128xf32> to vector<1x1x128xf32>
      %516 = vector.broadcast %515 : vector<1x1x128xf32> to vector<1x16x128xf32>
      %517 = arith.mulf %516, %201 : vector<1x16x128xf32>
      %518 = math.exp %517 : vector<1x16x128xf32>
      %519 = vector.shape_cast %512 : vector<1x128xf32> to vector<1x1x128xf32>
      %520 = vector.shape_cast %513 : vector<1x16xf32> to vector<1x16x1xf32>
      %521 = vector.broadcast %519 : vector<1x1x128xf32> to vector<1x16x128xf32>
      %522 = vector.broadcast %520 : vector<1x16x1xf32> to vector<1x16x128xf32>
      %523 = arith.mulf %521, %522 : vector<1x16x128xf32>
      %524 = arith.mulf %518, %506 : vector<1x16x128xf32>
      %525 = arith.addf %524, %523 : vector<1x16x128xf32>
      %526 = vector.shape_cast %514 : vector<1x16xf32> to vector<1x16x1xf32>
      %527 = vector.broadcast %526 : vector<1x16x1xf32> to vector<1x16x128xf32>
      %528 = arith.mulf %527, %525 : vector<1x16x128xf32>
      %cst_354 = arith.constant dense<0.000000e+00> : vector<1x128xf32>
      %529 = vector.multi_reduction <add>, %528, %cst_354 [1] : vector<1x16x128xf32> to vector<1x128xf32>
      %530 = vector.extract_strided_slice %448 {offsets = [4, 0], sizes = [1, 128], strides = [1, 1]} : vector<8x128xf32> to vector<1x128xf32>
      %531 = vector.extract_strided_slice %453 {offsets = [4, 0], sizes = [1, 128], strides = [1, 1]} : vector<8x128xf32> to vector<1x128xf32>
      %532 = vector.extract_strided_slice %452 {offsets = [4, 0], sizes = [1, 16], strides = [1, 1]} : vector<8x32xf32> to vector<1x16xf32>
      %533 = vector.extract_strided_slice %452 {offsets = [4, 16], sizes = [1, 16], strides = [1, 1]} : vector<8x32xf32> to vector<1x16xf32>
      %534 = vector.shape_cast %530 : vector<1x128xf32> to vector<1x1x128xf32>
      %535 = vector.broadcast %534 : vector<1x1x128xf32> to vector<1x16x128xf32>
      %536 = arith.mulf %535, %201 : vector<1x16x128xf32>
      %537 = math.exp %536 : vector<1x16x128xf32>
      %538 = vector.shape_cast %531 : vector<1x128xf32> to vector<1x1x128xf32>
      %539 = vector.shape_cast %532 : vector<1x16xf32> to vector<1x16x1xf32>
      %540 = vector.broadcast %538 : vector<1x1x128xf32> to vector<1x16x128xf32>
      %541 = vector.broadcast %539 : vector<1x16x1xf32> to vector<1x16x128xf32>
      %542 = arith.mulf %540, %541 : vector<1x16x128xf32>
      %543 = arith.mulf %537, %525 : vector<1x16x128xf32>
      %544 = arith.addf %543, %542 : vector<1x16x128xf32>
      %545 = vector.shape_cast %533 : vector<1x16xf32> to vector<1x16x1xf32>
      %546 = vector.broadcast %545 : vector<1x16x1xf32> to vector<1x16x128xf32>
      %547 = arith.mulf %546, %544 : vector<1x16x128xf32>
      %cst_355 = arith.constant dense<0.000000e+00> : vector<1x128xf32>
      %548 = vector.multi_reduction <add>, %547, %cst_355 [1] : vector<1x16x128xf32> to vector<1x128xf32>
      %549 = vector.extract_strided_slice %448 {offsets = [5, 0], sizes = [1, 128], strides = [1, 1]} : vector<8x128xf32> to vector<1x128xf32>
      %550 = vector.extract_strided_slice %453 {offsets = [5, 0], sizes = [1, 128], strides = [1, 1]} : vector<8x128xf32> to vector<1x128xf32>
      %551 = vector.extract_strided_slice %452 {offsets = [5, 0], sizes = [1, 16], strides = [1, 1]} : vector<8x32xf32> to vector<1x16xf32>
      %552 = vector.extract_strided_slice %452 {offsets = [5, 16], sizes = [1, 16], strides = [1, 1]} : vector<8x32xf32> to vector<1x16xf32>
      %553 = vector.shape_cast %549 : vector<1x128xf32> to vector<1x1x128xf32>
      %554 = vector.broadcast %553 : vector<1x1x128xf32> to vector<1x16x128xf32>
      %555 = arith.mulf %554, %201 : vector<1x16x128xf32>
      %556 = math.exp %555 : vector<1x16x128xf32>
      %557 = vector.shape_cast %550 : vector<1x128xf32> to vector<1x1x128xf32>
      %558 = vector.shape_cast %551 : vector<1x16xf32> to vector<1x16x1xf32>
      %559 = vector.broadcast %557 : vector<1x1x128xf32> to vector<1x16x128xf32>
      %560 = vector.broadcast %558 : vector<1x16x1xf32> to vector<1x16x128xf32>
      %561 = arith.mulf %559, %560 : vector<1x16x128xf32>
      %562 = arith.mulf %556, %544 : vector<1x16x128xf32>
      %563 = arith.addf %562, %561 : vector<1x16x128xf32>
      %564 = vector.shape_cast %552 : vector<1x16xf32> to vector<1x16x1xf32>
      %565 = vector.broadcast %564 : vector<1x16x1xf32> to vector<1x16x128xf32>
      %566 = arith.mulf %565, %563 : vector<1x16x128xf32>
      %cst_356 = arith.constant dense<0.000000e+00> : vector<1x128xf32>
      %567 = vector.multi_reduction <add>, %566, %cst_356 [1] : vector<1x16x128xf32> to vector<1x128xf32>
      %568 = vector.extract_strided_slice %448 {offsets = [6, 0], sizes = [1, 128], strides = [1, 1]} : vector<8x128xf32> to vector<1x128xf32>
      %569 = vector.extract_strided_slice %453 {offsets = [6, 0], sizes = [1, 128], strides = [1, 1]} : vector<8x128xf32> to vector<1x128xf32>
      %570 = vector.extract_strided_slice %452 {offsets = [6, 0], sizes = [1, 16], strides = [1, 1]} : vector<8x32xf32> to vector<1x16xf32>
      %571 = vector.extract_strided_slice %452 {offsets = [6, 16], sizes = [1, 16], strides = [1, 1]} : vector<8x32xf32> to vector<1x16xf32>
      %572 = vector.shape_cast %568 : vector<1x128xf32> to vector<1x1x128xf32>
      %573 = vector.broadcast %572 : vector<1x1x128xf32> to vector<1x16x128xf32>
      %574 = arith.mulf %573, %201 : vector<1x16x128xf32>
      %575 = math.exp %574 : vector<1x16x128xf32>
      %576 = vector.shape_cast %569 : vector<1x128xf32> to vector<1x1x128xf32>
      %577 = vector.shape_cast %570 : vector<1x16xf32> to vector<1x16x1xf32>
      %578 = vector.broadcast %576 : vector<1x1x128xf32> to vector<1x16x128xf32>
      %579 = vector.broadcast %577 : vector<1x16x1xf32> to vector<1x16x128xf32>
      %580 = arith.mulf %578, %579 : vector<1x16x128xf32>
      %581 = arith.mulf %575, %563 : vector<1x16x128xf32>
      %582 = arith.addf %581, %580 : vector<1x16x128xf32>
      %583 = vector.shape_cast %571 : vector<1x16xf32> to vector<1x16x1xf32>
      %584 = vector.broadcast %583 : vector<1x16x1xf32> to vector<1x16x128xf32>
      %585 = arith.mulf %584, %582 : vector<1x16x128xf32>
      %cst_357 = arith.constant dense<0.000000e+00> : vector<1x128xf32>
      %586 = vector.multi_reduction <add>, %585, %cst_357 [1] : vector<1x16x128xf32> to vector<1x128xf32>
      %587 = vector.extract_strided_slice %448 {offsets = [7, 0], sizes = [1, 128], strides = [1, 1]} : vector<8x128xf32> to vector<1x128xf32>
      %588 = vector.extract_strided_slice %453 {offsets = [7, 0], sizes = [1, 128], strides = [1, 1]} : vector<8x128xf32> to vector<1x128xf32>
      %589 = vector.extract_strided_slice %452 {offsets = [7, 0], sizes = [1, 16], strides = [1, 1]} : vector<8x32xf32> to vector<1x16xf32>
      %590 = vector.extract_strided_slice %452 {offsets = [7, 16], sizes = [1, 16], strides = [1, 1]} : vector<8x32xf32> to vector<1x16xf32>
      %591 = vector.shape_cast %587 : vector<1x128xf32> to vector<1x1x128xf32>
      %592 = vector.broadcast %591 : vector<1x1x128xf32> to vector<1x16x128xf32>
      %593 = arith.mulf %592, %201 : vector<1x16x128xf32>
      %594 = math.exp %593 : vector<1x16x128xf32>
      %595 = vector.shape_cast %588 : vector<1x128xf32> to vector<1x1x128xf32>
      %596 = vector.shape_cast %589 : vector<1x16xf32> to vector<1x16x1xf32>
      %597 = vector.broadcast %595 : vector<1x1x128xf32> to vector<1x16x128xf32>
      %598 = vector.broadcast %596 : vector<1x16x1xf32> to vector<1x16x128xf32>
      %599 = arith.mulf %597, %598 : vector<1x16x128xf32>
      %600 = arith.mulf %594, %582 : vector<1x16x128xf32>
      %601 = arith.addf %600, %599 : vector<1x16x128xf32>
      %602 = vector.shape_cast %590 : vector<1x16xf32> to vector<1x16x1xf32>
      %603 = vector.broadcast %602 : vector<1x16x1xf32> to vector<1x16x128xf32>
      %604 = arith.mulf %603, %601 : vector<1x16x128xf32>
      %cst_358 = arith.constant dense<0.000000e+00> : vector<1x128xf32>
      %605 = vector.multi_reduction <add>, %604, %cst_358 [1] : vector<1x16x128xf32> to vector<1x128xf32>
      %606 = tpu.concatenate %472, %491, %510, %529, %548, %567, %586, %605 in 0 : vector<1x128xf32>, vector<1x128xf32>, vector<1x128xf32>, vector<1x128xf32>, vector<1x128xf32>, vector<1x128xf32>, vector<1x128xf32>, vector<1x128xf32> -> vector<8x128xf32>
      %607 = vector.broadcast %203 : vector<1x128xf32> to vector<8x128xf32>
      %608 = arith.mulf %450, %607 : vector<8x128xf32>
      %609 = arith.addf %606, %608 : vector<8x128xf32>
      %610 = arith.index_cast %446 : i32 to index
      %c0_359 = arith.constant 0 : index
      %611 = vector.load %arg14[%610, %c0_359] : memref<16x128xf32, #tpu.memory_space<vmem>>, vector<8x128xf32>
      tpu.vector_store %arg14[%610, %c0_359], %609 {strides = array<i32>} : memref<16x128xf32, #tpu.memory_space<vmem>>, vector<8x128xf32>,
      scf.yield %601 : vector<1x16x128xf32>
    }
    %c2_i32_150 = arith.constant 2 : i32
    %c3_151 = arith.constant 3 : index
    %c0_152 = arith.constant 0 : index
    %c0_153 = arith.constant 0 : index
    %207 = vector.load %arg2[%c3_151, %c0_152, %c0_153] : memref<6x4x128xf32, #tpu.memory_space<vmem>>, vector<1x4x128xf32>
    %208 = vector.shape_cast %207 : vector<1x4x128xf32> to vector<4x128xf32>
    %cst_154 = arith.constant 0.000000e+00 : f32
    %209 = vector.broadcast %cst_154 : f32 to vector<16x128xf32>
    %210 = vector.extract_strided_slice %208 {offsets = [3, 0], sizes = [1, 128], strides = [1, 1]} : vector<4x128xf32> to vector<1x128xf32>
    %c3_155 = arith.constant 3 : index
    %c0_156 = arith.constant 0 : index
    %211 = vector.load %arg10[%c3_155, %c0_156] : memref<22x128xf32, #tpu.memory_space<vmem>>, vector<16x128xf32>
    %212 = vector.broadcast %210 : vector<1x128xf32> to vector<16x128xf32>
    %213 = arith.mulf %212, %211 : vector<16x128xf32>
    %214 = arith.addf %209, %213 : vector<16x128xf32>
    %215 = vector.extract_strided_slice %208 {offsets = [2, 0], sizes = [1, 128], strides = [1, 1]} : vector<4x128xf32> to vector<1x128xf32>
    %c4_157 = arith.constant 4 : index
    %c0_158 = arith.constant 0 : index
    %216 = vector.load %arg10[%c4_157, %c0_158] : memref<22x128xf32, #tpu.memory_space<vmem>>, vector<16x128xf32>
    %217 = vector.broadcast %215 : vector<1x128xf32> to vector<16x128xf32>
    %218 = arith.mulf %217, %216 : vector<16x128xf32>
    %219 = arith.addf %214, %218 : vector<16x128xf32>
    %220 = vector.extract_strided_slice %208 {offsets = [1, 0], sizes = [1, 128], strides = [1, 1]} : vector<4x128xf32> to vector<1x128xf32>
    %c5_159 = arith.constant 5 : index
    %c0_160 = arith.constant 0 : index
    %221 = vector.load %arg10[%c5_159, %c0_160] : memref<22x128xf32, #tpu.memory_space<vmem>>, vector<16x128xf32>
    %222 = vector.broadcast %220 : vector<1x128xf32> to vector<16x128xf32>
    %223 = arith.mulf %222, %221 : vector<16x128xf32>
    %224 = arith.addf %219, %223 : vector<16x128xf32>
    %225 = vector.extract_strided_slice %208 {offsets = [0, 0], sizes = [1, 128], strides = [1, 1]} : vector<4x128xf32> to vector<1x128xf32>
    %c6_161 = arith.constant 6 : index
    %c0_162 = arith.constant 0 : index
    %226 = vector.load %arg10[%c6_161, %c0_162] : memref<22x128xf32, #tpu.memory_space<vmem>>, vector<16x128xf32>
    %227 = vector.broadcast %225 : vector<1x128xf32> to vector<16x128xf32>
    %228 = arith.mulf %227, %226 : vector<16x128xf32>
    %229 = arith.addf %224, %228 : vector<16x128xf32>
    %c3_163 = arith.constant 3 : index
    %c0_164 = arith.constant 0 : index
    %c0_165 = arith.constant 0 : index
    %230 = vector.load %arg3[%c3_163, %c0_164, %c0_165] : memref<6x1x128xf32, #tpu.memory_space<vmem>>, vector<1x1x128xf32>
    %231 = vector.shape_cast %230 : vector<1x1x128xf32> to vector<1x128xf32>
    %232 = vector.broadcast %231 : vector<1x128xf32> to vector<16x128xf32>
    %233 = arith.addf %229, %232 : vector<16x128xf32>
    %234 = arith.negf %233 : vector<16x128xf32>
    %235 = math.exp %234 : vector<16x128xf32>
    %cst_166 = arith.constant 1.000000e+00 : f32
    %236 = vector.broadcast %cst_166 : f32 to vector<16x128xf32>
    %237 = arith.addf %236, %235 : vector<16x128xf32>
    %238 = arith.divf %236, %237 : vector<16x128xf32>
    %239 = arith.mulf %233, %238 : vector<16x128xf32>
    %c0_167 = arith.constant 0 : index
    %c0_168 = arith.constant 0 : index
    %240 = vector.load %arg11[%c0_167, %c0_168] : memref<16x128xf32, #tpu.memory_space<vmem>>, vector<16x128xf32>
    tpu.vector_store %arg11[%c0_167, %c0_168], %239 {strides = array<i32>} : memref<16x128xf32, #tpu.memory_space<vmem>>, vector<16x128xf32>,
    %241 = arith.truncf %239 : vector<16x128xf32> to vector<16x128xbf16>
    %c3_169 = arith.constant 3 : index
    %c0_170 = arith.constant 0 : index
    %c0_171 = arith.constant 0 : index
    %242 = vector.load %arg4[%c3_169, %c0_170, %c0_171] : memref<6x128x256xbf16, #tpu.memory_space<vmem>>, vector<1x128x256xbf16>
    %243 = vector.shape_cast %242 : vector<1x128x256xbf16> to vector<128x256xbf16>
    %cst_172 = arith.constant dense<0.000000e+00> : vector<16x256xf32>
    %244 = tpu.matmul %241, %243, %cst_172 {dimension_numbers = #tpu.dot_dimension_numbers<[1], [0], [0], [1], [0, 0, 1, 1], [], []>} : vector<16x128xbf16>, vector<128x256xbf16>, vector<16x256xf32> -> vector<16x256xf32>
    %245 = vector.extract_strided_slice %244 {offsets = [0, 0], sizes = [16, 128], strides = [1, 1]} : vector<16x256xf32> to vector<16x128xf32>
    %c3_173 = arith.constant 3 : index
    %c0_174 = arith.constant 0 : index
    %c0_175 = arith.constant 0 : index
    %246 = vector.load %arg5[%c3_173, %c0_174, %c0_175] : memref<6x1x128xf32, #tpu.memory_space<vmem>>, vector<1x1x128xf32>
    %247 = vector.shape_cast %246 : vector<1x1x128xf32> to vector<1x128xf32>
    %248 = vector.broadcast %247 : vector<1x128xf32> to vector<16x128xf32>
    %249 = arith.addf %245, %248 : vector<16x128xf32>
    %cst_176 = arith.constant 2.000000e+01 : f32
    %250 = vector.broadcast %cst_176 : f32 to vector<16x128xf32>
    %251 = arith.cmpf ogt, %249, %250 : vector<16x128xf32>
    %cst_177 = arith.constant 2.000000e+01 : f32
    %252 = vector.broadcast %cst_177 : f32 to vector<16x128xf32>
    %253 = arith.minimumf %249, %252 : vector<16x128xf32>
    %254 = math.exp %253 : vector<16x128xf32>
    %255 = math.log1p %254 : vector<16x128xf32>
    %256 = arith.select %251, %249, %255 : vector<16x128xi1>, vector<16x128xf32>
    %c0_178 = arith.constant 0 : index
    %c0_179 = arith.constant 0 : index
    %257 = vector.load %arg12[%c0_178, %c0_179] : memref<16x128xf32, #tpu.memory_space<vmem>>, vector<16x128xf32>
    tpu.vector_store %arg12[%c0_178, %c0_179], %256 {strides = array<i32>} : memref<16x128xf32, #tpu.memory_space<vmem>>, vector<16x128xf32>,
    %258 = vector.extract_strided_slice %244 {offsets = [0, 128], sizes = [16, 32], strides = [1, 1]} : vector<16x256xf32> to vector<16x32xf32>
    %c0_180 = arith.constant 0 : index
    %c0_181 = arith.constant 0 : index
    %259 = vector.load %arg13[%c0_180, %c0_181] : memref<16x32xf32, #tpu.memory_space<vmem>>, vector<16x32xf32>
    tpu.vector_store %arg13[%c0_180, %c0_181], %258 {strides = array<i32>} : memref<16x32xf32, #tpu.memory_space<vmem>>, vector<16x32xf32>,
    %c3_182 = arith.constant 3 : index
    %c0_183 = arith.constant 0 : index
    %c0_184 = arith.constant 0 : index
    %260 = vector.load %arg6[%c3_182, %c0_183, %c0_184] : memref<6x16x128xf32, #tpu.memory_space<vmem>>, vector<1x16x128xf32>
    %261 = vector.shape_cast %260 : vector<1x16x128xf32> to vector<16x128xf32>
    %262 = vector.shape_cast %261 : vector<16x128xf32> to vector<1x16x128xf32>
    %c3_185 = arith.constant 3 : index
    %c0_186 = arith.constant 0 : index
    %c0_187 = arith.constant 0 : index
    %263 = vector.load %arg7[%c3_185, %c0_186, %c0_187] : memref<6x1x128xf32, #tpu.memory_space<vmem>>, vector<1x1x128xf32>
    %264 = vector.shape_cast %263 : vector<1x1x128xf32> to vector<1x128xf32>
    %cst_188 = arith.constant 0.000000e+00 : f32
    %265 = vector.broadcast %cst_188 : f32 to vector<1x16x128xf32>
    %c0_i32_189 = arith.constant 0 : i32
    %c2_i32_190 = arith.constant 2 : i32
    %266 = arith.addi %c0_i32_189, %c2_i32_190 : i32
    %c1_i32_191 = arith.constant 1 : i32
    %267 = scf.for %arg16 = %c0_i32_189 to %266 step %c1_i32_191 iter_args(%arg17 = %265) -> (vector<1x16x128xf32>)  : i32 {
      %c1_i32_348 = arith.constant 1 : i32
      %445 = arith.subi %c1_i32_348, %arg16 : i32
      %c8_i32 = arith.constant 8 : i32
      %446 = arith.muli %445, %c8_i32 : i32
      %447 = tpu.assume_multiple %446, 8 : i32
      %448 = arith.index_cast %447 : i32 to index
      %c0_349 = arith.constant 0 : index
      %449 = vector.load %arg12[%448, %c0_349] : memref<16x128xf32, #tpu.memory_space<vmem>>, vector<8x128xf32>
      %450 = arith.index_cast %447 : i32 to index
      %c0_350 = arith.constant 0 : index
      %451 = vector.load %arg11[%450, %c0_350] : memref<16x128xf32, #tpu.memory_space<vmem>>, vector<8x128xf32>
      %452 = arith.index_cast %447 : i32 to index
      %c0_351 = arith.constant 0 : index
      %453 = vector.load %arg13[%452, %c0_351] : memref<16x32xf32, #tpu.memory_space<vmem>>, vector<8x32xf32>
      %454 = arith.mulf %449, %451 : vector<8x128xf32>
      %455 = vector.extract_strided_slice %449 {offsets = [7, 0], sizes = [1, 128], strides = [1, 1]} : vector<8x128xf32> to vector<1x128xf32>
      %456 = vector.extract_strided_slice %454 {offsets = [7, 0], sizes = [1, 128], strides = [1, 1]} : vector<8x128xf32> to vector<1x128xf32>
      %457 = vector.extract_strided_slice %453 {offsets = [7, 0], sizes = [1, 16], strides = [1, 1]} : vector<8x32xf32> to vector<1x16xf32>
      %458 = vector.extract_strided_slice %453 {offsets = [7, 16], sizes = [1, 16], strides = [1, 1]} : vector<8x32xf32> to vector<1x16xf32>
      %459 = vector.shape_cast %455 : vector<1x128xf32> to vector<1x1x128xf32>
      %460 = vector.broadcast %459 : vector<1x1x128xf32> to vector<1x16x128xf32>
      %461 = arith.mulf %460, %262 : vector<1x16x128xf32>
      %462 = math.exp %461 : vector<1x16x128xf32>
      %463 = vector.shape_cast %456 : vector<1x128xf32> to vector<1x1x128xf32>
      %464 = vector.shape_cast %457 : vector<1x16xf32> to vector<1x16x1xf32>
      %465 = vector.broadcast %463 : vector<1x1x128xf32> to vector<1x16x128xf32>
      %466 = vector.broadcast %464 : vector<1x16x1xf32> to vector<1x16x128xf32>
      %467 = arith.mulf %465, %466 : vector<1x16x128xf32>
      %468 = arith.mulf %462, %arg17 : vector<1x16x128xf32>
      %469 = arith.addf %468, %467 : vector<1x16x128xf32>
      %470 = vector.shape_cast %458 : vector<1x16xf32> to vector<1x16x1xf32>
      %471 = vector.broadcast %470 : vector<1x16x1xf32> to vector<1x16x128xf32>
      %472 = arith.mulf %471, %469 : vector<1x16x128xf32>
      %cst_352 = arith.constant dense<0.000000e+00> : vector<1x128xf32>
      %473 = vector.multi_reduction <add>, %472, %cst_352 [1] : vector<1x16x128xf32> to vector<1x128xf32>
      %474 = vector.extract_strided_slice %449 {offsets = [6, 0], sizes = [1, 128], strides = [1, 1]} : vector<8x128xf32> to vector<1x128xf32>
      %475 = vector.extract_strided_slice %454 {offsets = [6, 0], sizes = [1, 128], strides = [1, 1]} : vector<8x128xf32> to vector<1x128xf32>
      %476 = vector.extract_strided_slice %453 {offsets = [6, 0], sizes = [1, 16], strides = [1, 1]} : vector<8x32xf32> to vector<1x16xf32>
      %477 = vector.extract_strided_slice %453 {offsets = [6, 16], sizes = [1, 16], strides = [1, 1]} : vector<8x32xf32> to vector<1x16xf32>
      %478 = vector.shape_cast %474 : vector<1x128xf32> to vector<1x1x128xf32>
      %479 = vector.broadcast %478 : vector<1x1x128xf32> to vector<1x16x128xf32>
      %480 = arith.mulf %479, %262 : vector<1x16x128xf32>
      %481 = math.exp %480 : vector<1x16x128xf32>
      %482 = vector.shape_cast %475 : vector<1x128xf32> to vector<1x1x128xf32>
      %483 = vector.shape_cast %476 : vector<1x16xf32> to vector<1x16x1xf32>
      %484 = vector.broadcast %482 : vector<1x1x128xf32> to vector<1x16x128xf32>
      %485 = vector.broadcast %483 : vector<1x16x1xf32> to vector<1x16x128xf32>
      %486 = arith.mulf %484, %485 : vector<1x16x128xf32>
      %487 = arith.mulf %481, %469 : vector<1x16x128xf32>
      %488 = arith.addf %487, %486 : vector<1x16x128xf32>
      %489 = vector.shape_cast %477 : vector<1x16xf32> to vector<1x16x1xf32>
      %490 = vector.broadcast %489 : vector<1x16x1xf32> to vector<1x16x128xf32>
      %491 = arith.mulf %490, %488 : vector<1x16x128xf32>
      %cst_353 = arith.constant dense<0.000000e+00> : vector<1x128xf32>
      %492 = vector.multi_reduction <add>, %491, %cst_353 [1] : vector<1x16x128xf32> to vector<1x128xf32>
      %493 = vector.extract_strided_slice %449 {offsets = [5, 0], sizes = [1, 128], strides = [1, 1]} : vector<8x128xf32> to vector<1x128xf32>
      %494 = vector.extract_strided_slice %454 {offsets = [5, 0], sizes = [1, 128], strides = [1, 1]} : vector<8x128xf32> to vector<1x128xf32>
      %495 = vector.extract_strided_slice %453 {offsets = [5, 0], sizes = [1, 16], strides = [1, 1]} : vector<8x32xf32> to vector<1x16xf32>
      %496 = vector.extract_strided_slice %453 {offsets = [5, 16], sizes = [1, 16], strides = [1, 1]} : vector<8x32xf32> to vector<1x16xf32>
      %497 = vector.shape_cast %493 : vector<1x128xf32> to vector<1x1x128xf32>
      %498 = vector.broadcast %497 : vector<1x1x128xf32> to vector<1x16x128xf32>
      %499 = arith.mulf %498, %262 : vector<1x16x128xf32>
      %500 = math.exp %499 : vector<1x16x128xf32>
      %501 = vector.shape_cast %494 : vector<1x128xf32> to vector<1x1x128xf32>
      %502 = vector.shape_cast %495 : vector<1x16xf32> to vector<1x16x1xf32>
      %503 = vector.broadcast %501 : vector<1x1x128xf32> to vector<1x16x128xf32>
      %504 = vector.broadcast %502 : vector<1x16x1xf32> to vector<1x16x128xf32>
      %505 = arith.mulf %503, %504 : vector<1x16x128xf32>
      %506 = arith.mulf %500, %488 : vector<1x16x128xf32>
      %507 = arith.addf %506, %505 : vector<1x16x128xf32>
      %508 = vector.shape_cast %496 : vector<1x16xf32> to vector<1x16x1xf32>
      %509 = vector.broadcast %508 : vector<1x16x1xf32> to vector<1x16x128xf32>
      %510 = arith.mulf %509, %507 : vector<1x16x128xf32>
      %cst_354 = arith.constant dense<0.000000e+00> : vector<1x128xf32>
      %511 = vector.multi_reduction <add>, %510, %cst_354 [1] : vector<1x16x128xf32> to vector<1x128xf32>
      %512 = vector.extract_strided_slice %449 {offsets = [4, 0], sizes = [1, 128], strides = [1, 1]} : vector<8x128xf32> to vector<1x128xf32>
      %513 = vector.extract_strided_slice %454 {offsets = [4, 0], sizes = [1, 128], strides = [1, 1]} : vector<8x128xf32> to vector<1x128xf32>
      %514 = vector.extract_strided_slice %453 {offsets = [4, 0], sizes = [1, 16], strides = [1, 1]} : vector<8x32xf32> to vector<1x16xf32>
      %515 = vector.extract_strided_slice %453 {offsets = [4, 16], sizes = [1, 16], strides = [1, 1]} : vector<8x32xf32> to vector<1x16xf32>
      %516 = vector.shape_cast %512 : vector<1x128xf32> to vector<1x1x128xf32>
      %517 = vector.broadcast %516 : vector<1x1x128xf32> to vector<1x16x128xf32>
      %518 = arith.mulf %517, %262 : vector<1x16x128xf32>
      %519 = math.exp %518 : vector<1x16x128xf32>
      %520 = vector.shape_cast %513 : vector<1x128xf32> to vector<1x1x128xf32>
      %521 = vector.shape_cast %514 : vector<1x16xf32> to vector<1x16x1xf32>
      %522 = vector.broadcast %520 : vector<1x1x128xf32> to vector<1x16x128xf32>
      %523 = vector.broadcast %521 : vector<1x16x1xf32> to vector<1x16x128xf32>
      %524 = arith.mulf %522, %523 : vector<1x16x128xf32>
      %525 = arith.mulf %519, %507 : vector<1x16x128xf32>
      %526 = arith.addf %525, %524 : vector<1x16x128xf32>
      %527 = vector.shape_cast %515 : vector<1x16xf32> to vector<1x16x1xf32>
      %528 = vector.broadcast %527 : vector<1x16x1xf32> to vector<1x16x128xf32>
      %529 = arith.mulf %528, %526 : vector<1x16x128xf32>
      %cst_355 = arith.constant dense<0.000000e+00> : vector<1x128xf32>
      %530 = vector.multi_reduction <add>, %529, %cst_355 [1] : vector<1x16x128xf32> to vector<1x128xf32>
      %531 = vector.extract_strided_slice %449 {offsets = [3, 0], sizes = [1, 128], strides = [1, 1]} : vector<8x128xf32> to vector<1x128xf32>
      %532 = vector.extract_strided_slice %454 {offsets = [3, 0], sizes = [1, 128], strides = [1, 1]} : vector<8x128xf32> to vector<1x128xf32>
      %533 = vector.extract_strided_slice %453 {offsets = [3, 0], sizes = [1, 16], strides = [1, 1]} : vector<8x32xf32> to vector<1x16xf32>
      %534 = vector.extract_strided_slice %453 {offsets = [3, 16], sizes = [1, 16], strides = [1, 1]} : vector<8x32xf32> to vector<1x16xf32>
      %535 = vector.shape_cast %531 : vector<1x128xf32> to vector<1x1x128xf32>
      %536 = vector.broadcast %535 : vector<1x1x128xf32> to vector<1x16x128xf32>
      %537 = arith.mulf %536, %262 : vector<1x16x128xf32>
      %538 = math.exp %537 : vector<1x16x128xf32>
      %539 = vector.shape_cast %532 : vector<1x128xf32> to vector<1x1x128xf32>
      %540 = vector.shape_cast %533 : vector<1x16xf32> to vector<1x16x1xf32>
      %541 = vector.broadcast %539 : vector<1x1x128xf32> to vector<1x16x128xf32>
      %542 = vector.broadcast %540 : vector<1x16x1xf32> to vector<1x16x128xf32>
      %543 = arith.mulf %541, %542 : vector<1x16x128xf32>
      %544 = arith.mulf %538, %526 : vector<1x16x128xf32>
      %545 = arith.addf %544, %543 : vector<1x16x128xf32>
      %546 = vector.shape_cast %534 : vector<1x16xf32> to vector<1x16x1xf32>
      %547 = vector.broadcast %546 : vector<1x16x1xf32> to vector<1x16x128xf32>
      %548 = arith.mulf %547, %545 : vector<1x16x128xf32>
      %cst_356 = arith.constant dense<0.000000e+00> : vector<1x128xf32>
      %549 = vector.multi_reduction <add>, %548, %cst_356 [1] : vector<1x16x128xf32> to vector<1x128xf32>
      %550 = vector.extract_strided_slice %449 {offsets = [2, 0], sizes = [1, 128], strides = [1, 1]} : vector<8x128xf32> to vector<1x128xf32>
      %551 = vector.extract_strided_slice %454 {offsets = [2, 0], sizes = [1, 128], strides = [1, 1]} : vector<8x128xf32> to vector<1x128xf32>
      %552 = vector.extract_strided_slice %453 {offsets = [2, 0], sizes = [1, 16], strides = [1, 1]} : vector<8x32xf32> to vector<1x16xf32>
      %553 = vector.extract_strided_slice %453 {offsets = [2, 16], sizes = [1, 16], strides = [1, 1]} : vector<8x32xf32> to vector<1x16xf32>
      %554 = vector.shape_cast %550 : vector<1x128xf32> to vector<1x1x128xf32>
      %555 = vector.broadcast %554 : vector<1x1x128xf32> to vector<1x16x128xf32>
      %556 = arith.mulf %555, %262 : vector<1x16x128xf32>
      %557 = math.exp %556 : vector<1x16x128xf32>
      %558 = vector.shape_cast %551 : vector<1x128xf32> to vector<1x1x128xf32>
      %559 = vector.shape_cast %552 : vector<1x16xf32> to vector<1x16x1xf32>
      %560 = vector.broadcast %558 : vector<1x1x128xf32> to vector<1x16x128xf32>
      %561 = vector.broadcast %559 : vector<1x16x1xf32> to vector<1x16x128xf32>
      %562 = arith.mulf %560, %561 : vector<1x16x128xf32>
      %563 = arith.mulf %557, %545 : vector<1x16x128xf32>
      %564 = arith.addf %563, %562 : vector<1x16x128xf32>
      %565 = vector.shape_cast %553 : vector<1x16xf32> to vector<1x16x1xf32>
      %566 = vector.broadcast %565 : vector<1x16x1xf32> to vector<1x16x128xf32>
      %567 = arith.mulf %566, %564 : vector<1x16x128xf32>
      %cst_357 = arith.constant dense<0.000000e+00> : vector<1x128xf32>
      %568 = vector.multi_reduction <add>, %567, %cst_357 [1] : vector<1x16x128xf32> to vector<1x128xf32>
      %569 = vector.extract_strided_slice %449 {offsets = [1, 0], sizes = [1, 128], strides = [1, 1]} : vector<8x128xf32> to vector<1x128xf32>
      %570 = vector.extract_strided_slice %454 {offsets = [1, 0], sizes = [1, 128], strides = [1, 1]} : vector<8x128xf32> to vector<1x128xf32>
      %571 = vector.extract_strided_slice %453 {offsets = [1, 0], sizes = [1, 16], strides = [1, 1]} : vector<8x32xf32> to vector<1x16xf32>
      %572 = vector.extract_strided_slice %453 {offsets = [1, 16], sizes = [1, 16], strides = [1, 1]} : vector<8x32xf32> to vector<1x16xf32>
      %573 = vector.shape_cast %569 : vector<1x128xf32> to vector<1x1x128xf32>
      %574 = vector.broadcast %573 : vector<1x1x128xf32> to vector<1x16x128xf32>
      %575 = arith.mulf %574, %262 : vector<1x16x128xf32>
      %576 = math.exp %575 : vector<1x16x128xf32>
      %577 = vector.shape_cast %570 : vector<1x128xf32> to vector<1x1x128xf32>
      %578 = vector.shape_cast %571 : vector<1x16xf32> to vector<1x16x1xf32>
      %579 = vector.broadcast %577 : vector<1x1x128xf32> to vector<1x16x128xf32>
      %580 = vector.broadcast %578 : vector<1x16x1xf32> to vector<1x16x128xf32>
      %581 = arith.mulf %579, %580 : vector<1x16x128xf32>
      %582 = arith.mulf %576, %564 : vector<1x16x128xf32>
      %583 = arith.addf %582, %581 : vector<1x16x128xf32>
      %584 = vector.shape_cast %572 : vector<1x16xf32> to vector<1x16x1xf32>
      %585 = vector.broadcast %584 : vector<1x16x1xf32> to vector<1x16x128xf32>
      %586 = arith.mulf %585, %583 : vector<1x16x128xf32>
      %cst_358 = arith.constant dense<0.000000e+00> : vector<1x128xf32>
      %587 = vector.multi_reduction <add>, %586, %cst_358 [1] : vector<1x16x128xf32> to vector<1x128xf32>
      %588 = vector.extract_strided_slice %449 {offsets = [0, 0], sizes = [1, 128], strides = [1, 1]} : vector<8x128xf32> to vector<1x128xf32>
      %589 = vector.extract_strided_slice %454 {offsets = [0, 0], sizes = [1, 128], strides = [1, 1]} : vector<8x128xf32> to vector<1x128xf32>
      %590 = vector.extract_strided_slice %453 {offsets = [0, 0], sizes = [1, 16], strides = [1, 1]} : vector<8x32xf32> to vector<1x16xf32>
      %591 = vector.extract_strided_slice %453 {offsets = [0, 16], sizes = [1, 16], strides = [1, 1]} : vector<8x32xf32> to vector<1x16xf32>
      %592 = vector.shape_cast %588 : vector<1x128xf32> to vector<1x1x128xf32>
      %593 = vector.broadcast %592 : vector<1x1x128xf32> to vector<1x16x128xf32>
      %594 = arith.mulf %593, %262 : vector<1x16x128xf32>
      %595 = math.exp %594 : vector<1x16x128xf32>
      %596 = vector.shape_cast %589 : vector<1x128xf32> to vector<1x1x128xf32>
      %597 = vector.shape_cast %590 : vector<1x16xf32> to vector<1x16x1xf32>
      %598 = vector.broadcast %596 : vector<1x1x128xf32> to vector<1x16x128xf32>
      %599 = vector.broadcast %597 : vector<1x16x1xf32> to vector<1x16x128xf32>
      %600 = arith.mulf %598, %599 : vector<1x16x128xf32>
      %601 = arith.mulf %595, %583 : vector<1x16x128xf32>
      %602 = arith.addf %601, %600 : vector<1x16x128xf32>
      %603 = vector.shape_cast %591 : vector<1x16xf32> to vector<1x16x1xf32>
      %604 = vector.broadcast %603 : vector<1x16x1xf32> to vector<1x16x128xf32>
      %605 = arith.mulf %604, %602 : vector<1x16x128xf32>
      %cst_359 = arith.constant dense<0.000000e+00> : vector<1x128xf32>
      %606 = vector.multi_reduction <add>, %605, %cst_359 [1] : vector<1x16x128xf32> to vector<1x128xf32>
      %607 = tpu.concatenate %606, %587, %568, %549, %530, %511, %492, %473 in 0 : vector<1x128xf32>, vector<1x128xf32>, vector<1x128xf32>, vector<1x128xf32>, vector<1x128xf32>, vector<1x128xf32>, vector<1x128xf32>, vector<1x128xf32> -> vector<8x128xf32>
      %608 = vector.broadcast %264 : vector<1x128xf32> to vector<8x128xf32>
      %609 = arith.mulf %451, %608 : vector<8x128xf32>
      %610 = arith.addf %607, %609 : vector<8x128xf32>
      %611 = arith.index_cast %447 : i32 to index
      %c0_360 = arith.constant 0 : index
      %612 = vector.load %arg14[%611, %c0_360] : memref<16x128xf32, #tpu.memory_space<vmem>>, vector<8x128xf32>
      %613 = arith.addf %612, %610 : vector<8x128xf32>
      %614 = arith.index_cast %447 : i32 to index
      %c0_361 = arith.constant 0 : index
      %615 = vector.load %arg14[%614, %c0_361] : memref<16x128xf32, #tpu.memory_space<vmem>>, vector<8x128xf32>
      tpu.vector_store %arg14[%614, %c0_361], %613 {strides = array<i32>} : memref<16x128xf32, #tpu.memory_space<vmem>>, vector<8x128xf32>,
      scf.yield %602 : vector<1x16x128xf32>
    }
    %c2_i32_192 = arith.constant 2 : i32
    %c0_193 = arith.constant 0 : index
    %c0_194 = arith.constant 0 : index
    %268 = vector.load %arg15[%c0_193, %c0_194] : memref<16x128xf32, #tpu.memory_space<vmem>>, vector<4x128xf32>
    %c0_195 = arith.constant 0 : index
    %c0_196 = arith.constant 0 : index
    %269 = tpu.strided_load %arg14[%c0_195, %c0_196] {strides = array<i32: 4, 1>} : memref<16x128xf32, #tpu.memory_space<vmem>>, vector<4x128xf32>
    %270 = arith.addf %268, %269 : vector<4x128xf32>
    %c0_197 = arith.constant 0 : index
    %c0_198 = arith.constant 0 : index
    %271 = vector.load %arg15[%c0_197, %c0_198] : memref<16x128xf32, #tpu.memory_space<vmem>>, vector<4x128xf32>
    tpu.vector_store %arg15[%c0_197, %c0_198], %270 {strides = array<i32>} : memref<16x128xf32, #tpu.memory_space<vmem>>, vector<4x128xf32>,
    %c4_199 = arith.constant 4 : index
    %c0_200 = arith.constant 0 : index
    %272 = vector.load %arg15[%c4_199, %c0_200] : memref<16x128xf32, #tpu.memory_space<vmem>>, vector<4x128xf32>
    %c1_201 = arith.constant 1 : index
    %c0_202 = arith.constant 0 : index
    %273 = tpu.strided_load %arg14[%c1_201, %c0_202] {strides = array<i32: 4, 1>} : memref<16x128xf32, #tpu.memory_space<vmem>>, vector<4x128xf32>
    %274 = arith.addf %272, %273 : vector<4x128xf32>
    %c4_203 = arith.constant 4 : index
    %c0_204 = arith.constant 0 : index
    %275 = vector.load %arg15[%c4_203, %c0_204] : memref<16x128xf32, #tpu.memory_space<vmem>>, vector<4x128xf32>
    tpu.vector_store %arg15[%c4_203, %c0_204], %274 {strides = array<i32>} : memref<16x128xf32, #tpu.memory_space<vmem>>, vector<4x128xf32>,
    %c8 = arith.constant 8 : index
    %c0_205 = arith.constant 0 : index
    %276 = vector.load %arg15[%c8, %c0_205] : memref<16x128xf32, #tpu.memory_space<vmem>>, vector<4x128xf32>
    %c2_206 = arith.constant 2 : index
    %c0_207 = arith.constant 0 : index
    %277 = tpu.strided_load %arg14[%c2_206, %c0_207] {strides = array<i32: 4, 1>} : memref<16x128xf32, #tpu.memory_space<vmem>>, vector<4x128xf32>
    %278 = arith.addf %276, %277 : vector<4x128xf32>
    %c8_208 = arith.constant 8 : index
    %c0_209 = arith.constant 0 : index
    %279 = vector.load %arg15[%c8_208, %c0_209] : memref<16x128xf32, #tpu.memory_space<vmem>>, vector<4x128xf32>
    tpu.vector_store %arg15[%c8_208, %c0_209], %278 {strides = array<i32>} : memref<16x128xf32, #tpu.memory_space<vmem>>, vector<4x128xf32>,
    %c12 = arith.constant 12 : index
    %c0_210 = arith.constant 0 : index
    %280 = vector.load %arg15[%c12, %c0_210] : memref<16x128xf32, #tpu.memory_space<vmem>>, vector<4x128xf32>
    %c3_211 = arith.constant 3 : index
    %c0_212 = arith.constant 0 : index
    %281 = tpu.strided_load %arg14[%c3_211, %c0_212] {strides = array<i32: 4, 1>} : memref<16x128xf32, #tpu.memory_space<vmem>>, vector<4x128xf32>
    %282 = arith.addf %280, %281 : vector<4x128xf32>
    %c12_213 = arith.constant 12 : index
    %c0_214 = arith.constant 0 : index
    %283 = vector.load %arg15[%c12_213, %c0_214] : memref<16x128xf32, #tpu.memory_space<vmem>>, vector<4x128xf32>
    tpu.vector_store %arg15[%c12_213, %c0_214], %282 {strides = array<i32>} : memref<16x128xf32, #tpu.memory_space<vmem>>, vector<4x128xf32>,
    %c0_215 = arith.constant 0 : index
    %c0_216 = arith.constant 0 : index
    %284 = tpu.strided_load %arg9[%c0_215, %c0_216] {strides = array<i32: 8, 1>} : memref<16x128xf32, #tpu.memory_space<vmem>>, vector<2x128xf32>
    %c3_217 = arith.constant 3 : index
    %c0_218 = arith.constant 0 : index
    %285 = vector.load %arg10[%c3_217, %c0_218] : memref<22x128xf32, #tpu.memory_space<vmem>>, vector<2x128xf32>
    tpu.vector_store %arg10[%c3_217, %c0_218], %284 {strides = array<i32>} : memref<22x128xf32, #tpu.memory_space<vmem>>, vector<2x128xf32>,
    %c1_219 = arith.constant 1 : index
    %c0_220 = arith.constant 0 : index
    %286 = tpu.strided_load %arg9[%c1_219, %c0_220] {strides = array<i32: 8, 1>} : memref<16x128xf32, #tpu.memory_space<vmem>>, vector<2x128xf32>
    %c5_221 = arith.constant 5 : index
    %c0_222 = arith.constant 0 : index
    %287 = vector.load %arg10[%c5_221, %c0_222] : memref<22x128xf32, #tpu.memory_space<vmem>>, vector<2x128xf32>
    tpu.vector_store %arg10[%c5_221, %c0_222], %286 {strides = array<i32>} : memref<22x128xf32, #tpu.memory_space<vmem>>, vector<2x128xf32>,
    %c2_223 = arith.constant 2 : index
    %c0_224 = arith.constant 0 : index
    %288 = tpu.strided_load %arg9[%c2_223, %c0_224] {strides = array<i32: 8, 1>} : memref<16x128xf32, #tpu.memory_space<vmem>>, vector<2x128xf32>
    %c7_225 = arith.constant 7 : index
    %c0_226 = arith.constant 0 : index
    %289 = vector.load %arg10[%c7_225, %c0_226] : memref<22x128xf32, #tpu.memory_space<vmem>>, vector<2x128xf32>
    tpu.vector_store %arg10[%c7_225, %c0_226], %288 {strides = array<i32>} : memref<22x128xf32, #tpu.memory_space<vmem>>, vector<2x128xf32>,
    %c3_227 = arith.constant 3 : index
    %c0_228 = arith.constant 0 : index
    %290 = tpu.strided_load %arg9[%c3_227, %c0_228] {strides = array<i32: 8, 1>} : memref<16x128xf32, #tpu.memory_space<vmem>>, vector<2x128xf32>
    %c9 = arith.constant 9 : index
    %c0_229 = arith.constant 0 : index
    %291 = vector.load %arg10[%c9, %c0_229] : memref<22x128xf32, #tpu.memory_space<vmem>>, vector<2x128xf32>
    tpu.vector_store %arg10[%c9, %c0_229], %290 {strides = array<i32>} : memref<22x128xf32, #tpu.memory_space<vmem>>, vector<2x128xf32>,
    %c4_230 = arith.constant 4 : index
    %c0_231 = arith.constant 0 : index
    %292 = tpu.strided_load %arg9[%c4_230, %c0_231] {strides = array<i32: 8, 1>} : memref<16x128xf32, #tpu.memory_space<vmem>>, vector<2x128xf32>
    %c11_232 = arith.constant 11 : index
    %c0_233 = arith.constant 0 : index
    %293 = vector.load %arg10[%c11_232, %c0_233] : memref<22x128xf32, #tpu.memory_space<vmem>>, vector<2x128xf32>
    tpu.vector_store %arg10[%c11_232, %c0_233], %292 {strides = array<i32>} : memref<22x128xf32, #tpu.memory_space<vmem>>, vector<2x128xf32>,
    %c5_234 = arith.constant 5 : index
    %c0_235 = arith.constant 0 : index
    %294 = tpu.strided_load %arg9[%c5_234, %c0_235] {strides = array<i32: 8, 1>} : memref<16x128xf32, #tpu.memory_space<vmem>>, vector<2x128xf32>
    %c13 = arith.constant 13 : index
    %c0_236 = arith.constant 0 : index
    %295 = vector.load %arg10[%c13, %c0_236] : memref<22x128xf32, #tpu.memory_space<vmem>>, vector<2x128xf32>
    tpu.vector_store %arg10[%c13, %c0_236], %294 {strides = array<i32>} : memref<22x128xf32, #tpu.memory_space<vmem>>, vector<2x128xf32>,
    %c6_237 = arith.constant 6 : index
    %c0_238 = arith.constant 0 : index
    %296 = tpu.strided_load %arg9[%c6_237, %c0_238] {strides = array<i32: 8, 1>} : memref<16x128xf32, #tpu.memory_space<vmem>>, vector<2x128xf32>
    %c15_239 = arith.constant 15 : index
    %c0_240 = arith.constant 0 : index
    %297 = vector.load %arg10[%c15_239, %c0_240] : memref<22x128xf32, #tpu.memory_space<vmem>>, vector<2x128xf32>
    tpu.vector_store %arg10[%c15_239, %c0_240], %296 {strides = array<i32>} : memref<22x128xf32, #tpu.memory_space<vmem>>, vector<2x128xf32>,
    %c7_241 = arith.constant 7 : index
    %c0_242 = arith.constant 0 : index
    %298 = tpu.strided_load %arg9[%c7_241, %c0_242] {strides = array<i32: 8, 1>} : memref<16x128xf32, #tpu.memory_space<vmem>>, vector<2x128xf32>
    %c17 = arith.constant 17 : index
    %c0_243 = arith.constant 0 : index
    %299 = vector.load %arg10[%c17, %c0_243] : memref<22x128xf32, #tpu.memory_space<vmem>>, vector<2x128xf32>
    tpu.vector_store %arg10[%c17, %c0_243], %298 {strides = array<i32>} : memref<22x128xf32, #tpu.memory_space<vmem>>, vector<2x128xf32>,
    %c4_244 = arith.constant 4 : index
    %c0_245 = arith.constant 0 : index
    %c0_246 = arith.constant 0 : index
    %300 = vector.load %arg2[%c4_244, %c0_245, %c0_246] : memref<6x4x128xf32, #tpu.memory_space<vmem>>, vector<1x4x128xf32>
    %301 = vector.shape_cast %300 : vector<1x4x128xf32> to vector<4x128xf32>
    %cst_247 = arith.constant 0.000000e+00 : f32
    %302 = vector.broadcast %cst_247 : f32 to vector<16x128xf32>
    %303 = vector.extract_strided_slice %301 {offsets = [0, 0], sizes = [1, 128], strides = [1, 1]} : vector<4x128xf32> to vector<1x128xf32>
    %c0_248 = arith.constant 0 : index
    %c0_249 = arith.constant 0 : index
    %304 = vector.load %arg10[%c0_248, %c0_249] : memref<22x128xf32, #tpu.memory_space<vmem>>, vector<16x128xf32>
    %305 = vector.broadcast %303 : vector<1x128xf32> to vector<16x128xf32>
    %306 = arith.mulf %305, %304 : vector<16x128xf32>
    %307 = arith.addf %302, %306 : vector<16x128xf32>
    %308 = vector.extract_strided_slice %301 {offsets = [1, 0], sizes = [1, 128], strides = [1, 1]} : vector<4x128xf32> to vector<1x128xf32>
    %c1_250 = arith.constant 1 : index
    %c0_251 = arith.constant 0 : index
    %309 = vector.load %arg10[%c1_250, %c0_251] : memref<22x128xf32, #tpu.memory_space<vmem>>, vector<16x128xf32>
    %310 = vector.broadcast %308 : vector<1x128xf32> to vector<16x128xf32>
    %311 = arith.mulf %310, %309 : vector<16x128xf32>
    %312 = arith.addf %307, %311 : vector<16x128xf32>
    %313 = vector.extract_strided_slice %301 {offsets = [2, 0], sizes = [1, 128], strides = [1, 1]} : vector<4x128xf32> to vector<1x128xf32>
    %c2_252 = arith.constant 2 : index
    %c0_253 = arith.constant 0 : index
    %314 = vector.load %arg10[%c2_252, %c0_253] : memref<22x128xf32, #tpu.memory_space<vmem>>, vector<16x128xf32>
    %315 = vector.broadcast %313 : vector<1x128xf32> to vector<16x128xf32>
    %316 = arith.mulf %315, %314 : vector<16x128xf32>
    %317 = arith.addf %312, %316 : vector<16x128xf32>
    %318 = vector.extract_strided_slice %301 {offsets = [3, 0], sizes = [1, 128], strides = [1, 1]} : vector<4x128xf32> to vector<1x128xf32>
    %c3_254 = arith.constant 3 : index
    %c0_255 = arith.constant 0 : index
    %319 = vector.load %arg10[%c3_254, %c0_255] : memref<22x128xf32, #tpu.memory_space<vmem>>, vector<16x128xf32>
    %320 = vector.broadcast %318 : vector<1x128xf32> to vector<16x128xf32>
    %321 = arith.mulf %320, %319 : vector<16x128xf32>
    %322 = arith.addf %317, %321 : vector<16x128xf32>
    %c4_256 = arith.constant 4 : index
    %c0_257 = arith.constant 0 : index
    %c0_258 = arith.constant 0 : index
    %323 = vector.load %arg3[%c4_256, %c0_257, %c0_258] : memref<6x1x128xf32, #tpu.memory_space<vmem>>, vector<1x1x128xf32>
    %324 = vector.shape_cast %323 : vector<1x1x128xf32> to vector<1x128xf32>
    %325 = vector.broadcast %324 : vector<1x128xf32> to vector<16x128xf32>
    %326 = arith.addf %322, %325 : vector<16x128xf32>
    %327 = arith.negf %326 : vector<16x128xf32>
    %328 = math.exp %327 : vector<16x128xf32>
    %cst_259 = arith.constant 1.000000e+00 : f32
    %329 = vector.broadcast %cst_259 : f32 to vector<16x128xf32>
    %330 = arith.addf %329, %328 : vector<16x128xf32>
    %331 = arith.divf %329, %330 : vector<16x128xf32>
    %332 = arith.mulf %326, %331 : vector<16x128xf32>
    %c0_260 = arith.constant 0 : index
    %c0_261 = arith.constant 0 : index
    %333 = vector.load %arg11[%c0_260, %c0_261] : memref<16x128xf32, #tpu.memory_space<vmem>>, vector<16x128xf32>
    tpu.vector_store %arg11[%c0_260, %c0_261], %332 {strides = array<i32>} : memref<16x128xf32, #tpu.memory_space<vmem>>, vector<16x128xf32>,
    %334 = arith.truncf %332 : vector<16x128xf32> to vector<16x128xbf16>
    %c4_262 = arith.constant 4 : index
    %c0_263 = arith.constant 0 : index
    %c0_264 = arith.constant 0 : index
    %335 = vector.load %arg4[%c4_262, %c0_263, %c0_264] : memref<6x128x256xbf16, #tpu.memory_space<vmem>>, vector<1x128x256xbf16>
    %336 = vector.shape_cast %335 : vector<1x128x256xbf16> to vector<128x256xbf16>
    %cst_265 = arith.constant dense<0.000000e+00> : vector<16x256xf32>
    %337 = tpu.matmul %334, %336, %cst_265 {dimension_numbers = #tpu.dot_dimension_numbers<[1], [0], [0], [1], [0, 0, 1, 1], [], []>} : vector<16x128xbf16>, vector<128x256xbf16>, vector<16x256xf32> -> vector<16x256xf32>
    %338 = vector.extract_strided_slice %337 {offsets = [0, 0], sizes = [16, 128], strides = [1, 1]} : vector<16x256xf32> to vector<16x128xf32>
    %c4_266 = arith.constant 4 : index
    %c0_267 = arith.constant 0 : index
    %c0_268 = arith.constant 0 : index
    %339 = vector.load %arg5[%c4_266, %c0_267, %c0_268] : memref<6x1x128xf32, #tpu.memory_space<vmem>>, vector<1x1x128xf32>
    %340 = vector.shape_cast %339 : vector<1x1x128xf32> to vector<1x128xf32>
    %341 = vector.broadcast %340 : vector<1x128xf32> to vector<16x128xf32>
    %342 = arith.addf %338, %341 : vector<16x128xf32>
    %cst_269 = arith.constant 2.000000e+01 : f32
    %343 = vector.broadcast %cst_269 : f32 to vector<16x128xf32>
    %344 = arith.cmpf ogt, %342, %343 : vector<16x128xf32>
    %cst_270 = arith.constant 2.000000e+01 : f32
    %345 = vector.broadcast %cst_270 : f32 to vector<16x128xf32>
    %346 = arith.minimumf %342, %345 : vector<16x128xf32>
    %347 = math.exp %346 : vector<16x128xf32>
    %348 = math.log1p %347 : vector<16x128xf32>
    %349 = arith.select %344, %342, %348 : vector<16x128xi1>, vector<16x128xf32>
    %c0_271 = arith.constant 0 : index
    %c0_272 = arith.constant 0 : index
    %350 = vector.load %arg12[%c0_271, %c0_272] : memref<16x128xf32, #tpu.memory_space<vmem>>, vector<16x128xf32>
    tpu.vector_store %arg12[%c0_271, %c0_272], %349 {strides = array<i32>} : memref<16x128xf32, #tpu.memory_space<vmem>>, vector<16x128xf32>,
    %351 = vector.extract_strided_slice %337 {offsets = [0, 128], sizes = [16, 32], strides = [1, 1]} : vector<16x256xf32> to vector<16x32xf32>
    %c0_273 = arith.constant 0 : index
    %c0_274 = arith.constant 0 : index
    %352 = vector.load %arg13[%c0_273, %c0_274] : memref<16x32xf32, #tpu.memory_space<vmem>>, vector<16x32xf32>
    tpu.vector_store %arg13[%c0_273, %c0_274], %351 {strides = array<i32>} : memref<16x32xf32, #tpu.memory_space<vmem>>, vector<16x32xf32>,
    %c4_275 = arith.constant 4 : index
    %c0_276 = arith.constant 0 : index
    %c0_277 = arith.constant 0 : index
    %353 = vector.load %arg6[%c4_275, %c0_276, %c0_277] : memref<6x16x128xf32, #tpu.memory_space<vmem>>, vector<1x16x128xf32>
    %354 = vector.shape_cast %353 : vector<1x16x128xf32> to vector<16x128xf32>
    %355 = vector.shape_cast %354 : vector<16x128xf32> to vector<1x16x128xf32>
    %c4_278 = arith.constant 4 : index
    %c0_279 = arith.constant 0 : index
    %c0_280 = arith.constant 0 : index
    %356 = vector.load %arg7[%c4_278, %c0_279, %c0_280] : memref<6x1x128xf32, #tpu.memory_space<vmem>>, vector<1x1x128xf32>
    %357 = vector.shape_cast %356 : vector<1x1x128xf32> to vector<1x128xf32>
    %cst_281 = arith.constant 0.000000e+00 : f32
    %358 = vector.broadcast %cst_281 : f32 to vector<1x16x128xf32>
    %c0_i32_282 = arith.constant 0 : i32
    %c2_i32_283 = arith.constant 2 : i32
    %359 = arith.addi %c0_i32_282, %c2_i32_283 : i32
    %c1_i32_284 = arith.constant 1 : i32
    %360 = scf.for %arg16 = %c0_i32_282 to %359 step %c1_i32_284 iter_args(%arg17 = %358) -> (vector<1x16x128xf32>)  : i32 {
      %c8_i32 = arith.constant 8 : i32
      %445 = arith.muli %arg16, %c8_i32 : i32
      %446 = tpu.assume_multiple %445, 8 : i32
      %447 = arith.index_cast %446 : i32 to index
      %c0_348 = arith.constant 0 : index
      %448 = vector.load %arg12[%447, %c0_348] : memref<16x128xf32, #tpu.memory_space<vmem>>, vector<8x128xf32>
      %449 = arith.index_cast %446 : i32 to index
      %c0_349 = arith.constant 0 : index
      %450 = vector.load %arg11[%449, %c0_349] : memref<16x128xf32, #tpu.memory_space<vmem>>, vector<8x128xf32>
      %451 = arith.index_cast %446 : i32 to index
      %c0_350 = arith.constant 0 : index
      %452 = vector.load %arg13[%451, %c0_350] : memref<16x32xf32, #tpu.memory_space<vmem>>, vector<8x32xf32>
      %453 = arith.mulf %448, %450 : vector<8x128xf32>
      %454 = vector.extract_strided_slice %448 {offsets = [0, 0], sizes = [1, 128], strides = [1, 1]} : vector<8x128xf32> to vector<1x128xf32>
      %455 = vector.extract_strided_slice %453 {offsets = [0, 0], sizes = [1, 128], strides = [1, 1]} : vector<8x128xf32> to vector<1x128xf32>
      %456 = vector.extract_strided_slice %452 {offsets = [0, 0], sizes = [1, 16], strides = [1, 1]} : vector<8x32xf32> to vector<1x16xf32>
      %457 = vector.extract_strided_slice %452 {offsets = [0, 16], sizes = [1, 16], strides = [1, 1]} : vector<8x32xf32> to vector<1x16xf32>
      %458 = vector.shape_cast %454 : vector<1x128xf32> to vector<1x1x128xf32>
      %459 = vector.broadcast %458 : vector<1x1x128xf32> to vector<1x16x128xf32>
      %460 = arith.mulf %459, %355 : vector<1x16x128xf32>
      %461 = math.exp %460 : vector<1x16x128xf32>
      %462 = vector.shape_cast %455 : vector<1x128xf32> to vector<1x1x128xf32>
      %463 = vector.shape_cast %456 : vector<1x16xf32> to vector<1x16x1xf32>
      %464 = vector.broadcast %462 : vector<1x1x128xf32> to vector<1x16x128xf32>
      %465 = vector.broadcast %463 : vector<1x16x1xf32> to vector<1x16x128xf32>
      %466 = arith.mulf %464, %465 : vector<1x16x128xf32>
      %467 = arith.mulf %461, %arg17 : vector<1x16x128xf32>
      %468 = arith.addf %467, %466 : vector<1x16x128xf32>
      %469 = vector.shape_cast %457 : vector<1x16xf32> to vector<1x16x1xf32>
      %470 = vector.broadcast %469 : vector<1x16x1xf32> to vector<1x16x128xf32>
      %471 = arith.mulf %470, %468 : vector<1x16x128xf32>
      %cst_351 = arith.constant dense<0.000000e+00> : vector<1x128xf32>
      %472 = vector.multi_reduction <add>, %471, %cst_351 [1] : vector<1x16x128xf32> to vector<1x128xf32>
      %473 = vector.extract_strided_slice %448 {offsets = [1, 0], sizes = [1, 128], strides = [1, 1]} : vector<8x128xf32> to vector<1x128xf32>
      %474 = vector.extract_strided_slice %453 {offsets = [1, 0], sizes = [1, 128], strides = [1, 1]} : vector<8x128xf32> to vector<1x128xf32>
      %475 = vector.extract_strided_slice %452 {offsets = [1, 0], sizes = [1, 16], strides = [1, 1]} : vector<8x32xf32> to vector<1x16xf32>
      %476 = vector.extract_strided_slice %452 {offsets = [1, 16], sizes = [1, 16], strides = [1, 1]} : vector<8x32xf32> to vector<1x16xf32>
      %477 = vector.shape_cast %473 : vector<1x128xf32> to vector<1x1x128xf32>
      %478 = vector.broadcast %477 : vector<1x1x128xf32> to vector<1x16x128xf32>
      %479 = arith.mulf %478, %355 : vector<1x16x128xf32>
      %480 = math.exp %479 : vector<1x16x128xf32>
      %481 = vector.shape_cast %474 : vector<1x128xf32> to vector<1x1x128xf32>
      %482 = vector.shape_cast %475 : vector<1x16xf32> to vector<1x16x1xf32>
      %483 = vector.broadcast %481 : vector<1x1x128xf32> to vector<1x16x128xf32>
      %484 = vector.broadcast %482 : vector<1x16x1xf32> to vector<1x16x128xf32>
      %485 = arith.mulf %483, %484 : vector<1x16x128xf32>
      %486 = arith.mulf %480, %468 : vector<1x16x128xf32>
      %487 = arith.addf %486, %485 : vector<1x16x128xf32>
      %488 = vector.shape_cast %476 : vector<1x16xf32> to vector<1x16x1xf32>
      %489 = vector.broadcast %488 : vector<1x16x1xf32> to vector<1x16x128xf32>
      %490 = arith.mulf %489, %487 : vector<1x16x128xf32>
      %cst_352 = arith.constant dense<0.000000e+00> : vector<1x128xf32>
      %491 = vector.multi_reduction <add>, %490, %cst_352 [1] : vector<1x16x128xf32> to vector<1x128xf32>
      %492 = vector.extract_strided_slice %448 {offsets = [2, 0], sizes = [1, 128], strides = [1, 1]} : vector<8x128xf32> to vector<1x128xf32>
      %493 = vector.extract_strided_slice %453 {offsets = [2, 0], sizes = [1, 128], strides = [1, 1]} : vector<8x128xf32> to vector<1x128xf32>
      %494 = vector.extract_strided_slice %452 {offsets = [2, 0], sizes = [1, 16], strides = [1, 1]} : vector<8x32xf32> to vector<1x16xf32>
      %495 = vector.extract_strided_slice %452 {offsets = [2, 16], sizes = [1, 16], strides = [1, 1]} : vector<8x32xf32> to vector<1x16xf32>
      %496 = vector.shape_cast %492 : vector<1x128xf32> to vector<1x1x128xf32>
      %497 = vector.broadcast %496 : vector<1x1x128xf32> to vector<1x16x128xf32>
      %498 = arith.mulf %497, %355 : vector<1x16x128xf32>
      %499 = math.exp %498 : vector<1x16x128xf32>
      %500 = vector.shape_cast %493 : vector<1x128xf32> to vector<1x1x128xf32>
      %501 = vector.shape_cast %494 : vector<1x16xf32> to vector<1x16x1xf32>
      %502 = vector.broadcast %500 : vector<1x1x128xf32> to vector<1x16x128xf32>
      %503 = vector.broadcast %501 : vector<1x16x1xf32> to vector<1x16x128xf32>
      %504 = arith.mulf %502, %503 : vector<1x16x128xf32>
      %505 = arith.mulf %499, %487 : vector<1x16x128xf32>
      %506 = arith.addf %505, %504 : vector<1x16x128xf32>
      %507 = vector.shape_cast %495 : vector<1x16xf32> to vector<1x16x1xf32>
      %508 = vector.broadcast %507 : vector<1x16x1xf32> to vector<1x16x128xf32>
      %509 = arith.mulf %508, %506 : vector<1x16x128xf32>
      %cst_353 = arith.constant dense<0.000000e+00> : vector<1x128xf32>
      %510 = vector.multi_reduction <add>, %509, %cst_353 [1] : vector<1x16x128xf32> to vector<1x128xf32>
      %511 = vector.extract_strided_slice %448 {offsets = [3, 0], sizes = [1, 128], strides = [1, 1]} : vector<8x128xf32> to vector<1x128xf32>
      %512 = vector.extract_strided_slice %453 {offsets = [3, 0], sizes = [1, 128], strides = [1, 1]} : vector<8x128xf32> to vector<1x128xf32>
      %513 = vector.extract_strided_slice %452 {offsets = [3, 0], sizes = [1, 16], strides = [1, 1]} : vector<8x32xf32> to vector<1x16xf32>
      %514 = vector.extract_strided_slice %452 {offsets = [3, 16], sizes = [1, 16], strides = [1, 1]} : vector<8x32xf32> to vector<1x16xf32>
      %515 = vector.shape_cast %511 : vector<1x128xf32> to vector<1x1x128xf32>
      %516 = vector.broadcast %515 : vector<1x1x128xf32> to vector<1x16x128xf32>
      %517 = arith.mulf %516, %355 : vector<1x16x128xf32>
      %518 = math.exp %517 : vector<1x16x128xf32>
      %519 = vector.shape_cast %512 : vector<1x128xf32> to vector<1x1x128xf32>
      %520 = vector.shape_cast %513 : vector<1x16xf32> to vector<1x16x1xf32>
      %521 = vector.broadcast %519 : vector<1x1x128xf32> to vector<1x16x128xf32>
      %522 = vector.broadcast %520 : vector<1x16x1xf32> to vector<1x16x128xf32>
      %523 = arith.mulf %521, %522 : vector<1x16x128xf32>
      %524 = arith.mulf %518, %506 : vector<1x16x128xf32>
      %525 = arith.addf %524, %523 : vector<1x16x128xf32>
      %526 = vector.shape_cast %514 : vector<1x16xf32> to vector<1x16x1xf32>
      %527 = vector.broadcast %526 : vector<1x16x1xf32> to vector<1x16x128xf32>
      %528 = arith.mulf %527, %525 : vector<1x16x128xf32>
      %cst_354 = arith.constant dense<0.000000e+00> : vector<1x128xf32>
      %529 = vector.multi_reduction <add>, %528, %cst_354 [1] : vector<1x16x128xf32> to vector<1x128xf32>
      %530 = vector.extract_strided_slice %448 {offsets = [4, 0], sizes = [1, 128], strides = [1, 1]} : vector<8x128xf32> to vector<1x128xf32>
      %531 = vector.extract_strided_slice %453 {offsets = [4, 0], sizes = [1, 128], strides = [1, 1]} : vector<8x128xf32> to vector<1x128xf32>
      %532 = vector.extract_strided_slice %452 {offsets = [4, 0], sizes = [1, 16], strides = [1, 1]} : vector<8x32xf32> to vector<1x16xf32>
      %533 = vector.extract_strided_slice %452 {offsets = [4, 16], sizes = [1, 16], strides = [1, 1]} : vector<8x32xf32> to vector<1x16xf32>
      %534 = vector.shape_cast %530 : vector<1x128xf32> to vector<1x1x128xf32>
      %535 = vector.broadcast %534 : vector<1x1x128xf32> to vector<1x16x128xf32>
      %536 = arith.mulf %535, %355 : vector<1x16x128xf32>
      %537 = math.exp %536 : vector<1x16x128xf32>
      %538 = vector.shape_cast %531 : vector<1x128xf32> to vector<1x1x128xf32>
      %539 = vector.shape_cast %532 : vector<1x16xf32> to vector<1x16x1xf32>
      %540 = vector.broadcast %538 : vector<1x1x128xf32> to vector<1x16x128xf32>
      %541 = vector.broadcast %539 : vector<1x16x1xf32> to vector<1x16x128xf32>
      %542 = arith.mulf %540, %541 : vector<1x16x128xf32>
      %543 = arith.mulf %537, %525 : vector<1x16x128xf32>
      %544 = arith.addf %543, %542 : vector<1x16x128xf32>
      %545 = vector.shape_cast %533 : vector<1x16xf32> to vector<1x16x1xf32>
      %546 = vector.broadcast %545 : vector<1x16x1xf32> to vector<1x16x128xf32>
      %547 = arith.mulf %546, %544 : vector<1x16x128xf32>
      %cst_355 = arith.constant dense<0.000000e+00> : vector<1x128xf32>
      %548 = vector.multi_reduction <add>, %547, %cst_355 [1] : vector<1x16x128xf32> to vector<1x128xf32>
      %549 = vector.extract_strided_slice %448 {offsets = [5, 0], sizes = [1, 128], strides = [1, 1]} : vector<8x128xf32> to vector<1x128xf32>
      %550 = vector.extract_strided_slice %453 {offsets = [5, 0], sizes = [1, 128], strides = [1, 1]} : vector<8x128xf32> to vector<1x128xf32>
      %551 = vector.extract_strided_slice %452 {offsets = [5, 0], sizes = [1, 16], strides = [1, 1]} : vector<8x32xf32> to vector<1x16xf32>
      %552 = vector.extract_strided_slice %452 {offsets = [5, 16], sizes = [1, 16], strides = [1, 1]} : vector<8x32xf32> to vector<1x16xf32>
      %553 = vector.shape_cast %549 : vector<1x128xf32> to vector<1x1x128xf32>
      %554 = vector.broadcast %553 : vector<1x1x128xf32> to vector<1x16x128xf32>
      %555 = arith.mulf %554, %355 : vector<1x16x128xf32>
      %556 = math.exp %555 : vector<1x16x128xf32>
      %557 = vector.shape_cast %550 : vector<1x128xf32> to vector<1x1x128xf32>
      %558 = vector.shape_cast %551 : vector<1x16xf32> to vector<1x16x1xf32>
      %559 = vector.broadcast %557 : vector<1x1x128xf32> to vector<1x16x128xf32>
      %560 = vector.broadcast %558 : vector<1x16x1xf32> to vector<1x16x128xf32>
      %561 = arith.mulf %559, %560 : vector<1x16x128xf32>
      %562 = arith.mulf %556, %544 : vector<1x16x128xf32>
      %563 = arith.addf %562, %561 : vector<1x16x128xf32>
      %564 = vector.shape_cast %552 : vector<1x16xf32> to vector<1x16x1xf32>
      %565 = vector.broadcast %564 : vector<1x16x1xf32> to vector<1x16x128xf32>
      %566 = arith.mulf %565, %563 : vector<1x16x128xf32>
      %cst_356 = arith.constant dense<0.000000e+00> : vector<1x128xf32>
      %567 = vector.multi_reduction <add>, %566, %cst_356 [1] : vector<1x16x128xf32> to vector<1x128xf32>
      %568 = vector.extract_strided_slice %448 {offsets = [6, 0], sizes = [1, 128], strides = [1, 1]} : vector<8x128xf32> to vector<1x128xf32>
      %569 = vector.extract_strided_slice %453 {offsets = [6, 0], sizes = [1, 128], strides = [1, 1]} : vector<8x128xf32> to vector<1x128xf32>
      %570 = vector.extract_strided_slice %452 {offsets = [6, 0], sizes = [1, 16], strides = [1, 1]} : vector<8x32xf32> to vector<1x16xf32>
      %571 = vector.extract_strided_slice %452 {offsets = [6, 16], sizes = [1, 16], strides = [1, 1]} : vector<8x32xf32> to vector<1x16xf32>
      %572 = vector.shape_cast %568 : vector<1x128xf32> to vector<1x1x128xf32>
      %573 = vector.broadcast %572 : vector<1x1x128xf32> to vector<1x16x128xf32>
      %574 = arith.mulf %573, %355 : vector<1x16x128xf32>
      %575 = math.exp %574 : vector<1x16x128xf32>
      %576 = vector.shape_cast %569 : vector<1x128xf32> to vector<1x1x128xf32>
      %577 = vector.shape_cast %570 : vector<1x16xf32> to vector<1x16x1xf32>
      %578 = vector.broadcast %576 : vector<1x1x128xf32> to vector<1x16x128xf32>
      %579 = vector.broadcast %577 : vector<1x16x1xf32> to vector<1x16x128xf32>
      %580 = arith.mulf %578, %579 : vector<1x16x128xf32>
      %581 = arith.mulf %575, %563 : vector<1x16x128xf32>
      %582 = arith.addf %581, %580 : vector<1x16x128xf32>
      %583 = vector.shape_cast %571 : vector<1x16xf32> to vector<1x16x1xf32>
      %584 = vector.broadcast %583 : vector<1x16x1xf32> to vector<1x16x128xf32>
      %585 = arith.mulf %584, %582 : vector<1x16x128xf32>
      %cst_357 = arith.constant dense<0.000000e+00> : vector<1x128xf32>
      %586 = vector.multi_reduction <add>, %585, %cst_357 [1] : vector<1x16x128xf32> to vector<1x128xf32>
      %587 = vector.extract_strided_slice %448 {offsets = [7, 0], sizes = [1, 128], strides = [1, 1]} : vector<8x128xf32> to vector<1x128xf32>
      %588 = vector.extract_strided_slice %453 {offsets = [7, 0], sizes = [1, 128], strides = [1, 1]} : vector<8x128xf32> to vector<1x128xf32>
      %589 = vector.extract_strided_slice %452 {offsets = [7, 0], sizes = [1, 16], strides = [1, 1]} : vector<8x32xf32> to vector<1x16xf32>
      %590 = vector.extract_strided_slice %452 {offsets = [7, 16], sizes = [1, 16], strides = [1, 1]} : vector<8x32xf32> to vector<1x16xf32>
      %591 = vector.shape_cast %587 : vector<1x128xf32> to vector<1x1x128xf32>
      %592 = vector.broadcast %591 : vector<1x1x128xf32> to vector<1x16x128xf32>
      %593 = arith.mulf %592, %355 : vector<1x16x128xf32>
      %594 = math.exp %593 : vector<1x16x128xf32>
      %595 = vector.shape_cast %588 : vector<1x128xf32> to vector<1x1x128xf32>
      %596 = vector.shape_cast %589 : vector<1x16xf32> to vector<1x16x1xf32>
      %597 = vector.broadcast %595 : vector<1x1x128xf32> to vector<1x16x128xf32>
      %598 = vector.broadcast %596 : vector<1x16x1xf32> to vector<1x16x128xf32>
      %599 = arith.mulf %597, %598 : vector<1x16x128xf32>
      %600 = arith.mulf %594, %582 : vector<1x16x128xf32>
      %601 = arith.addf %600, %599 : vector<1x16x128xf32>
      %602 = vector.shape_cast %590 : vector<1x16xf32> to vector<1x16x1xf32>
      %603 = vector.broadcast %602 : vector<1x16x1xf32> to vector<1x16x128xf32>
      %604 = arith.mulf %603, %601 : vector<1x16x128xf32>
      %cst_358 = arith.constant dense<0.000000e+00> : vector<1x128xf32>
      %605 = vector.multi_reduction <add>, %604, %cst_358 [1] : vector<1x16x128xf32> to vector<1x128xf32>
      %606 = tpu.concatenate %472, %491, %510, %529, %548, %567, %586, %605 in 0 : vector<1x128xf32>, vector<1x128xf32>, vector<1x128xf32>, vector<1x128xf32>, vector<1x128xf32>, vector<1x128xf32>, vector<1x128xf32>, vector<1x128xf32> -> vector<8x128xf32>
      %607 = vector.broadcast %357 : vector<1x128xf32> to vector<8x128xf32>
      %608 = arith.mulf %450, %607 : vector<8x128xf32>
      %609 = arith.addf %606, %608 : vector<8x128xf32>
      %610 = arith.index_cast %446 : i32 to index
      %c0_359 = arith.constant 0 : index
      %611 = vector.load %arg14[%610, %c0_359] : memref<16x128xf32, #tpu.memory_space<vmem>>, vector<8x128xf32>
      tpu.vector_store %arg14[%610, %c0_359], %609 {strides = array<i32>} : memref<16x128xf32, #tpu.memory_space<vmem>>, vector<8x128xf32>,
      scf.yield %601 : vector<1x16x128xf32>
    }
    %c2_i32_285 = arith.constant 2 : i32
    %c5_286 = arith.constant 5 : index
    %c0_287 = arith.constant 0 : index
    %c0_288 = arith.constant 0 : index
    %361 = vector.load %arg2[%c5_286, %c0_287, %c0_288] : memref<6x4x128xf32, #tpu.memory_space<vmem>>, vector<1x4x128xf32>
    %362 = vector.shape_cast %361 : vector<1x4x128xf32> to vector<4x128xf32>
    %cst_289 = arith.constant 0.000000e+00 : f32
    %363 = vector.broadcast %cst_289 : f32 to vector<16x128xf32>
    %364 = vector.extract_strided_slice %362 {offsets = [3, 0], sizes = [1, 128], strides = [1, 1]} : vector<4x128xf32> to vector<1x128xf32>
    %c3_290 = arith.constant 3 : index
    %c0_291 = arith.constant 0 : index
    %365 = vector.load %arg10[%c3_290, %c0_291] : memref<22x128xf32, #tpu.memory_space<vmem>>, vector<16x128xf32>
    %366 = vector.broadcast %364 : vector<1x128xf32> to vector<16x128xf32>
    %367 = arith.mulf %366, %365 : vector<16x128xf32>
    %368 = arith.addf %363, %367 : vector<16x128xf32>
    %369 = vector.extract_strided_slice %362 {offsets = [2, 0], sizes = [1, 128], strides = [1, 1]} : vector<4x128xf32> to vector<1x128xf32>
    %c4_292 = arith.constant 4 : index
    %c0_293 = arith.constant 0 : index
    %370 = vector.load %arg10[%c4_292, %c0_293] : memref<22x128xf32, #tpu.memory_space<vmem>>, vector<16x128xf32>
    %371 = vector.broadcast %369 : vector<1x128xf32> to vector<16x128xf32>
    %372 = arith.mulf %371, %370 : vector<16x128xf32>
    %373 = arith.addf %368, %372 : vector<16x128xf32>
    %374 = vector.extract_strided_slice %362 {offsets = [1, 0], sizes = [1, 128], strides = [1, 1]} : vector<4x128xf32> to vector<1x128xf32>
    %c5_294 = arith.constant 5 : index
    %c0_295 = arith.constant 0 : index
    %375 = vector.load %arg10[%c5_294, %c0_295] : memref<22x128xf32, #tpu.memory_space<vmem>>, vector<16x128xf32>
    %376 = vector.broadcast %374 : vector<1x128xf32> to vector<16x128xf32>
    %377 = arith.mulf %376, %375 : vector<16x128xf32>
    %378 = arith.addf %373, %377 : vector<16x128xf32>
    %379 = vector.extract_strided_slice %362 {offsets = [0, 0], sizes = [1, 128], strides = [1, 1]} : vector<4x128xf32> to vector<1x128xf32>
    %c6_296 = arith.constant 6 : index
    %c0_297 = arith.constant 0 : index
    %380 = vector.load %arg10[%c6_296, %c0_297] : memref<22x128xf32, #tpu.memory_space<vmem>>, vector<16x128xf32>
    %381 = vector.broadcast %379 : vector<1x128xf32> to vector<16x128xf32>
    %382 = arith.mulf %381, %380 : vector<16x128xf32>
    %383 = arith.addf %378, %382 : vector<16x128xf32>
    %c5_298 = arith.constant 5 : index
    %c0_299 = arith.constant 0 : index
    %c0_300 = arith.constant 0 : index
    %384 = vector.load %arg3[%c5_298, %c0_299, %c0_300] : memref<6x1x128xf32, #tpu.memory_space<vmem>>, vector<1x1x128xf32>
    %385 = vector.shape_cast %384 : vector<1x1x128xf32> to vector<1x128xf32>
    %386 = vector.broadcast %385 : vector<1x128xf32> to vector<16x128xf32>
    %387 = arith.addf %383, %386 : vector<16x128xf32>
    %388 = arith.negf %387 : vector<16x128xf32>
    %389 = math.exp %388 : vector<16x128xf32>
    %cst_301 = arith.constant 1.000000e+00 : f32
    %390 = vector.broadcast %cst_301 : f32 to vector<16x128xf32>
    %391 = arith.addf %390, %389 : vector<16x128xf32>
    %392 = arith.divf %390, %391 : vector<16x128xf32>
    %393 = arith.mulf %387, %392 : vector<16x128xf32>
    %c0_302 = arith.constant 0 : index
    %c0_303 = arith.constant 0 : index
    %394 = vector.load %arg11[%c0_302, %c0_303] : memref<16x128xf32, #tpu.memory_space<vmem>>, vector<16x128xf32>
    tpu.vector_store %arg11[%c0_302, %c0_303], %393 {strides = array<i32>} : memref<16x128xf32, #tpu.memory_space<vmem>>, vector<16x128xf32>,
    %395 = arith.truncf %393 : vector<16x128xf32> to vector<16x128xbf16>
    %c5_304 = arith.constant 5 : index
    %c0_305 = arith.constant 0 : index
    %c0_306 = arith.constant 0 : index
    %396 = vector.load %arg4[%c5_304, %c0_305, %c0_306] : memref<6x128x256xbf16, #tpu.memory_space<vmem>>, vector<1x128x256xbf16>
    %397 = vector.shape_cast %396 : vector<1x128x256xbf16> to vector<128x256xbf16>
    %cst_307 = arith.constant dense<0.000000e+00> : vector<16x256xf32>
    %398 = tpu.matmul %395, %397, %cst_307 {dimension_numbers = #tpu.dot_dimension_numbers<[1], [0], [0], [1], [0, 0, 1, 1], [], []>} : vector<16x128xbf16>, vector<128x256xbf16>, vector<16x256xf32> -> vector<16x256xf32>
    %399 = vector.extract_strided_slice %398 {offsets = [0, 0], sizes = [16, 128], strides = [1, 1]} : vector<16x256xf32> to vector<16x128xf32>
    %c5_308 = arith.constant 5 : index
    %c0_309 = arith.constant 0 : index
    %c0_310 = arith.constant 0 : index
    %400 = vector.load %arg5[%c5_308, %c0_309, %c0_310] : memref<6x1x128xf32, #tpu.memory_space<vmem>>, vector<1x1x128xf32>
    %401 = vector.shape_cast %400 : vector<1x1x128xf32> to vector<1x128xf32>
    %402 = vector.broadcast %401 : vector<1x128xf32> to vector<16x128xf32>
    %403 = arith.addf %399, %402 : vector<16x128xf32>
    %cst_311 = arith.constant 2.000000e+01 : f32
    %404 = vector.broadcast %cst_311 : f32 to vector<16x128xf32>
    %405 = arith.cmpf ogt, %403, %404 : vector<16x128xf32>
    %cst_312 = arith.constant 2.000000e+01 : f32
    %406 = vector.broadcast %cst_312 : f32 to vector<16x128xf32>
    %407 = arith.minimumf %403, %406 : vector<16x128xf32>
    %408 = math.exp %407 : vector<16x128xf32>
    %409 = math.log1p %408 : vector<16x128xf32>
    %410 = arith.select %405, %403, %409 : vector<16x128xi1>, vector<16x128xf32>
    %c0_313 = arith.constant 0 : index
    %c0_314 = arith.constant 0 : index
    %411 = vector.load %arg12[%c0_313, %c0_314] : memref<16x128xf32, #tpu.memory_space<vmem>>, vector<16x128xf32>
    tpu.vector_store %arg12[%c0_313, %c0_314], %410 {strides = array<i32>} : memref<16x128xf32, #tpu.memory_space<vmem>>, vector<16x128xf32>,
    %412 = vector.extract_strided_slice %398 {offsets = [0, 128], sizes = [16, 32], strides = [1, 1]} : vector<16x256xf32> to vector<16x32xf32>
    %c0_315 = arith.constant 0 : index
    %c0_316 = arith.constant 0 : index
    %413 = vector.load %arg13[%c0_315, %c0_316] : memref<16x32xf32, #tpu.memory_space<vmem>>, vector<16x32xf32>
    tpu.vector_store %arg13[%c0_315, %c0_316], %412 {strides = array<i32>} : memref<16x32xf32, #tpu.memory_space<vmem>>, vector<16x32xf32>,
    %c5_317 = arith.constant 5 : index
    %c0_318 = arith.constant 0 : index
    %c0_319 = arith.constant 0 : index
    %414 = vector.load %arg6[%c5_317, %c0_318, %c0_319] : memref<6x16x128xf32, #tpu.memory_space<vmem>>, vector<1x16x128xf32>
    %415 = vector.shape_cast %414 : vector<1x16x128xf32> to vector<16x128xf32>
    %416 = vector.shape_cast %415 : vector<16x128xf32> to vector<1x16x128xf32>
    %c5_320 = arith.constant 5 : index
    %c0_321 = arith.constant 0 : index
    %c0_322 = arith.constant 0 : index
    %417 = vector.load %arg7[%c5_320, %c0_321, %c0_322] : memref<6x1x128xf32, #tpu.memory_space<vmem>>, vector<1x1x128xf32>
    %418 = vector.shape_cast %417 : vector<1x1x128xf32> to vector<1x128xf32>
    %cst_323 = arith.constant 0.000000e+00 : f32
    %419 = vector.broadcast %cst_323 : f32 to vector<1x16x128xf32>
    %c0_i32_324 = arith.constant 0 : i32
    %c2_i32_325 = arith.constant 2 : i32
    %420 = arith.addi %c0_i32_324, %c2_i32_325 : i32
    %c1_i32_326 = arith.constant 1 : i32
    %421 = scf.for %arg16 = %c0_i32_324 to %420 step %c1_i32_326 iter_args(%arg17 = %419) -> (vector<1x16x128xf32>)  : i32 {
      %c1_i32_348 = arith.constant 1 : i32
      %445 = arith.subi %c1_i32_348, %arg16 : i32
      %c8_i32 = arith.constant 8 : i32
      %446 = arith.muli %445, %c8_i32 : i32
      %447 = tpu.assume_multiple %446, 8 : i32
      %448 = arith.index_cast %447 : i32 to index
      %c0_349 = arith.constant 0 : index
      %449 = vector.load %arg12[%448, %c0_349] : memref<16x128xf32, #tpu.memory_space<vmem>>, vector<8x128xf32>
      %450 = arith.index_cast %447 : i32 to index
      %c0_350 = arith.constant 0 : index
      %451 = vector.load %arg11[%450, %c0_350] : memref<16x128xf32, #tpu.memory_space<vmem>>, vector<8x128xf32>
      %452 = arith.index_cast %447 : i32 to index
      %c0_351 = arith.constant 0 : index
      %453 = vector.load %arg13[%452, %c0_351] : memref<16x32xf32, #tpu.memory_space<vmem>>, vector<8x32xf32>
      %454 = arith.mulf %449, %451 : vector<8x128xf32>
      %455 = vector.extract_strided_slice %449 {offsets = [7, 0], sizes = [1, 128], strides = [1, 1]} : vector<8x128xf32> to vector<1x128xf32>
      %456 = vector.extract_strided_slice %454 {offsets = [7, 0], sizes = [1, 128], strides = [1, 1]} : vector<8x128xf32> to vector<1x128xf32>
      %457 = vector.extract_strided_slice %453 {offsets = [7, 0], sizes = [1, 16], strides = [1, 1]} : vector<8x32xf32> to vector<1x16xf32>
      %458 = vector.extract_strided_slice %453 {offsets = [7, 16], sizes = [1, 16], strides = [1, 1]} : vector<8x32xf32> to vector<1x16xf32>
      %459 = vector.shape_cast %455 : vector<1x128xf32> to vector<1x1x128xf32>
      %460 = vector.broadcast %459 : vector<1x1x128xf32> to vector<1x16x128xf32>
      %461 = arith.mulf %460, %416 : vector<1x16x128xf32>
      %462 = math.exp %461 : vector<1x16x128xf32>
      %463 = vector.shape_cast %456 : vector<1x128xf32> to vector<1x1x128xf32>
      %464 = vector.shape_cast %457 : vector<1x16xf32> to vector<1x16x1xf32>
      %465 = vector.broadcast %463 : vector<1x1x128xf32> to vector<1x16x128xf32>
      %466 = vector.broadcast %464 : vector<1x16x1xf32> to vector<1x16x128xf32>
      %467 = arith.mulf %465, %466 : vector<1x16x128xf32>
      %468 = arith.mulf %462, %arg17 : vector<1x16x128xf32>
      %469 = arith.addf %468, %467 : vector<1x16x128xf32>
      %470 = vector.shape_cast %458 : vector<1x16xf32> to vector<1x16x1xf32>
      %471 = vector.broadcast %470 : vector<1x16x1xf32> to vector<1x16x128xf32>
      %472 = arith.mulf %471, %469 : vector<1x16x128xf32>
      %cst_352 = arith.constant dense<0.000000e+00> : vector<1x128xf32>
      %473 = vector.multi_reduction <add>, %472, %cst_352 [1] : vector<1x16x128xf32> to vector<1x128xf32>
      %474 = vector.extract_strided_slice %449 {offsets = [6, 0], sizes = [1, 128], strides = [1, 1]} : vector<8x128xf32> to vector<1x128xf32>
      %475 = vector.extract_strided_slice %454 {offsets = [6, 0], sizes = [1, 128], strides = [1, 1]} : vector<8x128xf32> to vector<1x128xf32>
      %476 = vector.extract_strided_slice %453 {offsets = [6, 0], sizes = [1, 16], strides = [1, 1]} : vector<8x32xf32> to vector<1x16xf32>
      %477 = vector.extract_strided_slice %453 {offsets = [6, 16], sizes = [1, 16], strides = [1, 1]} : vector<8x32xf32> to vector<1x16xf32>
      %478 = vector.shape_cast %474 : vector<1x128xf32> to vector<1x1x128xf32>
      %479 = vector.broadcast %478 : vector<1x1x128xf32> to vector<1x16x128xf32>
      %480 = arith.mulf %479, %416 : vector<1x16x128xf32>
      %481 = math.exp %480 : vector<1x16x128xf32>
      %482 = vector.shape_cast %475 : vector<1x128xf32> to vector<1x1x128xf32>
      %483 = vector.shape_cast %476 : vector<1x16xf32> to vector<1x16x1xf32>
      %484 = vector.broadcast %482 : vector<1x1x128xf32> to vector<1x16x128xf32>
      %485 = vector.broadcast %483 : vector<1x16x1xf32> to vector<1x16x128xf32>
      %486 = arith.mulf %484, %485 : vector<1x16x128xf32>
      %487 = arith.mulf %481, %469 : vector<1x16x128xf32>
      %488 = arith.addf %487, %486 : vector<1x16x128xf32>
      %489 = vector.shape_cast %477 : vector<1x16xf32> to vector<1x16x1xf32>
      %490 = vector.broadcast %489 : vector<1x16x1xf32> to vector<1x16x128xf32>
      %491 = arith.mulf %490, %488 : vector<1x16x128xf32>
      %cst_353 = arith.constant dense<0.000000e+00> : vector<1x128xf32>
      %492 = vector.multi_reduction <add>, %491, %cst_353 [1] : vector<1x16x128xf32> to vector<1x128xf32>
      %493 = vector.extract_strided_slice %449 {offsets = [5, 0], sizes = [1, 128], strides = [1, 1]} : vector<8x128xf32> to vector<1x128xf32>
      %494 = vector.extract_strided_slice %454 {offsets = [5, 0], sizes = [1, 128], strides = [1, 1]} : vector<8x128xf32> to vector<1x128xf32>
      %495 = vector.extract_strided_slice %453 {offsets = [5, 0], sizes = [1, 16], strides = [1, 1]} : vector<8x32xf32> to vector<1x16xf32>
      %496 = vector.extract_strided_slice %453 {offsets = [5, 16], sizes = [1, 16], strides = [1, 1]} : vector<8x32xf32> to vector<1x16xf32>
      %497 = vector.shape_cast %493 : vector<1x128xf32> to vector<1x1x128xf32>
      %498 = vector.broadcast %497 : vector<1x1x128xf32> to vector<1x16x128xf32>
      %499 = arith.mulf %498, %416 : vector<1x16x128xf32>
      %500 = math.exp %499 : vector<1x16x128xf32>
      %501 = vector.shape_cast %494 : vector<1x128xf32> to vector<1x1x128xf32>
      %502 = vector.shape_cast %495 : vector<1x16xf32> to vector<1x16x1xf32>
      %503 = vector.broadcast %501 : vector<1x1x128xf32> to vector<1x16x128xf32>
      %504 = vector.broadcast %502 : vector<1x16x1xf32> to vector<1x16x128xf32>
      %505 = arith.mulf %503, %504 : vector<1x16x128xf32>
      %506 = arith.mulf %500, %488 : vector<1x16x128xf32>
      %507 = arith.addf %506, %505 : vector<1x16x128xf32>
      %508 = vector.shape_cast %496 : vector<1x16xf32> to vector<1x16x1xf32>
      %509 = vector.broadcast %508 : vector<1x16x1xf32> to vector<1x16x128xf32>
      %510 = arith.mulf %509, %507 : vector<1x16x128xf32>
      %cst_354 = arith.constant dense<0.000000e+00> : vector<1x128xf32>
      %511 = vector.multi_reduction <add>, %510, %cst_354 [1] : vector<1x16x128xf32> to vector<1x128xf32>
      %512 = vector.extract_strided_slice %449 {offsets = [4, 0], sizes = [1, 128], strides = [1, 1]} : vector<8x128xf32> to vector<1x128xf32>
      %513 = vector.extract_strided_slice %454 {offsets = [4, 0], sizes = [1, 128], strides = [1, 1]} : vector<8x128xf32> to vector<1x128xf32>
      %514 = vector.extract_strided_slice %453 {offsets = [4, 0], sizes = [1, 16], strides = [1, 1]} : vector<8x32xf32> to vector<1x16xf32>
      %515 = vector.extract_strided_slice %453 {offsets = [4, 16], sizes = [1, 16], strides = [1, 1]} : vector<8x32xf32> to vector<1x16xf32>
      %516 = vector.shape_cast %512 : vector<1x128xf32> to vector<1x1x128xf32>
      %517 = vector.broadcast %516 : vector<1x1x128xf32> to vector<1x16x128xf32>
      %518 = arith.mulf %517, %416 : vector<1x16x128xf32>
      %519 = math.exp %518 : vector<1x16x128xf32>
      %520 = vector.shape_cast %513 : vector<1x128xf32> to vector<1x1x128xf32>
      %521 = vector.shape_cast %514 : vector<1x16xf32> to vector<1x16x1xf32>
      %522 = vector.broadcast %520 : vector<1x1x128xf32> to vector<1x16x128xf32>
      %523 = vector.broadcast %521 : vector<1x16x1xf32> to vector<1x16x128xf32>
      %524 = arith.mulf %522, %523 : vector<1x16x128xf32>
      %525 = arith.mulf %519, %507 : vector<1x16x128xf32>
      %526 = arith.addf %525, %524 : vector<1x16x128xf32>
      %527 = vector.shape_cast %515 : vector<1x16xf32> to vector<1x16x1xf32>
      %528 = vector.broadcast %527 : vector<1x16x1xf32> to vector<1x16x128xf32>
      %529 = arith.mulf %528, %526 : vector<1x16x128xf32>
      %cst_355 = arith.constant dense<0.000000e+00> : vector<1x128xf32>
      %530 = vector.multi_reduction <add>, %529, %cst_355 [1] : vector<1x16x128xf32> to vector<1x128xf32>
      %531 = vector.extract_strided_slice %449 {offsets = [3, 0], sizes = [1, 128], strides = [1, 1]} : vector<8x128xf32> to vector<1x128xf32>
      %532 = vector.extract_strided_slice %454 {offsets = [3, 0], sizes = [1, 128], strides = [1, 1]} : vector<8x128xf32> to vector<1x128xf32>
      %533 = vector.extract_strided_slice %453 {offsets = [3, 0], sizes = [1, 16], strides = [1, 1]} : vector<8x32xf32> to vector<1x16xf32>
      %534 = vector.extract_strided_slice %453 {offsets = [3, 16], sizes = [1, 16], strides = [1, 1]} : vector<8x32xf32> to vector<1x16xf32>
      %535 = vector.shape_cast %531 : vector<1x128xf32> to vector<1x1x128xf32>
      %536 = vector.broadcast %535 : vector<1x1x128xf32> to vector<1x16x128xf32>
      %537 = arith.mulf %536, %416 : vector<1x16x128xf32>
      %538 = math.exp %537 : vector<1x16x128xf32>
      %539 = vector.shape_cast %532 : vector<1x128xf32> to vector<1x1x128xf32>
      %540 = vector.shape_cast %533 : vector<1x16xf32> to vector<1x16x1xf32>
      %541 = vector.broadcast %539 : vector<1x1x128xf32> to vector<1x16x128xf32>
      %542 = vector.broadcast %540 : vector<1x16x1xf32> to vector<1x16x128xf32>
      %543 = arith.mulf %541, %542 : vector<1x16x128xf32>
      %544 = arith.mulf %538, %526 : vector<1x16x128xf32>
      %545 = arith.addf %544, %543 : vector<1x16x128xf32>
      %546 = vector.shape_cast %534 : vector<1x16xf32> to vector<1x16x1xf32>
      %547 = vector.broadcast %546 : vector<1x16x1xf32> to vector<1x16x128xf32>
      %548 = arith.mulf %547, %545 : vector<1x16x128xf32>
      %cst_356 = arith.constant dense<0.000000e+00> : vector<1x128xf32>
      %549 = vector.multi_reduction <add>, %548, %cst_356 [1] : vector<1x16x128xf32> to vector<1x128xf32>
      %550 = vector.extract_strided_slice %449 {offsets = [2, 0], sizes = [1, 128], strides = [1, 1]} : vector<8x128xf32> to vector<1x128xf32>
      %551 = vector.extract_strided_slice %454 {offsets = [2, 0], sizes = [1, 128], strides = [1, 1]} : vector<8x128xf32> to vector<1x128xf32>
      %552 = vector.extract_strided_slice %453 {offsets = [2, 0], sizes = [1, 16], strides = [1, 1]} : vector<8x32xf32> to vector<1x16xf32>
      %553 = vector.extract_strided_slice %453 {offsets = [2, 16], sizes = [1, 16], strides = [1, 1]} : vector<8x32xf32> to vector<1x16xf32>
      %554 = vector.shape_cast %550 : vector<1x128xf32> to vector<1x1x128xf32>
      %555 = vector.broadcast %554 : vector<1x1x128xf32> to vector<1x16x128xf32>
      %556 = arith.mulf %555, %416 : vector<1x16x128xf32>
      %557 = math.exp %556 : vector<1x16x128xf32>
      %558 = vector.shape_cast %551 : vector<1x128xf32> to vector<1x1x128xf32>
      %559 = vector.shape_cast %552 : vector<1x16xf32> to vector<1x16x1xf32>
      %560 = vector.broadcast %558 : vector<1x1x128xf32> to vector<1x16x128xf32>
      %561 = vector.broadcast %559 : vector<1x16x1xf32> to vector<1x16x128xf32>
      %562 = arith.mulf %560, %561 : vector<1x16x128xf32>
      %563 = arith.mulf %557, %545 : vector<1x16x128xf32>
      %564 = arith.addf %563, %562 : vector<1x16x128xf32>
      %565 = vector.shape_cast %553 : vector<1x16xf32> to vector<1x16x1xf32>
      %566 = vector.broadcast %565 : vector<1x16x1xf32> to vector<1x16x128xf32>
      %567 = arith.mulf %566, %564 : vector<1x16x128xf32>
      %cst_357 = arith.constant dense<0.000000e+00> : vector<1x128xf32>
      %568 = vector.multi_reduction <add>, %567, %cst_357 [1] : vector<1x16x128xf32> to vector<1x128xf32>
      %569 = vector.extract_strided_slice %449 {offsets = [1, 0], sizes = [1, 128], strides = [1, 1]} : vector<8x128xf32> to vector<1x128xf32>
      %570 = vector.extract_strided_slice %454 {offsets = [1, 0], sizes = [1, 128], strides = [1, 1]} : vector<8x128xf32> to vector<1x128xf32>
      %571 = vector.extract_strided_slice %453 {offsets = [1, 0], sizes = [1, 16], strides = [1, 1]} : vector<8x32xf32> to vector<1x16xf32>
      %572 = vector.extract_strided_slice %453 {offsets = [1, 16], sizes = [1, 16], strides = [1, 1]} : vector<8x32xf32> to vector<1x16xf32>
      %573 = vector.shape_cast %569 : vector<1x128xf32> to vector<1x1x128xf32>
      %574 = vector.broadcast %573 : vector<1x1x128xf32> to vector<1x16x128xf32>
      %575 = arith.mulf %574, %416 : vector<1x16x128xf32>
      %576 = math.exp %575 : vector<1x16x128xf32>
      %577 = vector.shape_cast %570 : vector<1x128xf32> to vector<1x1x128xf32>
      %578 = vector.shape_cast %571 : vector<1x16xf32> to vector<1x16x1xf32>
      %579 = vector.broadcast %577 : vector<1x1x128xf32> to vector<1x16x128xf32>
      %580 = vector.broadcast %578 : vector<1x16x1xf32> to vector<1x16x128xf32>
      %581 = arith.mulf %579, %580 : vector<1x16x128xf32>
      %582 = arith.mulf %576, %564 : vector<1x16x128xf32>
      %583 = arith.addf %582, %581 : vector<1x16x128xf32>
      %584 = vector.shape_cast %572 : vector<1x16xf32> to vector<1x16x1xf32>
      %585 = vector.broadcast %584 : vector<1x16x1xf32> to vector<1x16x128xf32>
      %586 = arith.mulf %585, %583 : vector<1x16x128xf32>
      %cst_358 = arith.constant dense<0.000000e+00> : vector<1x128xf32>
      %587 = vector.multi_reduction <add>, %586, %cst_358 [1] : vector<1x16x128xf32> to vector<1x128xf32>
      %588 = vector.extract_strided_slice %449 {offsets = [0, 0], sizes = [1, 128], strides = [1, 1]} : vector<8x128xf32> to vector<1x128xf32>
      %589 = vector.extract_strided_slice %454 {offsets = [0, 0], sizes = [1, 128], strides = [1, 1]} : vector<8x128xf32> to vector<1x128xf32>
      %590 = vector.extract_strided_slice %453 {offsets = [0, 0], sizes = [1, 16], strides = [1, 1]} : vector<8x32xf32> to vector<1x16xf32>
      %591 = vector.extract_strided_slice %453 {offsets = [0, 16], sizes = [1, 16], strides = [1, 1]} : vector<8x32xf32> to vector<1x16xf32>
      %592 = vector.shape_cast %588 : vector<1x128xf32> to vector<1x1x128xf32>
      %593 = vector.broadcast %592 : vector<1x1x128xf32> to vector<1x16x128xf32>
      %594 = arith.mulf %593, %416 : vector<1x16x128xf32>
      %595 = math.exp %594 : vector<1x16x128xf32>
      %596 = vector.shape_cast %589 : vector<1x128xf32> to vector<1x1x128xf32>
      %597 = vector.shape_cast %590 : vector<1x16xf32> to vector<1x16x1xf32>
      %598 = vector.broadcast %596 : vector<1x1x128xf32> to vector<1x16x128xf32>
      %599 = vector.broadcast %597 : vector<1x16x1xf32> to vector<1x16x128xf32>
      %600 = arith.mulf %598, %599 : vector<1x16x128xf32>
      %601 = arith.mulf %595, %583 : vector<1x16x128xf32>
      %602 = arith.addf %601, %600 : vector<1x16x128xf32>
      %603 = vector.shape_cast %591 : vector<1x16xf32> to vector<1x16x1xf32>
      %604 = vector.broadcast %603 : vector<1x16x1xf32> to vector<1x16x128xf32>
      %605 = arith.mulf %604, %602 : vector<1x16x128xf32>
      %cst_359 = arith.constant dense<0.000000e+00> : vector<1x128xf32>
      %606 = vector.multi_reduction <add>, %605, %cst_359 [1] : vector<1x16x128xf32> to vector<1x128xf32>
      %607 = tpu.concatenate %606, %587, %568, %549, %530, %511, %492, %473 in 0 : vector<1x128xf32>, vector<1x128xf32>, vector<1x128xf32>, vector<1x128xf32>, vector<1x128xf32>, vector<1x128xf32>, vector<1x128xf32>, vector<1x128xf32> -> vector<8x128xf32>
      %608 = vector.broadcast %418 : vector<1x128xf32> to vector<8x128xf32>
      %609 = arith.mulf %451, %608 : vector<8x128xf32>
      %610 = arith.addf %607, %609 : vector<8x128xf32>
      %611 = arith.index_cast %447 : i32 to index
      %c0_360 = arith.constant 0 : index
      %612 = vector.load %arg14[%611, %c0_360] : memref<16x128xf32, #tpu.memory_space<vmem>>, vector<8x128xf32>
      %613 = arith.addf %612, %610 : vector<8x128xf32>
      %614 = arith.index_cast %447 : i32 to index
      %c0_361 = arith.constant 0 : index
      %615 = vector.load %arg14[%614, %c0_361] : memref<16x128xf32, #tpu.memory_space<vmem>>, vector<8x128xf32>
      tpu.vector_store %arg14[%614, %c0_361], %613 {strides = array<i32>} : memref<16x128xf32, #tpu.memory_space<vmem>>, vector<8x128xf32>,
      scf.yield %602 : vector<1x16x128xf32>
    }
    %c2_i32_327 = arith.constant 2 : i32
    %c0_328 = arith.constant 0 : index
    %c0_329 = arith.constant 0 : index
    %422 = vector.load %arg15[%c0_328, %c0_329] : memref<16x128xf32, #tpu.memory_space<vmem>>, vector<8x128xf32>
    %c0_330 = arith.constant 0 : index
    %c0_331 = arith.constant 0 : index
    %423 = tpu.strided_load %arg14[%c0_330, %c0_331] {strides = array<i32: 2, 1>} : memref<16x128xf32, #tpu.memory_space<vmem>>, vector<8x128xf32>
    %424 = arith.addf %422, %423 : vector<8x128xf32>
    %c0_332 = arith.constant 0 : index
    %c0_333 = arith.constant 0 : index
    %425 = vector.load %arg15[%c0_332, %c0_333] : memref<16x128xf32, #tpu.memory_space<vmem>>, vector<8x128xf32>
    tpu.vector_store %arg15[%c0_332, %c0_333], %424 {strides = array<i32>} : memref<16x128xf32, #tpu.memory_space<vmem>>, vector<8x128xf32>,
    %c8_334 = arith.constant 8 : index
    %c0_335 = arith.constant 0 : index
    %426 = vector.load %arg15[%c8_334, %c0_335] : memref<16x128xf32, #tpu.memory_space<vmem>>, vector<8x128xf32>
    %c1_336 = arith.constant 1 : index
    %c0_337 = arith.constant 0 : index
    %427 = tpu.strided_load %arg14[%c1_336, %c0_337] {strides = array<i32: 2, 1>} : memref<16x128xf32, #tpu.memory_space<vmem>>, vector<8x128xf32>
    %428 = arith.addf %426, %427 : vector<8x128xf32>
    %c8_338 = arith.constant 8 : index
    %c0_339 = arith.constant 0 : index
    %429 = vector.load %arg15[%c8_338, %c0_339] : memref<16x128xf32, #tpu.memory_space<vmem>>, vector<8x128xf32>
    tpu.vector_store %arg15[%c8_338, %c0_339], %428 {strides = array<i32>} : memref<16x128xf32, #tpu.memory_space<vmem>>, vector<8x128xf32>,
    %c0_340 = arith.constant 0 : index
    %c0_341 = arith.constant 0 : index
    %c128 = arith.constant 128 : index
    %430 = vector.load %arg1[%c0_340, %c0_341, %c128] : memref<1x16x256xbf16, #tpu.memory_space<vmem>>, vector<1x16x128xbf16>
    %431 = vector.shape_cast %430 : vector<1x16x128xbf16> to vector<16x128xbf16>
    %432 = arith.extf %431 : vector<16x128xbf16> to vector<16x128xf32>
    %c0_342 = arith.constant 0 : index
    %c0_343 = arith.constant 0 : index
    %433 = vector.load %arg15[%c0_342, %c0_343] : memref<16x128xf32, #tpu.memory_space<vmem>>, vector<16x128xf32>
    %434 = arith.negf %432 : vector<16x128xf32>
    %435 = math.exp %434 : vector<16x128xf32>
    %cst_344 = arith.constant 1.000000e+00 : f32
    %436 = vector.broadcast %cst_344 : f32 to vector<16x128xf32>
    %437 = arith.addf %436, %435 : vector<16x128xf32>
    %438 = arith.divf %436, %437 : vector<16x128xf32>
    %439 = arith.mulf %432, %438 : vector<16x128xf32>
    %440 = arith.mulf %433, %439 : vector<16x128xf32>
    %441 = arith.truncf %440 : vector<16x128xf32> to vector<16x128xbf16>
    %c0_345 = arith.constant 0 : index
    %c0_346 = arith.constant 0 : index
    %c0_347 = arith.constant 0 : index
    %442 = vector.load %arg8[%c0_345, %c0_346, %c0_347] : memref<1x16x128xbf16, #tpu.memory_space<vmem>>, vector<1x16x128xbf16>
    %443 = vector.shape_cast %442 : vector<1x16x128xbf16> to vector<16x128xbf16>
    %444 = vector.shape_cast %441 : vector<16x128xbf16> to vector<1x16x128xbf16>
    tpu.vector_store %arg8[%c0_345, %c0_346, %c0_347], %444 {strides = array<i32>} : memref<1x16x128xbf16, #tpu.memory_space<vmem>>, vector<1x16x128xbf16>,
    return
  }
  func.func @transform_0(%arg0: i32) -> (i32, i32, i32) {
    %c0_i32 = arith.constant 0 : i32
    %c0_i32_0 = arith.constant 0 : i32
    %c0_i32_1 = arith.constant 0 : i32
    return %arg0, %c0_i32, %c0_i32_0 : i32, i32, i32
  }
  func.func @transform_1(%arg0: i32) -> (i32, i32, i32) {
    %c0_i32 = arith.constant 0 : i32
    %c0_i32_0 = arith.constant 0 : i32
    %c0_i32_1 = arith.constant 0 : i32
    %c0_i32_2 = arith.constant 0 : i32
    return %c0_i32, %c0_i32_0, %c0_i32_1 : i32, i32, i32
  }
  func.func @transform_2(%arg0: i32) -> (i32, i32, i32) {
    %c0_i32 = arith.constant 0 : i32
    %c0_i32_0 = arith.constant 0 : i32
    %c0_i32_1 = arith.constant 0 : i32
    %c0_i32_2 = arith.constant 0 : i32
    return %c0_i32, %c0_i32_0, %c0_i32_1 : i32, i32, i32
  }
  func.func @transform_3(%arg0: i32) -> (i32, i32, i32) {
    %c0_i32 = arith.constant 0 : i32
    %c0_i32_0 = arith.constant 0 : i32
    %c0_i32_1 = arith.constant 0 : i32
    %c0_i32_2 = arith.constant 0 : i32
    return %c0_i32, %c0_i32_0, %c0_i32_1 : i32, i32, i32
  }
  func.func @transform_4(%arg0: i32) -> (i32, i32, i32) {
    %c0_i32 = arith.constant 0 : i32
    %c0_i32_0 = arith.constant 0 : i32
    %c0_i32_1 = arith.constant 0 : i32
    %c0_i32_2 = arith.constant 0 : i32
    return %c0_i32, %c0_i32_0, %c0_i32_1 : i32, i32, i32
  }
  func.func @transform_5(%arg0: i32) -> (i32, i32, i32) {
    %c0_i32 = arith.constant 0 : i32
    %c0_i32_0 = arith.constant 0 : i32
    %c0_i32_1 = arith.constant 0 : i32
    %c0_i32_2 = arith.constant 0 : i32
    return %c0_i32, %c0_i32_0, %c0_i32_1 : i32, i32, i32
  }
  func.func @transform_6(%arg0: i32) -> (i32, i32, i32) {
    %c0_i32 = arith.constant 0 : i32
    %c0_i32_0 = arith.constant 0 : i32
    %c0_i32_1 = arith.constant 0 : i32
    %c0_i32_2 = arith.constant 0 : i32
    return %c0_i32, %c0_i32_0, %c0_i32_1 : i32, i32, i32
  }
  func.func @transform_7(%arg0: i32) -> (i32, i32, i32) {
    %c0_i32 = arith.constant 0 : i32
    %c0_i32_0 = arith.constant 0 : i32
    %c0_i32_1 = arith.constant 0 : i32
    return %arg0, %c0_i32, %c0_i32_0 : i32, i32, i32
  }
}

module attributes {stable_mosaic.version = 11 : i64} {
  func.func @_matmul_kernel(%arg0: i32, %arg1: i32, %arg2: i32, %arg3: memref<32x128xbf16, #tpu.memory_space<vmem>>, %arg4: memref<128x32xbf16, #tpu.memory_space<vmem>>, %arg5: memref<32x32xf32, #tpu.memory_space<vmem>>, %arg6: memref<32x32xf32, #tpu.memory_space<vmem>>) attributes {dimension_semantics = [#tpu.dimension_semantics<parallel>, #tpu.dimension_semantics<parallel>, #tpu.dimension_semantics<arbitrary>], iteration_bounds = array<i64: 1, 1, 1>, scalar_prefetch = 0 : i64, scratch_operands = 1 : i64, tpu.core_type = #tpu.core_type<tc>, window_params = [{transform_indices = @transform_0, window_bounds = array<i64: 32, 128>}, {transform_indices = @transform_1, window_bounds = array<i64: 128, 32>}, {transform_indices = @transform_2, window_bounds = array<i64: 32, 32>}]} {
    %c0_i32 = arith.constant 0 : i32
    %0 = arith.cmpi eq, %arg2, %c0_i32 : i32
    %1 = arith.extui %0 : i1 to i32
    %c0_i32_0 = arith.constant 0 : i32
    %2 = arith.cmpi ne, %1, %c0_i32_0 : i32
    scf.if %2 {
      %cst_10 = arith.constant 0.000000e+00 : f32
      %12 = vector.broadcast %cst_10 : f32 to vector<32x32xf32>
      %c0_11 = arith.constant 0 : index
      %c0_12 = arith.constant 0 : index
      %13 = vector.load %arg6[%c0_11, %c0_12] : memref<32x32xf32, #tpu.memory_space<vmem>>, vector<32x32xf32>
      tpu.vector_store %arg6[%c0_11, %c0_12], %12 {strides = array<i32>} : memref<32x32xf32, #tpu.memory_space<vmem>>, vector<32x32xf32>,
    } else {
    }
    %c0 = arith.constant 0 : index
    %c0_1 = arith.constant 0 : index
    %3 = vector.load %arg6[%c0, %c0_1] : memref<32x32xf32, #tpu.memory_space<vmem>>, vector<32x32xf32>
    %c0_2 = arith.constant 0 : index
    %c0_3 = arith.constant 0 : index
    %4 = vector.load %arg3[%c0_2, %c0_3] : memref<32x128xbf16, #tpu.memory_space<vmem>>, vector<32x128xbf16>
    %c0_4 = arith.constant 0 : index
    %c0_5 = arith.constant 0 : index
    %5 = vector.load %arg4[%c0_4, %c0_5] : memref<128x32xbf16, #tpu.memory_space<vmem>>, vector<128x32xbf16>
    %cst = arith.constant dense<0.000000e+00> : vector<32x32xf32>
    %6 = tpu.matmul %4, %5, %cst {dimension_numbers = #tpu.dot_dimension_numbers<[1], [0], [0], [1], [0, 0, 1, 1], [], []>} : vector<32x128xbf16>, vector<128x32xbf16>, vector<32x32xf32> -> vector<32x32xf32>
    %7 = arith.addf %3, %6 : vector<32x32xf32>
    %c0_6 = arith.constant 0 : index
    %c0_7 = arith.constant 0 : index
    %8 = vector.load %arg6[%c0_6, %c0_7] : memref<32x32xf32, #tpu.memory_space<vmem>>, vector<32x32xf32>
    tpu.vector_store %arg6[%c0_6, %c0_7], %7 {strides = array<i32>} : memref<32x32xf32, #tpu.memory_space<vmem>>, vector<32x32xf32>,
    %c0_i32_8 = arith.constant 0 : i32
    %9 = arith.cmpi eq, %arg2, %c0_i32_8 : i32
    %10 = arith.extui %9 : i1 to i32
    %c0_i32_9 = arith.constant 0 : i32
    %11 = arith.cmpi ne, %10, %c0_i32_9 : i32
    scf.if %11 {
      %c0_10 = arith.constant 0 : index
      %c0_11 = arith.constant 0 : index
      %12 = vector.load %arg6[%c0_10, %c0_11] : memref<32x32xf32, #tpu.memory_space<vmem>>, vector<32x32xf32>
      %c0_12 = arith.constant 0 : index
      %c0_13 = arith.constant 0 : index
      %13 = vector.load %arg5[%c0_12, %c0_13] : memref<32x32xf32, #tpu.memory_space<vmem>>, vector<32x32xf32>
      tpu.vector_store %arg5[%c0_12, %c0_13], %12 {strides = array<i32>} : memref<32x32xf32, #tpu.memory_space<vmem>>, vector<32x32xf32>,
    } else {
    }
    return
  }
  func.func @transform_0(%arg0: i32, %arg1: i32, %arg2: i32) -> (i32, i32) {
    %c0_i32 = arith.constant 0 : i32
    return %arg0, %arg2 : i32, i32
  }
  func.func @transform_1(%arg0: i32, %arg1: i32, %arg2: i32) -> (i32, i32) {
    %c0_i32 = arith.constant 0 : i32
    return %arg2, %arg1 : i32, i32
  }
  func.func @transform_2(%arg0: i32, %arg1: i32, %arg2: i32) -> (i32, i32) {
    %c0_i32 = arith.constant 0 : i32
    return %arg0, %arg1 : i32, i32
  }
}

</mosaic_0001>

<bundles_post_ra>
// kernel: mamba_forward.3
= control target key start
LH: loop header
LB: loop body
LE: loop exit
PB: predicated region body
PF: predicated region fallthrough
CT: control target
= control target key end

     0   :  { %v246_v2 = vmov 0   ;;  %s301_s0 = inlined_call_operand.vmem [shape: f32[32,32], index: 0, kind: input, shape index: {}]   ;;  %s302_s1 = inlined_call_operand.vmem [shape: bf16[32,256], index: 1, kind: input, shape index: {}]   ;;  %s303_s2 = inlined_call_operand.hbm [shape: bf16[32,256], index: 2, kind: output, shape index: {}]  }
   0x1   :  { %v216_v0 = vld [vmem:[%s302_s1 + $0x4] ss:$8 sps:$4 sm:$0xff]   ;;  %v218_v1 = vld [vmem:[%s302_s1] ss:$8 sps:$4 sm:$0xff]   ;;  %102 = vmatprep.mubr.bf16.mxu0 %v246_v2  ;;  %112 = vmatprep.mubr.bf16.mxu1 %v246_v2  ;;  %v219_v3 = vld [vmem:[%s302_s1 + $0x14] ss:$8 sps:$4 sm:$0xff]  }
   0x2   :  { %70 = vmatprep.subr.bf16.mxu0 %v216_v0  ;;  %208 = vmatprep.subr.bf16.mxu1 %v216_v0  ;;  %v221_v4 = vld [vmem:[%s302_s1 + $0x10] ss:$8 sps:$4 sm:$0xff]   ;;  %v33_v5 = vld [vmem:[%s301_s0] sm:$0xff]  ;;  %v34_v6 = vld [vmem:[%s301_s0 + $0x8] sm:$0xff] }
   0x3   :  { %71 = vmatpush1.bf16.msra.mxu0 %v218_v1  ;;  %210 = vmatpush1.bf16.msra.mxu1 %v218_v1  ;;  %v35_v7 = vld [vmem:[%s301_s0 + $0x10] sm:$0xff]  ;;  %v36_v8 = vld [vmem:[%s301_s0 + $0x18] sm:$0xff] }
   0x4   :  { %72 = vmatprep.subr.bf16.mxu0 %v219_v3  ;;  %209 = vmatprep.subr.bf16.mxu1 %v219_v3 }
   0x5   :  { %7 = vsyncpa [#allocation4], 0  ;;  %v37_v9 = vpack.c.bf16 %v34_v6, %v33_v5  ;;  %v38_v10 = vpack.c.bf16 %v36_v8, %v35_v7  ;;  %vm63_vm0 = vcmask 261120   ;;  %s247_s1 = smov [#allocation3]  }
   0x6   :  { %s183_s25 = sshll.u32 %s247_s1, 4  ;;  %s184_s25 = int_to_ptr.vmem [resolvable:$true] %s183_s25 }
   0x7   :  { %73 = vmatpush1.bf16.msra.mxu0 %v221_v4  ;;  %211 = vmatpush1.bf16.msra.mxu1 %v221_v4  ;;  %s222_s0 = scalar_lea.vmem %s184_s25, 512  ;;  %p227_p1 = scmp.lt.s32.totalorder %s184_s25, %s184_s25 }
   0x8   :  { %p223_p0 = scmp.ne.s32.totalorder %s184_s25, %s222_s0  ;;  %p228_p2 = scmp.lt.s32.totalorder %s222_s0, %s222_s0 }
   0xa   :  { %198 = vmatmul.mubr.msk.bf16.vlgmr.msra.gmra.mrb[0].mxu0 %vm63_vm0, %v37_v9  ;;  %199 = vmatmul.mubr.msk.bf16.vlgmr.msra.gmra.mrb[0].mxu1 %vm63_vm0, %v38_v10  ;;  %p229_p3 = por %p228_p2, %p227_p1 }
   0xc   :  { %p230_p4 = pnand %p229_p3, %p223_p0 }
  0xdd   :  { %v104_v11 = vpop.f32.mrb[0].mxu0  ;;  %v114_v12 = vpop.f32.mrb[0].mxu1 }
  0xde   :  { %v106_v13 = vpop.f32.mrb[1].mxu0  ;;  %v116_v14 = vpop.f32.mrb[1].mxu1 }
  0xdf   :  { %v204_v15 = vpack.c.bf16 %v106_v13, %v104_v11  ;;  %v206_v16 = vpack.c.bf16 %v116_v14, %v114_v12  ;;  %v108_v17 = vpop.f32.mrb[2].mxu0  ;;  %v118_v18 = vpop.f32.mrb[2].mxu1 }
  0xe0   :  { %v110_v19 = vpop.f32.mrb[3].mxu0  ;;  %v120_v20 = vpop.f32.mrb[3].mxu1 }
  0xe1   :  { %174 = vst [vmem:[#allocation3] sm:$0xff] %v204_v15  ;;  %176 = vst [vmem:[#allocation3 + $0x10] sm:$0xff] %v206_v16  ;;  %v205_v21 = vpack.c.bf16 %v110_v19, %v108_v17  ;;  %v207_v22 = vpack.c.bf16 %v120_v20, %v118_v18 }
  0xe3   :  { %175 = vst [vmem:[#allocation3 + $0x8] sm:$0xff] %v205_v21  ;;  %177 = vst [vmem:[#allocation3 + $0x18] sm:$0xff] %v207_v22 }
  0xe4   :  { %233 = shalt.err (!%p230_p4)
}
  0xe5   :  { %s234_s28 = scalar_lea.hbm %s303_s2, 512 }
  0xe6   :  { %p235_p5 = scmp.ne.s32.totalorder %s303_s2, %s234_s28  ;;  %p238_p6 = scmp.lt.u32.totalorder %s234_s28, %s303_s2 }
  0xe8   :  { %p240_p7 = pnand %p238_p6, %p235_p5 }
  0xea   :  { %243 = shalt.err (!%p240_p7)
}
  0xeb   :  { %s248_s5 = smov 128   ;;  %s249_s6 = smov 8  }
  0xec   :  { %189 = dma.vmem_to_hbm [thread:$0]  %s184_s25, 512, %s303_s2, [#allocation4], %s248_s5, %s248_s5, %s249_s6  }
  0xed   :  { %244 = dma.done.wait [#allocation4], 512  }
  0xee   :  { %245 = vsyncadd [#allocation4], 4294966784 }
  0xef   :  { %193 = vsyncpa [#allocation4], 1 }

// kernel: mamba_forward.5
= control target key start
LH: loop header
LB: loop body
LE: loop exit
PB: predicated region body
PF: predicated region fallthrough
CT: control target
= control target key end

     0   :  { %vm17_vm0 = vcmask 261120   ;;  %v269_v2 = vmov 0.0   ;;  %s342_s0 = inlined_call_operand.vmem [shape: bf16[32,128], index: 0, kind: input, shape index: {}]   ;;  %s343_s1 = inlined_call_operand.vmem [shape: bf16[128,32], index: 1, kind: input, shape index: {}]   ;;  %s344_s2 = inlined_call_operand.hbm [shape: f32[32,32], index: 2, kind: output, shape index: {}]  }
   0x1   :  { %v235_v0 = vld [vmem:[%s343_s1] sm:$0xff]   ;;  %v236_v1 = vld [vmem:[%s343_s1 + $0x8] sm:$0xff]   ;;  %20 = vst.msk [vmem:[#allocation2 + $0x10] sm:$0xff] %vm17_vm0, %v269_v2  ;;  %18 = vst.msk [vmem:[#allocation2] sm:$0xff] %vm17_vm0, %v269_v2 }
   0x2   :  { %211 = vmatprep.subr.bf16.mxu0 %v235_v0  ;;  %19 = vst.msk [vmem:[#allocation2 + $0x8] sm:$0xff] %vm17_vm0, %v269_v2  ;;  %21 = vst.msk [vmem:[#allocation2 + $0x18] sm:$0xff] %vm17_vm0, %v269_v2  ;;  %v237_v3 = vld [vmem:[%s343_s1 + $0x10] sm:$0xff]   ;;  %v238_v4 = vld [vmem:[%s343_s1 + $0x18] sm:$0xff]  }
   0x3   :  { %212 = vmatpush3.bf16.msra.mxu0 %v235_v0  ;;  %v243_v5 = vld [vmem:[%s342_s0] sm:$0xff]  }
   0x4   :  { %213 = vmatprep.subr.bf16.mxu0 %v236_v1  ;;  %227 = vmatprep.mubr.bf16.mxu0 %v243_v5 }
   0x7   :  { %214 = vmatpush3.bf16.msra.mxu0 %v236_v1 }
   0x8   :  { %215 = vmatprep.subr.bf16.mxu0 %v237_v3 }
   0x9   :  { %7 = vsyncpa [#allocation4], 0  ;;  %v239_v6 = vld [vmem:[%s343_s1 + $0x20] sm:$0xff]   ;;  %v240_v7 = vld [vmem:[%s343_s1 + $0x28] sm:$0xff]  }
   0xa   :  { %v241_v8 = vld [vmem:[%s343_s1 + $0x30] sm:$0xff]   ;;  %v242_v9 = vld [vmem:[%s343_s1 + $0x38] sm:$0xff]   ;;  %v244_v10 = vld [vmem:[%s342_s0 + $0x8] sm:$0xff]   ;;  %s270_s0 = smov [#allocation3]  }
   0xb   :  { %216 = vmatpush3.bf16.msra.mxu0 %v237_v3  ;;  %v24_v11 = vld [vmem:[#allocation2 + $0x10] sm:$0xff]  ;;  %v22_v12 = vld [vmem:[#allocation2] sm:$0xff]  ;;  %v25_v14 = vld [vmem:[#allocation2 + $0x18] sm:$0xff]  ;;  %s180_s1 = sshll.u32 %s270_s0, 4  ;;  %s181_s1 = int_to_ptr.vmem [resolvable:$true] %s180_s1 }
   0xc   :  { %217 = vmatprep.subr.bf16.mxu0 %v238_v4  ;;  %v23_v17 = vld [vmem:[#allocation2 + $0x8] sm:$0xff]  ;;  %s245_s29 = scalar_lea.vmem %s181_s1, 512  ;;  %p250_p1 = scmp.lt.s32.totalorder %s181_s1, %s181_s1 }
   0xd   :  { %p246_p0 = scmp.ne.s32.totalorder %s181_s1, %s245_s29  ;;  %p251_p2 = scmp.lt.s32.totalorder %s245_s29, %s245_s29 }
   0xf   :  { %218 = vmatpush3.bf16.msra.mxu0 %v238_v4  ;;  %p252_p3 = por %p251_p2, %p250_p1 }
  0x10   :  { %219 = vmatprep.subr.bf16.mxu0 %v239_v6 }
  0x11   :  { %p253_p4 = pnand %p252_p3, %p246_p0 }
  0x13   :  { %220 = vmatpush3.bf16.msra.mxu0 %v239_v6 }
  0x14   :  { %221 = vmatprep.subr.bf16.mxu0 %v240_v7 }
  0x17   :  { %222 = vmatpush3.bf16.msra.mxu0 %v240_v7 }
  0x18   :  { %223 = vmatprep.subr.bf16.mxu0 %v241_v8 }
  0x1b   :  { %224 = vmatpush3.bf16.msra.mxu0 %v241_v8 }
  0x1c   :  { %225 = vmatprep.subr.bf16.mxu0 %v242_v9 }
  0x1f   :  { %226 = vmatpush3.bf16.msra.mxu0 %v242_v9 }
  0x22   :  { %228 = vmatmul.mubr.bf16.vlgmr.msra.gmra.mrb[0].mxu0 %v244_v10 }
  0xf5   :  { %v229_v13 = vpop.f32.mrb[0].mxu0 }
  0xf6   :  { %v157_v15 = vadd.f32 %v229_v13, %v24_v11  ;;  %v140_v16 = vpop.f32.mrb[1].mxu0 }
  0xf7   :  { %v155_v18 = vadd.f32 %v140_v16, %v22_v12  ;;  %v230_v19 = vpop.f32.mrb[2].mxu0 }
  0xf8   :  { %162 = vst.msk [vmem:[#allocation2 + $0x10] sm:$0xff] %vm17_vm0, %v157_v15  ;;  %v158_v20 = vadd.f32 %v230_v19, %v25_v14  ;;  %v143_v21 = vpop.f32.mrb[3].mxu0 }
  0xf9   :  { %160 = vst.msk [vmem:[#allocation2] sm:$0xff] %vm17_vm0, %v155_v18  ;;  %v156_v22 = vadd.f32 %v143_v21, %v23_v17 }
  0xfa   :  { %163 = vst.msk [vmem:[#allocation2 + $0x18] sm:$0xff] %vm17_vm0, %v158_v20 }
  0xfb   :  { %161 = vst.msk [vmem:[#allocation2 + $0x8] sm:$0xff] %vm17_vm0, %v156_v22 }
  0xff   :  { %v169_v23 = vld [vmem:[#allocation2 + $0x10] sm:$0xff] }
 0x100   :  { %v167_v24 = vld [vmem:[#allocation2] sm:$0xff]  ;;  %173 = vst.msk [vmem:[#allocation3 + $0x10] sm:$0xff] %vm17_vm0, %v169_v23 }
 0x101   :  { %v170_v25 = vld [vmem:[#allocation2 + $0x18] sm:$0xff]  ;;  %171 = vst.msk [vmem:[#allocation3] sm:$0xff] %vm17_vm0, %v167_v24 }
 0x102   :  { %v168_v26 = vld [vmem:[#allocation2 + $0x8] sm:$0xff]  ;;  %174 = vst.msk [vmem:[#allocation3 + $0x18] sm:$0xff] %vm17_vm0, %v170_v25 }
 0x103   :  { %172 = vst.msk [vmem:[#allocation3 + $0x8] sm:$0xff] %vm17_vm0, %v168_v26 }
 0x104   :  { %256 = shalt.err (!%p253_p4)
}
 0x105   :  { %s257_s4 = scalar_lea.hbm %s344_s2, 512 }
 0x106   :  { %p258_p5 = scmp.ne.s32.totalorder %s344_s2, %s257_s4  ;;  %p261_p6 = scmp.lt.u32.totalorder %s257_s4, %s344_s2 }
 0x108   :  { %p263_p7 = pnand %p261_p6, %p258_p5 }
 0x10a   :  { %266 = shalt.err (!%p263_p7)
}
 0x10b   :  { %s271_s9 = smov 128   ;;  %s272_s10 = smov 8  }
 0x10c   :  { %186 = dma.vmem_to_hbm [thread:$0]  %s181_s1, 512, %s344_s2, [#allocation4], %s271_s9, %s271_s9, %s272_s10  }
 0x10d   :  { %267 = dma.done.wait [#allocation4], 512  }
 0x10e   :  { %268 = vsyncadd [#allocation4], 4294966784 }
 0x10f   :  { %190 = vsyncpa [#allocation4], 1 }

// kernel: mamba_forward.4
= control target key start
LH: loop header
LB: loop body
LE: loop exit
PB: predicated region body
PF: predicated region fallthrough
CT: control target
= control target key end

     0   :  { %12 = vsyncpa [#allocation10], 0  ;;  %s7512_s0 = inlined_call_operand.hbm [shape: bf16[2,16,256], index: 0, kind: input, shape index: {}]   ;;  %s7513_s1 = inlined_call_operand.hbm [shape: f32[6,4,128], index: 1, kind: input, shape index: {}]   ;;  %s7514_s2 = inlined_call_operand.hbm [shape: f32[6,1,128], index: 2, kind: input, shape index: {}]   ;;  %s7515_s3 = inlined_call_operand.hbm [shape: bf16[6,128,256], index: 3, kind: input, shape index: {}]   ;;  %s7516_s4 = inlined_call_operand.hbm [shape: f32[6,1,128], index: 4, kind: input, shape index: {}]   ;;  %s7517_s5 = inlined_call_operand.hbm [shape: f32[6,16,128], index: 5, kind: input, shape index: {}]   ;;  %s7518_s6 = inlined_call_operand.hbm [shape: f32[6,1,128], index: 6, kind: input, shape index: {}]   ;;  %s7519_s7 = inlined_call_operand.hbm [shape: bf16[2,16,128], index: 7, kind: output, shape index: {}]  }
   0x1   :  { %14 = vsyncpa [#allocation10 + $0x1], 0 }
   0x2   :  { %15 = vsyncpa [#allocation13], 0 }
   0x3   :  { %16 = vsyncpa [#allocation16], 0 }
   0x4   :  { %17 = vsyncpa [#allocation19], 0 }
   0x5   :  { %18 = vsyncpa [#allocation11], 0 }
   0x6   :  { %20 = vsyncpa [#allocation11 + $0x1], 0  ;;  %s6191_s24 = smov 0   ;;  %s6193_s25 = smov 0  }
   0x7   :  { %s6195_s26 = smov 0   ;;  %s6197_s27 = smov 0  }
   0x8 LB: > { %s6133_s28 = smov [#allocation12]   ;;  %s6212_s30 = sadd.s32 4294967295, %s6059_s27   ;;  %s6059_s27 = sphi %s6197_s27, %s7549_s27   ;;  %s6055_s26 = sphi %s6195_s26, %s7548_s26   ;;  %s6051_s25 = sphi %s6193_s25, %s7547_s25   ;;  %s6047_s24 = sphi %s6191_s24, %s7546_s24  }
   0x9   : > { %s221_s29 = sshll.u32 %s6133_s28, 4  ;;  %p4840_p0 = scmp.ge.s32.totalorder %s6059_s27, 1  ;;  %s6217_s29 = int_to_ptr.vmem [resolvable:$true] %s221_s29 }
   0xa   : > { %p7520_p1 = scmp.eq.s32.totalorder %s6212_s30, 0  ;;  %p209_p2 = scmp.lt.s32.totalorder %s6059_s27, 3 }
   0xb   : > { %s6134_s9 = smov [#allocation15]   ;;  %s6135_s12 = smov [#allocation18]  }
   0xc   : > { %p6219_p3 = pnand %p4840_p0, %p209_p2  ;;  %s247_s10 = sshll.u32 %s6134_s9, 4  ;;  %s6232_s10 = int_to_ptr.vmem [resolvable:$true] %s247_s10 }
   0xd   : > { %s6234_s13 = sshll.u32 %s6135_s12, 4  ;;  %s5711_s16 = scalar_lea.hbm %s7513_s1, 384  ;;  %s274_s13 = int_to_ptr.vmem [resolvable:$true] %s6234_s13 }
   0xe   : > { %s7524_s8 = scalar_select %p6219_p3, 1, 0 }
   0xf   : > { %p5038_p5 = pneg %p6219_p3  ;;  %p5712_p7 = scmp.ne.s32.totalorder %s7513_s1, %s5711_s16 }
  0x10   : > { %p5718_p11 = scmp.lt.u32.totalorder %s5711_s16, %s7513_s1 }
  0x11   : > { %p6228_p6 = pnand %p5038_p5, %p7520_p1 }
  0x13   : > { %p6244_p8 = pneg %p6228_p6 }
  0x15   : > { %p5714_p9 = pnand %p6244_p8, %p5712_p7 }
  0x17   : > { %p5715_p10 = pneg %p5714_p9 }
  0x19   : > { %p5720_p12 = pnand %p5718_p11, %p5715_p10 }
  0x1b   : > { %5723 = shalt.err (!%p5720_p12)
}
  0x1c   : > { %s5724_s22 = scalar_lea.vmem %s6217_s29, 384  ;;  %p5732_p5 = scmp.lt.s32.totalorder %s6217_s29, %s6217_s29 }
  0x1d   : > { %p5725_p13 = scmp.ne.s32.totalorder %s6217_s29, %s5724_s22  ;;  %p5733_p4 = scmp.lt.s32.totalorder %s5724_s22, %s5724_s22 }
  0x1f   : > { %p5727_p0 = pnand %p5725_p13, %p6244_p8  ;;  %p5734_p7 = por %p5733_p4, %p5732_p5 }
  0x21   : > { %p5728_p2 = pneg %p5727_p0 }
  0x23   : > { %p5735_p9 = pnand %p5734_p7, %p5728_p2 }
  0x25   : > { %5738 = shalt.err (!%p5735_p9)
}
  0x26   : > { %s6136_s23 = smov 64   ;;  %s6137_s28 = smov 4  }
  0x27   : > { %5041 = dma.hbm_to_vmem [thread:$0]  (!%p6228_p6), %s7513_s1, 384, %s6217_s29, [#allocation13], %s6136_s23, %s6136_s23, %s6137_s28  }
  0x28   : > { %s5739_s16 = scalar_lea.hbm %s7515_s3, 12288 }
  0x29   : > { %p5740_p4 = scmp.ne.s32.totalorder %s7515_s3, %s5739_s16  ;;  %p5746_p12 = scmp.lt.u32.totalorder %s5739_s16, %s7515_s3 }
  0x2b   : > { %p5742_p10 = pnand %p5740_p4, %p6244_p8 }
  0x2d   : > { %p5743_p11 = pneg %p5742_p10 }
  0x2f   : > { %p5748_p13 = pnand %p5746_p12, %p5743_p11 }
  0x31   : > { %5751 = shalt.err (!%p5748_p13)
}
  0x32   : > { %s5752_s29 = scalar_lea.vmem %s6232_s10, 12288  ;;  %p5760_p7 = scmp.lt.s32.totalorder %s6232_s10, %s6232_s10 }
  0x33   : > { %p5753_p0 = scmp.ne.s32.totalorder %s6232_s10, %s5752_s29  ;;  %p5761_p9 = scmp.lt.s32.totalorder %s5752_s29, %s5752_s29 }
  0x35   : > { %p5755_p2 = pnand %p5753_p0, %p6244_p8  ;;  %p5762_p4 = por %p5761_p9, %p5760_p7 }
  0x37   : > { %p5756_p5 = pneg %p5755_p2 }
  0x39   : > { %p5763_p10 = pnand %p5762_p4, %p5756_p5 }
  0x3b   : > { %5766 = shalt.err (!%p5763_p10)
}
  0x3c   : > { %s7522_s22 = smov 128   ;;  %s6139_s23 = smov 8  }
  0x3d   : > { %5047 = dma.hbm_to_vmem [thread:$0]  (!%p6228_p6), %s7515_s3, 12288, %s6232_s10, [#allocation16], %s7522_s22, %s7522_s22, %s6139_s23  }
  0x3e   : > { %s5767_s15 = scalar_lea.hbm %s7517_s5, 1536 }
  0x3f   : > { %p5768_p11 = scmp.ne.s32.totalorder %s7517_s5, %s5767_s15  ;;  %p5774_p0 = scmp.lt.u32.totalorder %s5767_s15, %s7517_s5 }
  0x41   : > { %p5770_p12 = pnand %p5768_p11, %p6244_p8 }
  0x43   : > { %p5771_p13 = pneg %p5770_p12 }
  0x45   : > { %p5776_p2 = pnand %p5774_p0, %p5771_p13 }
  0x47   : > { %5779 = shalt.err (!%p5776_p2)
}
  0x48   : > { %s5780_s21 = scalar_lea.vmem %s274_s13, 1536  ;;  %p5788_p4 = scmp.lt.s32.totalorder %s274_s13, %s274_s13 }
  0x49   : > { %p5781_p5 = scmp.ne.s32.totalorder %s274_s13, %s5780_s21  ;;  %p5789_p10 = scmp.lt.s32.totalorder %s5780_s21, %s5780_s21 }
  0x4b   : > { %p5783_p7 = pnand %p5781_p5, %p6244_p8  ;;  %p5790_p1 = por %p5789_p10, %p5788_p4 }
  0x4d   : > { %p5784_p9 = pneg %p5783_p7 }
  0x4f   : > { %p5791_p3 = pnand %p5790_p1, %p5784_p9 }
  0x51   : > { %5794 = shalt.err (!%p5791_p3)
}
  0x52   : > { %5053 = dma.hbm_to_vmem [thread:$0]  (!%p6228_p6), %s7517_s5, 1536, %s274_s13, [#allocation19], %s7522_s22, %s7522_s22, %s6139_s23  }
  0x53   : > { %s6140_s28 = smov [#allocation14]   ;;  %s5795_s15 = scalar_lea.hbm %s7514_s2, 96 }
  0x54   : > { %s234_s9 = sshll.u32 %s6140_s28, 4  ;;  %p5796_p1 = scmp.ne.s32.totalorder %s7514_s2, %s5795_s15  ;;  %s235_s9 = int_to_ptr.vmem [resolvable:$true] %s234_s9 }
  0x55   : > { %p5802_p12 = scmp.lt.u32.totalorder %s5795_s15, %s7514_s2 }
  0x56   : > { %p5798_p3 = pnand %p5796_p1, %p6244_p8 }
  0x58   : > { %p5799_p11 = pneg %p5798_p3 }
  0x5a   : > { %p5804_p13 = pnand %p5802_p12, %p5799_p11 }
  0x5c   : > { %5807 = shalt.err (!%p5804_p13)
}
  0x5d   : > { %s5808_s13 = scalar_lea.vmem %s235_s9, 96  ;;  %p5816_p7 = scmp.lt.s32.totalorder %s235_s9, %s235_s9 }
  0x5e   : > { %p5809_p0 = scmp.ne.s32.totalorder %s235_s9, %s5808_s13  ;;  %p5817_p9 = scmp.lt.s32.totalorder %s5808_s13, %s5808_s13 }
  0x60   : > { %p5811_p2 = pnand %p5809_p0, %p6244_p8  ;;  %p5818_p4 = por %p5817_p9, %p5816_p7 }
  0x62   : > { %p5812_p5 = pneg %p5811_p2 }
  0x64   : > { %p5819_p10 = pnand %p5818_p4, %p5812_p5 }
  0x66   : > { %5822 = shalt.err (!%p5819_p10)
}
  0x67   : > { %s6141_s21 = smov 16   ;;  %s6142_s10 = smov 1  }
  0x68   : > { %5044 = dma.hbm_to_vmem [thread:$0]  (!%p6228_p6), %s7514_s2, 96, %s235_s9, [#allocation13], %s6141_s21, %s6141_s21, %s6142_s10  }
  0x69   : > { %s6143_s12 = smov [#allocation17]   ;;  %s6144_s15 = smov [#allocation20]  }
  0x6a   : > { %s260_s14 = sshll.u32 %s6143_s12, 4  ;;  %s286_s16 = sshll.u32 %s6144_s15, 4  ;;  %s261_s14 = int_to_ptr.vmem [resolvable:$true] %s260_s14  ;;  %s6334_s16 = int_to_ptr.vmem [resolvable:$true] %s286_s16 }
  0x6b   : > { %s5823_s20 = scalar_lea.hbm %s7516_s4, 96 }
  0x6c   : > { %p5824_p1 = scmp.ne.s32.totalorder %s7516_s4, %s5823_s20  ;;  %p5830_p12 = scmp.lt.u32.totalorder %s5823_s20, %s7516_s4 }
  0x6e   : > { %p5826_p3 = pnand %p5824_p1, %p6244_p8 }
  0x70   : > { %p5827_p11 = pneg %p5826_p3 }
  0x72   : > { %p5832_p13 = pnand %p5830_p12, %p5827_p11 }
  0x74   : > { %5835 = shalt.err (!%p5832_p13)
}
  0x75   : > { %s5836_s28 = scalar_lea.vmem %s261_s14, 96  ;;  %p5844_p7 = scmp.lt.s32.totalorder %s261_s14, %s261_s14 }
  0x76   : > { %p5837_p0 = scmp.ne.s32.totalorder %s261_s14, %s5836_s28  ;;  %p5845_p9 = scmp.lt.s32.totalorder %s5836_s28, %s5836_s28 }
  0x78   : > { %p5839_p2 = pnand %p5837_p0, %p6244_p8  ;;  %p5846_p4 = por %p5845_p9, %p5844_p7 }
  0x7a   : > { %p5840_p5 = pneg %p5839_p2 }
  0x7c   : > { %p5847_p10 = pnand %p5846_p4, %p5840_p5 }
  0x7e   : > { %5850 = shalt.err (!%p5847_p10)
}
  0x7f   : > { %5050 = dma.hbm_to_vmem [thread:$0]  (!%p6228_p6), %s7516_s4, 96, %s261_s14, [#allocation16], %s6141_s21, %s6141_s21, %s6142_s10  }
  0x80   : > { %s5851_s18 = scalar_lea.hbm %s7518_s6, 96 }
  0x81   : > { %p5852_p1 = scmp.ne.s32.totalorder %s7518_s6, %s5851_s18  ;;  %p5858_p12 = scmp.lt.u32.totalorder %s5851_s18, %s7518_s6 }
  0x83   : > { %p5854_p3 = pnand %p5852_p1, %p6244_p8 }
  0x85   : > { %p5855_p11 = pneg %p5854_p3 }
  0x87   : > { %p5860_p13 = pnand %p5858_p12, %p5855_p11 }
  0x89   : > { %5863 = shalt.err (!%p5860_p13)
}
  0x8a   : > { %s5864_s14 = scalar_lea.vmem %s6334_s16, 96  ;;  %p5872_p7 = scmp.lt.s32.totalorder %s6334_s16, %s6334_s16 }
  0x8b   : > { %p5865_p0 = scmp.ne.s32.totalorder %s6334_s16, %s5864_s14  ;;  %p5873_p9 = scmp.lt.s32.totalorder %s5864_s14, %s5864_s14 }
  0x8d   : > { %p5867_p2 = pnand %p5865_p0, %p6244_p8  ;;  %p5874_p4 = por %p5873_p9, %p5872_p7 }
  0x8f   : > { %p5868_p5 = pneg %p5867_p2 }
  0x91   : > { %p5875_p10 = pnand %p5874_p4, %p5868_p5 }
  0x93   : > { %5878 = shalt.err (!%p5875_p10)
}
  0x94   : > { %5056 = dma.hbm_to_vmem [thread:$0]  (!%p6228_p6), %s7518_s6, 96, %s6334_s16, [#allocation19], %s6141_s21, %s6141_s21, %s6142_s10  }
  0x95   : > { %s4839_s11 = sadd.s32 4294967294, %s6059_s27   ;;  %s6385_s19 = sadd.s32 1, %s6059_s27  }
  0x96   : > { %s30_s12 = ssub.s32 %s6059_s27, %s6385_s19  ;;  %s33_s15 = sadd.s32 1, %s6055_s26 }
  0x97   : > { %p31_p8 = scmp.eq.s32.totalorder %s30_s12, 0  ;;  %p40_p1 = scmp.ne.s32.totalorder %s6055_s26, %s6051_s25 }
  0x98   : > { %p41_p3 = scmp.eq.s32.totalorder %s6059_s27, 0  ;;  %p46_p11 = scmp.ne.s32.totalorder %s6051_s25, %s6047_s24 }
  0x99   : > { %s6396_s17 = scalar_select %p31_p8, %s6055_s26, %s33_s15  }
  0x9a   : > { %p6398_p12 = por %p41_p3, %p40_p1  ;;  %p7528_p13 = scmp.eq.s32.totalorder %s6212_s30, 0 }
  0x9b   : > { %p196_p0 = scmp.eq.s32.totalorder %s6212_s30, 1  ;;  %p202_p2 = scmp.eq.s32.totalorder %s4839_s11, 1 }
  0x9c   : > { %p6404_p6 = por %p7528_p13, %p46_p11  ;;  %p5071_p5 = scmp.lt.s32.totalorder %s6059_s27, 2 }
  0x9d   : > { %s300_s10 = sand.u32 1, %s6055_s26   ;;  %p6411_p7 = por %p196_p0, %p40_p1 }
  0x9e   : > { %p6415_p9 = por %p202_p2, %p46_p11  ;;  %s4848_s13 = sshll.u32 %s300_s10, 4 }
  0x9f   : > { %s7530_s16 = scalar_select %p6411_p7, 1, 0 }
  0xa0   : > { %s7531_s20 = scalar_select %p6415_p9, 1, 0 }
  0xa1   : > { %s5001_s29 = sshll.u32 %s6059_s27, 8  ;;  %s304_s22 = scalar_lea.vmem [#allocation9], %s4848_s13 }
  0xa2   : > { %s6423_s28 = scalar_lea.hbm %s7512_s0, %s5001_s29  ;;  %s311_s11 = sshll.u32 %s304_s22, 4  ;;  %s6425_s11 = int_to_ptr.vmem [resolvable:$true] %s311_s11 }
  0xa3   : > { %p6429_p4 = pnand %p5071_p5, %p6398_p12  ;;  %s6433_s15 = scalar_lea.sflag [#allocation10], %s300_s10 }
  0xa4   : > { %s5879_s9 = scalar_lea.hbm %s6423_s28, 256  ;;  %s5884_s18 = scalar_lea.hbm %s7512_s0, 512 }
  0xa5   : > { %p5880_p10 = scmp.ne.s32.totalorder %s6423_s28, %s5879_s9  ;;  %p5881_p8 = pneg %p6429_p4 }
  0xa6   : > { %p5885_p11 = scmp.lt.u32.totalorder %s6423_s28, %s7512_s0  ;;  %p5886_p12 = scmp.lt.u32.totalorder %s5884_s18, %s5879_s9 }
  0xa7   : > { %p5882_p1 = pnand %p5881_p8, %p5880_p10  ;;  %p5888_p0 = scmp.lt.u32.totalorder %s5879_s9, %s6423_s28 }
  0xa8   : > { %p5887_p13 = por %p5886_p12, %p5885_p11 }
  0xa9   : > { %p5883_p3 = pneg %p5882_p1 }
  0xaa   : > { %p5889_p2 = por %p5888_p0, %p5887_p13 }
  0xac   : > { %p5890_p5 = pnand %p5889_p2, %p5883_p3 }
  0xae   : > { %5893 = shalt.err (!%p5890_p5)
}
  0xaf   : > { %s5894_s10 = scalar_lea.vmem %s6425_s11, 256  ;;  %s6145_s13 = smov [#allocation9]  }
  0xb0   : > { %p5895_p10 = scmp.ne.s32.totalorder %s6425_s11, %s5894_s10  ;;  %s5899_s29 = sshll.u32 %s6145_s13, 4  ;;  %s5900_s29 = int_to_ptr.vmem [resolvable:$false] %s5899_s29 }
  0xb1   : > { %s5901_s14 = scalar_lea.vmem %s5900_s29, 512  ;;  %p5902_p7 = scmp.lt.s32.totalorder %s6425_s11, %s5900_s29 }
  0xb2   : > { %p5897_p1 = pnand %p5895_p10, %p5881_p8  ;;  %p5903_p11 = scmp.lt.s32.totalorder %s5901_s14, %s5894_s10 }
  0xb4   : > { %p5898_p9 = pneg %p5897_p1  ;;  %p5904_p12 = por %p5903_p11, %p5902_p7 }
  0xb6   : > { %p5905_p13 = pnand %p5904_p12, %p5898_p9 }
  0xb8   : > { %5908 = shalt.err (!%p5905_p13)
}
  0xb9   : > { %s7533_s9 = smov 128   ;;  %p7534_p8 = scmp.ne.s32.totalorder %s7524_s8, 0 }
  0xba   : > { %5060 = dma.hbm_to_vmem [thread:$0]  (!%p6429_p4), %s6423_s28, 256, %s6425_s11, %s6433_s15, %s7533_s9, %s7533_s9, %s6139_s23  }
  0xbb   : > { %323 = sbr.rel (%p7534_p8) target bundleno = 3194 (0xc7a), region = 48  ;;  %s6467_s18 = sand.u32 (!%p7534_p8), 1, %s6051_s25  }
  0xbc   : > { %s4852_s22 = sshll.u32 (!%p7534_p8), %s6467_s18, 4  ;;  %s326_s10 = scalar_lea.sflag (!%p7534_p8), [#allocation10], %s6467_s18 }
  0xbd   : > { %s6471_s13 = scalar_lea.vmem (!%p7534_p8), [#allocation9], %s4852_s22 }
  0xc2   : > { %6026 = dma.done.wait (%p6404_p6), %s326_s10, 256  }
  0xc3   : > { %6028 = vsyncadd (%p6404_p6), %s326_s10, 4294967040  ;;  %p7535_p7 = scmp.eq.s32.totalorder %s6212_s30, 0 }
  0xc5   : > { %6030 = dma.done.wait (%p7535_p7), [#allocation13], 480   ;;  %p7536_p9 = pmov %p7535_p7 }
  0xc6   : > { %p7537_p4 = pmov %p7535_p7 }
  0xc7   : > { %6032 = vsyncadd (%p7536_p9), [#allocation13], 4294966816 }
  0xc8   : > { %6034 = dma.done.wait (%p7537_p4), [#allocation16], 12384   ;;  %p7538_p3 = pmov %p7537_p4 }
  0xca   : > { %6036 = vsyncadd (%p7538_p3), [#allocation16], 4294954912  ;;  %p7539_p0 = pmov %p7538_p3 }
  0xcc   : > { %6038 = dma.done.wait (%p7539_p0), [#allocation19], 1632   ;;  %p7540_p2 = pmov %p7539_p0 }
  0xcd   : > { %s4859_s8 = sshll.u32 %s6467_s18, 3  ;;  %v6146_v0 = vmov 0   ;;  %v6147_v1 = vmov 0.0   ;;  %v6491_v2 = vld [vmem:[#allocation18] sm:$0xff]  ;;  %v6493_v3 = vld [vmem:[#allocation18 + $0x8] sm:$0xff]  ;;  %v402_v10 = vlaneseq  ;;  %vm644_vm0 = vcmask 261120  }
  0xce   : > { %6040 = vsyncadd (%p7540_p2), [#allocation19], 4294965664  ;;  %594 = vmatprep.mubr.bf16.mxu0 %v6146_v0  ;;  %385 = vst [vmem:[#allocation8] sm:$0xff] %v6147_v1  ;;  %v6495_v4 = vld [vmem:[#allocation20] ss:$0 sm:$0xff]  ;;  %s6520_s23 = scalar_lea.vmem [#allocation21], %s4859_s8 }
  0xcf   : > { %386 = vst [vmem:[#allocation8 + $0x8] sm:$0xff] %v6147_v1  ;;  %393 = vst [vmem:[#allocation3] sm:$0x7] %v6147_v1  ;;  %v5271_v5 = vld [vmem:[#allocation15 + $0x4] ss:$8 sps:$4 sm:$0xff]   ;;  %v6497_v13 = vshrl.u32 %v402_v10, 7 }
  0xd0   : > { %394 = vst [vmem:[#allocation3 + $0x13] sm:$0x7] %v6147_v1  ;;  %v5273_v6 = vld [vmem:[#allocation15] ss:$8 sps:$4 sm:$0xff]   ;;  %562 = vmatprep.subr.bf16.mxu0 %v5271_v5  ;;  %v5274_v7 = vld [vmem:[#allocation15 + $0x14] ss:$8 sps:$4 sm:$0xff]  }
  0xd1   : > { %563 = vmatpush1.bf16.msra.mxu0 %v5273_v6  ;;  %v5276_v8 = vld [vmem:[#allocation15 + $0x10] ss:$8 sps:$4 sm:$0xff]   ;;  %v5277_v9 = vld [vmem:[#allocation15 + $0x24] ss:$8 sps:$4 sm:$0xff]   ;;  %v5279_v11 = vld [vmem:[#allocation15 + $0x20] ss:$8 sps:$4 sm:$0xff]  }
  0xd2   : > { %564 = vmatprep.subr.bf16.mxu0 %v5274_v7  ;;  %v5280_v12 = vld [vmem:[#allocation15 + $0x34] ss:$8 sps:$4 sm:$0xff]   ;;  %v5282_v15 = vld [vmem:[#allocation15 + $0x30] ss:$8 sps:$4 sm:$0xff]   ;;  %v5283_v18 = vld [vmem:[#allocation15 + $0x44] ss:$8 sps:$4 sm:$0xff]  }
  0xd3   : > { %v387_v14 = vld [vmem:[%s6471_s13] ss:$8 sps:$4 sm:$0xff]   ;;  %v6501_v19 = vsub.s32 0, %v6497_v13  ;;  %v6504_v20 = vsub.s32 1, %v6497_v13  ;;  %v6507_v22 = vsub.s32 2, %v6497_v13  ;;  %v6510_v24 = vsub.s32 3, %v6497_v13 }
  0xd4   : > { %v389_v16 = vunpack.c.l.bf16 %v387_v14  ;;  %v390_v17 = vunpack.c.h.bf16 %v387_v14  ;;  %v399_v21 = vld [vmem:[#allocation12] sm:$0xf]  ;;  %v5286_v25 = vld [vmem:[#allocation15 + $0x54] ss:$8 sps:$4 sm:$0xff]   ;;  %v5288_v29 = vld [vmem:[#allocation15 + $0x50] ss:$8 sps:$4 sm:$0xff]  }
  0xd5   : > { %565 = vmatpush1.bf16.msra.mxu0 %v5276_v8  ;;  %v5285_v23 = vld [vmem:[#allocation15 + $0x40] ss:$8 sps:$4 sm:$0xff]   ;;  %v405_v26 = vrot.slane %v399_v21, %v6501_v19  ;;  %v415_v27 = vrot.slane %v399_v21, %v6504_v20  ;;  %v425_v28 = vrot.slane %v399_v21, %v6507_v22  ;;  %v5289_v30 = vld [vmem:[#allocation15 + $0x64] ss:$8 sps:$4 sm:$0xff]   ;;  %v435_v31 = vrot.slane %v399_v21, %v6510_v24  ;;  %v5292_v47 = vld [vmem:[#allocation15 + $0x74] ss:$8 sps:$4 sm:$0xff]  }
  0xd6   : > { %566 = vmatprep.subr.bf16.mxu0 %v5277_v9  ;;  %391 = vst [vmem:[#allocation2] sm:$0xff] %v389_v16  ;;  %392 = vst [vmem:[#allocation2 + $0x8] sm:$0xff] %v390_v17  ;;  %v5291_v44 = vld [vmem:[#allocation15 + $0x60] ss:$8 sps:$4 sm:$0xff]   ;;  %v4860_v52 = vld [vmem:[#allocation14] ss:$0 sm:$0xff] }
  0xd7   : > { %397 = vst [vmem:[#allocation3 + $0x3] sm:$0xff] %v389_v16  ;;  %398 = vst [vmem:[#allocation3 + $0xb] sm:$0xff] %v390_v17  ;;  %v436_v46 = vmul.f32 %v435_v31, %v389_v16  ;;  %v437_v49 = vmul.f32 %v435_v31, %v390_v17  ;;  %v5294_v53 = vld [vmem:[#allocation15 + $0x70] ss:$8 sps:$4 sm:$0xff]   ;;  %v4879_v9 = vld [vmem:[#allocation17] ss:$0 sm:$0xff] }
  0xd8   : > { %s6526_s21 = smov 0  }
  0xd9   : > { %567 = vmatpush1.bf16.msra.mxu0 %v5279_v11 }
  0xda   : > { %568 = vmatprep.subr.bf16.mxu0 %v5280_v12 }
  0xdd   : > { %569 = vmatpush1.bf16.msra.mxu0 %v5282_v15 }
  0xde   : > { %570 = vmatprep.subr.bf16.mxu0 %v5283_v18  ;;  %v400_v32 = vld [vmem:[#allocation3] sm:$0xff]  ;;  %v401_v33 = vld [vmem:[#allocation3 + $0x8] sm:$0xff] }
  0xdf   : > { %v410_v34 = vld [vmem:[#allocation3 + $0x1] sm:$0xff]  ;;  %v406_v35 = vmul.f32 %v405_v26, %v400_v32  ;;  %v407_v36 = vmul.f32 %v405_v26, %v401_v33  ;;  %v411_v37 = vld [vmem:[#allocation3 + $0x9] sm:$0xff] }
  0xe0   : > { %v416_v38 = vmul.f32 %v415_v27, %v410_v34  ;;  %v420_v39 = vld [vmem:[#allocation3 + $0x2] sm:$0xff]  ;;  %v421_v40 = vld [vmem:[#allocation3 + $0xa] sm:$0xff]  ;;  %v417_v41 = vmul.f32 %v415_v27, %v411_v37 }
  0xe1   : > { %571 = vmatpush1.bf16.msra.mxu0 %v5285_v23  ;;  %v426_v42 = vmul.f32 %v425_v28, %v420_v39  ;;  %v427_v43 = vmul.f32 %v425_v28, %v421_v40 }
  0xe2   : > { %572 = vmatprep.subr.bf16.mxu0 %v5286_v25  ;;  %v418_v45 = vadd.f32 %v416_v38, %v406_v35  ;;  %v419_v48 = vadd.f32 %v417_v41, %v407_v36 }
  0xe4   : > { %v428_v50 = vadd.f32 %v426_v42, %v418_v45  ;;  %v429_v51 = vadd.f32 %v427_v43, %v419_v48  ;;  %v6522_v45 = vmov 0.0  }
  0xe5   : > { %573 = vmatpush1.bf16.msra.mxu0 %v5288_v29 }
  0xe6   : > { %574 = vmatprep.subr.bf16.mxu0 %v5289_v30  ;;  %v438_v54 = vadd.f32 %v436_v46, %v428_v50  ;;  %v439_v55 = vadd.f32 %v437_v49, %v429_v51  ;;  %v6524_v46 = vmov 0.0  }
  0xe8   : > { %v447_v56 = vadd.f32 %v4860_v52, %v438_v54  ;;  %v448_v57 = vadd.f32 %v4860_v52, %v439_v55 }
  0xe9   : > { %575 = vmatpush1.bf16.msra.mxu0 %v5291_v44 }
  0xea   : > { %576 = vmatprep.subr.bf16.mxu0 %v5292_v47  ;;  %v4861_v58 = vmul.f32 -1.442695, %v447_v56  ;;  %v4862_v59 = vmul.f32 -1.442695, %v448_v57 }
  0xec   : > { %5295 = vpow2.f32 %v4861_v58 }
  0xed   : > { %577 = vmatpush1.bf16.msra.mxu0 %v5294_v53  ;;  %5297 = vpow2.f32 %v4862_v59 }
  0xf6   : > { %v5296_v60 = vpop.eup %5295 }
  0xf7   : > { %v5298_v61 = vpop.eup %5297  ;;  %v455_v62 = vadd.f32 1.0, %v5296_v60 }
  0xf8   : > { %v456_v63 = vadd.f32 1.0, %v5298_v61 }
  0xf9   : > { %5299 = vrcp.f32 %v455_v62 }
  0xfa   : > { %5301 = vrcp.f32 %v456_v63 }
 0x103   : > { %v5300_v1 = vpop.eup %5299 }
 0x104   : > { %v5302_v5 = vpop.eup %5301  ;;  %v461_v6 = vmul.f32 %v5300_v1, %v447_v56 }
 0x105   : > { %v462_v7 = vmul.f32 %v5302_v5, %v448_v57 }
 0x106   : > { %463 = vst [vmem:[#allocation4] sm:$0xff] %v461_v6 }
 0x107   : > { %464 = vst [vmem:[#allocation4 + $0x8] sm:$0xff] %v462_v7  ;;  %v465_v8 = vpack.c.bf16 %v462_v7, %v461_v6 }
 0x109   : > { %595 = vmatmul.mubr.bf16.vlgmr.msra.gmra.mrb[0].mxu0 %v465_v8 }
 0x1dc   : > { %v596_v10 = vpop.f32.mrb[0].mxu0 }
 0x1dd   : > { %v612_v11 = vadd.f32 %v4879_v9, %v596_v10  ;;  %v598_v12 = vpop.f32.mrb[1].mxu0 }
 0x1de   : > { %645 = vst.msk [vmem:[#allocation6] sm:$0xff] %vm644_vm0, %v598_v12  ;;  %v600_v14 = vpop.f32.mrb[2].mxu0 }
 0x1df   : > { %v616_v15 = vmin.f32 %v612_v11, 20.0  ;;  %v613_v16 = vadd.f32 %v4879_v9, %v600_v14  ;;  %v602_v17 = vpop.f32.mrb[3].mxu0  ;;  %vm614_vm2 = vcmp.gt.f32.partialorder %v612_v11, 20.0 }
 0x1e0   : > { %646 = vst.msk [vmem:[#allocation6 + $0x8] sm:$0xff] %vm644_vm0, %v602_v17 }
 0x1e1   : > { %v618_v18 = vmul.f32 1.442695, %v616_v15  ;;  %v617_v21 = vmin.f32 %v613_v16, 20.0  ;;  %vm615_vm4 = vcmp.gt.f32.partialorder %v613_v16, 20.0 }
 0x1e3   : > { %5303 = vpow2.f32 %v618_v18  ;;  %v620_v23 = vmul.f32 1.442695, %v617_v21 }
 0x1e5   : > { %5305 = vpow2.f32 %v620_v23 }
 0x1ed   : > { %v5304_v25 = vpop.eup %5303 }
 0x1ee   : > { %v622_v26 = vadd.f32 1.0, %v5304_v25  ;;  %v625_v29 = vmul.f32 -0.5, %v5304_v25  ;;  %v628_v32 = vand.u32 2147483647, %v5304_v25 }
 0x1ef   : > { %v5306_v27 = vpop.eup %5305 }
 0x1f0   : > { %5307 = vlog2.f32 %v622_v26  ;;  %v631_v28 = vadd.f32 1.0, %v5306_v27  ;;  %v634_v30 = vmul.f32 -0.5, %v5306_v27  ;;  %v626_v31 = vadd.f32 1.0, %v625_v29 }
 0x1f1   : > { %v637_v35 = vand.u32 2147483647, %v5306_v27  ;;  %vm629_vm1 = vcmp.lt.f32.partialorder %v628_v32, 0.0004427343 }
 0x1f2   : > { %5309 = vlog2.f32 %v631_v28  ;;  %v635_v33 = vadd.f32 1.0, %v634_v30  ;;  %v627_v37 = vmul.f32 %v5304_v25, %v626_v31 }
 0x1f3   : > { %vm638_vm3 = vcmp.lt.f32.partialorder %v637_v35, 0.0004427343 }
 0x1f4   : > { %v636_v41 = vmul.f32 %v5306_v27, %v635_v33 }
 0x1fa   : > { %v5308_v34 = vpop.eup %5307 }
 0x1fb   : > { %v624_v36 = vmul.f32 0.6931472, %v5308_v34 }
 0x1fc   : > { %v5310_v38 = vpop.eup %5309 }
 0x1fd   : > { %v630_v39 = vsel %vm629_vm1, %v627_v37, %v624_v36  ;;  %v633_v40 = vmul.f32 0.6931472, %v5310_v38 }
 0x1fe   : > { %v640_v42 = vsel %vm614_vm2, %v612_v11, %v630_v39 }
 0x1ff   : > { %642 = vst [vmem:[#allocation5] sm:$0xff] %v640_v42  ;;  %v639_v43 = vsel %vm638_vm3, %v636_v41, %v633_v40 }
 0x200   : > { %v641_v44 = vsel %vm615_vm4, %v613_v16, %v639_v43 }
 0x201   : > { %643 = vst [vmem:[#allocation5 + $0x8] sm:$0xff] %v641_v44 }
 0x202 LB: >> { %s6538_s28 = sshll.u32 %s6071_s21, 3  ;;  %v6542_v48 = vsub.s32 4, %v6497_v13  ;;  %v6553_v53 = vsub.s32 5, %v6497_v13  ;;  %v6556_v54 = vsub.s32 6, %v6497_v13  ;;  %v6563_v56 = vsub.s32 7, %v6497_v13  ;;  %s655_s21 = sadd.s32 1, %s6071_s21   ;;  %s6071_s21 = sphi %s6526_s21, %s655_s21   ;;  %v6067_v46 = vphi %v6524_v46, %v6684_v46   ;;  %v6063_v45 = vphi %v6522_v45, %v6682_v45  }
 0x203   : >> { %s663_s11 = scalar_lea.vmem [#allocation6], %s6538_s28  ;;  %s659_s12 = scalar_lea.vmem [#allocation5], %s6538_s28  ;;  %vm1050_vm5 = vcmask 1040384   ;;  %vm1052_vm6 = vcmask 1041408   ;;  %vm1054_vm7 = vcmask 1042432   ;;  %vm1056_vm8 = vcmask 1043456  }
 0x204   : >> { %v664_v47 = vld [vmem:[%s663_s11] sm:$0xff]  ;;  %s661_s15 = scalar_lea.vmem [#allocation4], %s6538_s28  ;;  %vm1058_vm9 = vcmask 1044480   ;;  %vm1060_vm10 = vcmask 1045504   ;;  %vm1062_vm11 = vcmask 1046528   ;;  %s1072_s29 = scalar_lea.vmem [#allocation7], %s6538_s28 }
 0x205   : >> { %v727_v49 = vrot.slane %v664_v47, %v6504_v20  ;;  %v6549_v51 = vld [vmem:[%s661_s15] sm:$0xff]  ;;  %v679_v52 = vrot.slane %v664_v47, %v6501_v19  ;;  %v775_v62 = vrot.slane %v664_v47, %v6507_v22  ;;  %v823_v1 = vrot.slane %v664_v47, %v6510_v24  ;;  %p652_p6 = scmp.ge.s32.totalorder %s655_s21, 2  }
 0x206   : >> { %v871_v6 = vrot.slane %v664_v47, %v6542_v48  ;;  %v919_v7 = vrot.slane %v664_v47, %v6553_v53  ;;  %v967_v8 = vrot.slane %v664_v47, %v6556_v54  ;;  %v1015_v10 = vrot.slane %v664_v47, %v6563_v56  ;;  %1272 = vmatprep.mubr.bf16.mxu1 (%p652_p6), %v6146_v0  ;;  %s6727_s14 = smov (%p652_p6), 0  }
 0x207   : >> { %729 = vbcast.lane.b32.xlu1 %v727_v49, 256  ;;  %681 = vbcast.lane.b32.xlu0 %v679_v52, 256 }
 0x208   : >> { %v6546_v50 = vld [vmem:[%s659_s12] sm:$0xff] }
 0x209   : >> { %v6560_v55 = vrot.slane %v6546_v50, %v6542_v48  ;;  %v6567_v57 = vmul.f32 %v6549_v51, %v6546_v50  ;;  %v6571_v58 = vrot.slane %v6546_v50, %v6553_v53  ;;  %v6575_v59 = vrot.slane %v6546_v50, %v6556_v54 }
 0x20a   : >> { %v6579_v60 = vrot.slane %v6546_v50, %v6563_v56  ;;  %v669_v11 = vrot.slane %v6546_v50, %v6501_v19  ;;  %v717_v14 = vrot.slane %v6546_v50, %v6504_v20  ;;  %v765_v18 = vrot.slane %v6546_v50, %v6507_v22 }
 0x20b   : >> { %v6583_v61 = vrot.slane %v6567_v57, %v6542_v48  ;;  %733 = vbcast.lane.b32.xlu1 %v727_v49, 264  ;;  %685 = vbcast.lane.b32.xlu0 %v679_v52, 264  ;;  %v6588_v63 = vrot.slane %v6567_v57, %v6553_v53  ;;  %v6593_v5 = vrot.slane %v6567_v57, %v6556_v54 }
 0x20c   : >> { %v6600_v9 = vrot.slane %v6567_v57, %v6563_v56  ;;  %v670_v12 = vmul.f32 %v669_v11, %v6491_v2  ;;  %v671_v15 = vmul.f32 %v669_v11, %v6493_v3  ;;  %v718_v17 = vmul.f32 %v717_v14, %v6491_v2 }
 0x20d   : >> { %v719_v23 = vmul.f32 %v717_v14, %v6493_v3  ;;  %v766_v26 = vmul.f32 %v765_v18, %v6491_v2  ;;  %v813_v27 = vrot.slane %v6546_v50, %v6510_v24  ;;  %v767_v29 = vmul.f32 %v765_v18, %v6493_v3 }
 0x20e   : >> { %v672_v16 = vmul.f32 1.442695, %v670_v12  ;;  %v674_v21 = vmul.f32 1.442695, %v671_v15  ;;  %v720_v25 = vmul.f32 1.442695, %v718_v17  ;;  %v862_v36 = vmul.f32 %v6560_v55, %v6491_v2 }
 0x20f   : >> { %781 = vbcast.lane.b32.xlu1 %v775_v62, 264  ;;  %777 = vbcast.lane.b32.xlu0 %v775_v62, 256  ;;  %v722_v28 = vmul.f32 1.442695, %v719_v23  ;;  %v768_v30 = vmul.f32 1.442695, %v766_v26  ;;  %v814_v31 = vmul.f32 %v813_v27, %v6491_v2  ;;  %v815_v33 = vmul.f32 %v813_v27, %v6493_v3 }
 0x210   : >> { %5311 = vpow2.f32 %v672_v16  ;;  %v770_v32 = vmul.f32 1.442695, %v767_v29  ;;  %v690_v37 = vrot.slane %v6567_v57, %v6501_v19  ;;  %v863_v40 = vmul.f32 %v6560_v55, %v6493_v3 }
 0x211   : >> { %5313 = vpow2.f32 %v674_v21  ;;  %v816_v35 = vmul.f32 1.442695, %v814_v31  ;;  %v818_v39 = vmul.f32 1.442695, %v815_v33  ;;  %v864_v44 = vmul.f32 1.442695, %v862_v36 }
 0x212   : >> { %5315 = vpow2.f32 %v720_v25  ;;  %v910_v47 = vmul.f32 %v6571_v58, %v6491_v2  ;;  %v866_v55 = vmul.f32 1.442695, %v863_v40  ;;  %v786_v15 = vrot.slane %v6567_v57, %v6507_v22 }
 0x213   : >> { %829 = vbcast.lane.b32.xlu1 %v823_v1, 264  ;;  %825 = vbcast.lane.b32.xlu0 %v823_v1, 256  ;;  %5317 = vpow2.f32 %v722_v28  ;;  %v959_v21 = vmul.f32 %v6575_v59, %v6493_v3  ;;  %v834_v26 = vrot.slane %v6567_v57, %v6510_v24  ;;  %v1006_v28 = vmul.f32 %v6579_v60, %v6491_v2 }
 0x214   : >> { %5319 = vpow2.f32 %v768_v30 }
 0x215   : >> { %5321 = vpow2.f32 %v770_v32  ;;  %v962_v36 = vmul.f32 1.442695, %v959_v21 }
 0x216   : >> { %5323 = vpow2.f32 %v816_v35 }
 0x217   : >> { %877 = vbcast.lane.b32.xlu1 %v871_v6, 264  ;;  %873 = vbcast.lane.b32.xlu0 %v871_v6, 256  ;;  %5325 = vpow2.f32 %v818_v39  ;;  %v1008_v39 = vmul.f32 1.442695, %v1006_v28 }
 0x218   : >> { %5327 = vpow2.f32 %v864_v44 }
 0x219   : >> { %5329 = vpow2.f32 %v866_v55 }
 0x21a   : >> { %v5312_v34 = vpop.eup %5311 }
 0x21b   : >> { %925 = vbcast.lane.b32.xlu1 %v919_v7, 264  ;;  %921 = vbcast.lane.b32.xlu0 %v919_v7, 256  ;;  %v693_v38 = vmul.f32 %v6067_v46, %v5312_v34  ;;  %v5314_v41 = vpop.eup %5313  ;;  %v911_v46 = vmul.f32 %v6571_v58, %v6493_v3 }
 0x21d   : >> { %v914_v16 = vmul.f32 1.442695, %v911_v46 }
 0x21f   : >> { %973 = vbcast.lane.b32.xlu1 %v967_v8, 264  ;;  %969 = vbcast.lane.b32.xlu0 %v967_v8, 256 }
 0x223   : >> { %703 = vbcast.lane.b32.xlu1 %v679_v52, 280  ;;  %699 = vbcast.lane.b32.xlu0 %v679_v52, 272  ;;  %v5316_v52 = vpop.eup %5315 }
 0x224   : >> { %v5318_v11 = vpop.eup %5317 }
 0x227   : >> { %751 = vbcast.lane.b32.xlu1 %v727_v49, 280  ;;  %747 = vbcast.lane.b32.xlu0 %v727_v49, 272  ;;  %v738_v49 = vrot.slane %v6567_v57, %v6504_v20 }
 0x22b   : >> { %799 = vbcast.lane.b32.xlu1 %v775_v62, 280  ;;  %795 = vbcast.lane.b32.xlu0 %v775_v62, 272  ;;  %v694_v62 = vmul.f32 %v6063_v45, %v5314_v41  ;;  %v5320_v45 = vpop.eup %5319 }
 0x22c   : >> { %v5322_v29 = vpop.eup %5321 }
 0x22d   : >> { %v5324_v34 = vpop.eup %5323 }
 0x22e   : >> { %v5326_v40 = vpop.eup %5325 }
 0x22f   : >> { %847 = vbcast.lane.b32.xlu1 %v823_v1, 280  ;;  %843 = vbcast.lane.b32.xlu0 %v823_v1, 272 }
 0x233   : >> { %1021 = vbcast.lane.b32.xlu1 %v1015_v10, 264  ;;  %1017 = vbcast.lane.b32.xlu0 %v1015_v10, 256 }
 0x237   : >> { %895 = vbcast.lane.b32.xlu1 %v871_v6, 280  ;;  %891 = vbcast.lane.b32.xlu0 %v871_v6, 272 }
 0x23b   : >> { %943 = vbcast.lane.b32.xlu1 %v919_v7, 280  ;;  %939 = vbcast.lane.b32.xlu0 %v919_v7, 272 }
 0x23f   : >> { %991 = vbcast.lane.b32.xlu1 %v967_v8, 280  ;;  %987 = vbcast.lane.b32.xlu0 %v967_v8, 272  ;;  %v912_v8 = vmul.f32 1.442695, %v910_v47  ;;  %v5328_v47 = vpop.eup %5327 }
 0x240   : >> { %v5330_v55 = vpop.eup %5329 }
 0x241   : >> { %5331 = vpow2.f32 %v912_v8 }
 0x242   : >> { %5333 = vpow2.f32 %v914_v16 }
 0x243   : >> { %1039 = vbcast.lane.b32.xlu1 %v1015_v10, 280  ;;  %1035 = vbcast.lane.b32.xlu0 %v1015_v10, 272  ;;  %v958_v10 = vmul.f32 %v6575_v59, %v6491_v2 }
 0x245   : >> { %v960_v27 = vmul.f32 1.442695, %v958_v10 }
 0x247   : >> { %5335 = vpow2.f32 %v960_v27 }
 0x248   : >> { %5337 = vpow2.f32 %v962_v36 }
 0x249   : >> { %5339 = vpow2.f32 %v1008_v39 }
 0x24b   : >> { %v5332_v10 = vpop.eup %5331 }
 0x279   : >> { %v730_v42 = vpop.permute.xlu1 %729  ;;  %v682_v43 = vpop.permute.xlu0 %681 }
 0x27a   : >> { %v691_v50 = vmul.f32 %v690_v37, %v682_v43  ;;  %v739_v12 = vmul.f32 %v738_v49, %v730_v42 }
 0x27c   : >> { %v6633_v1 = vadd.f32 %v693_v38, %v691_v50  ;;  %v1007_v38 = vmul.f32 %v6579_v60, %v6493_v3  ;;  %v1086_v3 = vld [vmem:[#allocation3 + $0x4] sm:$0xff] (%p652_p6) }
 0x27d   : >> { %v734_v6 = vpop.permute.xlu1 %733  ;;  %v686_v7 = vpop.permute.xlu0 %685 }
 0x27e   : >> { %v692_v14 = vmul.f32 %v690_v37, %v686_v7  ;;  %v741_v58 = vmul.f32 %v5316_v52, %v6633_v1  ;;  %v740_v30 = vmul.f32 %v738_v49, %v734_v6 }
 0x280   : >> { %v6640_v17 = vadd.f32 %v694_v62, %v692_v14  ;;  %v6642_v18 = vadd.f32 %v741_v58, %v739_v12  ;;  %v1010_v62 = vmul.f32 1.442695, %v1007_v38  ;;  %v5334_v58 = vpop.eup %5333 }
 0x281   : >> { %v782_v23 = vpop.permute.xlu1 %781  ;;  %v778_v25 = vpop.permute.xlu0 %777 }
 0x282   : >> { %v787_v31 = vmul.f32 %v786_v15, %v778_v25  ;;  %v742_v32 = vmul.f32 %v5318_v11, %v6640_v17  ;;  %v789_v33 = vmul.f32 %v5320_v45, %v6642_v18  ;;  %v788_v41 = vmul.f32 %v786_v15, %v782_v23  ;;  %v5336_v25 = vpop.eup %5335 }
 0x283   : >> { %5341 = vpow2.f32 %v1010_v62 }
 0x284   : >> { %v744_v35 = vadd.f32 %v742_v32, %v740_v30  ;;  %v6652_v59 = vadd.f32 %v789_v33, %v787_v31  ;;  %v5338_v30 = vpop.eup %5337 }
 0x285   : >> { %v830_v37 = vpop.permute.xlu1 %829  ;;  %v826_v57 = vpop.permute.xlu0 %825 }
 0x286   : >> { %v835_v42 = vmul.f32 %v834_v26, %v826_v57  ;;  %v790_v43 = vmul.f32 %v5322_v29, %v744_v35  ;;  %v837_v44 = vmul.f32 %v5324_v34, %v6652_v59  ;;  %v836_v6 = vmul.f32 %v834_v26, %v830_v37 }
 0x288   : >> { %v792_v49 = vadd.f32 %v790_v43, %v788_v41  ;;  %v6657_v50 = vadd.f32 %v837_v44, %v835_v42 }
 0x289   : >> { %v878_v52 = vpop.permute.xlu1 %877  ;;  %v874_v46 = vpop.permute.xlu0 %873 }
 0x28a   : >> { %v883_v60 = vmul.f32 %v6583_v61, %v874_v46  ;;  %v838_v7 = vmul.f32 %v5326_v40, %v792_v49  ;;  %v885_v8 = vmul.f32 %v5328_v47, %v6657_v50  ;;  %v884_v45 = vmul.f32 %v6583_v61, %v878_v52  ;;  %v5340_v61 = vpop.eup %5339 }
 0x28c   : >> { %v840_v11 = vadd.f32 %v838_v7, %v836_v6  ;;  %v6661_v12 = vadd.f32 %v885_v8, %v883_v60 }
 0x28d   : >> { %v926_v14 = vpop.permute.xlu1 %925  ;;  %v922_v15 = vpop.permute.xlu0 %921 }
 0x28e   : >> { %v931_v16 = vmul.f32 %v6588_v63, %v922_v15  ;;  %v886_v21 = vmul.f32 %v5330_v55, %v840_v11  ;;  %v933_v23 = vmul.f32 %v5332_v10, %v6661_v12  ;;  %v932_v31 = vmul.f32 %v6588_v63, %v926_v14  ;;  %v5342_v42 = vpop.eup %5341 }
 0x290   : >> { %v888_v26 = vadd.f32 %v886_v21, %v884_v45  ;;  %v6666_v27 = vadd.f32 %v933_v23, %v931_v16 }
 0x291   : >> { %v974_v28 = vpop.permute.xlu1 %973  ;;  %v970_v29 = vpop.permute.xlu0 %969 }
 0x292   : >> { %v979_v32 = vmul.f32 %v6593_v5, %v970_v29  ;;  %v934_v33 = vmul.f32 %v5334_v58, %v888_v26  ;;  %v981_v34 = vmul.f32 %v5336_v25, %v6666_v27  ;;  %v980_v39 = vmul.f32 %v6593_v5, %v974_v28 }
 0x294   : >> { %v936_v36 = vadd.f32 %v934_v33, %v932_v31  ;;  %v6671_v37 = vadd.f32 %v981_v34, %v979_v32 }
 0x295   : >> { %v704_v57 = vpop.permute.xlu1 %703  ;;  %v700_v38 = vpop.permute.xlu0 %699 }
 0x296   : >> { %v982_v40 = vmul.f32 %v5338_v30, %v936_v36  ;;  %v1029_v41 = vmul.f32 %v5340_v61, %v6671_v37  ;;  %v706_v63 = vmul.f32 %v704_v57, %v6640_v17  ;;  %v705_v44 = vmul.f32 %v700_v38, %v6633_v1 }
 0x298   : >> { %v984_v43 = vadd.f32 %v982_v40, %v980_v39  ;;  %v707_v60 = vadd.f32 %v706_v63, %v705_v44 }
 0x299   : >> { %v752_v47 = vpop.permute.xlu1 %751  ;;  %v748_v52 = vpop.permute.xlu0 %747 }
 0x29a   : >> { %v754_v46 = vmul.f32 %v752_v47, %v744_v35  ;;  %v753_v62 = vmul.f32 %v748_v52, %v6642_v18  ;;  %v1030_v55 = vmul.f32 %v5342_v42, %v984_v43  ;;  %v708_v58 = vrot.slane %v707_v60, 4 }
 0x29c   : >> { %v755_v6 = vadd.f32 %v754_v46, %v753_v62  ;;  %v709_v18 = vadd.f32 %v708_v58, %v707_v60 }
 0x29d   : >> { %v800_v7 = vpop.permute.xlu1 %799  ;;  %v796_v8 = vpop.permute.xlu0 %795 }
 0x29e   : >> { %v802_v5 = vmul.f32 %v800_v7, %v792_v49  ;;  %v801_v10 = vmul.f32 %v796_v8, %v6652_v59  ;;  %v756_v14 = vrot.slane %v755_v6, 4 }
 0x2a0   : >> { %v803_v15 = vadd.f32 %v802_v5, %v801_v10  ;;  %v757_v21 = vadd.f32 %v756_v14, %v755_v6 }
 0x2a1   : >> { %v848_v45 = vpop.permute.xlu1 %847  ;;  %v844_v17 = vpop.permute.xlu0 %843 }
 0x2a2   : >> { %v804_v16 = vrot.slane %v803_v15, 4  ;;  %v850_v1 = vmul.f32 %v848_v45, %v840_v11  ;;  %v849_v35 = vmul.f32 %v844_v17, %v6657_v50  ;;  %v758_v59 = vrot.slane %v757_v21, 2 }
 0x2a3   : >> { %v710_v11 = vrot.slane %v709_v18, 2 }
 0x2a4   : >> { %v805_v23 = vadd.f32 %v804_v16, %v803_v15  ;;  %v851_v25 = vadd.f32 %v850_v1, %v849_v35  ;;  %v759_v38 = vadd.f32 %v758_v59, %v757_v21 }
 0x2a5   : >> { %v1022_v28 = vpop.permute.xlu1 %1021  ;;  %v1018_v29 = vpop.permute.xlu0 %1017  ;;  %v711_v63 = vadd.f32 %v710_v11, %v709_v18 }
 0x2a6   : >> { %v1028_v30 = vmul.f32 %v6600_v9, %v1022_v28  ;;  %v1027_v49 = vmul.f32 %v6600_v9, %v1018_v29  ;;  %v852_v31 = vrot.slane %v851_v25, 4  ;;  %v806_v32 = vrot.slane %v805_v23, 2 }
 0x2a7   : >> { %v712_v8 = vrot.slane %v711_v63, 1 }
 0x2a8   : >> { %v6682_v45 = vadd.f32 %v1030_v55, %v1028_v30   ;;  %v6684_v46 = vadd.f32 %v1029_v41, %v1027_v49   ;;  %v853_v33 = vadd.f32 %v852_v31, %v851_v25  ;;  %v807_v40 = vadd.f32 %v806_v32, %v805_v23 }
 0x2a9   : >> { %v896_v34 = vpop.permute.xlu1 %895  ;;  %v892_v50 = vpop.permute.xlu0 %891  ;;  %v760_v55 = vrot.slane %v759_v38, 1 }
 0x2aa   : >> { %v898_v61 = vmul.f32 %v896_v34, %v888_v26  ;;  %v897_v57 = vmul.f32 %v892_v50, %v6661_v12  ;;  %v854_v39 = vrot.slane %v853_v33, 2  ;;  %v808_v6 = vrot.slane %v807_v40, 1 }
 0x2ab   : >> { %v761_v17 = vadd.f32 %v760_v55, %v759_v38 }
 0x2ac   : >> { %v899_v42 = vadd.f32 %v898_v61, %v897_v57  ;;  %v855_v9 = vadd.f32 %v854_v39, %v853_v33  ;;  %v809_v16 = vadd.f32 %v808_v6, %v807_v40 }
 0x2ad   : >> { %v944_v44 = vpop.permute.xlu1 %943  ;;  %v940_v47 = vpop.permute.xlu0 %939 }
 0x2ae   : >> { %v900_v52 = vrot.slane %v899_v42, 4  ;;  %v946_v62 = vmul.f32 %v944_v44, %v936_v36  ;;  %v945_v41 = vmul.f32 %v940_v47, %v6666_v27  ;;  %v856_v26 = vrot.slane %v855_v9, 1 }
 0x2af   : >> { %v713_v27 = vadd.f32 %v712_v8, %v711_v63  ;;  %v5346_v8 = vld [vmem:[#allocation15 + $0x94] ss:$8 sps:$4 sm:$0xff] (%p652_p6)  }
 0x2b0   : >> { %v901_v60 = vadd.f32 %v900_v52, %v899_v42  ;;  %v947_v7 = vadd.f32 %v946_v62, %v945_v41  ;;  %v857_v35 = vadd.f32 %v856_v26, %v855_v9  ;;  %v1070_v41 = vmul.f32 %v6495_v4, %v6549_v51  ;;  %v5345_v51 = vld [vmem:[#allocation15 + $0x80] ss:$8 sps:$4 sm:$0xff] (%p652_p6)   ;;  %v5348_v26 = vld [vmem:[#allocation15 + $0x90] ss:$8 sps:$4 sm:$0xff] (%p652_p6)  }
 0x2b1   : >> { %v992_v5 = vpop.permute.xlu1 %991  ;;  %v988_v12 = vpop.permute.xlu0 %987 }
 0x2b2   : >> { %v902_v10 = vrot.slane %v901_v60, 2  ;;  %v948_v14 = vrot.slane %v947_v7, 4  ;;  %v994_v15 = vmul.f32 %v992_v5, %v984_v43  ;;  %v993_v58 = vmul.f32 %v988_v12, %v6671_v37  ;;  %v5349_v5 = vld [vmem:[#allocation15 + $0xa4] ss:$8 sps:$4 sm:$0xff] (%p652_p6)   ;;  %v5351_v12 = vld [vmem:[#allocation15 + $0xa0] ss:$8 sps:$4 sm:$0xff] (%p652_p6)  }
 0x2b3   : >> { %v1051_v43 = vsel %vm1050_vm5, %v713_v27, %v761_v17  ;;  %v1077_v17 = vld [vmem:[#allocation3 + $0xb] sm:$0xff] (%p652_p6) }
 0x2b4   : >> { %v903_v1 = vadd.f32 %v902_v10, %v901_v60  ;;  %v949_v36 = vadd.f32 %v948_v14, %v947_v7  ;;  %v995_v21 = vadd.f32 %v994_v15, %v993_v58  ;;  %v1053_v49 = vsel %vm1052_vm6, %v1051_v43, %v809_v16  ;;  %v5343_v7 = vld [vmem:[#allocation15 + $0x84] ss:$8 sps:$4 sm:$0xff] (%p652_p6)   ;;  %v5352_v10 = vld [vmem:[#allocation15 + $0xb4] ss:$8 sps:$4 sm:$0xff] (%p652_p6)   ;;  %v5354_v14 = vld [vmem:[#allocation15 + $0xb0] ss:$8 sps:$4 sm:$0xff] (%p652_p6)  }
 0x2b5   : >> { %v1040_v23 = vpop.permute.xlu1 %1039  ;;  %v1036_v18 = vpop.permute.xlu0 %1035  ;;  %v1055_v11 = vsel %vm1054_vm7, %v1053_v49, %v857_v35  ;;  %1240 = vmatprep.subr.bf16.mxu1 (%p652_p6), %v5343_v7  ;;  %v5355_v15 = vld [vmem:[#allocation15 + $0xc4] ss:$8 sps:$4 sm:$0xff] (%p652_p6)  }
 0x2b6   : >> { %v904_v25 = vrot.slane %v903_v1, 1  ;;  %v950_v28 = vrot.slane %v949_v36, 2  ;;  %v996_v29 = vrot.slane %v995_v21, 4  ;;  %v1042_v30 = vmul.f32 %v1040_v23, %v6682_v45  ;;  %1241 = vmatpush1.bf16.msra.mxu1 (%p652_p6), %v5345_v51  ;;  %v1076_v58 = vld [vmem:[#allocation3 + $0x3] sm:$0xff] (%p652_p6)  ;;  %v1087_v16 = vld [vmem:[#allocation3 + $0xc] sm:$0xff] (%p652_p6) }
 0x2b7   : >> { %v1041_v37 = vmul.f32 %v1036_v18, %v6684_v46  ;;  %1242 = vmatprep.subr.bf16.mxu1 (%p652_p6), %v5346_v8  ;;  %v1075_v46 = vld [vmem:[#allocation12 + $0x4] sm:$0xf] (%p652_p6)  ;;  %v6715_v8 = vld [vmem:[#allocation18 + $0x10] sm:$0xff] (%p652_p6) }
 0x2b8   : >> { %v905_v59 = vadd.f32 %v904_v25, %v903_v1  ;;  %v951_v31 = vadd.f32 %v950_v28, %v949_v36  ;;  %v997_v32 = vadd.f32 %v996_v29, %v995_v21  ;;  %v1081_v2 = vrot.slane (%p652_p6), %v1075_v46, %v6510_v24  ;;  %v1096_v1 = vld [vmem:[#allocation3 + $0x5] sm:$0xff] (%p652_p6)  ;;  %v1097_v36 = vld [vmem:[#allocation3 + $0xd] sm:$0xff] (%p652_p6) }
 0x2b9   : >> { %v1043_v33 = vadd.f32 %v1042_v30, %v1041_v37  ;;  %v1091_v4 = vrot.slane (%p652_p6), %v1075_v46, %v6507_v22  ;;  %v1101_v13 = vrot.slane (%p652_p6), %v1075_v46, %v6504_v20  ;;  %v1111_v45 = vrot.slane (%p652_p6), %v1075_v46, %v6501_v19  ;;  %v1106_v18 = vld [vmem:[#allocation3 + $0x6] sm:$0xff] (%p652_p6)  ;;  %v1107_v25 = vld [vmem:[#allocation3 + $0xe] sm:$0xff] (%p652_p6) }
 0x2ba   : >> { %v1057_v34 = vsel %vm1056_vm8, %v1055_v11, %v905_v59  ;;  %v952_v50 = vrot.slane %v951_v31, 1  ;;  %v998_v61 = vrot.slane %v997_v32, 2  ;;  %1243 = vmatpush1.bf16.msra.mxu1 (%p652_p6), %v5348_v26  ;;  %v1082_v21 = vmul.f32 (%p652_p6), %v1081_v2, %v1076_v58  ;;  %v5357_v30 = vld [vmem:[#allocation15 + $0xc0] ss:$8 sps:$4 sm:$0xff] (%p652_p6)  }
 0x2bb   : >> { %v1044_v57 = vrot.slane %v1043_v33, 4  ;;  %1244 = vmatprep.subr.bf16.mxu1 (%p652_p6), %v5349_v5  ;;  %v1083_v27 = vmul.f32 (%p652_p6), %v1081_v2, %v1077_v17  ;;  %v1092_v35 = vmul.f32 (%p652_p6), %v1091_v4, %v1086_v3  ;;  %v1093_v23 = vmul.f32 (%p652_p6), %v1091_v4, %v1087_v16  ;;  %v6717_v26 = vld [vmem:[#allocation18 + $0x18] sm:$0xff] (%p652_p6)  ;;  %v6719_v5 = vld [vmem:[#allocation20 + $0x1] ss:$0 sm:$0xff] (%p652_p6) }
 0x2bc   : >> { %v953_v38 = vadd.f32 %v952_v50, %v951_v31  ;;  %v999_v39 = vadd.f32 %v998_v61, %v997_v32  ;;  %v1102_v28 = vmul.f32 (%p652_p6), %v1101_v13, %v1096_v1  ;;  %v1103_v29 = vmul.f32 (%p652_p6), %v1101_v13, %v1097_v36  ;;  %v5358_v31 = vld [vmem:[#allocation15 + $0xd4] ss:$8 sps:$4 sm:$0xff] (%p652_p6)  }
 0x2bd   : >> { %v1045_v40 = vadd.f32 %v1044_v57, %v1043_v33  ;;  %v1094_v43 = vadd.f32 (%p652_p6), %v1092_v35, %v1082_v21  ;;  %v1095_v37 = vadd.f32 (%p652_p6), %v1093_v23, %v1083_v27  ;;  %v1112_v49 = vmul.f32 (%p652_p6), %v1111_v45, %v1106_v18  ;;  %v4882_v33 = vld [vmem:[#allocation14 + $0x1] ss:$0 sm:$0xff] (%p652_p6)  ;;  %v5361_v57 = vld [vmem:[#allocation15 + $0xe4] ss:$8 sps:$4 sm:$0xff] (%p652_p6)  }
 0x2be   : >> { %v1059_v42 = vsel %vm1058_vm9, %v1057_v34, %v953_v38  ;;  %v1000_v63 = vrot.slane %v999_v39, 1  ;;  %1245 = vmatpush1.bf16.msra.mxu1 (%p652_p6), %v5351_v12  ;;  %v1113_v59 = vmul.f32 (%p652_p6), %v1111_v45, %v1107_v25  ;;  %v5360_v34 = vld [vmem:[#allocation15 + $0xd0] ss:$8 sps:$4 sm:$0xff] (%p652_p6)   ;;  %v4901_v12 = vld [vmem:[#allocation17 + $0x1] ss:$0 sm:$0xff] (%p652_p6) }
 0x2bf   : >> { %v1046_v9 = vrot.slane %v1045_v40, 2  ;;  %1246 = vmatprep.subr.bf16.mxu1 (%p652_p6), %v5352_v10  ;;  %v1104_v32 = vadd.f32 (%p652_p6), %v1102_v28, %v1094_v43  ;;  %v1105_v11 = vadd.f32 (%p652_p6), %v1103_v29, %v1095_v37 }
 0x2c0   : >> { %v1001_v44 = vadd.f32 %v1000_v63, %v999_v39 }
 0x2c1   : >> { %v1047_v47 = vadd.f32 %v1046_v9, %v1045_v40  ;;  %v1114_v50 = vadd.f32 (%p652_p6), %v1112_v49, %v1104_v32  ;;  %v1115_v61 = vadd.f32 (%p652_p6), %v1113_v59, %v1105_v11  ;;  %v5363_v40 = vld [vmem:[#allocation15 + $0xe0] ss:$8 sps:$4 sm:$0xff] (%p652_p6)   ;;  %v5364_v9 = vld [vmem:[#allocation15 + $0xf4] ss:$8 sps:$4 sm:$0xff] (%p652_p6)  }
 0x2c2   : >> { %v1061_v52 = vsel %vm1060_vm10, %v1059_v42, %v1001_v44  ;;  %1247 = vmatpush1.bf16.msra.mxu1 (%p652_p6), %v5354_v14  ;;  %v5366_v44 = vld [vmem:[#allocation15 + $0xf0] ss:$8 sps:$4 sm:$0xff] (%p652_p6)  }
 0x2c3   : >> { %v1048_v62 = vrot.slane %v1047_v47, 1  ;;  %1248 = vmatprep.subr.bf16.mxu1 (%p652_p6), %v5355_v15  ;;  %v1124_v38 = vadd.f32 (%p652_p6), %v4882_v33, %v1114_v50  ;;  %v1125_v39 = vadd.f32 (%p652_p6), %v4882_v33, %v1115_v61  ;;  %v6723_v33 = vmov (%p652_p6), 0.0  }
 0x2c4   : > { %654 = sbr.rel (!%p652_p6) target bundleno = 514 (0x202), region = 223 }
 0x2c5   : >> { %v1049_v55 = vadd.f32 %v1048_v62, %v1047_v47  ;;  %v4883_v42 = vmul.f32 (%p652_p6), -1.442695, %v1124_v38  ;;  %v4884_v63 = vmul.f32 (%p652_p6), -1.442695, %v1125_v39 }
 0x2c6   : > { %1249 = vmatpush1.bf16.msra.mxu1 (%p652_p6), %v5357_v30 }
 0x2c7   : >> { %v1063_v6 = vsel %vm1062_vm11, %v1061_v52, %v1049_v55  ;;  %1250 = vmatprep.subr.bf16.mxu1 (%p652_p6), %v5358_v31  ;;  %5367 = vpow2.f32 (%p652_p6), %v4883_v42 }
 0x2c8   : >> { %v1071_v60 = vadd.f32 %v1070_v41, %v1063_v6  ;;  %5369 = vpow2.f32 (%p652_p6), %v4884_v63 }
 0x2ca   : >> { %1073 = vst [vmem:[%s1072_s29] sm:$0xff] %v1071_v60  ;;  %1251 = vmatpush1.bf16.msra.mxu1 (%p652_p6), %v5360_v34  ;;  %v6725_v34 = vmov (%p652_p6), 0.0  }
 0x2cb   : > { %1252 = vmatprep.subr.bf16.mxu1 %v5361_v57 }
 0x2ce   : > { %1253 = vmatpush1.bf16.msra.mxu1 %v5363_v40 }
 0x2cf   : > { %1254 = vmatprep.subr.bf16.mxu1 %v5364_v9 }
 0x2d1   : > { %v5368_v47 = vpop.eup %5367 }
 0x2d2   : > { %1255 = vmatpush1.bf16.msra.mxu1 %v5366_v44  ;;  %v5370_v52 = vpop.eup %5369  ;;  %v1132_v62 = vadd.f32 1.0, %v5368_v47 }
 0x2d3   : > { %v1133_v41 = vadd.f32 1.0, %v5370_v52 }
 0x2d4   : > { %5371 = vrcp.f32 %v1132_v62 }
 0x2d5   : > { %5373 = vrcp.f32 %v1133_v41 }
 0x2de   : > { %v5372_v55 = vpop.eup %5371 }
 0x2df   : > { %v5374_v6 = vpop.eup %5373  ;;  %v1138_v60 = vmul.f32 %v5372_v55, %v1124_v38 }
 0x2e0   : > { %v1139_v7 = vmul.f32 %v5374_v6, %v1125_v39 }
 0x2e1   : > { %1140 = vst [vmem:[#allocation4] sm:$0xff] %v1138_v60 }
 0x2e2   : > { %1141 = vst [vmem:[#allocation4 + $0x8] sm:$0xff] %v1139_v7  ;;  %v1142_v51 = vpack.c.bf16 %v1139_v7, %v1138_v60 }
 0x2e4   : > { %1273 = vmatmul.mubr.bf16.vlgmr.msra.gmra.mrb[0].mxu1 %v1142_v51 }
 0x3b7   : > { %v1274_v10 = vpop.f32.mrb[0].mxu1 }
 0x3b8   : > { %v1291_v14 = vadd.f32 %v4901_v12, %v1274_v10  ;;  %v1276_v15 = vpop.f32.mrb[1].mxu1 }
 0x3b9   : > { %1323 = vst.msk [vmem:[#allocation6] sm:$0xff] %vm644_vm0, %v1276_v15  ;;  %v1278_v46 = vpop.f32.mrb[2].mxu1 }
 0x3ba   : > { %v1295_v58 = vmin.f32 %v1291_v14, 20.0  ;;  %v1292_v17 = vadd.f32 %v4901_v12, %v1278_v46  ;;  %v1280_v2 = vpop.f32.mrb[3].mxu1  ;;  %vm1293_vm13 = vcmp.gt.f32.partialorder %v1291_v14, 20.0 }
 0x3bb   : > { %1324 = vst.msk [vmem:[#allocation6 + $0x8] sm:$0xff] %vm644_vm0, %v1280_v2 }
 0x3bc   : > { %v1297_v3 = vmul.f32 1.442695, %v1295_v58  ;;  %v1296_v4 = vmin.f32 %v1292_v17, 20.0  ;;  %vm1294_vm15 = vcmp.gt.f32.partialorder %v1292_v17, 20.0 }
 0x3be   : > { %5375 = vpow2.f32 %v1297_v3  ;;  %v1299_v13 = vmul.f32 1.442695, %v1296_v4 }
 0x3c0   : > { %5377 = vpow2.f32 %v1299_v13 }
 0x3c8   : > { %v5376_v45 = vpop.eup %5375 }
 0x3c9   : > { %v1301_v16 = vadd.f32 1.0, %v5376_v45  ;;  %v1304_v21 = vmul.f32 -0.5, %v5376_v45  ;;  %v1307_v23 = vand.u32 2147483647, %v5376_v45 }
 0x3ca   : > { %v5378_v1 = vpop.eup %5377 }
 0x3cb   : > { %5379 = vlog2.f32 %v1301_v16  ;;  %v1310_v36 = vadd.f32 1.0, %v5378_v1  ;;  %v1313_v27 = vmul.f32 -0.5, %v5378_v1  ;;  %v1305_v35 = vadd.f32 1.0, %v1304_v21 }
 0x3cc   : > { %v1316_v28 = vand.u32 2147483647, %v5378_v1  ;;  %vm1308_vm12 = vcmp.lt.f32.partialorder %v1307_v23, 0.0004427343 }
 0x3cd   : > { %5381 = vlog2.f32 %v1310_v36  ;;  %v1314_v18 = vadd.f32 1.0, %v1313_v27  ;;  %v1306_v30 = vmul.f32 %v5376_v45, %v1305_v35 }
 0x3ce   : > { %vm1317_vm14 = vcmp.lt.f32.partialorder %v1316_v28, 0.0004427343 }
 0x3cf   : > { %v1315_v59 = vmul.f32 %v5378_v1, %v1314_v18 }
 0x3d5   : > { %v5380_v25 = vpop.eup %5379 }
 0x3d6   : > { %v1303_v29 = vmul.f32 0.6931472, %v5380_v25 }
 0x3d7   : > { %v5382_v43 = vpop.eup %5381 }
 0x3d8   : > { %v1309_v37 = vsel %vm1308_vm12, %v1306_v30, %v1303_v29  ;;  %v1312_v49 = vmul.f32 0.6931472, %v5382_v43 }
 0x3d9   : > { %v1319_v31 = vsel %vm1293_vm13, %v1291_v14, %v1309_v37 }
 0x3da   : > { %1321 = vst [vmem:[#allocation5] sm:$0xff] %v1319_v31  ;;  %v1318_v32 = vsel %vm1317_vm14, %v1315_v59, %v1312_v49 }
 0x3db   : > { %v1320_v11 = vsel %vm1294_vm15, %v1292_v17, %v1318_v32 }
 0x3dc   : > { %1322 = vst [vmem:[#allocation5 + $0x8] sm:$0xff] %v1320_v11 }
 0x3dd LB: >> { %s1338_s9 = ssub.s32 1, %s6083_s14  ;;  %s1335_s14 = sadd.s32 1, %s6083_s14   ;;  %s6083_s14 = sphi %s6727_s14, %s1335_s14   ;;  %v6079_v34 = vphi %v6725_v34, %v6836_v34   ;;  %v6075_v33 = vphi %v6723_v33, %v6834_v33  }
 0x3de   : >> { %s6739_s22 = sshll.u32 %s1338_s9, 3  ;;  %p1332_p5 = scmp.ge.s32.totalorder %s1335_s14, 2  }
 0x3df   : >> { %s1344_s10 = scalar_lea.vmem [#allocation6], %s6739_s22  ;;  %s1340_s8 = scalar_lea.vmem [#allocation5], %s6739_s22  ;;  %1974 = vmatprep.mubr.bf16.mxu0 (%p1332_p5), %v6146_v0 }
 0x3e0   : >> { %v1345_v50 = vld [vmem:[%s1344_s10] sm:$0xff]  ;;  %s1342_s21 = scalar_lea.vmem [#allocation4], %s6739_s22  ;;  %s1753_s28 = scalar_lea.vmem [#allocation7], %s6739_s22 }
 0x3e1   : >> { %v1408_v61 = vrot.slane %v1345_v50, %v6556_v54  ;;  %v1360_v57 = vrot.slane %v1345_v50, %v6563_v56  ;;  %v1456_v38 = vrot.slane %v1345_v50, %v6553_v53  ;;  %v1504_v39 = vrot.slane %v1345_v50, %v6542_v48  ;;  %v6767_v15 = vld [vmem:[%s1342_s21] sm:$0xff]  ;;  %s6884_s11 = smov (%p1332_p5), 0  }
 0x3e2   : >> { %v1552_v40 = vrot.slane %v1345_v50, %v6510_v24  ;;  %v1600_v42 = vrot.slane %v1345_v50, %v6507_v22  ;;  %v1648_v63 = vrot.slane %v1345_v50, %v6504_v20  ;;  %v1696_v9 = vrot.slane %v1345_v50, %v6501_v19 }
 0x3e3   : >> { %1410 = vbcast.lane.b32.xlu1 %v1408_v61, 256  ;;  %1362 = vbcast.lane.b32.xlu0 %v1360_v57, 256  ;;  %v6751_v44 = vld [vmem:[%s1340_s8] sm:$0xff] }
 0x3e4   : >> { %v1350_v47 = vrot.slane %v6751_v44, %v6563_v56  ;;  %v1398_v62 = vrot.slane %v6751_v44, %v6556_v54  ;;  %v1446_v60 = vrot.slane %v6751_v44, %v6553_v53  ;;  %v1494_v14 = vrot.slane %v6751_v44, %v6542_v48 }
 0x3e5   : >> { %v1542_v3 = vrot.slane %v6751_v44, %v6510_v24  ;;  %v6775_v4 = vmul.f32 %v6767_v15, %v6751_v44  ;;  %v1590_v21 = vrot.slane %v6751_v44, %v6507_v22  ;;  %v1638_v37 = vrot.slane %v6751_v44, %v6504_v20 }
 0x3e6   : >> { %v1351_v52 = vmul.f32 %v1350_v47, %v6715_v8  ;;  %v1352_v55 = vmul.f32 %v1350_v47, %v6717_v26  ;;  %v1399_v6 = vmul.f32 %v1398_v62, %v6715_v8  ;;  %v1400_v51 = vmul.f32 %v1398_v62, %v6717_v26 }
 0x3e7   : >> { %1414 = vbcast.lane.b32.xlu1 %v1408_v61, 264  ;;  %1366 = vbcast.lane.b32.xlu0 %v1360_v57, 264  ;;  %v1447_v10 = vmul.f32 %v1446_v60, %v6715_v8  ;;  %v1448_v58 = vmul.f32 %v1446_v60, %v6717_v26  ;;  %v1495_v2 = vmul.f32 %v1494_v14, %v6715_v8 }
 0x3e8   : >> { %v1353_v41 = vmul.f32 1.442695, %v1351_v52  ;;  %v1355_v7 = vmul.f32 1.442695, %v1352_v55  ;;  %v1401_v12 = vmul.f32 1.442695, %v1399_v6  ;;  %v1496_v45 = vmul.f32 %v1494_v14, %v6717_v26 }
 0x3e9   : >> { %v1403_v46 = vmul.f32 1.442695, %v1400_v51  ;;  %v1449_v17 = vmul.f32 1.442695, %v1447_v10  ;;  %v1451_v13 = vmul.f32 1.442695, %v1448_v58  ;;  %v1543_v36 = vmul.f32 %v1542_v3, %v6715_v8 }
 0x3ea   : >> { %5383 = vpow2.f32 %v1353_v41  ;;  %v1497_v1 = vmul.f32 1.442695, %v1495_v2  ;;  %v1371_v27 = vrot.slane %v6775_v4, %v6563_v56  ;;  %v1544_v35 = vmul.f32 %v1542_v3, %v6717_v26 }
 0x3eb   : >> { %1462 = vbcast.lane.b32.xlu1 %v1456_v38, 264  ;;  %1458 = vbcast.lane.b32.xlu0 %v1456_v38, 256  ;;  %5385 = vpow2.f32 %v1355_v7  ;;  %v1499_v18 = vmul.f32 1.442695, %v1496_v45  ;;  %v1545_v30 = vmul.f32 1.442695, %v1543_v36  ;;  %v1591_v43 = vmul.f32 %v1590_v21, %v6715_v8 }
 0x3ec   : >> { %5387 = vpow2.f32 %v1401_v12  ;;  %v1419_v49 = vrot.slane %v6775_v4, %v6556_v54  ;;  %v1547_v32 = vmul.f32 1.442695, %v1544_v35  ;;  %v1592_v50 = vmul.f32 %v1590_v21, %v6717_v26 }
 0x3ed   : >> { %5389 = vpow2.f32 %v1403_v46  ;;  %v1467_v47 = vrot.slane %v6775_v4, %v6553_v53  ;;  %v1640_v7 = vmul.f32 %v1638_v37, %v6717_v26  ;;  %v1686_v12 = vrot.slane %v6751_v44, %v6501_v19 }
 0x3ee   : >> { %5391 = vpow2.f32 %v1449_v17  ;;  %v1595_v55 = vmul.f32 1.442695, %v1592_v50  ;;  %v1563_v44 = vrot.slane %v6775_v4, %v6510_v24 }
 0x3ef   : >> { %1510 = vbcast.lane.b32.xlu1 %v1504_v39, 264  ;;  %1506 = vbcast.lane.b32.xlu0 %v1504_v39, 256  ;;  %5393 = vpow2.f32 %v1451_v13  ;;  %v1688_v45 = vmul.f32 %v1686_v12, %v6717_v26  ;;  %v1643_v36 = vmul.f32 1.442695, %v1640_v7  ;;  %v1687_v21 = vmul.f32 %v1686_v12, %v6715_v8  ;;  %v5426_v26 = vld [vmem:[#allocation15 + $0x130] ss:$8 sps:$4 sm:$0xff] (%p1332_p5)  }
 0x3f0   : >> { %5395 = vpow2.f32 %v1497_v1 }
 0x3f1   : >> { %5397 = vpow2.f32 %v1499_v18 }
 0x3f2   : >> { %5399 = vpow2.f32 %v1545_v30 }
 0x3f3   : >> { %1558 = vbcast.lane.b32.xlu1 %v1552_v40, 264  ;;  %1554 = vbcast.lane.b32.xlu0 %v1552_v40, 256  ;;  %5401 = vpow2.f32 %v1547_v32 }
 0x3f4   : >> { %v5384_v16 = vpop.eup %5383 }
 0x3f5   : >> { %v1374_v23 = vmul.f32 %v6079_v34, %v5384_v16  ;;  %v5386_v25 = vpop.eup %5385 }
 0x3f6   : >> { %v5388_v31 = vpop.eup %5387  ;;  %v1375_v34 = vmul.f32 %v6075_v33, %v5386_v25  ;;  %v1515_v33 = vrot.slane %v6775_v4, %v6542_v48 }
 0x3f7   : >> { %1606 = vbcast.lane.b32.xlu1 %v1600_v42, 264  ;;  %1602 = vbcast.lane.b32.xlu0 %v1600_v42, 256 }
 0x3fb   : >> { %1654 = vbcast.lane.b32.xlu1 %v1648_v63, 264  ;;  %1650 = vbcast.lane.b32.xlu0 %v1648_v63, 256 }
 0x3ff   : >> { %1702 = vbcast.lane.b32.xlu1 %v1696_v9, 264  ;;  %1698 = vbcast.lane.b32.xlu0 %v1696_v9, 256 }
 0x403   : >> { %1672 = vbcast.lane.b32.xlu1 %v1648_v63, 280  ;;  %1668 = vbcast.lane.b32.xlu0 %v1648_v63, 272 }
 0x407   : >> { %1720 = vbcast.lane.b32.xlu1 %v1696_v9, 280  ;;  %1716 = vbcast.lane.b32.xlu0 %v1696_v9, 272 }
 0x40b   : >> { %1624 = vbcast.lane.b32.xlu1 %v1600_v42, 280  ;;  %1620 = vbcast.lane.b32.xlu0 %v1600_v42, 272 }
 0x40f   : >> { %1576 = vbcast.lane.b32.xlu1 %v1552_v40, 280  ;;  %1572 = vbcast.lane.b32.xlu0 %v1552_v40, 272  ;;  %v5390_v40 = vpop.eup %5389 }
 0x410   : >> { %v5392_v52 = vpop.eup %5391 }
 0x411   : >> { %v5394_v10 = vpop.eup %5393 }
 0x412   : >> { %v5396_v2 = vpop.eup %5395 }
 0x413   : >> { %1528 = vbcast.lane.b32.xlu1 %v1504_v39, 280  ;;  %1524 = vbcast.lane.b32.xlu0 %v1504_v39, 272  ;;  %v1639_v39 = vmul.f32 %v1638_v37, %v6715_v8  ;;  %v5424_v8 = vld [vmem:[#allocation15 + $0x134] ss:$8 sps:$4 sm:$0xff] (%p1332_p5)  }
 0x415   : >> { %v1641_v51 = vmul.f32 1.442695, %v1639_v39 }
 0x417   : >> { %1480 = vbcast.lane.b32.xlu1 %v1456_v38, 280  ;;  %1476 = vbcast.lane.b32.xlu0 %v1456_v38, 272  ;;  %v1593_v38 = vmul.f32 1.442695, %v1591_v43  ;;  %v1691_v43 = vmul.f32 1.442695, %v1688_v45 }
 0x419   : >> { %5403 = vpow2.f32 %v1593_v38 }
 0x41a   : >> { %5405 = vpow2.f32 %v1595_v55 }
 0x41b   : >> { %1432 = vbcast.lane.b32.xlu1 %v1408_v61, 280  ;;  %1428 = vbcast.lane.b32.xlu0 %v1408_v61, 272  ;;  %5407 = vpow2.f32 %v1641_v51 }
 0x41c   : >> { %5409 = vpow2.f32 %v1643_v36 }
 0x41d   : >> { %5411 = vpow2.f32 %v1691_v43 }
 0x41f   : >> { %1384 = vbcast.lane.b32.xlu1 %v1360_v57, 280  ;;  %1380 = vbcast.lane.b32.xlu0 %v1360_v57, 272 }
 0x455   : >> { %v1411_v28 = vpop.permute.xlu1 %1410  ;;  %v1363_v29 = vpop.permute.xlu0 %1362 }
 0x456   : >> { %v1372_v59 = vmul.f32 %v1371_v27, %v1363_v29  ;;  %v1420_v42 = vmul.f32 %v1419_v49, %v1411_v28 }
 0x458   : >> { %v6790_v11 = vadd.f32 %v1374_v23, %v1372_v59  ;;  %v1611_v59 = vrot.slane %v6775_v4, %v6507_v22 }
 0x459   : >> { %v1415_v61 = vpop.permute.xlu1 %1414  ;;  %v1367_v57 = vpop.permute.xlu0 %1366 }
 0x45a   : >> { %v1422_v63 = vmul.f32 %v5388_v31, %v6790_v11  ;;  %v1373_v9 = vmul.f32 %v1371_v27, %v1367_v57  ;;  %v1421_v14 = vmul.f32 %v1419_v49, %v1415_v61  ;;  %v5398_v27 = vpop.eup %5397  ;;  %v1689_v31 = vmul.f32 1.442695, %v1687_v21 }
 0x45b   : >> { %v5400_v28 = vpop.eup %5399 }
 0x45c   : >> { %v6800_v62 = vadd.f32 %v1375_v34, %v1373_v9  ;;  %v6802_v41 = vadd.f32 %v1422_v63, %v1420_v42  ;;  %v5402_v32 = vpop.eup %5401  ;;  %v1659_v9 = vrot.slane %v6775_v4, %v6504_v20  ;;  %5413 = vpow2.f32 %v1689_v31 }
 0x45d   : >> { %v1463_v6 = vpop.permute.xlu1 %1462  ;;  %v1459_v60 = vpop.permute.xlu0 %1458 }
 0x45e   : >> { %v1423_v46 = vmul.f32 %v5390_v40, %v6800_v62  ;;  %v1468_v58 = vmul.f32 %v1467_v47, %v1459_v60  ;;  %v1470_v17 = vmul.f32 %v5392_v52, %v6802_v41  ;;  %v1469_v35 = vmul.f32 %v1467_v47, %v1463_v6  ;;  %v5404_v38 = vpop.eup %5403 }
 0x45f   : >> { %v5406_v47 = vpop.eup %5405 }
 0x460   : >> { %v6809_v3 = vadd.f32 %v1423_v46, %v1421_v14  ;;  %v6811_v13 = vadd.f32 %v1470_v17, %v1468_v58  ;;  %v5408_v60 = vpop.eup %5407 }
 0x461   : >> { %v1511_v16 = vpop.permute.xlu1 %1510  ;;  %v1507_v1 = vpop.permute.xlu0 %1506 }
 0x462   : >> { %v1471_v23 = vmul.f32 %v5394_v10, %v6809_v3  ;;  %v1516_v18 = vmul.f32 %v1515_v33, %v1507_v1  ;;  %v1518_v25 = vmul.f32 %v5396_v2, %v6811_v13  ;;  %v1517_v34 = vmul.f32 %v1515_v33, %v1511_v16  ;;  %v5410_v2 = vpop.eup %5409 }
 0x463   : >> { %v5412_v36 = vpop.eup %5411 }
 0x464   : >> { %v6819_v29 = vadd.f32 %v1471_v23, %v1469_v35  ;;  %v6821_v30 = vadd.f32 %v1518_v25, %v1516_v18 }
 0x465   : >> { %v1559_v37 = vpop.permute.xlu1 %1558  ;;  %v1555_v49 = vpop.permute.xlu0 %1554 }
 0x466   : >> { %v1519_v50 = vmul.f32 %v5398_v27, %v6819_v29  ;;  %v1564_v61 = vmul.f32 %v1563_v44, %v1555_v49  ;;  %v1566_v57 = vmul.f32 %v5400_v28, %v6821_v30  ;;  %v1565_v52 = vmul.f32 %v1563_v44, %v1559_v37  ;;  %v5414_v23 = vpop.eup %5413 }
 0x467   : >> { %v1707_v44 = vrot.slane %v6775_v4, %v6501_v19 }
 0x468   : >> { %v6827_v39 = vadd.f32 %v1519_v50, %v1517_v34  ;;  %v1568_v40 = vadd.f32 %v1566_v57, %v1564_v61 }
 0x469   : >> { %v1607_v42 = vpop.permute.xlu1 %1606  ;;  %v1603_v63 = vpop.permute.xlu0 %1602 }
 0x46a   : >> { %v1567_v33 = vmul.f32 %v5402_v32, %v6827_v39  ;;  %v1612_v55 = vmul.f32 %v1611_v59, %v1603_v63  ;;  %v1614_v6 = vmul.f32 %v5404_v38, %v1568_v40  ;;  %v1613_v14 = vmul.f32 %v1611_v59, %v1607_v42 }
 0x46c   : >> { %v1569_v7 = vadd.f32 %v1567_v33, %v1565_v52  ;;  %v1616_v51 = vadd.f32 %v1614_v6, %v1612_v55 }
 0x46d   : >> { %v1655_v12 = vpop.permute.xlu1 %1654  ;;  %v1651_v10 = vpop.permute.xlu0 %1650 }
 0x46e   : >> { %v1615_v46 = vmul.f32 %v5406_v47, %v1569_v7  ;;  %v1660_v58 = vmul.f32 %v1659_v9, %v1651_v10  ;;  %v1662_v17 = vmul.f32 %v5408_v60, %v1616_v51  ;;  %v1661_v21 = vmul.f32 %v1659_v9, %v1655_v12 }
 0x470   : >> { %v1617_v45 = vadd.f32 %v1615_v46, %v1613_v14  ;;  %v1664_v35 = vadd.f32 %v1662_v17, %v1660_v58 }
 0x471   : >> { %v1703_v16 = vpop.permute.xlu1 %1702  ;;  %v1699_v1 = vpop.permute.xlu0 %1698 }
 0x472   : >> { %v1663_v27 = vmul.f32 %v5410_v2, %v1617_v45  ;;  %v1709_v43 = vmul.f32 %v1707_v44, %v1703_v16  ;;  %v1708_v37 = vmul.f32 %v1707_v44, %v1699_v1  ;;  %v1710_v59 = vmul.f32 %v5414_v23, %v1664_v35 }
 0x474   : >> { %v1665_v18 = vadd.f32 %v1663_v27, %v1661_v21  ;;  %v6836_v34 = vadd.f32 %v1710_v59, %v1708_v37  }
 0x475   : >> { %v1673_v25 = vpop.permute.xlu1 %1672  ;;  %v1669_v28 = vpop.permute.xlu0 %1668 }
 0x476   : >> { %v1711_v49 = vmul.f32 %v5412_v36, %v1665_v18  ;;  %v1675_v61 = vmul.f32 %v1673_v25, %v1665_v18  ;;  %v1674_v57 = vmul.f32 %v1669_v28, %v1664_v35 }
 0x478   : >> { %v6834_v33 = vadd.f32 %v1711_v49, %v1709_v43   ;;  %v1676_v52 = vadd.f32 %v1675_v61, %v1674_v57 }
 0x479   : >> { %v1721_v31 = vpop.permute.xlu1 %1720  ;;  %v1717_v32 = vpop.permute.xlu0 %1716 }
 0x47a   : >> { %v1723_v50 = vmul.f32 %v1721_v31, %v6834_v33  ;;  %v1722_v4 = vmul.f32 %v1717_v32, %v6836_v34  ;;  %v1677_v46 = vrot.slane %v1676_v52, 4  ;;  %v5421_v34 = vld [vmem:[#allocation15 + $0x124] ss:$8 sps:$4 sm:$0xff] (%p1332_p5)  }
 0x47b   : > { %v1768_v33 = vld [vmem:[#allocation2 + $0x1] ss:$4 sm:$0xf] (%p1332_p5) }
 0x47c   : >> { %v1724_v47 = vadd.f32 %v1723_v50, %v1722_v4  ;;  %v1678_v44 = vadd.f32 %v1677_v46, %v1676_v52  ;;  %1769 = vst [vmem:[#allocation3 + $0x7] sm:$0xf] (%p1332_p5), %v1768_v33  ;;  %v4923_v33 = vld [vmem:[#allocation17 + $0x2] ss:$0 sm:$0xff] (%p1332_p5) }
 0x47d   : >> { %v1625_v38 = vpop.permute.xlu1 %1624  ;;  %v1621_v42 = vpop.permute.xlu0 %1620 }
 0x47e   : >> { %v1627_v63 = vmul.f32 %v1625_v38, %v1617_v45  ;;  %v1626_v9 = vmul.f32 %v1621_v42, %v1616_v51  ;;  %v1725_v14 = vrot.slane %v1724_v47, 4  ;;  %v1679_v37 = vrot.slane %v1678_v44, 2 }
 0x480   : >> { %v1628_v55 = vadd.f32 %v1627_v63, %v1626_v9  ;;  %v1726_v45 = vadd.f32 %v1725_v14, %v1724_v47  ;;  %v1680_v42 = vadd.f32 %v1679_v37, %v1678_v44 }
 0x481   : >> { %v1577_v6 = vpop.permute.xlu1 %1576  ;;  %v1573_v60 = vpop.permute.xlu0 %1572 }
 0x482   : >> { %v1579_v12 = vmul.f32 %v1577_v6, %v1569_v7  ;;  %v1578_v10 = vmul.f32 %v1573_v60, %v1568_v40  ;;  %v1629_v58 = vrot.slane %v1628_v55, 4  ;;  %v1727_v28 = vrot.slane %v1726_v45, 2 }
 0x484   : >> { %v1580_v17 = vadd.f32 %v1579_v12, %v1578_v10  ;;  %v1630_v27 = vadd.f32 %v1629_v58, %v1628_v55  ;;  %v1728_v57 = vadd.f32 %v1727_v28, %v1726_v45  ;;  %v1681_v58 = vrot.slane %v1680_v42, 1 }
 0x485   : >> { %v1529_v2 = vpop.permute.xlu1 %1528  ;;  %v1525_v16 = vpop.permute.xlu0 %1524 }
 0x486   : >> { %v1531_v1 = vmul.f32 %v1529_v2, %v6827_v39  ;;  %v1530_v36 = vmul.f32 %v1525_v16, %v6821_v30  ;;  %v1581_v21 = vrot.slane %v1580_v17, 4  ;;  %v1631_v49 = vrot.slane %v1630_v27, 2 }
 0x488   : >> { %v1532_v51 = vadd.f32 %v1531_v1, %v1530_v36  ;;  %v1582_v18 = vadd.f32 %v1581_v21, %v1580_v17 }
 0x489   : >> { %v1481_v35 = vpop.permute.xlu1 %1480  ;;  %v1477_v23 = vpop.permute.xlu0 %1476 }
 0x48a   : >> { %v1533_v7 = vrot.slane %v1532_v51, 4  ;;  %v1483_v40 = vmul.f32 %v1481_v35, %v6819_v29  ;;  %v1482_v25 = vmul.f32 %v1477_v23, %v6811_v13  ;;  %v1583_v31 = vrot.slane %v1582_v18, 2 }
 0x48b   : >> { %v1632_v29 = vadd.f32 %v1631_v49, %v1630_v27 }
 0x48c   : >> { %v1534_v43 = vadd.f32 %v1533_v7, %v1532_v51  ;;  %v1484_v39 = vadd.f32 %v1483_v40, %v1482_v25  ;;  %v1584_v47 = vadd.f32 %v1583_v31, %v1582_v18 }
 0x48d   : >> { %v1433_v59 = vpop.permute.xlu1 %1432  ;;  %v1429_v30 = vpop.permute.xlu0 %1428  ;;  %v1633_v14 = vrot.slane %v1632_v29, 1 }
 0x48e   : >> { %v1435_v32 = vmul.f32 %v1433_v59, %v6809_v3  ;;  %v1434_v50 = vmul.f32 %v1429_v30, %v6802_v41  ;;  %v1535_v4 = vrot.slane %v1534_v43, 2  ;;  %v1485_v61 = vrot.slane %v1484_v39, 4 }
 0x48f   : >> { %v1729_v3 = vrot.slane %v1728_v57, 1  ;;  %v1585_v17 = vrot.slane %v1584_v47, 1  ;;  %v1634_v44 = vadd.f32 %v1633_v14, %v1632_v29 }
 0x490   : >> { %v1436_v38 = vadd.f32 %v1435_v32, %v1434_v50  ;;  %v1486_v63 = vadd.f32 %v1485_v61, %v1484_v39  ;;  %v1536_v60 = vadd.f32 %v1535_v4, %v1534_v43  ;;  %v1751_v39 = vmul.f32 %v6719_v5, %v6767_v15  ;;  %v1754_v32 = vld [vmem:[%s1753_s28] sm:$0xff]  ;;  %v1757_v15 = vld [vmem:[#allocation8] sm:$0xff] (%p1332_p5) }
 0x491   : >> { %v1385_v13 = vpop.permute.xlu1 %1384  ;;  %v1381_v9 = vpop.permute.xlu0 %1380  ;;  %v1730_v36 = vadd.f32 %v1729_v3, %v1728_v57  ;;  %v1586_v27 = vadd.f32 %v1585_v17, %v1584_v47  ;;  %v1758_v57 = vld [vmem:[#allocation8 + $0x8] sm:$0xff] (%p1332_p5)  ;;  %v1765_v5 = vld [vmem:[#allocation2] ss:$4 sm:$0xf] (%p1332_p5) }
 0x492   : >> { %v1437_v52 = vrot.slane %v1436_v38, 4  ;;  %v1387_v55 = vmul.f32 %v1385_v13, %v6800_v62  ;;  %v1386_v6 = vmul.f32 %v1381_v9, %v6790_v11  ;;  %v1487_v12 = vrot.slane %v1486_v63, 2  ;;  %v5415_v13 = vld [vmem:[#allocation15 + $0x104] ss:$8 sps:$4 sm:$0xff] (%p1332_p5)   ;;  %v5417_v9 = vld [vmem:[#allocation15 + $0x100] ss:$8 sps:$4 sm:$0xff] (%p1332_p5)  }
 0x493   : >> { %v1537_v1 = vrot.slane %v1536_v60, 1  ;;  %v1682_v62 = vadd.f32 %v1681_v58, %v1680_v42  ;;  %v5418_v47 = vld [vmem:[#allocation15 + $0x114] ss:$8 sps:$4 sm:$0xff] (%p1332_p5)   ;;  %1942 = vmatprep.subr.bf16.mxu0 (%p1332_p5), %v5415_v13  ;;  %1766 = vst [vmem:[#allocation3 + $0x3] sm:$0xf] (%p1332_p5), %v1765_v5 }
 0x494   : >> { %v1438_v10 = vadd.f32 %v1437_v52, %v1436_v38  ;;  %v1388_v41 = vadd.f32 %v1387_v55, %v1386_v6  ;;  %v1488_v46 = vadd.f32 %v1487_v12, %v1486_v63  ;;  %1943 = vmatpush1.bf16.msra.mxu0 (%p1332_p5), %v5417_v9  ;;  %v5420_v52 = vld [vmem:[#allocation15 + $0x110] ss:$8 sps:$4 sm:$0xff] (%p1332_p5)   ;;  %v5423_v55 = vld [vmem:[#allocation15 + $0x120] ss:$8 sps:$4 sm:$0xff] (%p1332_p5)   ;;  %v5427_v12 = vld [vmem:[#allocation15 + $0x144] ss:$8 sps:$4 sm:$0xff] (%p1332_p5)  }
 0x495   : >> { %v1538_v23 = vadd.f32 %v1537_v1, %v1536_v60  ;;  %v1732_v18 = vsel %vm1050_vm5, %v1730_v36, %v1682_v62  ;;  %1944 = vmatprep.subr.bf16.mxu0 (%p1332_p5), %v5418_v47  ;;  %v1771_v6 = vld [vmem:[#allocation2 + $0x2] ss:$4 sm:$0xf] (%p1332_p5)  ;;  %v1774_v60 = vld [vmem:[#allocation2 + $0x3] ss:$4 sm:$0xf] (%p1332_p5) }
 0x496   : >> { %v1439_v2 = vrot.slane %v1438_v10, 2  ;;  %v1389_v16 = vrot.slane %v1388_v41, 4  ;;  %v1489_v21 = vrot.slane %v1488_v46, 1  ;;  %v1734_v25 = vsel %vm1052_vm6, %v1732_v18, %v1634_v44  ;;  %1772 = vst [vmem:[#allocation3 + $0xb] sm:$0xf] (%p1332_p5), %v1771_v6 }
 0x497   : >> { %v1736_v43 = vsel %vm1054_vm7, %v1734_v25, %v1586_v27  ;;  %1775 = vst [vmem:[#allocation3 + $0xf] sm:$0xf] (%p1332_p5), %v1774_v60  ;;  %v1777_v3 = vld [vmem:[#allocation12 + $0x8] sm:$0xf] (%p1332_p5)  ;;  %v5430_v58 = vld [vmem:[#allocation15 + $0x154] ss:$8 sps:$4 sm:$0xff] (%p1332_p5)  }
 0x498   : >> { %v1440_v45 = vadd.f32 %v1439_v2, %v1438_v10  ;;  %v1390_v51 = vadd.f32 %v1389_v16, %v1388_v41  ;;  %v1490_v7 = vadd.f32 %v1489_v21, %v1488_v46  ;;  %v1738_v49 = vsel %vm1056_vm8, %v1736_v43, %v1538_v23  ;;  %1945 = vmatpush1.bf16.msra.mxu0 (%p1332_p5), %v5420_v52  ;;  %v5429_v10 = vld [vmem:[#allocation15 + $0x140] ss:$8 sps:$4 sm:$0xff] (%p1332_p5)   ;;  %v5432_v17 = vld [vmem:[#allocation15 + $0x150] ss:$8 sps:$4 sm:$0xff] (%p1332_p5)  }
 0x499   : > { %1946 = vmatprep.subr.bf16.mxu0 (%p1332_p5), %v5421_v34  ;;  %v1783_v41 = vrot.slane (%p1332_p5), %v1777_v3, %v6501_v19  ;;  %v1793_v14 = vrot.slane (%p1332_p5), %v1777_v3, %v6504_v20  ;;  %v1803_v46 = vrot.slane (%p1332_p5), %v1777_v3, %v6507_v22  ;;  %v1813_v2 = vrot.slane (%p1332_p5), %v1777_v3, %v6510_v24  ;;  %v6876_v5 = vld [vmem:[#allocation20 + $0x2] ss:$0 sm:$0xff] (%p1332_p5) }
 0x49a   : >> { %v1441_v11 = vrot.slane %v1440_v45, 1  ;;  %v1391_v35 = vrot.slane %v1390_v51, 2  ;;  %v1740_v59 = vsel %vm1058_vm9, %v1738_v49, %v1490_v7  ;;  %v1778_v16 = vld [vmem:[#allocation3] sm:$0xff] (%p1332_p5) }
 0x49b   : > { %v1788_v1 = vld [vmem:[#allocation3 + $0x1] sm:$0xff] (%p1332_p5) }
 0x49c   : >> { %v1392_v40 = vadd.f32 %v1391_v35, %v1390_v51  ;;  %v1442_v28 = vadd.f32 %v1441_v11, %v1440_v45  ;;  %1947 = vmatpush1.bf16.msra.mxu0 (%p1332_p5), %v5423_v55  ;;  %v1798_v36 = vld [vmem:[#allocation3 + $0x2] sm:$0xff] (%p1332_p5)  ;;  %v1784_v45 = vmul.f32 (%p1332_p5), %v1783_v41, %v1778_v16  ;;  %v1794_v44 = vmul.f32 (%p1332_p5), %v1793_v14, %v1788_v1  ;;  %v5433_v11 = vld [vmem:[#allocation15 + $0x164] ss:$8 sps:$4 sm:$0xff] (%p1332_p5)  }
 0x49d   : > { %1948 = vmatprep.subr.bf16.mxu0 (%p1332_p5), %v5424_v8  ;;  %v1804_v27 = vmul.f32 (%p1332_p5), %v1803_v46, %v1798_v36  ;;  %v1808_v7 = vld [vmem:[#allocation3 + $0x3] sm:$0xff] (%p1332_p5)  ;;  %v6872_v8 = vld [vmem:[#allocation18 + $0x20] sm:$0xff] (%p1332_p5) }
 0x49e   : >> { %v1393_v37 = vrot.slane %v1392_v40, 1  ;;  %v1742_v31 = vsel %vm1060_vm10, %v1740_v59, %v1442_v28  ;;  %v1779_v21 = vld [vmem:[#allocation3 + $0x8] sm:$0xff] (%p1332_p5)  ;;  %v1796_v25 = vadd.f32 (%p1332_p5), %v1794_v44, %v1784_v45  ;;  %v1814_v28 = vmul.f32 (%p1332_p5), %v1813_v2, %v1808_v7  ;;  %v5436_v59 = vld [vmem:[#allocation15 + $0x174] ss:$8 sps:$4 sm:$0xff] (%p1332_p5)  }
 0x49f   : > { %v1789_v51 = vld [vmem:[#allocation3 + $0x9] sm:$0xff] (%p1332_p5)  ;;  %v1785_v35 = vmul.f32 (%p1332_p5), %v1783_v41, %v1779_v21 }
 0x4a0   : >> { %v1394_v30 = vadd.f32 %v1393_v37, %v1392_v40  ;;  %1949 = vmatpush1.bf16.msra.mxu0 (%p1332_p5), %v5426_v26  ;;  %v1799_v62 = vld [vmem:[#allocation3 + $0xa] sm:$0xff] (%p1332_p5)  ;;  %v1795_v23 = vmul.f32 (%p1332_p5), %v1793_v14, %v1789_v51  ;;  %v6874_v26 = vld [vmem:[#allocation18 + $0x28] sm:$0xff] (%p1332_p5) }
 0x4a1   : > { %1334 = sbr.rel (!%p1332_p5) target bundleno = 989 (0x3dd), region = 234  ;;  %1950 = vmatprep.subr.bf16.mxu0 (%p1332_p5), %v5427_v12  ;;  %v1805_v18 = vmul.f32 (%p1332_p5), %v1803_v46, %v1799_v62  ;;  %v1809_v40 = vld [vmem:[#allocation3 + $0xb] sm:$0xff] (%p1332_p5) }
 0x4a2   : >> { %v1744_v50 = vsel %vm1062_vm11, %v1742_v31, %v1394_v30  ;;  %v1797_v43 = vadd.f32 (%p1332_p5), %v1795_v23, %v1785_v35  ;;  %v1815_v37 = vmul.f32 (%p1332_p5), %v1813_v2, %v1809_v40  ;;  %v5435_v49 = vld [vmem:[#allocation15 + $0x160] ss:$8 sps:$4 sm:$0xff] (%p1332_p5)   ;;  %v4904_v31 = vld [vmem:[#allocation14 + $0x2] ss:$0 sm:$0xff] (%p1332_p5) }
 0x4a3   : >> { %v1752_v4 = vadd.f32 %v1751_v39, %v1744_v50  ;;  %v1806_v39 = vadd.f32 (%p1332_p5), %v1804_v27, %v1796_v25 }
 0x4a4   : > { %1951 = vmatpush1.bf16.msra.mxu0 (%p1332_p5), %v5429_v10  ;;  %v1807_v30 = vadd.f32 (%p1332_p5), %v1805_v18, %v1797_v43 }
 0x4a5   : >> { %v1755_v61 = vadd.f32 %v1754_v32, %v1752_v4  ;;  %1952 = vmatprep.subr.bf16.mxu0 (%p1332_p5), %v5430_v58  ;;  %v1816_v32 = vadd.f32 (%p1332_p5), %v1814_v28, %v1806_v39  ;;  %v5438_v4 = vld [vmem:[#allocation15 + $0x170] ss:$8 sps:$4 sm:$0xff] (%p1332_p5)   ;;  %v6882_v39 = vmov (%p1332_p5), 0.0  }
 0x4a6   : > { %v1817_v50 = vadd.f32 (%p1332_p5), %v1815_v37, %v1807_v30 }
 0x4a7   : >> { %1756 = vst [vmem:[%s1753_s28] sm:$0xff] %v1755_v61  ;;  %v1826_v61 = vadd.f32 (%p1332_p5), %v4904_v31, %v1816_v32 }
 0x4a8   : > { %1953 = vmatpush1.bf16.msra.mxu0 %v5432_v17 }
 0x4a9   : > { %1954 = vmatprep.subr.bf16.mxu0 %v5433_v11 }
 0x4ac   : > { %1955 = vmatpush1.bf16.msra.mxu0 %v5435_v49  ;;  %v6880_v49 = vmov 0.0  }
 0x4ad   : > { %1956 = vmatprep.subr.bf16.mxu0 %v5436_v59 }
 0x4ae   : > { %v1759_v38 = vld [vmem:[#allocation7] sm:$0xff]  ;;  %v1760_v42 = vld [vmem:[#allocation7 + $0x8] sm:$0xff] }
 0x4af   : > { %v1761_v29 = vadd.f32 %v1759_v38, %v1757_v15  ;;  %v1762_v63 = vadd.f32 %v1760_v42, %v1758_v57  ;;  %v1827_v15 = vadd.f32 %v4904_v31, %v1817_v50  ;;  %v4905_v57 = vmul.f32 -1.442695, %v1826_v61 }
 0x4b0   : > { %1957 = vmatpush1.bf16.msra.mxu0 %v5438_v4 }
 0x4b1   : > { %1763 = vst [vmem:[#allocation8] sm:$0xff] %v1761_v29  ;;  %1764 = vst [vmem:[#allocation8 + $0x8] sm:$0xff] %v1762_v63  ;;  %v4906_v38 = vmul.f32 -1.442695, %v1827_v15  ;;  %5439 = vpow2.f32 %v4905_v57 }
 0x4b3   : > { %5441 = vpow2.f32 %v4906_v38 }
 0x4bb   : > { %v5440_v42 = vpop.eup %5439 }
 0x4bc   : > { %v1834_v63 = vadd.f32 1.0, %v5440_v42 }
 0x4bd   : > { %v5442_v29 = vpop.eup %5441 }
 0x4be   : > { %v1835_v13 = vadd.f32 1.0, %v5442_v29  ;;  %5443 = vrcp.f32 %v1834_v63 }
 0x4c0   : > { %5445 = vrcp.f32 %v1835_v13 }
 0x4c8   : > { %v5444_v9 = vpop.eup %5443 }
 0x4c9   : > { %v1840_v52 = vmul.f32 %v5444_v9, %v1826_v61 }
 0x4ca   : > { %v5446_v47 = vpop.eup %5445 }
 0x4cb   : > { %v1841_v34 = vmul.f32 %v5446_v47, %v1827_v15  ;;  %1842 = vst [vmem:[#allocation4] sm:$0xff] %v1840_v52 }
 0x4cd   : > { %1843 = vst [vmem:[#allocation4 + $0x8] sm:$0xff] %v1841_v34  ;;  %v1844_v55 = vpack.c.bf16 %v1841_v34, %v1840_v52 }
 0x4cf   : > { %1975 = vmatmul.mubr.bf16.vlgmr.msra.gmra.mrb[4].mxu0 %v1844_v55 }
 0x5a2   : > { %v1976_v6 = vpop.f32.mrb[4].mxu0 }
 0x5a3   : > { %v1993_v60 = vadd.f32 %v4923_v33, %v1976_v6  ;;  %v1978_v12 = vpop.f32.mrb[5].mxu0 }
 0x5a4   : > { %2025 = vst.msk [vmem:[#allocation6] sm:$0xff] %vm644_vm0, %v1978_v12  ;;  %v1980_v3 = vpop.f32.mrb[6].mxu0 }
 0x5a5   : > { %v1997_v10 = vmin.f32 %v1993_v60, 20.0  ;;  %v1994_v41 = vadd.f32 %v4923_v33, %v1980_v3  ;;  %v1982_v14 = vpop.f32.mrb[7].mxu0  ;;  %vm1995_vm2 = vcmp.gt.f32.partialorder %v1993_v60, 20.0 }
 0x5a6   : > { %2026 = vst.msk [vmem:[#allocation6 + $0x8] sm:$0xff] %vm644_vm0, %v1982_v14 }
 0x5a7   : > { %v1999_v46 = vmul.f32 1.442695, %v1997_v10  ;;  %v1998_v58 = vmin.f32 %v1994_v41, 20.0  ;;  %vm1996_vm4 = vcmp.gt.f32.partialorder %v1994_v41, 20.0 }
 0x5a9   : > { %5447 = vpow2.f32 %v1999_v46  ;;  %v2001_v17 = vmul.f32 1.442695, %v1998_v58 }
 0x5ab   : > { %5449 = vpow2.f32 %v2001_v17 }
 0x5b3   : > { %v5448_v2 = vpop.eup %5447 }
 0x5b4   : > { %v2003_v16 = vadd.f32 1.0, %v5448_v2  ;;  %v2006_v21 = vmul.f32 -0.5, %v5448_v2  ;;  %v2009_v44 = vand.u32 2147483647, %v5448_v2 }
 0x5b5   : > { %v5450_v1 = vpop.eup %5449 }
 0x5b6   : > { %5451 = vlog2.f32 %v2003_v16  ;;  %v2012_v36 = vadd.f32 1.0, %v5450_v1  ;;  %v2015_v45 = vmul.f32 -0.5, %v5450_v1  ;;  %v2007_v51 = vadd.f32 1.0, %v2006_v21 }
 0x5b7   : > { %v2018_v11 = vand.u32 2147483647, %v5450_v1  ;;  %vm2010_vm1 = vcmp.lt.f32.partialorder %v2009_v44, 0.0004427343 }
 0x5b8   : > { %5453 = vlog2.f32 %v2012_v36  ;;  %v2016_v62 = vadd.f32 1.0, %v2015_v45  ;;  %v2008_v23 = vmul.f32 %v5448_v2, %v2007_v51 }
 0x5b9   : > { %vm2019_vm3 = vcmp.lt.f32.partialorder %v2018_v11, 0.0004427343 }
 0x5ba   : > { %v2017_v25 = vmul.f32 %v5450_v1, %v2016_v62 }
 0x5c0   : > { %v5452_v27 = vpop.eup %5451 }
 0x5c1   : > { %v2005_v35 = vmul.f32 0.6931472, %v5452_v27 }
 0x5c2   : > { %v5454_v18 = vpop.eup %5453 }
 0x5c3   : > { %v2011_v7 = vsel %vm2010_vm1, %v2008_v23, %v2005_v35  ;;  %v2014_v40 = vmul.f32 0.6931472, %v5454_v18 }
 0x5c4   : > { %v2021_v28 = vsel %vm1995_vm2, %v1993_v60, %v2011_v7 }
 0x5c5   : > { %2023 = vst [vmem:[#allocation5] sm:$0xff] %v2021_v28  ;;  %v2020_v43 = vsel %vm2019_vm3, %v2017_v25, %v2014_v40 }
 0x5c6   : > { %v2022_v37 = vsel %vm1996_vm4, %v1994_v41, %v2020_v43 }
 0x5c7   : > { %2024 = vst [vmem:[#allocation5 + $0x8] sm:$0xff] %v2022_v37 }
 0x5c8 LB: >> { %s6896_s12 = sshll.u32 %s6095_s11, 3  ;;  %s2037_s11 = sadd.s32 1, %s6095_s11   ;;  %s6095_s11 = sphi %s6884_s11, %s2037_s11   ;;  %v6091_v39 = vphi %v6882_v39, %v7541_v39   ;;  %v6087_v49 = vphi %v6880_v49, %v2414_v49  }
 0x5c9   : >> { %s2045_s15 = scalar_lea.vmem [#allocation6], %s6896_s12  ;;  %s2041_s29 = scalar_lea.vmem [#allocation5], %s6896_s12 }
 0x5ca   : >> { %v2046_v59 = vld [vmem:[%s2045_s15] sm:$0xff]  ;;  %s2043_s14 = scalar_lea.vmem [#allocation4], %s6896_s12  ;;  %s2454_s9 = scalar_lea.vmem [#allocation7], %s6896_s12 }
 0x5cb   : >> { %v2109_v30 = vrot.slane %v2046_v59, %v6504_v20  ;;  %v2061_v31 = vrot.slane %v2046_v59, %v6501_v19  ;;  %v2157_v32 = vrot.slane %v2046_v59, %v6507_v22  ;;  %v2205_v50 = vrot.slane %v2046_v59, %v6510_v24  ;;  %v6919_v55 = vld [vmem:[%s2043_s14] sm:$0xff]  ;;  %p2034_p10 = scmp.ge.s32.totalorder %s2037_s11, 2  }
 0x5cc   : >> { %v2253_v4 = vrot.slane %v2046_v59, %v6542_v48  ;;  %v2301_v61 = vrot.slane %v2046_v59, %v6553_v53  ;;  %v2349_v15 = vrot.slane %v2046_v59, %v6556_v54  ;;  %v2397_v57 = vrot.slane %v2046_v59, %v6563_v56  ;;  %2654 = vmatprep.mubr.bf16.mxu1 (%p2034_p10), %v6146_v0  ;;  %s7023_s22 = smov (%p2034_p10), 0  }
 0x5cd   : >> { %2111 = vbcast.lane.b32.xlu1 %v2109_v30, 256  ;;  %2063 = vbcast.lane.b32.xlu0 %v2061_v31, 256 }
 0x5ce   : >> { %v6908_v38 = vld [vmem:[%s2041_s29] sm:$0xff] }
 0x5cf   : >> { %v2051_v42 = vrot.slane %v6908_v38, %v6501_v19  ;;  %v2099_v9 = vrot.slane %v6908_v38, %v6504_v20  ;;  %v2147_v60 = vrot.slane %v6908_v38, %v6507_v22  ;;  %v6925_v12 = vmul.f32 %v6919_v55, %v6908_v38 }
 0x5d0   : >> { %v2195_v1 = vrot.slane %v6908_v38, %v6510_v24 }
 0x5d1   : >> { %2115 = vbcast.lane.b32.xlu1 %v2109_v30, 264  ;;  %2067 = vbcast.lane.b32.xlu0 %v2061_v31, 264  ;;  %v2052_v29 = vmul.f32 %v2051_v42, %v6872_v8  ;;  %v2053_v63 = vmul.f32 %v2051_v42, %v6874_v26  ;;  %v2101_v52 = vmul.f32 %v2099_v9, %v6874_v26 }
 0x5d2   : >> { %v2100_v34 = vmul.f32 %v2099_v9, %v6872_v8  ;;  %v2149_v3 = vmul.f32 %v2147_v60, %v6874_v26  ;;  %v2148_v10 = vmul.f32 %v2147_v60, %v6872_v8  ;;  %v2072_v41 = vrot.slane %v6925_v12, %v6501_v19 }
 0x5d3   : >> { %v2054_v13 = vmul.f32 1.442695, %v2052_v29  ;;  %v2056_v47 = vmul.f32 1.442695, %v2053_v63  ;;  %v2104_v33 = vmul.f32 1.442695, %v2101_v52  ;;  %v2197_v51 = vmul.f32 %v2195_v1, %v6874_v26 }
 0x5d4   : >> { %v2102_v6 = vmul.f32 1.442695, %v2100_v34  ;;  %v2152_v46 = vmul.f32 1.442695, %v2149_v3  ;;  %v2150_v16 = vmul.f32 1.442695, %v2148_v10  ;;  %v2196_v27 = vmul.f32 %v2195_v1, %v6872_v8 }
 0x5d5   : >> { %2163 = vbcast.lane.b32.xlu1 %v2157_v32, 264  ;;  %2159 = vbcast.lane.b32.xlu0 %v2157_v32, 256  ;;  %5455 = vpow2.f32 %v2054_v13  ;;  %v2120_v7 = vrot.slane %v6925_v12, %v6504_v20  ;;  %v2200_v25 = vmul.f32 1.442695, %v2197_v51  ;;  %v2168_v42 = vrot.slane %v6925_v12, %v6507_v22 }
 0x5d6   : >> { %5457 = vpow2.f32 %v2056_v47  ;;  %v2198_v37 = vmul.f32 1.442695, %v2196_v27 }
 0x5d7   : >> { %5459 = vpow2.f32 %v2104_v33  ;;  %v2291_v33 = vrot.slane %v6908_v38, %v6553_v53 }
 0x5d8   : >> { %5461 = vpow2.f32 %v2102_v6 }
 0x5d9   : >> { %2211 = vbcast.lane.b32.xlu1 %v2205_v50, 264  ;;  %2207 = vbcast.lane.b32.xlu0 %v2205_v50, 256  ;;  %5463 = vpow2.f32 %v2152_v46  ;;  %v2293_v10 = vmul.f32 %v2291_v33, %v6874_v26 }
 0x5da   : >> { %5465 = vpow2.f32 %v2150_v16 }
 0x5db   : >> { %5467 = vpow2.f32 %v2200_v25 }
 0x5dc   : >> { %5469 = vpow2.f32 %v2198_v37  ;;  %v2264_v37 = vrot.slane %v6925_v12, %v6542_v48 }
 0x5dd   : >> { %2259 = vbcast.lane.b32.xlu1 %v2253_v4, 264  ;;  %2255 = vbcast.lane.b32.xlu0 %v2253_v4, 256 }
 0x5df   : >> { %v5456_v14 = vpop.eup %5455 }
 0x5e0   : >> { %v5458_v58 = vpop.eup %5457  ;;  %v2075_v21 = vmul.f32 %v6091_v39, %v5456_v14 }
 0x5e1   : >> { %2307 = vbcast.lane.b32.xlu1 %v2301_v61, 264  ;;  %2303 = vbcast.lane.b32.xlu0 %v2301_v61, 256  ;;  %v2076_v45 = vmul.f32 %v6087_v49, %v5458_v58  ;;  %v5460_v11 = vpop.eup %5459  ;;  %v2243_v49 = vrot.slane %v6908_v38, %v6542_v48  ;;  %v2292_v58 = vmul.f32 %v2291_v33, %v6872_v8 }
 0x5e2   : >> { %v5462_v18 = vpop.eup %5461 }
 0x5e5   : >> { %2355 = vbcast.lane.b32.xlu1 %v2349_v15, 264  ;;  %2351 = vbcast.lane.b32.xlu0 %v2349_v15, 256 }
 0x5e9   : >> { %2085 = vbcast.lane.b32.xlu1 %v2061_v31, 280  ;;  %2081 = vbcast.lane.b32.xlu0 %v2061_v31, 272 }
 0x5ed   : >> { %2133 = vbcast.lane.b32.xlu1 %v2109_v30, 280  ;;  %2129 = vbcast.lane.b32.xlu0 %v2109_v30, 272 }
 0x5f1   : >> { %2181 = vbcast.lane.b32.xlu1 %v2157_v32, 280  ;;  %2177 = vbcast.lane.b32.xlu0 %v2157_v32, 272  ;;  %v2245_v32 = vmul.f32 %v2243_v49, %v6874_v26 }
 0x5f3   : >> { %v2248_v13 = vmul.f32 1.442695, %v2245_v32 }
 0x5f5   : >> { %2229 = vbcast.lane.b32.xlu1 %v2205_v50, 280  ;;  %2225 = vbcast.lane.b32.xlu0 %v2205_v50, 272  ;;  %5471 = vpow2.f32 %v2248_v13 }
 0x5f9   : >> { %2403 = vbcast.lane.b32.xlu1 %v2397_v57, 264  ;;  %2399 = vbcast.lane.b32.xlu0 %v2397_v57, 256 }
 0x5fd   : >> { %2277 = vbcast.lane.b32.xlu1 %v2253_v4, 280  ;;  %2273 = vbcast.lane.b32.xlu0 %v2253_v4, 272 }
 0x601   : >> { %2325 = vbcast.lane.b32.xlu1 %v2301_v61, 280  ;;  %2321 = vbcast.lane.b32.xlu0 %v2301_v61, 272 }
 0x605   : >> { %2373 = vbcast.lane.b32.xlu1 %v2349_v15, 280  ;;  %2369 = vbcast.lane.b32.xlu0 %v2349_v15, 272  ;;  %v2244_v15 = vmul.f32 %v2243_v49, %v6872_v8 }
 0x607   : >> { %v2246_v34 = vmul.f32 1.442695, %v2244_v15 }
 0x609   : >> { %2421 = vbcast.lane.b32.xlu1 %v2397_v57, 280  ;;  %2417 = vbcast.lane.b32.xlu0 %v2397_v57, 272  ;;  %v5464_v57 = vpop.eup %5463  ;;  %5473 = vpow2.f32 %v2246_v34  ;;  %v2312_v34 = vrot.slane %v6925_v12, %v6553_v53 }
 0x60a   : >> { %v5466_v63 = vpop.eup %5465 }
 0x63f   : >> { %v2112_v17 = vpop.permute.xlu1 %2111  ;;  %v2064_v2 = vpop.permute.xlu0 %2063 }
 0x640   : >> { %v2073_v36 = vmul.f32 %v2072_v41, %v2064_v2  ;;  %v2121_v31 = vmul.f32 %v2120_v7, %v2112_v17  ;;  %v5468_v17 = vpop.eup %5467  ;;  %v2216_v2 = vrot.slane %v6925_v12, %v6510_v24 }
 0x641   : >> { %v5470_v1 = vpop.eup %5469 }
 0x642   : >> { %v6937_v23 = vadd.f32 %v2075_v21, %v2073_v36  ;;  %v2296_v36 = vmul.f32 1.442695, %v2293_v10 }
 0x643   : >> { %v2116_v44 = vpop.permute.xlu1 %2115  ;;  %v2068_v62 = vpop.permute.xlu0 %2067 }
 0x644   : >> { %v2074_v35 = vmul.f32 %v2072_v41, %v2068_v62  ;;  %v2123_v59 = vmul.f32 %v5462_v18, %v6937_v23  ;;  %v2122_v30 = vmul.f32 %v2120_v7, %v2116_v44  ;;  %v2294_v44 = vmul.f32 1.442695, %v2292_v58 }
 0x645   : >> { %5475 = vpow2.f32 %v2296_v36 }
 0x646   : >> { %v6941_v40 = vadd.f32 %v2076_v45, %v2074_v35  ;;  %v6953_v29 = vadd.f32 %v2123_v59, %v2121_v31  ;;  %5477 = vpow2.f32 %v2294_v44  ;;  %v2387_v31 = vrot.slane %v6908_v38, %v6563_v56 }
 0x647   : >> { %v2164_v28 = vpop.permute.xlu1 %2163  ;;  %v2160_v43 = vpop.permute.xlu0 %2159 }
 0x648   : >> { %v2124_v39 = vmul.f32 %v5460_v11, %v6941_v40  ;;  %v2169_v6 = vmul.f32 %v2168_v42, %v2160_v43  ;;  %v2171_v60 = vmul.f32 %v5466_v63, %v6953_v29  ;;  %v2170_v3 = vmul.f32 %v2168_v42, %v2164_v28  ;;  %v5472_v43 = vpop.eup %5471 }
 0x649   : >> { %v2339_v11 = vrot.slane %v6908_v38, %v6556_v54  ;;  %v5474_v59 = vpop.eup %5473  ;;  %v2389_v13 = vmul.f32 %v2387_v31, %v6874_v26 }
 0x64a   : >> { %v6948_v61 = vadd.f32 %v2124_v39, %v2122_v30  ;;  %v2173_v16 = vadd.f32 %v2171_v60, %v2169_v6 }
 0x64b   : >> { %v2212_v50 = vpop.permute.xlu1 %2211  ;;  %v2208_v4 = vpop.permute.xlu0 %2207  ;;  %v2341_v18 = vmul.f32 %v2339_v11, %v6874_v26  ;;  %v2340_v39 = vmul.f32 %v2339_v11, %v6872_v8  ;;  %v2392_v58 = vmul.f32 1.442695, %v2389_v13  ;;  %v2408_v13 = vrot.slane %v6925_v12, %v6563_v56  ;;  %v2468_v26 = vld [vmem:[#allocation3 + $0x4] sm:$0xff] (%p2034_p10) }
 0x64c   : >> { %v2172_v52 = vmul.f32 %v5464_v57, %v6948_v61  ;;  %v2217_v62 = vmul.f32 %v2216_v2, %v2208_v4  ;;  %v2219_v27 = vmul.f32 %v5470_v1, %v2173_v16  ;;  %v2218_v35 = vmul.f32 %v2216_v2, %v2212_v50 }
 0x64d   : >> { %v2344_v30 = vmul.f32 1.442695, %v2341_v18  ;;  %v2342_v42 = vmul.f32 1.442695, %v2340_v39 }
 0x64e   : >> { %v2174_v46 = vadd.f32 %v2172_v52, %v2170_v3  ;;  %v2221_v49 = vadd.f32 %v2219_v27, %v2217_v62  ;;  %v2388_v52 = vmul.f32 %v2387_v31, %v6872_v8 }
 0x64f   : >> { %v2260_v9 = vpop.permute.xlu1 %2259  ;;  %v2256_v47 = vpop.permute.xlu0 %2255  ;;  %5479 = vpow2.f32 %v2344_v30 }
 0x650   : >> { %v2220_v51 = vmul.f32 %v5468_v17, %v2174_v46  ;;  %v2265_v15 = vmul.f32 %v2264_v37, %v2256_v47  ;;  %v2267_v57 = vmul.f32 %v5474_v59, %v2221_v49  ;;  %v2266_v63 = vmul.f32 %v2264_v37, %v2260_v9  ;;  %v5476_v3 = vpop.eup %5475 }
 0x651   : >> { %5481 = vpow2.f32 %v2342_v42  ;;  %v5478_v10 = vpop.eup %5477  ;;  %v2390_v47 = vmul.f32 1.442695, %v2388_v52 }
 0x652   : >> { %v2222_v28 = vadd.f32 %v2220_v51, %v2218_v35  ;;  %v2269_v38 = vadd.f32 %v2267_v57, %v2265_v15  ;;  %5483 = vpow2.f32 %v2392_v58 }
 0x653   : >> { %v2308_v41 = vpop.permute.xlu1 %2307  ;;  %v2304_v14 = vpop.permute.xlu0 %2303  ;;  %5485 = vpow2.f32 %v2390_v47 }
 0x654   : >> { %v2268_v4 = vmul.f32 %v5472_v43, %v2222_v28  ;;  %v2314_v17 = vmul.f32 %v2312_v34, %v2308_v41  ;;  %v2313_v44 = vmul.f32 %v2312_v34, %v2304_v14  ;;  %v2315_v11 = vmul.f32 %v5478_v10, %v2269_v38 }
 0x656   : >> { %v2270_v60 = vadd.f32 %v2268_v4, %v2266_v63 }
 0x657   : >> { %v6963_v21 = vpop.permute.xlu1 %2355  ;;  %v6965_v45 = vpop.permute.xlu0 %2351 }
 0x658   : >> { %v2316_v51 = vmul.f32 %v5476_v3, %v2270_v60 }
 0x659   : >> { %v5480_v30 = vpop.eup %5479 }
 0x65b   : >> { %v2086_v7 = vpop.permute.xlu1 %2085  ;;  %v2082_v25 = vpop.permute.xlu0 %2081 }
 0x65c   : >> { %v2088_v35 = vmul.f32 %v2086_v7, %v6941_v40  ;;  %v2087_v18 = vmul.f32 %v2082_v25, %v6937_v23 }
 0x65e   : >> { %v2089_v14 = vadd.f32 %v2088_v35, %v2087_v18 }
 0x65f   : >> { %v2134_v32 = vpop.permute.xlu1 %2133  ;;  %v2130_v50 = vpop.permute.xlu0 %2129 }
 0x660   : >> { %v2136_v9 = vmul.f32 %v2134_v32, %v6948_v61  ;;  %v2135_v2 = vmul.f32 %v2130_v50, %v6953_v29  ;;  %v2318_v61 = vadd.f32 %v2316_v51, %v2314_v17  ;;  %v2360_v29 = vrot.slane %v6925_v12, %v6556_v54  ;;  %v5482_v32 = vpop.eup %5481 }
 0x661   : >> { %v2090_v57 = vrot.slane %v2089_v14, 4  ;;  %v5484_v10 = vpop.eup %5483 }
 0x662   : >> { %v2137_v39 = vadd.f32 %v2136_v9, %v2135_v2  ;;  %v2364_v25 = vmul.f32 %v5480_v30, %v2318_v61  ;;  %v2361_v15 = vmul.f32 %v2360_v29, %v6965_v45  ;;  %v5486_v45 = vpop.eup %5485 }
 0x663   : >> { %v2182_v33 = vpop.permute.xlu1 %2181  ;;  %v2178_v6 = vpop.permute.xlu0 %2177 }
 0x664   : >> { %v2184_v62 = vmul.f32 %v2182_v33, %v2174_v46  ;;  %v2183_v27 = vmul.f32 %v2178_v6, %v2173_v16  ;;  %v2317_v16 = vadd.f32 %v2315_v11, %v2313_v44  ;;  %v2138_v40 = vrot.slane %v2137_v39, 4 }
 0x666   : >> { %v2185_v31 = vadd.f32 %v2184_v62, %v2183_v27  ;;  %v2363_v63 = vmul.f32 %v5482_v32, %v2317_v16  ;;  %v2139_v34 = vadd.f32 %v2138_v40, %v2137_v39 }
 0x667   : >> { %v2230_v1 = vpop.permute.xlu1 %2229  ;;  %v2226_v36 = vpop.permute.xlu0 %2225 }
 0x668   : >> { %v2232_v43 = vmul.f32 %v2230_v1, %v2222_v28  ;;  %v2231_v37 = vmul.f32 %v2226_v36, %v2221_v49  ;;  %v2362_v28 = vmul.f32 %v2360_v29, %v6963_v21  ;;  %v2186_v49 = vrot.slane %v2185_v31, 4 }
 0x669   : >> { %v2365_v9 = vadd.f32 %v2363_v63, %v2361_v15  ;;  %v2140_v51 = vrot.slane %v2139_v34, 2 }
 0x66a   : >> { %v2233_v46 = vadd.f32 %v2232_v43, %v2231_v37  ;;  %v2366_v3 = vadd.f32 %v2364_v25, %v2362_v28  ;;  %v2187_v58 = vadd.f32 %v2186_v49, %v2185_v31 }
 0x66b   : >> { %v2404_v41 = vpop.permute.xlu1 %2403  ;;  %v2400_v59 = vpop.permute.xlu0 %2399 }
 0x66c   : >> { %v2234_v42 = vrot.slane %v2233_v46, 4  ;;  %v2410_v2 = vmul.f32 %v2408_v13, %v2404_v41  ;;  %v2409_v44 = vmul.f32 %v2408_v13, %v2400_v59  ;;  %v2412_v27 = vmul.f32 %v5484_v10, %v2366_v3 }
 0x66d   : >> { %v2188_v11 = vrot.slane %v2187_v58, 2 }
 0x66e   : >> { %v2414_v49 = vadd.f32 %v2412_v27, %v2410_v2  }
 0x66f   : >> { %v2278_v7 = vpop.permute.xlu1 %2277  ;;  %v2274_v23 = vpop.permute.xlu0 %2273  ;;  %v2189_v32 = vadd.f32 %v2188_v11, %v2187_v58  ;;  %v2452_v11 = vmul.f32 %v6876_v5, %v6919_v55  ;;  %v5487_v55 = vld [vmem:[#allocation15 + $0x184] ss:$8 sps:$4 sm:$0xff] (%p2034_p10)  }
 0x670   : >> { %v2280_v50 = vmul.f32 %v2278_v7, %v2270_v60  ;;  %v2279_v4 = vmul.f32 %v2274_v23, %v2269_v38  ;;  %v2091_v60 = vadd.f32 %v2090_v57, %v2089_v14  ;;  %v2235_v38 = vadd.f32 %v2234_v42, %v2233_v46  ;;  %2622 = vmatprep.subr.bf16.mxu1 (%p2034_p10), %v5487_v55 }
 0x671   : >> { %v2141_v14 = vadd.f32 %v2140_v51, %v2139_v34  ;;  %v2190_v63 = vrot.slane %v2189_v32, 1 }
 0x672   : >> { %v2281_v52 = vadd.f32 %v2280_v50, %v2279_v4  ;;  %v2092_v37 = vrot.slane %v2091_v60, 2  ;;  %v2236_v39 = vrot.slane %v2235_v38, 2 }
 0x673   : >> { %v2326_v33 = vpop.permute.xlu1 %2325  ;;  %v2322_v6 = vpop.permute.xlu0 %2321  ;;  %v2142_v15 = vrot.slane %v2141_v14, 1 }
 0x674   : >> { %v2282_v47 = vrot.slane %v2281_v52, 4  ;;  %v2328_v21 = vmul.f32 %v2326_v33, %v2318_v61  ;;  %v2327_v17 = vmul.f32 %v2322_v6, %v2317_v16  ;;  %v2411_v61 = vmul.f32 %v5486_v45, %v2365_v9 }
 0x675   : >> { %v2093_v23 = vadd.f32 %v2092_v37, %v2091_v60  ;;  %v2237_v25 = vadd.f32 %v2236_v39, %v2235_v38  ;;  %v2143_v10 = vadd.f32 %v2142_v15, %v2141_v14  ;;  %v5495_v14 = vld [vmem:[#allocation15 + $0x1a0] ss:$8 sps:$4 sm:$0xff] (%p2034_p10)  }
 0x676   : >> { %v2283_v1 = vadd.f32 %v2282_v47, %v2281_v52  ;;  %v2329_v36 = vadd.f32 %v2328_v21, %v2327_v17  ;;  %v2413_v16 = vadd.f32 %v2411_v61, %v2409_v44   ;;  %v2191_v21 = vadd.f32 %v2190_v63, %v2189_v32  ;;  %v5489_v61 = vld [vmem:[#allocation15 + $0x180] ss:$8 sps:$4 sm:$0xff] (%p2034_p10)   ;;  %v5499_v32 = vld [vmem:[#allocation15 + $0x1c4] ss:$8 sps:$4 sm:$0xff] (%p2034_p10)  }
 0x677   : >> { %v2374_v12 = vpop.permute.xlu1 %2373  ;;  %v2370_v62 = vpop.permute.xlu0 %2369  ;;  %v2094_v52 = vrot.slane %v2093_v23, 1  ;;  %v2238_v33 = vrot.slane %v2237_v25, 1  ;;  %2623 = vmatpush1.bf16.msra.mxu1 (%p2034_p10), %v5489_v61  ;;  %v2489_v63 = vld [vmem:[#allocation3 + $0xe] sm:$0xff] (%p2034_p10) }
 0x678   : >> { %v2330_v35 = vrot.slane %v2329_v36, 4  ;;  %v2376_v18 = vmul.f32 %v2374_v12, %v2366_v3  ;;  %v2375_v43 = vmul.f32 %v2370_v62, %v2365_v9  ;;  %v2284_v30 = vrot.slane %v2283_v1, 2 }
 0x679   : >> { %v2095_v60 = vadd.f32 %v2094_v52, %v2093_v23  ;;  %v2239_v38 = vadd.f32 %v2238_v33, %v2237_v25  ;;  %v2469_v23 = vld [vmem:[#allocation3 + $0xc] sm:$0xff] (%p2034_p10) }
 0x67a   : >> { %v2331_v29 = vadd.f32 %v2330_v35, %v2329_v36  ;;  %v2377_v31 = vadd.f32 %v2376_v18, %v2375_v43  ;;  %v2285_v50 = vadd.f32 %v2284_v30, %v2283_v1  ;;  %v5490_v30 = vld [vmem:[#allocation15 + $0x194] ss:$8 sps:$4 sm:$0xff] (%p2034_p10)   ;;  %v5501_v33 = vld [vmem:[#allocation15 + $0x1c0] ss:$8 sps:$4 sm:$0xff] (%p2034_p10)  }
 0x67b   : >> { %v2422_v41 = vpop.permute.xlu1 %2421  ;;  %v2418_v46 = vpop.permute.xlu0 %2417  ;;  %v2433_v2 = vsel %vm1050_vm5, %v2095_v60, %v2143_v10  ;;  %2624 = vmatprep.subr.bf16.mxu1 (%p2034_p10), %v5490_v30  ;;  %v2478_v25 = vld [vmem:[#allocation3 + $0x5] sm:$0xff] (%p2034_p10)  ;;  %v5504_v60 = vld [vmem:[#allocation15 + $0x1d0] ss:$8 sps:$4 sm:$0xff] (%p2034_p10)  }
 0x67c   : >> { %v2332_v59 = vrot.slane %v2331_v29, 2  ;;  %v2378_v40 = vrot.slane %v2377_v31, 4  ;;  %v2424_v7 = vmul.f32 %v2422_v41, %v2414_v49  ;;  %v2423_v28 = vmul.f32 %v2418_v46, %v2413_v16  ;;  %v5496_v41 = vld [vmem:[#allocation15 + $0x1b4] ss:$8 sps:$4 sm:$0xff] (%p2034_p10)   ;;  %v5498_v46 = vld [vmem:[#allocation15 + $0x1b0] ss:$8 sps:$4 sm:$0xff] (%p2034_p10)  }
 0x67d   : >> { %v2286_v6 = vrot.slane %v2285_v50, 1  ;;  %v2435_v51 = vsel %vm1052_vm6, %v2433_v2, %v2191_v21  ;;  %v7011_v30 = vld [vmem:[#allocation18 + $0x30] sm:$0xff] (%p2034_p10) }
 0x67e   : >> { %v2379_v4 = vadd.f32 %v2378_v40, %v2377_v31  ;;  %v2333_v57 = vadd.f32 %v2332_v59, %v2331_v29  ;;  %v2425_v42 = vadd.f32 %v2424_v7, %v2423_v28  ;;  %v2437_v12 = vsel %vm1054_vm7, %v2435_v51, %v2239_v38  ;;  %v5492_v29 = vld [vmem:[#allocation15 + $0x190] ss:$8 sps:$4 sm:$0xff] (%p2034_p10)   ;;  %v5493_v31 = vld [vmem:[#allocation15 + $0x1a4] ss:$8 sps:$4 sm:$0xff] (%p2034_p10)  }
 0x67f   : >> { %v2287_v45 = vadd.f32 %v2286_v6, %v2285_v50  ;;  %2625 = vmatpush1.bf16.msra.mxu1 (%p2034_p10), %v5492_v29  ;;  %v2458_v59 = vld [vmem:[#allocation3 + $0x3] sm:$0xff] (%p2034_p10)  ;;  %v2459_v40 = vld [vmem:[#allocation3 + $0xb] sm:$0xff] (%p2034_p10) }
 0x680   : >> { %v2380_v13 = vrot.slane %v2379_v4, 2  ;;  %v2426_v34 = vrot.slane %v2425_v42, 4  ;;  %v2334_v58 = vrot.slane %v2333_v57, 1  ;;  %2626 = vmatprep.subr.bf16.mxu1 (%p2034_p10), %v5493_v31  ;;  %v2479_v28 = vld [vmem:[#allocation3 + $0xd] sm:$0xff] (%p2034_p10)  ;;  %v7013_v29 = vld [vmem:[#allocation18 + $0x38] sm:$0xff] (%p2034_p10) }
 0x681   : >> { %v2439_v27 = vsel %vm1056_vm8, %v2437_v12, %v2287_v45  ;;  %v5505_v45 = vld [vmem:[#allocation15 + $0x1e4] ss:$8 sps:$4 sm:$0xff] (%p2034_p10)   ;;  %v5508_v12 = vld [vmem:[#allocation15 + $0x1f4] ss:$8 sps:$4 sm:$0xff] (%p2034_p10)   ;;  %v7015_v31 = vld [vmem:[#allocation20 + $0x3] ss:$0 sm:$0xff] (%p2034_p10) }
 0x682   : >> { %v2381_v3 = vadd.f32 %v2380_v13, %v2379_v4  ;;  %v2427_v47 = vadd.f32 %v2426_v34, %v2425_v42  ;;  %v2335_v1 = vadd.f32 %v2334_v58, %v2333_v57  ;;  %v2488_v42 = vld [vmem:[#allocation3 + $0x6] sm:$0xff] (%p2034_p10)  ;;  %v5502_v58 = vld [vmem:[#allocation15 + $0x1d4] ss:$8 sps:$4 sm:$0xff] (%p2034_p10)  }
 0x683   : > { %2627 = vmatpush1.bf16.msra.mxu1 (%p2034_p10), %v5495_v14  ;;  %v4945_v14 = vld [vmem:[#allocation17 + $0x3] ss:$0 sm:$0xff] (%p2034_p10) }
 0x684   : >> { %v2382_v17 = vrot.slane %v2381_v3, 1  ;;  %v2428_v9 = vrot.slane %v2427_v47, 2  ;;  %v2441_v35 = vsel %vm1058_vm9, %v2439_v27, %v2335_v1  ;;  %2628 = vmatprep.subr.bf16.mxu1 (%p2034_p10), %v5496_v41 }
 0x686   : >> { %v2429_v36 = vadd.f32 %v2428_v9, %v2427_v47  ;;  %v2383_v44 = vadd.f32 %v2382_v17, %v2381_v3  ;;  %v4926_v17 = vld [vmem:[#allocation14 + $0x3] ss:$0 sm:$0xff] (%p2034_p10) }
 0x687   : > { %2629 = vmatpush1.bf16.msra.mxu1 (%p2034_p10), %v5498_v46 }
 0x688   : >> { %v2430_v62 = vrot.slane %v2429_v36, 1  ;;  %v2443_v43 = vsel %vm1060_vm10, %v2441_v35, %v2383_v44  ;;  %2630 = vmatprep.subr.bf16.mxu1 (%p2034_p10), %v5499_v32 }
 0x689   : > { %2036 = sbr.rel (!%p2034_p10) target bundleno = 1480 (0x5c8), region = 245 }
 0x68a   : >> { %v2431_v18 = vadd.f32 %v2430_v62, %v2429_v36  ;;  %v5507_v36 = vld [vmem:[#allocation15 + $0x1e0] ss:$8 sps:$4 sm:$0xff] (%p2034_p10)   ;;  %v5510_v62 = vld [vmem:[#allocation15 + $0x1f0] ss:$8 sps:$4 sm:$0xff] (%p2034_p10)  }
 0x68b   : > { %2631 = vmatpush1.bf16.msra.mxu1 (%p2034_p10), %v5501_v33 }
 0x68c   : >> { %v2445_v37 = vsel %vm1062_vm11, %v2443_v43, %v2431_v18  ;;  %2632 = vmatprep.subr.bf16.mxu1 (%p2034_p10), %v5502_v58 }
 0x68d   : >> { %v2453_v39 = vadd.f32 %v2452_v11, %v2445_v37 }
 0x68f   : >> { %2455 = vst [vmem:[%s2454_s9] sm:$0xff] %v2453_v39  ;;  %v7541_v39 = vmov %v2413_v16  ;;  %v2457_v16 = vld [vmem:[#allocation12 + $0xc] sm:$0xf] (%p2034_p10)  ;;  %2633 = vmatpush1.bf16.msra.mxu1 (%p2034_p10), %v5504_v60  ;;  %v7021_v60 = vmov (%p2034_p10), 0.0  }
 0x690   : > { %v2463_v8 = vrot.slane %v2457_v16, %v6510_v24  ;;  %v2473_v5 = vrot.slane %v2457_v16, %v6507_v22  ;;  %v2483_v49 = vrot.slane %v2457_v16, %v6504_v20  ;;  %v2493_v7 = vrot.slane %v2457_v16, %v6501_v19  ;;  %2634 = vmatprep.subr.bf16.mxu1 %v5505_v45 }
 0x692   : > { %v2464_v50 = vmul.f32 %v2463_v8, %v2458_v59  ;;  %v2465_v4 = vmul.f32 %v2463_v8, %v2459_v40  ;;  %v2474_v15 = vmul.f32 %v2473_v5, %v2468_v26  ;;  %v2475_v57 = vmul.f32 %v2473_v5, %v2469_v23 }
 0x693   : > { %v2484_v13 = vmul.f32 %v2483_v49, %v2478_v25  ;;  %v2485_v52 = vmul.f32 %v2483_v49, %v2479_v28  ;;  %v2494_v3 = vmul.f32 %v2493_v7, %v2488_v42  ;;  %v2495_v10 = vmul.f32 %v2493_v7, %v2489_v63  ;;  %2635 = vmatpush1.bf16.msra.mxu1 %v5507_v36 }
 0x694   : > { %v2476_v34 = vadd.f32 %v2474_v15, %v2464_v50  ;;  %v2477_v6 = vadd.f32 %v2475_v57, %v2465_v4  ;;  %2636 = vmatprep.subr.bf16.mxu1 %v5508_v12 }
 0x696   : > { %v2486_v47 = vadd.f32 %v2484_v13, %v2476_v34  ;;  %v2487_v21 = vadd.f32 %v2485_v52, %v2477_v6 }
 0x697   : > { %2637 = vmatpush1.bf16.msra.mxu1 %v5510_v62 }
 0x698   : > { %v2496_v38 = vadd.f32 %v2494_v3, %v2486_v47  ;;  %v2497_v9 = vadd.f32 %v2495_v10, %v2487_v21 }
 0x69a   : > { %v2506_v2 = vadd.f32 %v4926_v17, %v2496_v38  ;;  %v2507_v1 = vadd.f32 %v4926_v17, %v2497_v9  ;;  %v7019_v17 = vmov 0.0  }
 0x69c   : > { %v4927_v51 = vmul.f32 -1.442695, %v2506_v2  ;;  %v4928_v44 = vmul.f32 -1.442695, %v2507_v1 }
 0x69e   : > { %5511 = vpow2.f32 %v4927_v51 }
 0x69f   : > { %5513 = vpow2.f32 %v4928_v44 }
 0x6a8   : > { %v5512_v27 = vpop.eup %5511 }
 0x6a9   : > { %v5514_v11 = vpop.eup %5513  ;;  %v2514_v35 = vadd.f32 1.0, %v5512_v27 }
 0x6aa   : > { %v2515_v18 = vadd.f32 1.0, %v5514_v11 }
 0x6ab   : > { %5515 = vrcp.f32 %v2514_v35 }
 0x6ac   : > { %5517 = vrcp.f32 %v2515_v18 }
 0x6b5   : > { %v5516_v43 = vpop.eup %5515 }
 0x6b6   : > { %v5518_v37 = vpop.eup %5517  ;;  %v2520_v39 = vmul.f32 %v5516_v43, %v2506_v2 }
 0x6b7   : > { %v2521_v55 = vmul.f32 %v5518_v37, %v2507_v1 }
 0x6b8   : > { %2522 = vst [vmem:[#allocation4] sm:$0xff] %v2520_v39 }
 0x6b9   : > { %2523 = vst [vmem:[#allocation4 + $0x8] sm:$0xff] %v2521_v55  ;;  %v2524_v61 = vpack.c.bf16 %v2521_v55, %v2520_v39 }
 0x6bb   : > { %2655 = vmatmul.mubr.bf16.vlgmr.msra.gmra.mrb[4].mxu1 %v2524_v61 }
 0x78e   : > { %v2656_v41 = vpop.f32.mrb[4].mxu1 }
 0x78f   : > { %v2673_v46 = vadd.f32 %v4945_v14, %v2656_v41  ;;  %v2658_v32 = vpop.f32.mrb[5].mxu1 }
 0x790   : > { %2705 = vst.msk [vmem:[#allocation6] sm:$0xff] %vm644_vm0, %v2658_v32  ;;  %v2660_v16 = vpop.f32.mrb[6].mxu1 }
 0x791   : > { %v2677_v59 = vmin.f32 %v2673_v46, 20.0  ;;  %v2674_v40 = vadd.f32 %v4945_v14, %v2660_v16  ;;  %v2662_v8 = vpop.f32.mrb[7].mxu1  ;;  %vm2675_vm13 = vcmp.gt.f32.partialorder %v2673_v46, 20.0 }
 0x792   : > { %2706 = vst.msk [vmem:[#allocation6 + $0x8] sm:$0xff] %vm644_vm0, %v2662_v8 }
 0x793   : > { %v2679_v26 = vmul.f32 1.442695, %v2677_v59  ;;  %v2678_v5 = vmin.f32 %v2674_v40, 20.0  ;;  %vm2676_vm15 = vcmp.gt.f32.partialorder %v2674_v40, 20.0 }
 0x795   : > { %5519 = vpow2.f32 %v2679_v26  ;;  %v2681_v49 = vmul.f32 1.442695, %v2678_v5 }
 0x797   : > { %5521 = vpow2.f32 %v2681_v49 }
 0x79f   : > { %v5520_v7 = vpop.eup %5519 }
 0x7a0   : > { %v2683_v23 = vadd.f32 1.0, %v5520_v7  ;;  %v2686_v50 = vmul.f32 -0.5, %v5520_v7  ;;  %v2689_v57 = vand.u32 2147483647, %v5520_v7 }
 0x7a1   : > { %v5522_v25 = vpop.eup %5521 }
 0x7a2   : > { %5523 = vlog2.f32 %v2683_v23  ;;  %v2692_v28 = vadd.f32 1.0, %v5522_v25  ;;  %v2695_v4 = vmul.f32 -0.5, %v5522_v25  ;;  %v2687_v15 = vadd.f32 1.0, %v2686_v50 }
 0x7a3   : > { %v2698_v13 = vand.u32 2147483647, %v5522_v25  ;;  %vm2690_vm12 = vcmp.lt.f32.partialorder %v2689_v57, 0.0004427343 }
 0x7a4   : > { %5525 = vlog2.f32 %v2692_v28  ;;  %v2696_v42 = vadd.f32 1.0, %v2695_v4  ;;  %v2688_v33 = vmul.f32 %v5520_v7, %v2687_v15 }
 0x7a5   : > { %vm2699_vm14 = vcmp.lt.f32.partialorder %v2698_v13, 0.0004427343 }
 0x7a6   : > { %v2697_v10 = vmul.f32 %v5522_v25, %v2696_v42 }
 0x7ac   : > { %v5524_v63 = vpop.eup %5523 }
 0x7ad   : > { %v2685_v52 = vmul.f32 0.6931472, %v5524_v63 }
 0x7ae   : > { %v5526_v34 = vpop.eup %5525 }
 0x7af   : > { %v2691_v6 = vsel %vm2690_vm12, %v2688_v33, %v2685_v52  ;;  %v2694_v3 = vmul.f32 0.6931472, %v5526_v34 }
 0x7b0   : > { %v2701_v58 = vsel %vm2675_vm13, %v2673_v46, %v2691_v6 }
 0x7b1   : > { %2703 = vst [vmem:[#allocation5] sm:$0xff] %v2701_v58  ;;  %v2700_v47 = vsel %vm2699_vm14, %v2697_v10, %v2694_v3 }
 0x7b2   : > { %v2702_v21 = vsel %vm2676_vm15, %v2674_v40, %v2700_v47 }
 0x7b3   : > { %2704 = vst [vmem:[#allocation5 + $0x8] sm:$0xff] %v2702_v21 }
 0x7b4 LB: >> { %s2720_s10 = ssub.s32 1, %s6107_s22  ;;  %s2717_s22 = sadd.s32 1, %s6107_s22   ;;  %s6107_s22 = sphi %s7023_s22, %s2717_s22   ;;  %v6103_v60 = vphi %v7021_v60, %v7132_v60   ;;  %v6099_v17 = vphi %v7019_v17, %v7130_v17  }
 0x7b5   : >> { %s7035_s8 = sshll.u32 %s2720_s10, 3  ;;  %p2714_p1 = scmp.ge.s32.totalorder %s2717_s22, 2  }
 0x7b6   : >> { %s2726_s21 = scalar_lea.vmem [#allocation6], %s7035_s8  ;;  %s2722_s28 = scalar_lea.vmem [#allocation5], %s7035_s8  ;;  %3376 = vmatprep.mubr.bf16.mxu0 (%p2714_p1), %v6146_v0 }
 0x7b7   : >> { %v2727_v38 = vld [vmem:[%s2726_s21] sm:$0xff]  ;;  %s2724_s11 = scalar_lea.vmem [#allocation4], %s7035_s8  ;;  %s3135_s12 = scalar_lea.vmem [#allocation7], %s7035_s8 }
 0x7b8   : >> { %v2790_v9 = vrot.slane %v2727_v38, %v6556_v54  ;;  %v2742_v45 = vrot.slane %v2727_v38, %v6563_v56  ;;  %v2838_v2 = vrot.slane %v2727_v38, %v6553_v53  ;;  %v2886_v1 = vrot.slane %v2727_v38, %v6542_v48  ;;  %v7063_v32 = vld [vmem:[%s2724_s11] sm:$0xff]  ;;  %s7180_s15 = smov (%p2714_p1), 0  }
 0x7b9   : >> { %v2934_v36 = vrot.slane %v2727_v38, %v6510_v24  ;;  %v2982_v51 = vrot.slane %v2727_v38, %v6507_v22  ;;  %v3030_v44 = vrot.slane %v2727_v38, %v6504_v20  ;;  %v3078_v12 = vrot.slane %v2727_v38, %v6501_v19 }
 0x7ba   : >> { %2792 = vbcast.lane.b32.xlu1 %v2790_v9, 256  ;;  %2744 = vbcast.lane.b32.xlu0 %v2742_v45, 256  ;;  %v7047_v62 = vld [vmem:[%s2722_s28] sm:$0xff] }
 0x7bb   : >> { %v2732_v27 = vrot.slane %v7047_v62, %v6563_v56  ;;  %v2780_v35 = vrot.slane %v7047_v62, %v6556_v54  ;;  %v2828_v39 = vrot.slane %v7047_v62, %v6553_v53  ;;  %v2876_v46 = vrot.slane %v7047_v62, %v6542_v48 }
 0x7bc   : >> { %v2924_v26 = vrot.slane %v7047_v62, %v6510_v24  ;;  %v7071_v5 = vmul.f32 %v7063_v32, %v7047_v62  ;;  %v2972_v50 = vrot.slane %v7047_v62, %v6507_v22  ;;  %v3020_v6 = vrot.slane %v7047_v62, %v6504_v20 }
 0x7bd   : >> { %v2733_v11 = vmul.f32 %v2732_v27, %v7011_v30  ;;  %v2734_v43 = vmul.f32 %v2732_v27, %v7013_v29  ;;  %v2781_v37 = vmul.f32 %v2780_v35, %v7011_v30  ;;  %v2782_v61 = vmul.f32 %v2780_v35, %v7013_v29 }
 0x7be   : >> { %2796 = vbcast.lane.b32.xlu1 %v2790_v9, 264  ;;  %2748 = vbcast.lane.b32.xlu0 %v2742_v45, 264  ;;  %v2829_v41 = vmul.f32 %v2828_v39, %v7011_v30  ;;  %v2830_v59 = vmul.f32 %v2828_v39, %v7013_v29  ;;  %v2877_v8 = vmul.f32 %v2876_v46, %v7011_v30 }
 0x7bf   : >> { %v2735_v18 = vmul.f32 1.442695, %v2733_v11  ;;  %v2737_v55 = vmul.f32 1.442695, %v2734_v43  ;;  %v2783_v14 = vmul.f32 1.442695, %v2781_v37  ;;  %v2878_v7 = vmul.f32 %v2876_v46, %v7013_v29 }
 0x7c0   : >> { %v2785_v16 = vmul.f32 1.442695, %v2782_v61  ;;  %v2831_v40 = vmul.f32 1.442695, %v2829_v41  ;;  %v2833_v49 = vmul.f32 1.442695, %v2830_v59  ;;  %v2925_v28 = vmul.f32 %v2924_v26, %v7011_v30 }
 0x7c1   : >> { %5527 = vpow2.f32 %v2735_v18  ;;  %v2879_v25 = vmul.f32 1.442695, %v2877_v8  ;;  %v2753_v4 = vrot.slane %v7071_v5, %v6563_v56  ;;  %v2926_v15 = vmul.f32 %v2924_v26, %v7013_v29 }
 0x7c2   : >> { %2844 = vbcast.lane.b32.xlu1 %v2838_v2, 264  ;;  %2840 = vbcast.lane.b32.xlu0 %v2838_v2, 256  ;;  %5529 = vpow2.f32 %v2737_v55  ;;  %v2881_v42 = vmul.f32 1.442695, %v2878_v7  ;;  %v2927_v33 = vmul.f32 1.442695, %v2925_v28  ;;  %v2973_v34 = vmul.f32 %v2972_v50, %v7011_v30 }
 0x7c3   : >> { %5531 = vpow2.f32 %v2783_v14  ;;  %v2801_v3 = vrot.slane %v7071_v5, %v6556_v54  ;;  %v2929_v47 = vmul.f32 1.442695, %v2926_v15  ;;  %v2974_v38 = vmul.f32 %v2972_v50, %v7013_v29 }
 0x7c4   : >> { %5533 = vpow2.f32 %v2785_v16  ;;  %v2849_v27 = vrot.slane %v7071_v5, %v6553_v53  ;;  %v3022_v55 = vmul.f32 %v3020_v6, %v7013_v29  ;;  %v3068_v14 = vrot.slane %v7047_v62, %v6501_v19 }
 0x7c5   : >> { %5535 = vpow2.f32 %v2831_v40  ;;  %v2977_v43 = vmul.f32 1.442695, %v2974_v38  ;;  %v2945_v62 = vrot.slane %v7071_v5, %v6510_v24 }
 0x7c6   : >> { %2892 = vbcast.lane.b32.xlu1 %v2886_v1, 264  ;;  %2888 = vbcast.lane.b32.xlu0 %v2886_v1, 256  ;;  %5537 = vpow2.f32 %v2833_v49  ;;  %v3070_v7 = vmul.f32 %v3068_v14, %v7013_v29  ;;  %v3025_v28 = vmul.f32 1.442695, %v3022_v55  ;;  %v3069_v50 = vmul.f32 %v3068_v14, %v7011_v30  ;;  %v5565_v29 = vld [vmem:[#allocation15 + $0x224] ss:$8 sps:$4 sm:$0xff] (%p2714_p1)  }
 0x7c7   : >> { %5539 = vpow2.f32 %v2879_v25 }
 0x7c8   : >> { %5541 = vpow2.f32 %v2881_v42 }
 0x7c9   : >> { %5543 = vpow2.f32 %v2927_v33 }
 0x7ca   : >> { %2940 = vbcast.lane.b32.xlu1 %v2934_v36, 264  ;;  %2936 = vbcast.lane.b32.xlu0 %v2934_v36, 256  ;;  %5545 = vpow2.f32 %v2929_v47 }
 0x7cb   : >> { %v5528_v23 = vpop.eup %5527 }
 0x7cc   : >> { %v2756_v57 = vmul.f32 %v6103_v60, %v5528_v23  ;;  %v5530_v63 = vpop.eup %5529 }
 0x7cd   : >> { %v5532_v58 = vpop.eup %5531  ;;  %v2757_v60 = vmul.f32 %v6099_v17, %v5530_v63  ;;  %v2897_v17 = vrot.slane %v7071_v5, %v6542_v48 }
 0x7ce   : >> { %2988 = vbcast.lane.b32.xlu1 %v2982_v51, 264  ;;  %2984 = vbcast.lane.b32.xlu0 %v2982_v51, 256 }
 0x7d2   : >> { %3036 = vbcast.lane.b32.xlu1 %v3030_v44, 264  ;;  %3032 = vbcast.lane.b32.xlu0 %v3030_v44, 256 }
 0x7d6   : >> { %3084 = vbcast.lane.b32.xlu1 %v3078_v12, 264  ;;  %3080 = vbcast.lane.b32.xlu0 %v3078_v12, 256 }
 0x7da   : >> { %3054 = vbcast.lane.b32.xlu1 %v3030_v44, 280  ;;  %3050 = vbcast.lane.b32.xlu0 %v3030_v44, 272 }
 0x7de   : >> { %3102 = vbcast.lane.b32.xlu1 %v3078_v12, 280  ;;  %3098 = vbcast.lane.b32.xlu0 %v3078_v12, 272 }
 0x7e2   : >> { %3006 = vbcast.lane.b32.xlu1 %v2982_v51, 280  ;;  %3002 = vbcast.lane.b32.xlu0 %v2982_v51, 272 }
 0x7e6   : >> { %2958 = vbcast.lane.b32.xlu1 %v2934_v36, 280  ;;  %2954 = vbcast.lane.b32.xlu0 %v2934_v36, 272  ;;  %v5534_v36 = vpop.eup %5533 }
 0x7e7   : >> { %v5536_v11 = vpop.eup %5535 }
 0x7e8   : >> { %v5538_v41 = vpop.eup %5537 }
 0x7e9   : >> { %v5540_v8 = vpop.eup %5539 }
 0x7ea   : >> { %2910 = vbcast.lane.b32.xlu1 %v2886_v1, 280  ;;  %2906 = vbcast.lane.b32.xlu0 %v2886_v1, 272  ;;  %v3021_v1 = vmul.f32 %v3020_v6, %v7011_v30  ;;  %v5564_v30 = vld [vmem:[#allocation15 + $0x210] ss:$8 sps:$4 sm:$0xff] (%p2714_p1)  }
 0x7ec   : >> { %v3023_v61 = vmul.f32 1.442695, %v3021_v1 }
 0x7ee   : >> { %2862 = vbcast.lane.b32.xlu1 %v2838_v2, 280  ;;  %2858 = vbcast.lane.b32.xlu0 %v2838_v2, 272  ;;  %v2975_v2 = vmul.f32 1.442695, %v2973_v34  ;;  %v3073_v34 = vmul.f32 1.442695, %v3070_v7 }
 0x7f0   : >> { %5547 = vpow2.f32 %v2975_v2 }
 0x7f1   : >> { %5549 = vpow2.f32 %v2977_v43 }
 0x7f2   : >> { %2814 = vbcast.lane.b32.xlu1 %v2790_v9, 280  ;;  %2810 = vbcast.lane.b32.xlu0 %v2790_v9, 272  ;;  %5551 = vpow2.f32 %v3023_v61 }
 0x7f3   : >> { %5553 = vpow2.f32 %v3025_v28 }
 0x7f4   : >> { %5555 = vpow2.f32 %v3073_v34 }
 0x7f6   : >> { %2766 = vbcast.lane.b32.xlu1 %v2742_v45, 280  ;;  %2762 = vbcast.lane.b32.xlu0 %v2742_v45, 272 }
 0x82c   : >> { %v2793_v13 = vpop.permute.xlu1 %2792  ;;  %v2745_v52 = vpop.permute.xlu0 %2744 }
 0x82d   : >> { %v2754_v10 = vmul.f32 %v2753_v4, %v2745_v52  ;;  %v2802_v51 = vmul.f32 %v2801_v3, %v2793_v13 }
 0x82f   : >> { %v7086_v21 = vadd.f32 %v2756_v57, %v2754_v10  ;;  %v2993_v10 = vrot.slane %v7071_v5, %v6507_v22 }
 0x830   : >> { %v2797_v9 = vpop.permute.xlu1 %2796  ;;  %v2749_v45 = vpop.permute.xlu0 %2748 }
 0x831   : >> { %v2804_v44 = vmul.f32 %v5532_v58, %v7086_v21  ;;  %v2755_v12 = vmul.f32 %v2753_v4, %v2749_v45  ;;  %v2803_v46 = vmul.f32 %v2801_v3, %v2797_v9  ;;  %v5542_v4 = vpop.eup %5541  ;;  %v3071_v58 = vmul.f32 1.442695, %v3069_v50 }
 0x832   : >> { %v5544_v13 = vpop.eup %5543 }
 0x833   : >> { %v7096_v35 = vadd.f32 %v2757_v60, %v2755_v12  ;;  %v7098_v18 = vadd.f32 %v2804_v44, %v2802_v51  ;;  %v5546_v47 = vpop.eup %5545  ;;  %v3041_v12 = vrot.slane %v7071_v5, %v6504_v20  ;;  %5557 = vpow2.f32 %v3071_v58 }
 0x834   : >> { %v2845_v37 = vpop.permute.xlu1 %2844  ;;  %v2841_v39 = vpop.permute.xlu0 %2840 }
 0x835   : >> { %v2805_v16 = vmul.f32 %v5534_v36, %v7096_v35  ;;  %v2850_v59 = vmul.f32 %v2849_v27, %v2841_v39  ;;  %v2852_v40 = vmul.f32 %v5536_v11, %v7098_v18  ;;  %v2851_v15 = vmul.f32 %v2849_v27, %v2845_v37  ;;  %v5548_v2 = vpop.eup %5547 }
 0x836   : >> { %v5550_v27 = vpop.eup %5549 }
 0x837   : >> { %v7105_v26 = vadd.f32 %v2805_v16, %v2803_v46  ;;  %v7107_v49 = vadd.f32 %v2852_v40, %v2850_v59  ;;  %v5552_v39 = vpop.eup %5551 }
 0x838   : >> { %v2893_v23 = vpop.permute.xlu1 %2892  ;;  %v2889_v25 = vpop.permute.xlu0 %2888 }
 0x839   : >> { %v2853_v57 = vmul.f32 %v5538_v41, %v7105_v26  ;;  %v2898_v42 = vmul.f32 %v2897_v17, %v2889_v25  ;;  %v2900_v63 = vmul.f32 %v5540_v8, %v7107_v49  ;;  %v2899_v60 = vmul.f32 %v2897_v17, %v2893_v23  ;;  %v5554_v8 = vpop.eup %5553 }
 0x83a   : >> { %v5556_v28 = vpop.eup %5555 }
 0x83b   : >> { %v7115_v52 = vadd.f32 %v2853_v57, %v2851_v15  ;;  %v7117_v33 = vadd.f32 %v2900_v63, %v2898_v42 }
 0x83c   : >> { %v2941_v6 = vpop.permute.xlu1 %2940  ;;  %v2937_v3 = vpop.permute.xlu0 %2936 }
 0x83d   : >> { %v2901_v38 = vmul.f32 %v5542_v4, %v7115_v52  ;;  %v2946_v9 = vmul.f32 %v2945_v62, %v2937_v3  ;;  %v2948_v45 = vmul.f32 %v5544_v13, %v7117_v33  ;;  %v2947_v11 = vmul.f32 %v2945_v62, %v2941_v6  ;;  %v5558_v57 = vpop.eup %5557 }
 0x83e   : >> { %v3089_v62 = vrot.slane %v7071_v5, %v6501_v19 }
 0x83f   : >> { %v7123_v1 = vadd.f32 %v2901_v38, %v2899_v60  ;;  %v2950_v36 = vadd.f32 %v2948_v45, %v2946_v9 }
 0x840   : >> { %v2989_v51 = vpop.permute.xlu1 %2988  ;;  %v2985_v44 = vpop.permute.xlu0 %2984 }
 0x841   : >> { %v2949_v17 = vmul.f32 %v5546_v47, %v7123_v1  ;;  %v2994_v43 = vmul.f32 %v2993_v10, %v2985_v44  ;;  %v2996_v37 = vmul.f32 %v5548_v2, %v2950_v36  ;;  %v2995_v46 = vmul.f32 %v2993_v10, %v2989_v51 }
 0x843   : >> { %v2951_v55 = vadd.f32 %v2949_v17, %v2947_v11  ;;  %v2998_v61 = vadd.f32 %v2996_v37, %v2994_v43 }
 0x844   : >> { %v3037_v14 = vpop.permute.xlu1 %3036  ;;  %v3033_v41 = vpop.permute.xlu0 %3032 }
 0x845   : >> { %v2997_v16 = vmul.f32 %v5550_v27, %v2951_v55  ;;  %v3042_v59 = vmul.f32 %v3041_v12, %v3033_v41  ;;  %v3044_v40 = vmul.f32 %v5552_v39, %v2998_v61  ;;  %v3043_v50 = vmul.f32 %v3041_v12, %v3037_v14 }
 0x847   : >> { %v2999_v7 = vadd.f32 %v2997_v16, %v2995_v46  ;;  %v3046_v15 = vadd.f32 %v3044_v40, %v3042_v59 }
 0x848   : >> { %v3085_v23 = vpop.permute.xlu1 %3084  ;;  %v3081_v25 = vpop.permute.xlu0 %3080 }
 0x849   : >> { %v3045_v4 = vmul.f32 %v5554_v8, %v2999_v7  ;;  %v3091_v34 = vmul.f32 %v3089_v62, %v3085_v23  ;;  %v3090_v6 = vmul.f32 %v3089_v62, %v3081_v25  ;;  %v3092_v10 = vmul.f32 %v5558_v57, %v3046_v15 }
 0x84b   : >> { %v3047_v42 = vadd.f32 %v3045_v4, %v3043_v50  ;;  %v7132_v60 = vadd.f32 %v3092_v10, %v3090_v6  }
 0x84c   : >> { %v3055_v63 = vpop.permute.xlu1 %3054  ;;  %v3051_v13 = vpop.permute.xlu0 %3050 }
 0x84d   : >> { %v3093_v3 = vmul.f32 %v5556_v28, %v3047_v42  ;;  %v3057_v9 = vmul.f32 %v3055_v63, %v3047_v42  ;;  %v3056_v45 = vmul.f32 %v3051_v13, %v3046_v15 }
 0x84f   : >> { %v7130_v17 = vadd.f32 %v3093_v3, %v3091_v34   ;;  %v3058_v11 = vadd.f32 %v3057_v9, %v3056_v45 }
 0x850   : >> { %v3103_v58 = vpop.permute.xlu1 %3102  ;;  %v3099_v47 = vpop.permute.xlu0 %3098 }
 0x851   : >> { %v3105_v38 = vmul.f32 %v3103_v58, %v7130_v17  ;;  %v3104_v5 = vmul.f32 %v3099_v47, %v7132_v60  ;;  %v3059_v16 = vrot.slane %v3058_v11, 4  ;;  %v5559_v60 = vld [vmem:[#allocation15 + $0x204] ss:$8 sps:$4 sm:$0xff] (%p2714_p1)   ;;  %v5568_v17 = vld [vmem:[#allocation15 + $0x234] ss:$8 sps:$4 sm:$0xff] (%p2714_p1)  }
 0x852   : > { %3344 = vmatprep.subr.bf16.mxu0 (%p2714_p1), %v5559_v60 }
 0x853   : >> { %v3106_v27 = vadd.f32 %v3105_v38, %v3104_v5  ;;  %v3060_v62 = vadd.f32 %v3059_v16, %v3058_v11 }
 0x854   : >> { %v3007_v2 = vpop.permute.xlu1 %3006  ;;  %v3003_v51 = vpop.permute.xlu0 %3002 }
 0x855   : >> { %v3009_v44 = vmul.f32 %v3007_v2, %v2999_v7  ;;  %v3008_v12 = vmul.f32 %v3003_v51, %v2998_v61  ;;  %v3107_v46 = vrot.slane %v3106_v27, 4  ;;  %v3061_v6 = vrot.slane %v3060_v62, 2 }
 0x857   : >> { %v3010_v43 = vadd.f32 %v3009_v44, %v3008_v12  ;;  %v3108_v7 = vadd.f32 %v3107_v46, %v3106_v27  ;;  %v3062_v51 = vadd.f32 %v3061_v6, %v3060_v62 }
 0x858   : >> { %v2959_v37 = vpop.permute.xlu1 %2958  ;;  %v2955_v39 = vpop.permute.xlu0 %2954 }
 0x859   : >> { %v2961_v14 = vmul.f32 %v2959_v37, %v2951_v55  ;;  %v2960_v41 = vmul.f32 %v2955_v39, %v2950_v36  ;;  %v3011_v59 = vrot.slane %v3010_v43, 4  ;;  %v3109_v13 = vrot.slane %v3108_v7, 2 }
 0x85b   : >> { %v2962_v40 = vadd.f32 %v2961_v14, %v2960_v41  ;;  %v3012_v4 = vadd.f32 %v3011_v59, %v3010_v43  ;;  %v3110_v45 = vadd.f32 %v3109_v13, %v3108_v7  ;;  %v3063_v59 = vrot.slane %v3062_v51, 1 }
 0x85c   : >> { %v2911_v8 = vpop.permute.xlu1 %2910  ;;  %v2907_v23 = vpop.permute.xlu0 %2906 }
 0x85d   : >> { %v2913_v25 = vmul.f32 %v2911_v8, %v7123_v1  ;;  %v2912_v28 = vmul.f32 %v2907_v23, %v7117_v33  ;;  %v2963_v50 = vrot.slane %v2962_v40, 4  ;;  %v3013_v3 = vrot.slane %v3012_v4, 2 }
 0x85f   : >> { %v2914_v61 = vadd.f32 %v2913_v25, %v2912_v28  ;;  %v2964_v42 = vadd.f32 %v2963_v50, %v2962_v40 }
 0x860   : >> { %v2863_v15 = vpop.permute.xlu1 %2862  ;;  %v2859_v57 = vpop.permute.xlu0 %2858 }
 0x861   : >> { %v2915_v55 = vrot.slane %v2914_v61, 4  ;;  %v2865_v36 = vmul.f32 %v2863_v15, %v7115_v52  ;;  %v2864_v63 = vmul.f32 %v2859_v57, %v7107_v49  ;;  %v2965_v58 = vrot.slane %v2964_v42, 2 }
 0x862   : >> { %v3014_v52 = vadd.f32 %v3013_v3, %v3012_v4 }
 0x863   : >> { %v2916_v34 = vadd.f32 %v2915_v55, %v2914_v61  ;;  %v2866_v1 = vadd.f32 %v2865_v36, %v2864_v63  ;;  %v2966_v27 = vadd.f32 %v2965_v58, %v2964_v42 }
 0x864   : >> { %v2815_v10 = vpop.permute.xlu1 %2814  ;;  %v2811_v33 = vpop.permute.xlu0 %2810  ;;  %v3015_v46 = vrot.slane %v3014_v52, 1 }
 0x865   : >> { %v2817_v47 = vmul.f32 %v2815_v10, %v7105_v26  ;;  %v2816_v38 = vmul.f32 %v2811_v33, %v7098_v18  ;;  %v2917_v5 = vrot.slane %v2916_v34, 2  ;;  %v2867_v9 = vrot.slane %v2866_v1, 4 }
 0x866   : >> { %v3111_v26 = vrot.slane %v3110_v45, 1  ;;  %v2967_v40 = vrot.slane %v2966_v27, 1  ;;  %v3016_v62 = vadd.f32 %v3015_v46, %v3014_v52  ;;  %v3160_v46 = vld [vmem:[#allocation2 + $0x1] ss:$8 sm:$0x3] (%p2714_p1) }
 0x867   : >> { %v2818_v2 = vadd.f32 %v2817_v47, %v2816_v38  ;;  %v2868_v44 = vadd.f32 %v2867_v9, %v2866_v1  ;;  %v2918_v39 = vadd.f32 %v2917_v5, %v2916_v34  ;;  %v3133_v1 = vmul.f32 %v7015_v31, %v7063_v32  ;;  %v3136_v47 = vld [vmem:[%s3135_s12] sm:$0xff]  ;;  %v3139_v32 = vld [vmem:[#allocation8] sm:$0xf] (%p2714_p1)  ;;  %3161 = vst [vmem:[#allocation3 + $0x5] sm:$0x3] (%p2714_p1), %v3160_v46 }
 0x868   : >> { %v2767_v49 = vpop.permute.xlu1 %2766  ;;  %v2763_v12 = vpop.permute.xlu0 %2762  ;;  %v3112_v28 = vadd.f32 %v3111_v26, %v3110_v45  ;;  %v2968_v4 = vadd.f32 %v2967_v40, %v2966_v27  ;;  %v5567_v31 = vld [vmem:[#allocation15 + $0x220] ss:$8 sps:$4 sm:$0xff] (%p2714_p1)   ;;  %v5570_v26 = vld [vmem:[#allocation15 + $0x230] ss:$8 sps:$4 sm:$0xff] (%p2714_p1)  }
 0x869   : >> { %v2819_v11 = vrot.slane %v2818_v2, 4  ;;  %v2769_v43 = vmul.f32 %v2767_v49, %v7096_v35  ;;  %v2768_v37 = vmul.f32 %v2763_v12, %v7086_v21  ;;  %v2869_v14 = vrot.slane %v2868_v44, 2  ;;  %v3148_v49 = vld [vmem:[#allocation8 + $0x8] sm:$0xf] (%p2714_p1)  ;;  %v7168_v46 = vld [vmem:[#allocation18 + $0x40] sm:$0xff] (%p2714_p1) }
 0x86a   : >> { %v2919_v25 = vrot.slane %v2918_v39, 1  ;;  %v3064_v35 = vadd.f32 %v3063_v59, %v3062_v51  ;;  %v3143_v51 = vld [vmem:[#allocation8 + $0x4] sm:$0xf] (%p2714_p1)  ;;  %v3164_v59 = vld [vmem:[#allocation2 + $0x3] ss:$8 sm:$0x3] (%p2714_p1) }
 0x86b   : >> { %v2820_v41 = vadd.f32 %v2819_v11, %v2818_v2  ;;  %v2770_v18 = vadd.f32 %v2769_v43, %v2768_v37  ;;  %v2870_v16 = vadd.f32 %v2869_v14, %v2868_v44  ;;  %v3153_v11 = vld [vmem:[#allocation8 + $0xc] sm:$0xf] (%p2714_p1)  ;;  %v3167_v40 = vld [vmem:[#allocation2 + $0x4] ss:$8 sm:$0x3] (%p2714_p1) }
 0x86c   : >> { %v2920_v57 = vadd.f32 %v2919_v25, %v2918_v39  ;;  %v3114_v42 = vsel %vm1050_vm5, %v3112_v28, %v3064_v35  ;;  %v5561_v39 = vld [vmem:[#allocation15 + $0x200] ss:$8 sps:$4 sm:$0xff] (%p2714_p1)   ;;  %v5562_v14 = vld [vmem:[#allocation15 + $0x214] ss:$8 sps:$4 sm:$0xff] (%p2714_p1)   ;;  %3165 = vst [vmem:[#allocation3 + $0x9] sm:$0x3] (%p2714_p1), %v3164_v59 }
 0x86d   : >> { %v2821_v8 = vrot.slane %v2820_v41, 2  ;;  %v2771_v23 = vrot.slane %v2770_v18, 4  ;;  %v2871_v50 = vrot.slane %v2870_v16, 1  ;;  %v3116_v63 = vsel %vm1052_vm6, %v3114_v42, %v3016_v62  ;;  %3345 = vmatpush1.bf16.msra.mxu0 (%p2714_p1), %v5561_v39  ;;  %3168 = vst [vmem:[#allocation3 + $0xb] sm:$0x3] (%p2714_p1), %v3167_v40 }
 0x86e   : >> { %v3118_v34 = vsel %vm1054_vm7, %v3116_v63, %v2968_v4  ;;  %3346 = vmatprep.subr.bf16.mxu0 (%p2714_p1), %v5562_v14  ;;  %v3176_v25 = vld [vmem:[#allocation2 + $0x7] ss:$8 sm:$0x3] (%p2714_p1)  ;;  %v3179_v28 = vld [vmem:[#allocation12 + $0x10] sm:$0xf] (%p2714_p1) }
 0x86f   : >> { %v2822_v7 = vadd.f32 %v2821_v8, %v2820_v41  ;;  %v2772_v61 = vadd.f32 %v2771_v23, %v2770_v18  ;;  %v2872_v55 = vadd.f32 %v2871_v50, %v2870_v16  ;;  %v3120_v3 = vsel %vm1056_vm8, %v3118_v34, %v2920_v57  ;;  %v3158_v41 = vld [vmem:[#allocation2] ss:$8 sm:$0x3] (%p2714_p1)  ;;  %v5571_v18 = vld [vmem:[#allocation15 + $0x244] ss:$8 sps:$4 sm:$0xff] (%p2714_p1)  }
 0x870   : > { %3159 = vst [vmem:[#allocation3 + $0x3] sm:$0x3] (%p2714_p1), %v3158_v41  ;;  %v3162_v16 = vld [vmem:[#allocation2 + $0x2] ss:$8 sm:$0x3] (%p2714_p1)  ;;  %v3205_v35 = vrot.slane (%p2714_p1), %v3179_v28, %v6507_v22  ;;  %v3215_v4 = vrot.slane (%p2714_p1), %v3179_v28, %v6510_v24 }
 0x871   : >> { %v2823_v21 = vrot.slane %v2822_v7, 1  ;;  %v2773_v15 = vrot.slane %v2772_v61, 2  ;;  %v3122_v10 = vsel %vm1058_vm9, %v3120_v3, %v2872_v55  ;;  %3347 = vmatpush1.bf16.msra.mxu0 (%p2714_p1), %v5564_v30  ;;  %3163 = vst [vmem:[#allocation3 + $0x7] sm:$0x3] (%p2714_p1), %v3162_v16  ;;  %3177 = vst [vmem:[#allocation3 + $0x11] sm:$0x3] (%p2714_p1), %v3176_v25 }
 0x872   : > { %3348 = vmatprep.subr.bf16.mxu0 (%p2714_p1), %v5565_v29  ;;  %v3170_v8 = vld [vmem:[#allocation2 + $0x5] ss:$8 sm:$0x3] (%p2714_p1)  ;;  %v3173_v23 = vld [vmem:[#allocation2 + $0x6] ss:$8 sm:$0x3] (%p2714_p1) }
 0x873   : >> { %v2774_v36 = vadd.f32 %v2773_v15, %v2772_v61  ;;  %v2824_v13 = vadd.f32 %v2823_v21, %v2822_v7  ;;  %3171 = vst [vmem:[#allocation3 + $0xd] sm:$0x3] (%p2714_p1), %v3170_v8  ;;  %3174 = vst [vmem:[#allocation3 + $0xf] sm:$0x3] (%p2714_p1), %v3173_v23  ;;  %v5573_v50 = vld [vmem:[#allocation15 + $0x240] ss:$8 sps:$4 sm:$0xff] (%p2714_p1)   ;;  %v3185_v7 = vrot.slane (%p2714_p1), %v3179_v28, %v6501_v19 }
 0x874   : > { %v3195_v61 = vrot.slane (%p2714_p1), %v3179_v28, %v6504_v20  ;;  %v5574_v62 = vld [vmem:[#allocation15 + $0x254] ss:$8 sps:$4 sm:$0xff] (%p2714_p1)   ;;  %v5576_v57 = vld [vmem:[#allocation15 + $0x250] ss:$8 sps:$4 sm:$0xff] (%p2714_p1)   ;;  %v7172_v59 = vld [vmem:[#allocation20 + $0x4] ss:$0 sm:$0xff] (%p2714_p1) }
 0x875   : >> { %v2775_v6 = vrot.slane %v2774_v36, 1  ;;  %v3124_v58 = vsel %vm1060_vm10, %v3122_v10, %v2824_v13  ;;  %3349 = vmatpush1.bf16.msra.mxu0 (%p2714_p1), %v5567_v31  ;;  %v5577_v13 = vld [vmem:[#allocation15 + $0x264] ss:$8 sps:$4 sm:$0xff] (%p2714_p1)  }
 0x876   : > { %3350 = vmatprep.subr.bf16.mxu0 (%p2714_p1), %v5568_v17  ;;  %v7170_v16 = vld [vmem:[#allocation18 + $0x48] sm:$0xff] (%p2714_p1)  ;;  %v4967_v40 = vld [vmem:[#allocation17 + $0x4] ss:$0 sm:$0xff] (%p2714_p1) }
 0x877   : >> { %v2776_v33 = vadd.f32 %v2775_v6, %v2774_v36 }
 0x878   : > { %2716 = sbr.rel (!%p2714_p1) target bundleno = 1972 (0x7b4), region = 256  ;;  %v3180_v21 = vld [vmem:[#allocation3] sm:$0xff] (%p2714_p1) }
 0x879   : >> { %v3126_v38 = vsel %vm1062_vm11, %v3124_v58, %v2776_v33  ;;  %3351 = vmatpush1.bf16.msra.mxu0 (%p2714_p1), %v5570_v26  ;;  %v3190_v15 = vld [vmem:[#allocation3 + $0x1] sm:$0xff] (%p2714_p1)  ;;  %v3186_v42 = vmul.f32 (%p2714_p1), %v3185_v7, %v3180_v21 }
 0x87a   : >> { %v3134_v5 = vadd.f32 %v3133_v1, %v3126_v38  ;;  %3352 = vmatprep.subr.bf16.mxu0 (%p2714_p1), %v5571_v18  ;;  %v3196_v55 = vmul.f32 (%p2714_p1), %v3195_v61, %v3190_v15  ;;  %v3200_v36 = vld [vmem:[#allocation3 + $0x2] sm:$0xff] (%p2714_p1)  ;;  %v3201_v58 = vld [vmem:[#allocation3 + $0xa] sm:$0xff] (%p2714_p1) }
 0x87b   : > { %v3210_v63 = vld [vmem:[#allocation3 + $0x3] sm:$0xff] (%p2714_p1)  ;;  %v3206_v3 = vmul.f32 (%p2714_p1), %v3205_v35, %v3200_v36 }
 0x87c   : >> { %v3137_v9 = vadd.f32 %v3136_v47, %v3134_v5  ;;  %v3181_v34 = vld [vmem:[#allocation3 + $0x8] sm:$0xff] (%p2714_p1)  ;;  %v3198_v33 = vadd.f32 (%p2714_p1), %v3196_v55, %v3186_v42  ;;  %v3216_v38 = vmul.f32 (%p2714_p1), %v3215_v4, %v3210_v63  ;;  %v3207_v5 = vmul.f32 (%p2714_p1), %v3205_v35, %v3201_v58 }
 0x87d   : > { %3353 = vmatpush1.bf16.msra.mxu0 (%p2714_p1), %v5573_v50  ;;  %v3191_v6 = vld [vmem:[#allocation3 + $0x9] sm:$0xff] (%p2714_p1)  ;;  %v3187_v1 = vmul.f32 (%p2714_p1), %v3185_v7, %v3181_v34 }
 0x87e   : >> { %3138 = vst [vmem:[%s3135_s12] sm:$0xff] %v3137_v9  ;;  %3354 = vmatprep.subr.bf16.mxu0 (%p2714_p1), %v5574_v62  ;;  %v3197_v10 = vmul.f32 (%p2714_p1), %v3195_v61, %v3191_v6  ;;  %v3211_v47 = vld [vmem:[#allocation3 + $0xb] sm:$0xff] (%p2714_p1) }
 0x87f   : > { %v5579_v9 = vld [vmem:[#allocation15 + $0x260] ss:$8 sps:$4 sm:$0xff]  }
 0x881   : > { %3355 = vmatpush1.bf16.msra.mxu0 %v5576_v57 }
 0x882   : > { %3356 = vmatprep.subr.bf16.mxu0 %v5577_v13 }
 0x885   : > { %v3140_v45 = vld [vmem:[#allocation7] ss:$4 sm:$0xf]  ;;  %v3145_v52 = vld [vmem:[#allocation7 + $0x1] ss:$4 sm:$0xf]  ;;  %3357 = vmatpush1.bf16.msra.mxu0 %v5579_v9 }
 0x886   : > { %v3141_v2 = vadd.f32 %v3140_v45, %v3139_v32  ;;  %v3146_v44 = vadd.f32 %v3145_v52, %v3143_v51  ;;  %v3150_v12 = vld [vmem:[#allocation7 + $0x2] ss:$4 sm:$0xf]  ;;  %v3155_v43 = vld [vmem:[#allocation7 + $0x3] ss:$4 sm:$0xf]  ;;  %v3199_v32 = vadd.f32 %v3197_v10, %v3187_v1  ;;  %v3208_v45 = vadd.f32 %v3206_v3, %v3198_v33 }
 0x887   : > { %v3151_v27 = vadd.f32 %v3150_v12, %v3148_v49  ;;  %v3156_v37 = vadd.f32 %v3155_v43, %v3153_v11  ;;  %v5580_v51 = vld [vmem:[#allocation15 + $0x274] ss:$8 sps:$4 sm:$0xff]   ;;  %v5582_v12 = vld [vmem:[#allocation15 + $0x270] ss:$8 sps:$4 sm:$0xff]  }
 0x888   : > { %3142 = vst [vmem:[#allocation8] sm:$0xf] %v3141_v2  ;;  %3147 = vst [vmem:[#allocation8 + $0x4] sm:$0xf] %v3146_v44  ;;  %v3217_v2 = vmul.f32 %v3215_v4, %v3211_v47  ;;  %v4948_v52 = vld [vmem:[#allocation14 + $0x4] ss:$0 sm:$0xff]  ;;  %v3209_v44 = vadd.f32 %v3207_v5, %v3199_v32  ;;  %v3218_v49 = vadd.f32 %v3216_v38, %v3208_v45  ;;  %3358 = vmatprep.subr.bf16.mxu0 %v5580_v51 }
 0x889   : > { %3152 = vst [vmem:[#allocation8 + $0x8] sm:$0xf] %v3151_v27  ;;  %3157 = vst [vmem:[#allocation8 + $0xc] sm:$0xf] %v3156_v37  ;;  %3359 = vmatpush1.bf16.msra.mxu0 %v5582_v12  ;;  %v7176_v45 = vmov 0.0  }
 0x88a   : > { %v3219_v27 = vadd.f32 %v3217_v2, %v3209_v44  ;;  %v3228_v11 = vadd.f32 %v4948_v52, %v3218_v49  ;;  %v7178_v2 = vmov 0.0  }
 0x88c   : > { %v3229_v43 = vadd.f32 %v4948_v52, %v3219_v27  ;;  %v4949_v37 = vmul.f32 -1.442695, %v3228_v11 }
 0x88e   : > { %5583 = vpow2.f32 %v4949_v37  ;;  %v4950_v60 = vmul.f32 -1.442695, %v3229_v43 }
 0x890   : > { %5585 = vpow2.f32 %v4950_v60 }
 0x898   : > { %v5584_v39 = vpop.eup %5583 }
 0x899   : > { %v3236_v14 = vadd.f32 1.0, %v5584_v39 }
 0x89a   : > { %v5586_v30 = vpop.eup %5585 }
 0x89b   : > { %v3237_v29 = vadd.f32 1.0, %v5586_v30  ;;  %5587 = vrcp.f32 %v3236_v14 }
 0x89d   : > { %5589 = vrcp.f32 %v3237_v29 }
 0x8a5   : > { %v5588_v31 = vpop.eup %5587 }
 0x8a6   : > { %v3242_v17 = vmul.f32 %v5588_v31, %v3228_v11 }
 0x8a7   : > { %v5590_v26 = vpop.eup %5589 }
 0x8a8   : > { %v3243_v41 = vmul.f32 %v5590_v26, %v3229_v43  ;;  %3244 = vst [vmem:[#allocation4] sm:$0xff] %v3242_v17 }
 0x8aa   : > { %3245 = vst [vmem:[#allocation4 + $0x8] sm:$0xff] %v3243_v41  ;;  %v3246_v18 = vpack.c.bf16 %v3243_v41, %v3242_v17 }
 0x8ac   : > { %3377 = vmatmul.mubr.bf16.vlgmr.msra.gmra.mrb[8].mxu0 %v3246_v18 }
 0x97f   : > { %v3378_v8 = vpop.f32.mrb[8].mxu0 }
 0x980   : > { %v3395_v23 = vadd.f32 %v4967_v40, %v3378_v8  ;;  %v3380_v25 = vpop.f32.mrb[9].mxu0 }
 0x981   : > { %3427 = vst.msk [vmem:[#allocation6] sm:$0xff] %vm644_vm0, %v3380_v25  ;;  %v3382_v28 = vpop.f32.mrb[10].mxu0 }
 0x982   : > { %v3399_v50 = vmin.f32 %v3395_v23, 20.0  ;;  %v3396_v7 = vadd.f32 %v4967_v40, %v3382_v28  ;;  %v3384_v61 = vpop.f32.mrb[11].mxu0  ;;  %vm3397_vm2 = vcmp.gt.f32.partialorder %v3395_v23, 20.0 }
 0x983   : > { %3428 = vst.msk [vmem:[#allocation6 + $0x8] sm:$0xff] %vm644_vm0, %v3384_v61 }
 0x984   : > { %v3401_v62 = vmul.f32 1.442695, %v3399_v50  ;;  %v3400_v35 = vmin.f32 %v3396_v7, 20.0  ;;  %vm3398_vm4 = vcmp.gt.f32.partialorder %v3396_v7, 20.0 }
 0x986   : > { %5591 = vpow2.f32 %v3401_v62  ;;  %v3403_v4 = vmul.f32 1.442695, %v3400_v35 }
 0x988   : > { %5593 = vpow2.f32 %v3403_v4 }
 0x990   : > { %v5592_v21 = vpop.eup %5591 }
 0x991   : > { %v3405_v15 = vadd.f32 1.0, %v5592_v21  ;;  %v3408_v55 = vmul.f32 -0.5, %v5592_v21  ;;  %v3411_v13 = vand.u32 2147483647, %v5592_v21 }
 0x992   : > { %v5594_v57 = vpop.eup %5593 }
 0x993   : > { %5595 = vlog2.f32 %v3405_v15  ;;  %v3414_v42 = vadd.f32 1.0, %v5594_v57  ;;  %v3417_v36 = vmul.f32 -0.5, %v5594_v57  ;;  %v3409_v63 = vadd.f32 1.0, %v3408_v55 }
 0x994   : > { %v3420_v3 = vand.u32 2147483647, %v5594_v57  ;;  %vm3412_vm1 = vcmp.lt.f32.partialorder %v3411_v13, 0.0004427343 }
 0x995   : > { %5597 = vlog2.f32 %v3414_v42  ;;  %v3418_v34 = vadd.f32 1.0, %v3417_v36  ;;  %v3410_v10 = vmul.f32 %v5592_v21, %v3409_v63 }
 0x996   : > { %vm3421_vm3 = vcmp.lt.f32.partialorder %v3420_v3, 0.0004427343 }
 0x997   : > { %v3419_v38 = vmul.f32 %v5594_v57, %v3418_v34 }
 0x99d   : > { %v5596_v6 = vpop.eup %5595 }
 0x99e   : > { %v3407_v1 = vmul.f32 0.6931472, %v5596_v6 }
 0x99f   : > { %v5598_v33 = vpop.eup %5597 }
 0x9a0   : > { %v3413_v58 = vsel %vm3412_vm1, %v3410_v10, %v3407_v1  ;;  %v3416_v47 = vmul.f32 0.6931472, %v5598_v33 }
 0x9a1   : > { %v3423_v5 = vsel %vm3397_vm2, %v3395_v23, %v3413_v58 }
 0x9a2   : > { %3425 = vst [vmem:[#allocation5] sm:$0xff] %v3423_v5  ;;  %v3422_v9 = vsel %vm3421_vm3, %v3419_v38, %v3416_v47 }
 0x9a3   : > { %v3424_v32 = vsel %vm3398_vm4, %v3396_v7, %v3422_v9 }
 0x9a4   : > { %3426 = vst [vmem:[#allocation5 + $0x8] sm:$0xff] %v3424_v32 }
 0x9a5 LB: >> { %s7192_s29 = sshll.u32 %s6119_s15, 3  ;;  %s3439_s15 = sadd.s32 1, %s6119_s15   ;;  %s6119_s15 = sphi %s7180_s15, %s3439_s15   ;;  %v6115_v2 = vphi %v7178_v2, %v7542_v2   ;;  %v6111_v45 = vphi %v7176_v45, %v3816_v45  }
 0x9a6   : >> { %s3447_s14 = scalar_lea.vmem [#allocation6], %s7192_s29  ;;  %s3443_s9 = scalar_lea.vmem [#allocation5], %s7192_s29 }
 0x9a7   : >> { %v3448_v51 = vld [vmem:[%s3447_s14] sm:$0xff]  ;;  %s3445_s22 = scalar_lea.vmem [#allocation4], %s7192_s29  ;;  %s3856_s10 = scalar_lea.vmem [#allocation7], %s7192_s29 }
 0x9a8   : >> { %v3511_v52 = vrot.slane %v3448_v51, %v6504_v20  ;;  %v3463_v44 = vrot.slane %v3448_v51, %v6501_v19  ;;  %v3559_v49 = vrot.slane %v3448_v51, %v6507_v22  ;;  %v3607_v12 = vrot.slane %v3448_v51, %v6510_v24  ;;  %v7215_v18 = vld [vmem:[%s3445_s22] sm:$0xff]  ;;  %p3436_p11 = scmp.ge.s32.totalorder %s3439_s15, 2  }
 0x9a9   : >> { %v3655_v27 = vrot.slane %v3448_v51, %v6542_v48  ;;  %v3703_v11 = vrot.slane %v3448_v51, %v6553_v53  ;;  %v3751_v43 = vrot.slane %v3448_v51, %v6556_v54  ;;  %v3799_v37 = vrot.slane %v3448_v51, %v6563_v56  ;;  %4056 = vmatprep.mubr.bf16.mxu1 (%p3436_p11), %v6146_v0  ;;  %v3870_v0 = vld [vmem:[#allocation3 + $0x4] sm:$0xff] (%p3436_p11)  ;;  %s7319_s8 = smov (%p3436_p11), 0  }
 0x9aa   : >> { %3513 = vbcast.lane.b32.xlu1 %v3511_v52, 256  ;;  %3465 = vbcast.lane.b32.xlu0 %v3463_v44, 256 }
 0x9ab   : >> { %v7204_v60 = vld [vmem:[%s3443_s9] sm:$0xff] }
 0x9ac   : >> { %v3453_v39 = vrot.slane %v7204_v60, %v6501_v19  ;;  %v3501_v31 = vrot.slane %v7204_v60, %v6504_v20  ;;  %v3549_v23 = vrot.slane %v7204_v60, %v6507_v22  ;;  %v7221_v25 = vmul.f32 %v7215_v18, %v7204_v60 }
 0x9ad   : >> { %v3597_v57 = vrot.slane %v7204_v60, %v6510_v24 }
 0x9ae   : >> { %3517 = vbcast.lane.b32.xlu1 %v3511_v52, 264  ;;  %3469 = vbcast.lane.b32.xlu0 %v3463_v44, 264  ;;  %v3454_v14 = vmul.f32 %v3453_v39, %v7168_v46  ;;  %v3455_v30 = vmul.f32 %v3453_v39, %v7170_v16  ;;  %v3503_v26 = vmul.f32 %v3501_v31, %v7170_v16 }
 0x9af   : >> { %v3502_v41 = vmul.f32 %v3501_v31, %v7168_v46  ;;  %v3551_v28 = vmul.f32 %v3549_v23, %v7170_v16  ;;  %v3550_v50 = vmul.f32 %v3549_v23, %v7168_v46  ;;  %v3474_v7 = vrot.slane %v7221_v25, %v6501_v19 }
 0x9b0   : >> { %v3456_v29 = vmul.f32 1.442695, %v3454_v14  ;;  %v3458_v17 = vmul.f32 1.442695, %v3455_v30  ;;  %v3506_v40 = vmul.f32 1.442695, %v3503_v26  ;;  %v3599_v63 = vmul.f32 %v3597_v57, %v7170_v16 }
 0x9b1   : >> { %v3504_v8 = vmul.f32 1.442695, %v3502_v41  ;;  %v3554_v62 = vmul.f32 1.442695, %v3551_v28  ;;  %v3552_v15 = vmul.f32 1.442695, %v3550_v50  ;;  %v3598_v6 = vmul.f32 %v3597_v57, %v7168_v46 }
 0x9b2   : >> { %3565 = vbcast.lane.b32.xlu1 %v3559_v49, 264  ;;  %3561 = vbcast.lane.b32.xlu0 %v3559_v49, 256  ;;  %5599 = vpow2.f32 %v3456_v29  ;;  %v3522_v58 = vrot.slane %v7221_v25, %v6504_v20  ;;  %v3602_v38 = vmul.f32 1.442695, %v3599_v63  ;;  %v3570_v39 = vrot.slane %v7221_v25, %v6507_v22 }
 0x9b3   : >> { %5601 = vpow2.f32 %v3458_v17  ;;  %v3600_v32 = vmul.f32 1.442695, %v3598_v6 }
 0x9b4   : >> { %5603 = vpow2.f32 %v3506_v40  ;;  %v3693_v40 = vrot.slane %v7204_v60, %v6553_v53 }
 0x9b5   : >> { %5605 = vpow2.f32 %v3504_v8 }
 0x9b6   : >> { %3613 = vbcast.lane.b32.xlu1 %v3607_v12, 264  ;;  %3609 = vbcast.lane.b32.xlu0 %v3607_v12, 256  ;;  %5607 = vpow2.f32 %v3554_v62  ;;  %v3695_v50 = vmul.f32 %v3693_v40, %v7170_v16 }
 0x9b7   : >> { %5609 = vpow2.f32 %v3552_v15 }
 0x9b8   : >> { %5611 = vpow2.f32 %v3602_v38 }
 0x9b9   : >> { %5613 = vpow2.f32 %v3600_v32  ;;  %v3666_v32 = vrot.slane %v7221_v25, %v6542_v48 }
 0x9ba   : >> { %3661 = vbcast.lane.b32.xlu1 %v3655_v27, 264  ;;  %3657 = vbcast.lane.b32.xlu0 %v3655_v27, 256 }
 0x9bc   : >> { %v5600_v61 = vpop.eup %5599 }
 0x9bd   : >> { %v5602_v35 = vpop.eup %5601  ;;  %v3477_v55 = vmul.f32 %v6115_v2, %v5600_v61 }
 0x9be   : >> { %3709 = vbcast.lane.b32.xlu1 %v3703_v11, 264  ;;  %3705 = vbcast.lane.b32.xlu0 %v3703_v11, 256  ;;  %v3478_v36 = vmul.f32 %v6111_v45, %v5602_v35  ;;  %v5604_v3 = vpop.eup %5603  ;;  %v3645_v45 = vrot.slane %v7204_v60, %v6542_v48  ;;  %v3694_v35 = vmul.f32 %v3693_v40, %v7168_v46 }
 0x9bf   : >> { %v5606_v33 = vpop.eup %5605 }
 0x9c2   : >> { %3757 = vbcast.lane.b32.xlu1 %v3751_v43, 264  ;;  %3753 = vbcast.lane.b32.xlu0 %v3751_v43, 256 }
 0x9c6   : >> { %3487 = vbcast.lane.b32.xlu1 %v3463_v44, 280  ;;  %3483 = vbcast.lane.b32.xlu0 %v3463_v44, 272 }
 0x9ca   : >> { %3535 = vbcast.lane.b32.xlu1 %v3511_v52, 280  ;;  %3531 = vbcast.lane.b32.xlu0 %v3511_v52, 272 }
 0x9ce   : >> { %3583 = vbcast.lane.b32.xlu1 %v3559_v49, 280  ;;  %3579 = vbcast.lane.b32.xlu0 %v3559_v49, 272  ;;  %v3647_v49 = vmul.f32 %v3645_v45, %v7170_v16 }
 0x9d0   : >> { %v3650_v29 = vmul.f32 1.442695, %v3647_v49 }
 0x9d2   : >> { %3631 = vbcast.lane.b32.xlu1 %v3607_v12, 280  ;;  %3627 = vbcast.lane.b32.xlu0 %v3607_v12, 272  ;;  %5615 = vpow2.f32 %v3650_v29 }
 0x9d6   : >> { %3805 = vbcast.lane.b32.xlu1 %v3799_v37, 264  ;;  %3801 = vbcast.lane.b32.xlu0 %v3799_v37, 256 }
 0x9da   : >> { %3679 = vbcast.lane.b32.xlu1 %v3655_v27, 280  ;;  %3675 = vbcast.lane.b32.xlu0 %v3655_v27, 272 }
 0x9de   : >> { %3727 = vbcast.lane.b32.xlu1 %v3703_v11, 280  ;;  %3723 = vbcast.lane.b32.xlu0 %v3703_v11, 272 }
 0x9e2   : >> { %3775 = vbcast.lane.b32.xlu1 %v3751_v43, 280  ;;  %3771 = vbcast.lane.b32.xlu0 %v3751_v43, 272  ;;  %v3646_v43 = vmul.f32 %v3645_v45, %v7168_v46 }
 0x9e4   : >> { %v3648_v41 = vmul.f32 1.442695, %v3646_v43 }
 0x9e6   : >> { %3823 = vbcast.lane.b32.xlu1 %v3799_v37, 280  ;;  %3819 = vbcast.lane.b32.xlu0 %v3799_v37, 272  ;;  %v5608_v37 = vpop.eup %5607  ;;  %5617 = vpow2.f32 %v3648_v41  ;;  %v3714_v41 = vrot.slane %v7221_v25, %v6553_v53 }
 0x9e7   : >> { %v5610_v30 = vpop.eup %5609 }
 0xa1c   : >> { %v3514_v4 = vpop.permute.xlu1 %3513  ;;  %v3466_v21 = vpop.permute.xlu0 %3465 }
 0xa1d   : >> { %v3475_v42 = vmul.f32 %v3474_v7, %v3466_v21  ;;  %v3523_v44 = vmul.f32 %v3522_v58, %v3514_v4  ;;  %v5612_v4 = vpop.eup %5611  ;;  %v3618_v21 = vrot.slane %v7221_v25, %v6510_v24 }
 0xa1e   : >> { %v5614_v57 = vpop.eup %5613 }
 0xa1f   : >> { %v7233_v10 = vadd.f32 %v3477_v55, %v3475_v42  ;;  %v3698_v42 = vmul.f32 1.442695, %v3695_v50 }
 0xa20   : >> { %v3518_v13 = vpop.permute.xlu1 %3517  ;;  %v3470_v34 = vpop.permute.xlu0 %3469 }
 0xa21   : >> { %v3476_v1 = vmul.f32 %v3474_v7, %v3470_v34  ;;  %v3525_v51 = vmul.f32 %v5606_v33, %v7233_v10  ;;  %v3524_v52 = vmul.f32 %v3522_v58, %v3518_v13  ;;  %v3696_v13 = vmul.f32 1.442695, %v3694_v35 }
 0xa22   : >> { %5619 = vpow2.f32 %v3698_v42 }
 0xa23   : >> { %v7237_v47 = vadd.f32 %v3478_v36, %v3476_v1  ;;  %v7249_v14 = vadd.f32 %v3525_v51, %v3523_v44  ;;  %5621 = vpow2.f32 %v3696_v13  ;;  %v3789_v44 = vrot.slane %v7204_v60, %v6563_v56 }
 0xa24   : >> { %v3566_v5 = vpop.permute.xlu1 %3565  ;;  %v3562_v9 = vpop.permute.xlu0 %3561 }
 0xa25   : >> { %v3526_v2 = vmul.f32 %v5604_v3, %v7237_v47  ;;  %v3571_v8 = vmul.f32 %v3570_v39, %v3562_v9  ;;  %v3573_v23 = vmul.f32 %v5610_v30, %v7249_v14  ;;  %v3572_v28 = vmul.f32 %v3570_v39, %v3566_v5  ;;  %v5616_v9 = vpop.eup %5615 }
 0xa26   : >> { %v3741_v3 = vrot.slane %v7204_v60, %v6556_v54  ;;  %v5618_v51 = vpop.eup %5617  ;;  %v3791_v29 = vmul.f32 %v3789_v44, %v7170_v16 }
 0xa27   : >> { %v7244_v11 = vadd.f32 %v3526_v2, %v3524_v52  ;;  %v3575_v15 = vadd.f32 %v3573_v23, %v3571_v8 }
 0xa28   : >> { %v3614_v12 = vpop.permute.xlu1 %3613  ;;  %v3610_v27 = vpop.permute.xlu0 %3609  ;;  %v3743_v33 = vmul.f32 %v3741_v3, %v7170_v16  ;;  %v3742_v2 = vmul.f32 %v3741_v3, %v7168_v46  ;;  %v3794_v35 = vmul.f32 1.442695, %v3791_v29  ;;  %v3810_v29 = vrot.slane %v7221_v25, %v6563_v56 }
 0xa29   : >> { %v3574_v26 = vmul.f32 %v5608_v37, %v7244_v11  ;;  %v3619_v34 = vmul.f32 %v3618_v21, %v3610_v27  ;;  %v3621_v6 = vmul.f32 %v5614_v57, %v3575_v15  ;;  %v3620_v1 = vmul.f32 %v3618_v21, %v3614_v12 }
 0xa2a   : >> { %v3746_v52 = vmul.f32 1.442695, %v3743_v33  ;;  %v3744_v39 = vmul.f32 1.442695, %v3742_v2 }
 0xa2b   : >> { %v3576_v62 = vadd.f32 %v3574_v26, %v3572_v28  ;;  %v3623_v45 = vadd.f32 %v3621_v6, %v3619_v34  ;;  %v3790_v26 = vmul.f32 %v3789_v44, %v7168_v46 }
 0xa2c   : >> { %v3662_v31 = vpop.permute.xlu1 %3661  ;;  %v3658_v17 = vpop.permute.xlu0 %3657  ;;  %5623 = vpow2.f32 %v3746_v52 }
 0xa2d   : >> { %v3622_v63 = vmul.f32 %v5612_v4, %v3576_v62  ;;  %v3667_v43 = vmul.f32 %v3666_v32, %v3658_v17  ;;  %v3669_v37 = vmul.f32 %v5618_v51, %v3623_v45  ;;  %v3668_v30 = vmul.f32 %v3666_v32, %v3662_v31  ;;  %v5620_v28 = vpop.eup %5619 }
 0xa2e   : >> { %5625 = vpow2.f32 %v3744_v39  ;;  %v5622_v50 = vpop.eup %5621  ;;  %v3792_v17 = vmul.f32 1.442695, %v3790_v26 }
 0xa2f   : >> { %v3624_v5 = vadd.f32 %v3622_v63, %v3620_v1  ;;  %v3671_v60 = vadd.f32 %v3669_v37, %v3667_v43  ;;  %5627 = vpow2.f32 %v3794_v35 }
 0xa30   : >> { %v3710_v7 = vpop.permute.xlu1 %3709  ;;  %v3706_v61 = vpop.permute.xlu0 %3705  ;;  %5629 = vpow2.f32 %v3792_v17 }
 0xa31   : >> { %v3670_v27 = vmul.f32 %v5616_v9, %v3624_v5  ;;  %v3716_v4 = vmul.f32 %v3714_v41, %v3710_v7  ;;  %v3715_v13 = vmul.f32 %v3714_v41, %v3706_v61  ;;  %v3717_v3 = vmul.f32 %v5622_v50, %v3671_v60 }
 0xa33   : >> { %v3672_v23 = vadd.f32 %v3670_v27, %v3668_v30 }
 0xa34   : >> { %v7259_v55 = vpop.permute.xlu1 %3757  ;;  %v7261_v36 = vpop.permute.xlu0 %3753 }
 0xa35   : >> { %v3718_v63 = vmul.f32 %v5620_v28, %v3672_v23 }
 0xa36   : >> { %v5624_v52 = vpop.eup %5623 }
 0xa38   : >> { %v3488_v58 = vpop.permute.xlu1 %3487  ;;  %v3484_v38 = vpop.permute.xlu0 %3483 }
 0xa39   : >> { %v3490_v1 = vmul.f32 %v3488_v58, %v7237_v47  ;;  %v3489_v33 = vmul.f32 %v3484_v38, %v7233_v10 }
 0xa3b   : >> { %v3491_v61 = vadd.f32 %v3490_v1, %v3489_v33 }
 0xa3c   : >> { %v3536_v49 = vpop.permute.xlu1 %3535  ;;  %v3532_v12 = vpop.permute.xlu0 %3531 }
 0xa3d   : >> { %v3538_v31 = vmul.f32 %v3536_v49, %v7244_v11  ;;  %v3537_v21 = vmul.f32 %v3532_v12, %v7249_v14  ;;  %v3720_v11 = vadd.f32 %v3718_v63, %v3716_v4  ;;  %v3762_v14 = vrot.slane %v7221_v25, %v6556_v54  ;;  %v5626_v49 = vpop.eup %5625 }
 0xa3e   : >> { %v3492_v37 = vrot.slane %v3491_v61, 4  ;;  %v5628_v50 = vpop.eup %5627 }
 0xa3f   : >> { %v3539_v2 = vadd.f32 %v3538_v31, %v3537_v21  ;;  %v3766_v38 = vmul.f32 %v5624_v52, %v3720_v11  ;;  %v3763_v43 = vmul.f32 %v3762_v14, %v7261_v36  ;;  %v5630_v36 = vpop.eup %5629 }
 0xa40   : >> { %v3584_v40 = vpop.permute.xlu1 %3583  ;;  %v3580_v8 = vpop.permute.xlu0 %3579 }
 0xa41   : >> { %v3586_v34 = vmul.f32 %v3584_v40, %v3576_v62  ;;  %v3585_v6 = vmul.f32 %v3580_v8, %v3575_v15  ;;  %v3719_v15 = vadd.f32 %v3717_v3, %v3715_v13  ;;  %v3540_v47 = vrot.slane %v3539_v2, 4 }
 0xa43   : >> { %v3587_v44 = vadd.f32 %v3586_v34, %v3585_v6  ;;  %v3765_v30 = vmul.f32 %v5626_v49, %v3719_v15  ;;  %v3541_v41 = vadd.f32 %v3540_v47, %v3539_v2 }
 0xa44   : >> { %v3632_v57 = vpop.permute.xlu1 %3631  ;;  %v3628_v42 = vpop.permute.xlu0 %3627 }
 0xa45   : >> { %v3634_v9 = vmul.f32 %v3632_v57, %v3624_v5  ;;  %v3633_v32 = vmul.f32 %v3628_v42, %v3623_v45  ;;  %v3764_v5 = vmul.f32 %v3762_v14, %v7259_v55  ;;  %v3588_v45 = vrot.slane %v3587_v44, 4 }
 0xa46   : >> { %v3767_v31 = vadd.f32 %v3765_v30, %v3763_v43  ;;  %v3542_v63 = vrot.slane %v3541_v41, 2 }
 0xa47   : >> { %v3635_v62 = vadd.f32 %v3634_v9, %v3633_v32  ;;  %v3768_v28 = vadd.f32 %v3766_v38, %v3764_v5  ;;  %v3589_v35 = vadd.f32 %v3588_v45, %v3587_v44 }
 0xa48   : >> { %v3806_v7 = vpop.permute.xlu1 %3805  ;;  %v3802_v51 = vpop.permute.xlu0 %3801 }
 0xa49   : >> { %v3636_v39 = vrot.slane %v3635_v62, 4  ;;  %v3812_v21 = vmul.f32 %v3810_v29, %v3806_v7  ;;  %v3811_v13 = vmul.f32 %v3810_v29, %v3802_v51  ;;  %v3814_v6 = vmul.f32 %v5628_v50, %v3768_v28 }
 0xa4a   : >> { %v3590_v3 = vrot.slane %v3589_v35, 2 }
 0xa4b   : >> { %v3816_v45 = vadd.f32 %v3814_v6, %v3812_v21  }
 0xa4c   : >> { %v3680_v58 = vpop.permute.xlu1 %3679  ;;  %v3676_v10 = vpop.permute.xlu0 %3675  ;;  %v3591_v49 = vadd.f32 %v3590_v3, %v3589_v35  ;;  %v3854_v3 = vmul.f32 %v7172_v59, %v7215_v18  ;;  %v5631_v18 = vld [vmem:[#allocation15 + $0x284] ss:$8 sps:$4 sm:$0xff] (%p3436_p11)  }
 0xa4d   : >> { %v3682_v12 = vmul.f32 %v3680_v58, %v3672_v23  ;;  %v3681_v27 = vmul.f32 %v3676_v10, %v3671_v60  ;;  %v3493_v23 = vadd.f32 %v3492_v37, %v3491_v61  ;;  %v3637_v60 = vadd.f32 %v3636_v39, %v3635_v62  ;;  %4024 = vmatprep.subr.bf16.mxu1 (%p3436_p11), %v5631_v18 }
 0xa4e   : >> { %v3543_v61 = vadd.f32 %v3542_v63, %v3541_v41  ;;  %v3592_v30 = vrot.slane %v3591_v49, 1 }
 0xa4f   : >> { %v3683_v26 = vadd.f32 %v3682_v12, %v3681_v27  ;;  %v3494_v32 = vrot.slane %v3493_v23, 2  ;;  %v3638_v2 = vrot.slane %v3637_v60, 2 }
 0xa50   : >> { %v3728_v40 = vpop.permute.xlu1 %3727  ;;  %v3724_v8 = vpop.permute.xlu0 %3723  ;;  %v3544_v43 = vrot.slane %v3543_v61, 1 }
 0xa51   : >> { %v3684_v17 = vrot.slane %v3683_v26, 4  ;;  %v3730_v55 = vmul.f32 %v3728_v40, %v3720_v11  ;;  %v3729_v4 = vmul.f32 %v3724_v8, %v3719_v15  ;;  %v3813_v11 = vmul.f32 %v5630_v36, %v3767_v31 }
 0xa52   : >> { %v3495_v10 = vadd.f32 %v3494_v32, %v3493_v23  ;;  %v3639_v38 = vadd.f32 %v3638_v2, %v3637_v60  ;;  %v3545_v50 = vadd.f32 %v3544_v43, %v3543_v61  ;;  %v5639_v61 = vld [vmem:[#allocation15 + $0x2a0] ss:$8 sps:$4 sm:$0xff] (%p3436_p11)  }
 0xa53   : >> { %v3685_v57 = vadd.f32 %v3684_v17, %v3683_v26  ;;  %v3731_v42 = vadd.f32 %v3730_v55, %v3729_v4  ;;  %v3815_v15 = vadd.f32 %v3813_v11, %v3811_v13   ;;  %v3593_v55 = vadd.f32 %v3592_v30, %v3591_v49  ;;  %v5633_v11 = vld [vmem:[#allocation15 + $0x280] ss:$8 sps:$4 sm:$0xff] (%p3436_p11)   ;;  %v5643_v49 = vld [vmem:[#allocation15 + $0x2c4] ss:$8 sps:$4 sm:$0xff] (%p3436_p11)  }
 0xa54   : >> { %v3776_v25 = vpop.permute.xlu1 %3775  ;;  %v3772_v34 = vpop.permute.xlu0 %3771  ;;  %v3496_v26 = vrot.slane %v3495_v10, 1  ;;  %v3640_v40 = vrot.slane %v3639_v38, 1  ;;  %4025 = vmatpush1.bf16.msra.mxu1 (%p3436_p11), %v5633_v11  ;;  %v7307_v11 = vld [vmem:[#allocation18 + $0x50] sm:$0xff] (%p3436_p11) }
 0xa55   : >> { %v3732_v1 = vrot.slane %v3731_v42, 4  ;;  %v3778_v33 = vmul.f32 %v3776_v25, %v3768_v28  ;;  %v3777_v9 = vmul.f32 %v3772_v34, %v3767_v31  ;;  %v3686_v52 = vrot.slane %v3685_v57, 2 }
 0xa56   : >> { %v3497_v23 = vadd.f32 %v3496_v26, %v3495_v10  ;;  %v3641_v60 = vadd.f32 %v3640_v40, %v3639_v38  ;;  %v3880_v10 = vld [vmem:[#allocation3 + $0x5] sm:$0xff] (%p3436_p11)  ;;  %v3881_v38 = vld [vmem:[#allocation3 + $0xd] sm:$0xff] (%p3436_p11) }
 0xa57   : >> { %v3733_v14 = vadd.f32 %v3732_v1, %v3731_v42  ;;  %v3779_v44 = vadd.f32 %v3778_v33, %v3777_v9  ;;  %v3687_v12 = vadd.f32 %v3686_v52, %v3685_v57  ;;  %v5634_v52 = vld [vmem:[#allocation15 + $0x294] ss:$8 sps:$4 sm:$0xff] (%p3436_p11)   ;;  %v5645_v26 = vld [vmem:[#allocation15 + $0x2c0] ss:$8 sps:$4 sm:$0xff] (%p3436_p11)  }
 0xa58   : >> { %v3824_v7 = vpop.permute.xlu1 %3823  ;;  %v3820_v62 = vpop.permute.xlu0 %3819  ;;  %v3835_v21 = vsel %vm1050_vm5, %v3497_v23, %v3545_v50  ;;  %4026 = vmatprep.subr.bf16.mxu1 (%p3436_p11), %v5634_v52  ;;  %v5646_v50 = vld [vmem:[#allocation15 + $0x2d4] ss:$8 sps:$4 sm:$0xff] (%p3436_p11)  }
 0xa59   : >> { %v3734_v51 = vrot.slane %v3733_v14, 2  ;;  %v3780_v47 = vrot.slane %v3779_v44, 4  ;;  %v3826_v58 = vmul.f32 %v3824_v7, %v3816_v45  ;;  %v3825_v5 = vmul.f32 %v3820_v62, %v3815_v15  ;;  %v5640_v7 = vld [vmem:[#allocation15 + $0x2b4] ss:$8 sps:$4 sm:$0xff] (%p3436_p11)   ;;  %v5642_v62 = vld [vmem:[#allocation15 + $0x2b0] ss:$8 sps:$4 sm:$0xff] (%p3436_p11)  }
 0xa5a   : >> { %v3688_v8 = vrot.slane %v3687_v12, 1  ;;  %v3837_v63 = vsel %vm1052_vm6, %v3835_v21, %v3593_v55  ;;  %v4970_v55 = vld [vmem:[#allocation14 + $0x5] ss:$0 sm:$0xff] (%p3436_p11) }
 0xa5b   : >> { %v3781_v27 = vadd.f32 %v3780_v47, %v3779_v44  ;;  %v3735_v37 = vadd.f32 %v3734_v51, %v3733_v14  ;;  %v3827_v39 = vadd.f32 %v3826_v58, %v3825_v5  ;;  %v3839_v25 = vsel %vm1054_vm7, %v3837_v63, %v3641_v60  ;;  %v5636_v14 = vld [vmem:[#allocation15 + $0x290] ss:$8 sps:$4 sm:$0xff] (%p3436_p11)   ;;  %v5637_v44 = vld [vmem:[#allocation15 + $0x2a4] ss:$8 sps:$4 sm:$0xff] (%p3436_p11)  }
 0xa5c   : >> { %v3689_v36 = vadd.f32 %v3688_v8, %v3687_v12  ;;  %4027 = vmatpush1.bf16.msra.mxu1 (%p3436_p11), %v5636_v14  ;;  %v3860_v51 = vld [vmem:[#allocation3 + $0x3] sm:$0xff] (%p3436_p11)  ;;  %v3861_v47 = vld [vmem:[#allocation3 + $0xb] sm:$0xff] (%p3436_p11) }
 0xa5d   : >> { %v3782_v29 = vrot.slane %v3781_v27, 2  ;;  %v3828_v41 = vrot.slane %v3827_v39, 4  ;;  %v3736_v35 = vrot.slane %v3735_v37, 1  ;;  %4028 = vmatprep.subr.bf16.mxu1 (%p3436_p11), %v5637_v44  ;;  %v3871_v58 = vld [vmem:[#allocation3 + $0xc] sm:$0xff] (%p3436_p11)  ;;  %v7309_v52 = vld [vmem:[#allocation18 + $0x58] sm:$0xff] (%p3436_p11) }
 0xa5e   : >> { %v3841_v6 = vsel %vm1056_vm8, %v3839_v25, %v3689_v36  ;;  %v5654_v25 = vld [vmem:[#allocation15 + $0x2f0] ss:$8 sps:$4 sm:$0xff] (%p3436_p11)   ;;  %v7311_v14 = vld [vmem:[#allocation20 + $0x5] ss:$0 sm:$0xff] (%p3436_p11)  ;;  %v4989_v44 = vld [vmem:[#allocation17 + $0x5] ss:$0 sm:$0xff] (%p3436_p11) }
 0xa5f   : >> { %v3783_v28 = vadd.f32 %v3782_v29, %v3781_v27  ;;  %v3829_v17 = vadd.f32 %v3828_v41, %v3827_v39  ;;  %v3737_v57 = vadd.f32 %v3736_v35, %v3735_v37  ;;  %v3890_v37 = vld [vmem:[#allocation3 + $0x6] sm:$0xff] (%p3436_p11)  ;;  %v3891_v39 = vld [vmem:[#allocation3 + $0xe] sm:$0xff] (%p3436_p11) }
 0xa60   : > { %4029 = vmatpush1.bf16.msra.mxu1 (%p3436_p11), %v5639_v61 }
 0xa61   : >> { %v3784_v4 = vrot.slane %v3783_v28, 1  ;;  %v3830_v31 = vrot.slane %v3829_v17, 2  ;;  %v3843_v1 = vsel %vm1058_vm9, %v3841_v6, %v3737_v57  ;;  %4030 = vmatprep.subr.bf16.mxu1 (%p3436_p11), %v5640_v7  ;;  %v5651_v57 = vld [vmem:[#allocation15 + $0x2e0] ss:$8 sps:$4 sm:$0xff] (%p3436_p11)  }
 0xa63   : >> { %v3831_v42 = vadd.f32 %v3830_v31, %v3829_v17  ;;  %v3785_v13 = vadd.f32 %v3784_v4, %v3783_v28  ;;  %v5648_v4 = vld [vmem:[#allocation15 + $0x2d0] ss:$8 sps:$4 sm:$0xff] (%p3436_p11)   ;;  %v5649_v31 = vld [vmem:[#allocation15 + $0x2e4] ss:$8 sps:$4 sm:$0xff] (%p3436_p11)  }
 0xa64   : > { %4031 = vmatpush1.bf16.msra.mxu1 (%p3436_p11), %v5642_v62 }
 0xa65   : >> { %v3832_v34 = vrot.slane %v3831_v42, 1  ;;  %v3845_v9 = vsel %vm1060_vm10, %v3843_v1, %v3785_v13  ;;  %4032 = vmatprep.subr.bf16.mxu1 (%p3436_p11), %v5643_v49  ;;  %v5652_v13 = vld [vmem:[#allocation15 + $0x2f4] ss:$8 sps:$4 sm:$0xff] (%p3436_p11)  }
 0xa66   : > { %3438 = sbr.rel (!%p3436_p11) target bundleno = 2469 (0x9a5), region = 267 }
 0xa67   : >> { %v3833_v33 = vadd.f32 %v3832_v34, %v3831_v42 }
 0xa68   : > { %4033 = vmatpush1.bf16.msra.mxu1 (%p3436_p11), %v5645_v26 }
 0xa69   : >> { %v3847_v32 = vsel %vm1062_vm11, %v3845_v9, %v3833_v33  ;;  %4034 = vmatprep.subr.bf16.mxu1 (%p3436_p11), %v5646_v50 }
 0xa6a   : >> { %v3855_v2 = vadd.f32 %v3854_v3, %v3847_v32 }
 0xa6c   : >> { %3857 = vst [vmem:[%s3856_s10] sm:$0xff] %v3855_v2  ;;  %v7542_v2 = vmov %v3815_v15  ;;  %v3859_v15 = vld [vmem:[#allocation12 + $0x14] sm:$0xf] (%p3436_p11)  ;;  %4035 = vmatpush1.bf16.msra.mxu1 (%p3436_p11), %v5648_v4 }
 0xa6d   : > { %v3865_v46 = vrot.slane %v3859_v15, %v6510_v24  ;;  %v3875_v16 = vrot.slane %v3859_v15, %v6507_v22  ;;  %v3885_v59 = vrot.slane %v3859_v15, %v6504_v20  ;;  %v3895_v45 = vrot.slane %v3859_v15, %v6501_v19  ;;  %4036 = vmatprep.subr.bf16.mxu1 %v5649_v31 }
 0xa6f   : > { %v3866_v5 = vmul.f32 %v3865_v46, %v3860_v51  ;;  %v3867_v12 = vmul.f32 %v3865_v46, %v3861_v47  ;;  %v3876_v27 = vmul.f32 %v3875_v16, %v3870_v0  ;;  %v3877_v43 = vmul.f32 %v3875_v16, %v3871_v58 }
 0xa70   : > { %v3886_v30 = vmul.f32 %v3885_v59, %v3880_v10  ;;  %v3887_v29 = vmul.f32 %v3885_v59, %v3881_v38  ;;  %v3896_v8 = vmul.f32 %v3895_v45, %v3890_v37  ;;  %v3897_v28 = vmul.f32 %v3895_v45, %v3891_v39  ;;  %4037 = vmatpush1.bf16.msra.mxu1 %v5651_v57 }
 0xa71   : > { %v3878_v40 = vadd.f32 %v3876_v27, %v3866_v5  ;;  %v3879_v41 = vadd.f32 %v3877_v43, %v3867_v12  ;;  %4038 = vmatprep.subr.bf16.mxu1 %v5652_v13 }
 0xa73   : > { %v3888_v35 = vadd.f32 %v3886_v30, %v3878_v40  ;;  %v3889_v17 = vadd.f32 %v3887_v29, %v3879_v41 }
 0xa74   : > { %4039 = vmatpush1.bf16.msra.mxu1 %v5654_v25 }
 0xa75   : > { %v3898_v23 = vadd.f32 %v3896_v8, %v3888_v35  ;;  %v3899_v60 = vadd.f32 %v3897_v28, %v3889_v17  ;;  %v7315_v17 = vmov 0.0  }
 0xa77   : > { %v3908_v36 = vadd.f32 %v4970_v55, %v3898_v23  ;;  %v3909_v21 = vadd.f32 %v4970_v55, %v3899_v60  ;;  %v7317_v55 = vmov 0.0  }
 0xa79   : > { %v4971_v42 = vmul.f32 -1.442695, %v3908_v36  ;;  %v4972_v63 = vmul.f32 -1.442695, %v3909_v21 }
 0xa7b   : > { %5655 = vpow2.f32 %v4971_v42 }
 0xa7c   : > { %5657 = vpow2.f32 %v4972_v63 }
 0xa85   : > { %v5656_v34 = vpop.eup %5655 }
 0xa86   : > { %v5658_v6 = vpop.eup %5657  ;;  %v3916_v3 = vadd.f32 1.0, %v5656_v34 }
 0xa87   : > { %v3917_v1 = vadd.f32 1.0, %v5658_v6 }
 0xa88   : > { %5659 = vrcp.f32 %v3916_v3 }
 0xa89   : > { %5661 = vrcp.f32 %v3917_v1 }
 0xa92   : > { %v5660_v33 = vpop.eup %5659 }
 0xa93   : > { %v5662_v9 = vpop.eup %5661  ;;  %v3922_v32 = vmul.f32 %v5660_v33, %v3908_v36 }
 0xa94   : > { %v3923_v2 = vmul.f32 %v5662_v9, %v3909_v21 }
 0xa95   : > { %3924 = vst [vmem:[#allocation4] sm:$0xff] %v3922_v32 }
 0xa96   : > { %3925 = vst [vmem:[#allocation4 + $0x8] sm:$0xff] %v3923_v2  ;;  %v3926_v18 = vpack.c.bf16 %v3923_v2, %v3922_v32 }
 0xa98   : > { %4057 = vmatmul.mubr.bf16.vlgmr.msra.gmra.mrb[8].mxu1 %v3926_v18 }
 0xb6b   : > { %v4058_v61 = vpop.f32.mrb[8].mxu1 }
 0xb6c   : > { %v4075_v7 = vadd.f32 %v4989_v44, %v4058_v61  ;;  %v4060_v62 = vpop.f32.mrb[9].mxu1 }
 0xb6d   : > { %4107 = vst.msk [vmem:[#allocation6] sm:$0xff] %vm644_vm0, %v4060_v62  ;;  %v4062_v49 = vpop.f32.mrb[10].mxu1 }
 0xb6e   : > { %v4079_v15 = vmin.f32 %v4075_v7, 20.0  ;;  %v4076_v51 = vadd.f32 %v4989_v44, %v4062_v49  ;;  %v4064_v47 = vpop.f32.mrb[11].mxu1  ;;  %vm4077_vm12 = vcmp.gt.f32.partialorder %v4075_v7, 20.0 }
 0xb6f   : > { %4108 = vst.msk [vmem:[#allocation6 + $0x8] sm:$0xff] %vm644_vm0, %v4064_v47 }
 0xb70   : > { %v4081_v46 = vmul.f32 1.442695, %v4079_v15  ;;  %v4080_v0 = vmin.f32 %v4076_v51, 20.0  ;;  %vm4078_vm14 = vcmp.gt.f32.partialorder %v4076_v51, 20.0 }
 0xb72   : > { %5663 = vpow2.f32 %v4081_v46  ;;  %v4083_v16 = vmul.f32 1.442695, %v4080_v0 }
 0xb74   : > { %5665 = vpow2.f32 %v4083_v16 }
 0xb7c   : > { %v5664_v59 = vpop.eup %5663 }
 0xb7d   : > { %v4085_v45 = vadd.f32 1.0, %v5664_v59  ;;  %v4088_v38 = vmul.f32 -0.5, %v5664_v59  ;;  %v4091_v27 = vand.u32 2147483647, %v5664_v59 }
 0xb7e   : > { %v5666_v58 = vpop.eup %5665 }
 0xb7f   : > { %5667 = vlog2.f32 %v4085_v45  ;;  %v4094_v10 = vadd.f32 1.0, %v5666_v58  ;;  %v4097_v5 = vmul.f32 -0.5, %v5666_v58  ;;  %v4089_v12 = vadd.f32 1.0, %v4088_v38 }
 0xb80   : > { %v4100_v39 = vand.u32 2147483647, %v5666_v58  ;;  %vm4092_vm0 = vcmp.lt.f32.partialorder %v4091_v27, 0.0004427343 }
 0xb81   : > { %5669 = vlog2.f32 %v4094_v10  ;;  %v4098_v43 = vadd.f32 1.0, %v4097_v5  ;;  %v4090_v29 = vmul.f32 %v5664_v59, %v4089_v12 }
 0xb82   : > { %vm4101_vm13 = vcmp.lt.f32.partialorder %v4100_v39, 0.0004427343 }
 0xb83   : > { %v4099_v8 = vmul.f32 %v5666_v58, %v4098_v43 }
 0xb89   : > { %v5668_v37 = vpop.eup %5667 }
 0xb8a   : > { %v4087_v30 = vmul.f32 0.6931472, %v5668_v37 }
 0xb8b   : > { %v5670_v26 = vpop.eup %5669 }
 0xb8c   : > { %v4093_v40 = vsel %vm4092_vm0, %v4090_v29, %v4087_v30  ;;  %v4096_v41 = vmul.f32 0.6931472, %v5670_v26 }
 0xb8d   : > { %v4103_v28 = vsel %vm4077_vm12, %v4075_v7, %v4093_v40 }
 0xb8e   : > { %4105 = vst [vmem:[#allocation5] sm:$0xff] %v4103_v28  ;;  %v4102_v50 = vsel %vm4101_vm13, %v4099_v8, %v4096_v41 }
 0xb8f   : > { %v4104_v35 = vsel %vm4078_vm14, %v4076_v51, %v4102_v50 }
 0xb90   : > { %4106 = vst [vmem:[#allocation5 + $0x8] sm:$0xff] %v4104_v35 }
 0xb91 LB: >> { %s4122_s21 = ssub.s32 1, %s6131_s8  ;;  %s4119_s8 = sadd.s32 1, %s6131_s8   ;;  %s6131_s8 = sphi %s7319_s8, %s4119_s8   ;;  %v6127_v55 = vphi %v7317_v55, %v7428_v55   ;;  %v6123_v17 = vphi %v7315_v17, %v7426_v17  }
 0xb92   : >> { %s7331_s28 = sshll.u32 %s4122_s21, 3  ;;  %p4116_p12 = scmp.ge.s32.totalorder %s4119_s8, 2  }
 0xb93   : >> { %s4128_s11 = scalar_lea.vmem [#allocation6], %s7331_s28  ;;  %s4124_s12 = scalar_lea.vmem [#allocation5], %s7331_s28 }
 0xb94   : >> { %v4129_v4 = vld [vmem:[%s4128_s11] sm:$0xff]  ;;  %s4126_s15 = scalar_lea.vmem [#allocation4], %s7331_s28  ;;  %s4537_s29 = scalar_lea.vmem [#allocation7], %s7331_s28 }
 0xb95   : >> { %v4192_v23 = vrot.slane %v4129_v4, %v6556_v54  ;;  %v4144_v60 = vrot.slane %v4129_v4, %v6563_v56  ;;  %v4240_v31 = vrot.slane %v4129_v4, %v6553_v53  ;;  %v4288_v36 = vrot.slane %v4129_v4, %v6542_v48  ;;  %v7359_v7 = vld [vmem:[%s4126_s15] sm:$0xff]  ;;  %s4595_s14 = sshll.u32 (%p4116_p12), %s6520_s23, 4  ;;  %s4582_s8 = scalar_lea.sflag (%p4116_p12), [#allocation11], %s6467_s18  ;;  %s7467_s14 = int_to_ptr.vmem [resolvable:$true] %s4595_s14 }
 0xb96   : >> { %v4336_v21 = vrot.slane %v4129_v4, %v6510_v24  ;;  %v4384_v57 = vrot.slane %v4129_v4, %v6507_v22  ;;  %v4432_v42 = vrot.slane %v4129_v4, %v6504_v20  ;;  %v4480_v63 = vrot.slane %v4129_v4, %v6501_v19  ;;  %s5909_s21 = scalar_lea.vmem (%p4116_p12), %s7467_s14, 128  ;;  %p7543_p8 = scmp.ne.s32.totalorder (%p4116_p12), %s7530_s16, 0 }
 0xb97   : >> { %4194 = vbcast.lane.b32.xlu1 %v4192_v23, 256  ;;  %4146 = vbcast.lane.b32.xlu0 %v4144_v60, 256  ;;  %v7343_v13 = vld [vmem:[%s4124_s12] sm:$0xff]  ;;  %p5910_p13 = scmp.ne.s32.totalorder (%p4116_p12), %s7467_s14, %s5909_s21 }
 0xb98   : >> { %v4134_v25 = vrot.slane %v7343_v13, %v6563_v56  ;;  %v4182_v6 = vrot.slane %v7343_v13, %v6556_v54  ;;  %v4230_v9 = vrot.slane %v7343_v13, %v6553_v53  ;;  %v4278_v61 = vrot.slane %v7343_v13, %v6542_v48 }
 0xb99   : >> { %v4326_v47 = vrot.slane %v7343_v13, %v6510_v24  ;;  %v7367_v46 = vmul.f32 %v7359_v7, %v7343_v13  ;;  %v4374_v10 = vrot.slane %v7343_v13, %v6507_v22  ;;  %v4422_v26 = vrot.slane %v7343_v13, %v6504_v20  ;;  %p5911_p7 = pnand (%p4116_p12), %p5910_p13, %p7543_p8 }
 0xb9a   : >> { %v4135_v34 = vmul.f32 %v4134_v25, %v7307_v11  ;;  %v4136_v1 = vmul.f32 %v4134_v25, %v7309_v52  ;;  %v4183_v33 = vmul.f32 %v4182_v6, %v7307_v11  ;;  %v4184_v2 = vmul.f32 %v4182_v6, %v7309_v52 }
 0xb9b   : >> { %4198 = vbcast.lane.b32.xlu1 %v4192_v23, 264  ;;  %4150 = vbcast.lane.b32.xlu0 %v4144_v60, 264  ;;  %v4231_v44 = vmul.f32 %v4230_v9, %v7307_v11  ;;  %v4232_v49 = vmul.f32 %v4230_v9, %v7309_v52  ;;  %v4279_v51 = vmul.f32 %v4278_v61, %v7307_v11  ;;  %p5912_p9 = pneg (%p4116_p12), %p5911_p7 }
 0xb9c   : >> { %v4137_v3 = vmul.f32 1.442695, %v4135_v34  ;;  %v4139_v32 = vmul.f32 1.442695, %v4136_v1  ;;  %v4185_v18 = vmul.f32 1.442695, %v4183_v33  ;;  %v4280_v16 = vmul.f32 %v4278_v61, %v7309_v52 }
 0xb9d   : >> { %v4187_v62 = vmul.f32 1.442695, %v4184_v2  ;;  %v4233_v15 = vmul.f32 1.442695, %v4231_v44  ;;  %v4235_v0 = vmul.f32 1.442695, %v4232_v49  ;;  %v4327_v58 = vmul.f32 %v4326_v47, %v7307_v11 }
 0xb9e   : >> { %5671 = vpow2.f32 %v4137_v3  ;;  %v4281_v45 = vmul.f32 1.442695, %v4279_v51  ;;  %v4155_v38 = vrot.slane %v7367_v46, %v6563_v56  ;;  %v4328_v5 = vmul.f32 %v4326_v47, %v7309_v52 }
 0xb9f   : >> { %4246 = vbcast.lane.b32.xlu1 %v4240_v31, 264  ;;  %4242 = vbcast.lane.b32.xlu0 %v4240_v31, 256  ;;  %5673 = vpow2.f32 %v4139_v32  ;;  %v4283_v27 = vmul.f32 1.442695, %v4280_v16  ;;  %v4329_v30 = vmul.f32 1.442695, %v4327_v58  ;;  %v4375_v29 = vmul.f32 %v4374_v10, %v7307_v11 }
 0xba0   : >> { %5675 = vpow2.f32 %v4185_v18  ;;  %v4203_v40 = vrot.slane %v7367_v46, %v6556_v54  ;;  %v4331_v28 = vmul.f32 1.442695, %v4328_v5  ;;  %v4424_v9 = vmul.f32 %v4422_v26, %v7309_v52 }
 0xba1   : >> { %5677 = vpow2.f32 %v4187_v62  ;;  %v4470_v2 = vrot.slane %v7343_v13, %v6501_v19  ;;  %v4347_v13 = vrot.slane %v7367_v46, %v6510_v24 }
 0xba2   : >> { %5679 = vpow2.f32 %v4233_v15 }
 0xba3   : >> { %4294 = vbcast.lane.b32.xlu1 %v4288_v36, 264  ;;  %4290 = vbcast.lane.b32.xlu0 %v4288_v36, 256  ;;  %5681 = vpow2.f32 %v4235_v0  ;;  %v4472_v0 = vmul.f32 %v4470_v2, %v7309_v52  ;;  %v4471_v58 = vmul.f32 %v4470_v2, %v7307_v11 }
 0xba4   : >> { %5683 = vpow2.f32 %v4281_v45  ;;  %v4427_v45 = vmul.f32 1.442695, %v4424_v9 }
 0xba5   : >> { %5685 = vpow2.f32 %v4283_v27 }
 0xba6   : >> { %5687 = vpow2.f32 %v4329_v30  ;;  %v4475_v30 = vmul.f32 1.442695, %v4472_v0 }
 0xba7   : >> { %4342 = vbcast.lane.b32.xlu1 %v4336_v21, 264  ;;  %4338 = vbcast.lane.b32.xlu0 %v4336_v21, 256  ;;  %5689 = vpow2.f32 %v4331_v28 }
 0xba8   : >> { %v5672_v59 = vpop.eup %5671 }
 0xba9   : >> { %v4158_v12 = vmul.f32 %v6127_v55, %v5672_v59  ;;  %v5674_v43 = vpop.eup %5673  ;;  %v4376_v55 = vmul.f32 %v4374_v10, %v7309_v52 }
 0xbaa   : >> { %v5676_v8 = vpop.eup %5675  ;;  %v4159_v35 = vmul.f32 %v6123_v17, %v5674_v43  ;;  %v4299_v17 = vrot.slane %v7367_v46, %v6542_v48 }
 0xbab   : >> { %4390 = vbcast.lane.b32.xlu1 %v4384_v57, 264  ;;  %4386 = vbcast.lane.b32.xlu0 %v4384_v57, 256  ;;  %v4379_v3 = vmul.f32 1.442695, %v4376_v55 }
 0xbaf   : >> { %4438 = vbcast.lane.b32.xlu1 %v4432_v42, 264  ;;  %4434 = vbcast.lane.b32.xlu0 %v4432_v42, 256 }
 0xbb3   : >> { %4486 = vbcast.lane.b32.xlu1 %v4480_v63, 264  ;;  %4482 = vbcast.lane.b32.xlu0 %v4480_v63, 256 }
 0xbb7   : >> { %4456 = vbcast.lane.b32.xlu1 %v4432_v42, 280  ;;  %4452 = vbcast.lane.b32.xlu0 %v4432_v42, 272 }
 0xbbb   : >> { %4504 = vbcast.lane.b32.xlu1 %v4480_v63, 280  ;;  %4500 = vbcast.lane.b32.xlu0 %v4480_v63, 272  ;;  %v4251_v63 = vrot.slane %v7367_v46, %v6553_v53 }
 0xbbf   : >> { %4408 = vbcast.lane.b32.xlu1 %v4384_v57, 280  ;;  %4404 = vbcast.lane.b32.xlu0 %v4384_v57, 272 }
 0xbc3   : >> { %4360 = vbcast.lane.b32.xlu1 %v4336_v21, 280  ;;  %4356 = vbcast.lane.b32.xlu0 %v4336_v21, 272 }
 0xbc7   : >> { %4312 = vbcast.lane.b32.xlu1 %v4288_v36, 280  ;;  %4308 = vbcast.lane.b32.xlu0 %v4288_v36, 272  ;;  %v5678_v36 = vpop.eup %5677 }
 0xbc8   : >> { %v5680_v25 = vpop.eup %5679 }
 0xbc9   : >> { %v5682_v18 = vpop.eup %5681 }
 0xbca   : >> { %v5684_v15 = vpop.eup %5683 }
 0xbcb   : >> { %4264 = vbcast.lane.b32.xlu1 %v4240_v31, 280  ;;  %4260 = vbcast.lane.b32.xlu0 %v4240_v31, 272  ;;  %v4423_v31 = vmul.f32 %v4422_v26, %v7307_v11  ;;  %v5686_v10 = vpop.eup %5685 }
 0xbcc   : >> { %v5688_v43 = vpop.eup %5687 }
 0xbcd   : >> { %v4425_v32 = vmul.f32 1.442695, %v4423_v31 }
 0xbcf   : >> { %4216 = vbcast.lane.b32.xlu1 %v4192_v23, 280  ;;  %4212 = vbcast.lane.b32.xlu0 %v4192_v23, 272 }
 0xbd3   : >> { %4168 = vbcast.lane.b32.xlu1 %v4144_v60, 280  ;;  %4164 = vbcast.lane.b32.xlu0 %v4144_v60, 272  ;;  %v4377_v60 = vmul.f32 1.442695, %v4375_v29 }
 0xbd5   : >> { %5691 = vpow2.f32 %v4377_v60 }
 0xbd6   : >> { %5693 = vpow2.f32 %v4379_v3 }
 0xbd7   : >> { %5695 = vpow2.f32 %v4425_v32 }
 0xbd8   : >> { %5697 = vpow2.f32 %v4427_v45 }
 0xbd9   : >> { %5699 = vpow2.f32 %v4475_v30 }
 0xc09   : >> { %v4195_v37 = vpop.permute.xlu1 %4194  ;;  %v4147_v39 = vpop.permute.xlu0 %4146 }
 0xc0a   : >> { %v4156_v41 = vmul.f32 %v4155_v38, %v4147_v39  ;;  %v4204_v21 = vmul.f32 %v4203_v40, %v4195_v37 }
 0xc0c   : >> { %v7382_v50 = vadd.f32 %v4158_v12, %v4156_v41  ;;  %v4473_v41 = vmul.f32 1.442695, %v4471_v58 }
 0xc0d   : >> { %v4199_v4 = vpop.permute.xlu1 %4198  ;;  %v4151_v23 = vpop.permute.xlu0 %4150 }
 0xc0e   : >> { %v4206_v57 = vmul.f32 %v5676_v8, %v7382_v50  ;;  %v4157_v42 = vmul.f32 %v4155_v38, %v4151_v23  ;;  %v4205_v44 = vmul.f32 %v4203_v40, %v4199_v4  ;;  %v4395_v40 = vrot.slane %v7367_v46, %v6507_v22  ;;  %v5690_v8 = vpop.eup %5689 }
 0xc0f   : >> { %v5692_v23 = vpop.eup %5691  ;;  %5701 = vpow2.f32 %v4473_v41 }
 0xc10   : >> { %v7392_v34 = vadd.f32 %v4159_v35, %v4157_v42  ;;  %v7394_v6 = vadd.f32 %v4206_v57, %v4204_v21  ;;  %v4443_v57 = vrot.slane %v7367_v46, %v6504_v20  ;;  %v5694_v42 = vpop.eup %5693 }
 0xc11   : >> { %v4247_v1 = vpop.permute.xlu1 %4246  ;;  %v4243_v33 = vpop.permute.xlu0 %4242 }
 0xc12   : >> { %v4207_v61 = vmul.f32 %v5678_v36, %v7392_v34  ;;  %v4252_v62 = vmul.f32 %v4251_v63, %v4243_v33  ;;  %v4254_v49 = vmul.f32 %v5680_v25, %v7394_v6  ;;  %v4253_v38 = vmul.f32 %v4251_v63, %v4247_v1  ;;  %v5696_v1 = vpop.eup %5695 }
 0xc14   : >> { %v7401_v51 = vadd.f32 %v4207_v61, %v4205_v44  ;;  %v7403_v47 = vadd.f32 %v4254_v49, %v4252_v62  ;;  %v5698_v49 = vpop.eup %5697 }
 0xc15   : >> { %v4295_v16 = vpop.permute.xlu1 %4294  ;;  %v4291_v59 = vpop.permute.xlu0 %4290 }
 0xc16   : >> { %v4255_v5 = vmul.f32 %v5682_v18, %v7401_v51  ;;  %v4300_v12 = vmul.f32 %v4299_v17, %v4291_v59  ;;  %v4302_v27 = vmul.f32 %v5684_v15, %v7403_v47  ;;  %v4301_v28 = vmul.f32 %v4299_v17, %v4295_v16  ;;  %v5700_v59 = vpop.eup %5699 }
 0xc18   : >> { %v7411_v37 = vadd.f32 %v4255_v5, %v4253_v38  ;;  %v7413_v39 = vadd.f32 %v4302_v27, %v4300_v12 }
 0xc19   : >> { %v4343_v29 = vpop.permute.xlu1 %4342  ;;  %v4339_v26 = vpop.permute.xlu0 %4338 }
 0xc1a   : >> { %v4303_v35 = vmul.f32 %v5686_v10, %v7411_v37  ;;  %v4348_v55 = vmul.f32 %v4347_v13, %v4339_v26  ;;  %v4350_v4 = vmul.f32 %v5688_v43, %v7413_v39  ;;  %v4349_v63 = vmul.f32 %v4347_v13, %v4343_v29  ;;  %v5702_v38 = vpop.eup %5701 }
 0xc1b   : >> { %v4491_v13 = vrot.slane %v7367_v46, %v6501_v19 }
 0xc1c   : >> { %v7419_v60 = vadd.f32 %v4303_v35, %v4301_v28  ;;  %v4352_v31 = vadd.f32 %v4350_v4, %v4348_v55 }
 0xc1d   : >> { %v4391_v36 = vpop.permute.xlu1 %4390  ;;  %v4387_v21 = vpop.permute.xlu0 %4386 }
 0xc1e   : >> { %v4351_v25 = vmul.f32 %v5690_v8, %v7419_v60  ;;  %v4396_v17 = vmul.f32 %v4395_v40, %v4387_v21  ;;  %v4398_v3 = vmul.f32 %v5692_v23, %v4352_v31  ;;  %v4397_v18 = vmul.f32 %v4395_v40, %v4391_v36 }
 0xc20   : >> { %v4353_v33 = vadd.f32 %v4351_v25, %v4349_v63  ;;  %v4400_v9 = vadd.f32 %v4398_v3, %v4396_v17 }
 0xc21   : >> { %v4439_v32 = vpop.permute.xlu1 %4438  ;;  %v4435_v2 = vpop.permute.xlu0 %4434 }
 0xc22   : >> { %v4399_v44 = vmul.f32 %v5694_v42, %v4353_v33  ;;  %v4444_v61 = vmul.f32 %v4443_v57, %v4435_v2  ;;  %v4446_v62 = vmul.f32 %v5696_v1, %v4400_v9  ;;  %v4445_v45 = vmul.f32 %v4443_v57, %v4439_v32 }
 0xc24   : >> { %v4401_v15 = vadd.f32 %v4399_v44, %v4397_v18  ;;  %v4448_v10 = vadd.f32 %v4446_v62, %v4444_v61 }
 0xc25   : >> { %v4487_v0 = vpop.permute.xlu1 %4486  ;;  %v4483_v16 = vpop.permute.xlu0 %4482 }
 0xc26   : >> { %v4447_v58 = vmul.f32 %v5698_v49, %v4401_v15  ;;  %v4493_v43 = vmul.f32 %v4491_v13, %v4487_v0  ;;  %v4492_v30 = vmul.f32 %v4491_v13, %v4483_v16  ;;  %v4494_v26 = vmul.f32 %v5702_v38, %v4448_v10 }
 0xc28   : >> { %v4449_v5 = vadd.f32 %v4447_v58, %v4445_v45  ;;  %v7428_v55 = vadd.f32 %v4494_v26, %v4492_v30  }
 0xc29   : >> { %v4457_v12 = vpop.permute.xlu1 %4456  ;;  %v4453_v27 = vpop.permute.xlu0 %4452 }
 0xc2a   : >> { %v4495_v29 = vmul.f32 %v5700_v59, %v4449_v5  ;;  %v4459_v28 = vmul.f32 %v4457_v12, %v4449_v5  ;;  %v4458_v35 = vmul.f32 %v4453_v27, %v4448_v10 }
 0xc2c   : >> { %v7426_v17 = vadd.f32 %v4495_v29, %v4493_v43   ;;  %v4460_v42 = vadd.f32 %v4459_v28, %v4458_v35 }
 0xc2d   : >> { %v4505_v40 = vpop.permute.xlu1 %4504  ;;  %v4501_v41 = vpop.permute.xlu0 %4500 }
 0xc2e   : >> { %v4507_v8 = vmul.f32 %v4505_v40, %v7426_v17  ;;  %v4506_v46 = vmul.f32 %v4501_v41, %v7428_v55  ;;  %v4461_v18 = vrot.slane %v4460_v42, 4 }
 0xc30   : >> { %v4508_v57 = vadd.f32 %v4507_v8, %v4506_v46  ;;  %v4462_v45 = vadd.f32 %v4461_v18, %v4460_v42 }
 0xc31   : >> { %v4409_v4 = vpop.permute.xlu1 %4408  ;;  %v4405_v23 = vpop.permute.xlu0 %4404 }
 0xc32   : >> { %v4411_v36 = vmul.f32 %v4409_v4, %v4401_v15  ;;  %v4410_v21 = vmul.f32 %v4405_v23, %v4400_v9  ;;  %v4509_v2 = vrot.slane %v4508_v57, 4  ;;  %v4463_v43 = vrot.slane %v4462_v45, 2 }
 0xc34   : >> { %v4412_v63 = vadd.f32 %v4411_v36, %v4410_v21  ;;  %v4510_v15 = vadd.f32 %v4509_v2, %v4508_v57  ;;  %v4464_v4 = vadd.f32 %v4463_v43, %v4462_v45 }
 0xc35   : >> { %v4361_v25 = vpop.permute.xlu1 %4360  ;;  %v4357_v3 = vpop.permute.xlu0 %4356 }
 0xc36   : >> { %v4363_v1 = vmul.f32 %v4361_v25, %v4353_v33  ;;  %v4362_v32 = vmul.f32 %v4357_v3, %v4352_v31  ;;  %v4413_v44 = vrot.slane %v4412_v63, 4  ;;  %v4511_v12 = vrot.slane %v4510_v15, 2 }
 0xc37   : >> { %v4465_v18 = vrot.slane %v4464_v4, 1 }
 0xc38   : >> { %v4364_v61 = vadd.f32 %v4363_v1, %v4362_v32  ;;  %v4414_v13 = vadd.f32 %v4413_v44, %v4412_v63  ;;  %v4512_v28 = vadd.f32 %v4511_v12, %v4510_v15 }
 0xc39   : >> { %v4313_v62 = vpop.permute.xlu1 %4312  ;;  %v4309_v49 = vpop.permute.xlu0 %4308 }
 0xc3a   : >> { %v4315_v0 = vmul.f32 %v4313_v62, %v7419_v60  ;;  %v4314_v16 = vmul.f32 %v4309_v49, %v7413_v39  ;;  %v4365_v59 = vrot.slane %v4364_v61, 4  ;;  %v4415_v30 = vrot.slane %v4414_v13, 2 }
 0xc3c   : >> { %v4316_v9 = vadd.f32 %v4315_v0, %v4314_v16  ;;  %v4366_v38 = vadd.f32 %v4365_v59, %v4364_v61 }
 0xc3d   : >> { %v4265_v58 = vpop.permute.xlu1 %4264  ;;  %v4261_v10 = vpop.permute.xlu0 %4260 }
 0xc3e   : >> { %v4317_v33 = vrot.slane %v4316_v9, 4  ;;  %v4267_v31 = vmul.f32 %v4265_v58, %v7411_v37  ;;  %v4266_v5 = vmul.f32 %v4261_v10, %v7403_v47  ;;  %v4367_v26 = vrot.slane %v4366_v38, 2 }
 0xc3f   : >> { %v4416_v37 = vadd.f32 %v4415_v30, %v4414_v13  ;;  %v4535_v30 = vmul.f32 %v7311_v14, %v7359_v7  ;;  %v4541_v7 = vld [vmem:[#allocation8] sm:$0xff] (%p4116_p12) }
 0xc40   : >> { %v4318_v27 = vadd.f32 %v4317_v33, %v4316_v9  ;;  %v4268_v60 = vadd.f32 %v4267_v31, %v4266_v5  ;;  %v4368_v21 = vadd.f32 %v4367_v26, %v4366_v38  ;;  %v4538_v26 = vld [vmem:[%s4537_s29] sm:$0xff] }
 0xc41   : >> { %v4217_v29 = vpop.permute.xlu1 %4216  ;;  %v4213_v39 = vpop.permute.xlu0 %4212  ;;  %v4417_v32 = vrot.slane %v4416_v37, 1 }
 0xc42   : >> { %v4219_v40 = vmul.f32 %v4217_v29, %v7401_v51  ;;  %v4218_v41 = vmul.f32 %v4213_v39, %v7394_v6  ;;  %v4319_v8 = vrot.slane %v4318_v27, 2  ;;  %v4269_v46 = vrot.slane %v4268_v60, 4 }
 0xc43   : >> { %v4513_v51 = vrot.slane %v4512_v28, 1  ;;  %v4369_v44 = vrot.slane %v4368_v21, 1  ;;  %v4418_v9 = vadd.f32 %v4417_v32, %v4416_v37  ;;  %v4549_v37 = vld [vmem:[%s6471_s13 + $0x4] ss:$8 sps:$4 sm:$0xff] (%p4116_p12)   ;;  %s5004_s13 = sshll.u32 (%p4116_p12), %s6212_s30, 7  ;;  %s6148_s30 = smov (%p4116_p12), [#allocation21]  }
 0xc44   : >> { %v4220_v35 = vadd.f32 %v4219_v40, %v4218_v41  ;;  %v4270_v23 = vadd.f32 %v4269_v46, %v4268_v60  ;;  %v4320_v25 = vadd.f32 %v4319_v8, %v4318_v27  ;;  %s7465_s10 = scalar_lea.hbm (%p4116_p12), %s7519_s7, %s5004_s13  ;;  %s5913_s28 = sshll.u32 (%p4116_p12), %s6148_s30, 4  ;;  %s5914_s28 = int_to_ptr.vmem [resolvable:$false] %s5913_s28 }
 0xc45   : >> { %v4169_v47 = vpop.permute.xlu1 %4168  ;;  %v4165_v36 = vpop.permute.xlu0 %4164  ;;  %v4514_v0 = vadd.f32 %v4513_v51, %v4512_v28  ;;  %v4370_v45 = vadd.f32 %v4369_v44, %v4368_v21  ;;  %v4545_v28 = vld [vmem:[#allocation8 + $0x8] sm:$0xff] (%p4116_p12)  ;;  %s5915_s11 = scalar_lea.vmem (%p4116_p12), %s5914_s28, 256  ;;  %p5916_p4 = scmp.lt.s32.totalorder (%p4116_p12), %s7467_s14, %s5914_s28 }
 0xc46   : >> { %v4221_v57 = vrot.slane %v4220_v35, 4  ;;  %v4171_v42 = vmul.f32 %v4169_v47, %v7392_v34  ;;  %v4170_v63 = vmul.f32 %v4165_v36, %v7382_v50  ;;  %v4271_v3 = vrot.slane %v4270_v23, 2  ;;  %p5917_p3 = scmp.lt.s32.totalorder (%p4116_p12), %s5915_s11, %s5909_s21 }
 0xc47   : >> { %v4321_v49 = vrot.slane %v4320_v25, 1  ;;  %v4466_v34 = vadd.f32 %v4465_v18, %v4464_v4  ;;  %v4551_v47 = vunpack.c.l.bf16 (%p4116_p12), %v4549_v37  ;;  %v4552_v36 = vunpack.c.h.bf16 (%p4116_p12), %v4549_v37 }
 0xc48   : >> { %v4222_v1 = vadd.f32 %v4221_v57, %v4220_v35  ;;  %v4172_v6 = vadd.f32 %v4171_v42, %v4170_v63  ;;  %v4272_v2 = vadd.f32 %v4271_v3, %v4270_v23  ;;  %p5918_p0 = por (%p4116_p12), %p5917_p3, %p5916_p4 }
 0xc49   : >> { %v4322_v58 = vadd.f32 %v4321_v49, %v4320_v25  ;;  %v4516_v10 = vsel %vm1050_vm5, %v4514_v0, %v4466_v34  ;;  %v4992_v21 = vmul.f32 (%p4116_p12), -1.442695, %v4551_v47  ;;  %v4993_v57 = vmul.f32 (%p4116_p12), -1.442695, %v4552_v36 }
 0xc4a   : >> { %v4223_v61 = vrot.slane %v4222_v1, 2  ;;  %v4173_v62 = vrot.slane %v4172_v6, 4  ;;  %v4273_v16 = vrot.slane %v4272_v2, 1  ;;  %v4518_v31 = vsel %vm1052_vm6, %v4516_v10, %v4418_v9  ;;  %p5919_p2 = pnand (%p4116_p12), %p5918_p0, %p5912_p9 }
 0xc4b   : >> { %v4520_v12 = vsel %vm1054_vm7, %v4518_v31, %v4370_v45  ;;  %5703 = vpow2.f32 (%p4116_p12), %v4992_v21 }
 0xc4c   : >> { %v4224_v59 = vadd.f32 %v4223_v61, %v4222_v1  ;;  %v4174_v15 = vadd.f32 %v4173_v62, %v4172_v6  ;;  %v4274_v38 = vadd.f32 %v4273_v16, %v4272_v2  ;;  %v4522_v43 = vsel %vm1056_vm8, %v4520_v12, %v4322_v58 }
 0xc4d   : > { %5705 = vpow2.f32 (%p4116_p12), %v4993_v57 }
 0xc4e   : >> { %v4225_v50 = vrot.slane %v4224_v59, 1  ;;  %v4175_v13 = vrot.slane %v4174_v15, 2  ;;  %v4524_v60 = vsel %vm1058_vm9, %v4522_v43, %v4274_v38 }
 0xc50   : >> { %v4176_v33 = vadd.f32 %v4175_v13, %v4174_v15  ;;  %v4226_v5 = vadd.f32 %v4225_v50, %v4224_v59 }
 0xc52   : >> { %v4177_v27 = vrot.slane %v4176_v33, 1  ;;  %v4526_v39 = vsel %vm1060_vm10, %v4524_v60, %v4226_v5 }
 0xc54   : >> { %v4178_v29 = vadd.f32 %v4177_v27, %v4176_v33 }
 0xc55   : > { %4118 = sbr.rel (!%p4116_p12) target bundleno = 2961 (0xb91), region = 278  ;;  %v5704_v55 = vpop.eup (%p4116_p12), %5703 }
 0xc56   : >> { %v4528_v40 = vsel %vm1062_vm11, %v4526_v39, %v4178_v29  ;;  %v4561_v19 = vadd.f32 (%p4116_p12), 1.0, %v5704_v55 }
 0xc57   : >> { %v4536_v41 = vadd.f32 %v4535_v30, %v4528_v40  ;;  %v5706_v42 = vpop.eup (%p4116_p12), %5705 }
 0xc58   : > { %v4562_v20 = vadd.f32 (%p4116_p12), 1.0, %v5706_v42  ;;  %5707 = vrcp.f32 (%p4116_p12), %v4561_v19 }
 0xc59   : >> { %v4539_v8 = vadd.f32 %v4538_v26, %v4536_v41 }
 0xc5a   : > { %5709 = vrcp.f32 (%p4116_p12), %v4562_v20 }
 0xc5b   : >> { %4540 = vst [vmem:[%s4537_s29] sm:$0xff] %v4539_v8 }
 0xc62   : > { %v4542_v46 = vld [vmem:[#allocation7] ss:$2 sm:$0xff]  ;;  %v4546_v4 = vld [vmem:[#allocation7 + $0x1] ss:$2 sm:$0xff]  ;;  %v5708_v22 = vpop.eup %5707 }
 0xc63   : > { %v4543_v35 = vadd.f32 %v4542_v46, %v4541_v7  ;;  %v4547_v23 = vadd.f32 %v4546_v4, %v4545_v28  ;;  %v4567_v48 = vmul.f32 %v5708_v22, %v4551_v47 }
 0xc64   : > { %v5710_v24 = vpop.eup %5709 }
 0xc65   : > { %4544 = vst [vmem:[#allocation8] sm:$0xff] %v4543_v35  ;;  %4548 = vst [vmem:[#allocation8 + $0x8] sm:$0xff] %v4547_v23  ;;  %v4568_v53 = vmul.f32 %v5710_v24, %v4552_v36  ;;  %v4569_v54 = vmul.f32 %v4567_v48, %v4543_v35 }
 0xc67   : > { %v4570_v56 = vmul.f32 %v4568_v53, %v4547_v23 }
 0xc69   : > { %v5008_v11 = vpack.c.bf16 %v4570_v56, %v4569_v54 }
 0xc6b   : > { %5009 = vst [vmem:[%s6520_s23] sm:$0xff] %v5008_v11  }
 0xc6c   : > { %5922 = shalt.err (!%p5919_p2)
}
 0xc6d   : > { %s5923_s23 = scalar_lea.hbm %s7465_s10, 128  ;;  %s5927_s29 = scalar_lea.hbm %s7519_s7, 256 }
 0xc6e   : > { %p5924_p6 = scmp.ne.s32.totalorder %s7465_s10, %s5923_s23  ;;  %p5928_p1 = scmp.lt.u32.totalorder %s7465_s10, %s7519_s7 }
 0xc6f   : > { %p5929_p11 = scmp.lt.u32.totalorder %s5927_s29, %s5923_s23  ;;  %p5931_p13 = scmp.lt.u32.totalorder %s5923_s23, %s7465_s10 }
 0xc70   : > { %p5925_p5 = pnand %p5924_p6, %p7543_p8 }
 0xc71   : > { %p5930_p12 = por %p5929_p11, %p5928_p1 }
 0xc72   : > { %p5926_p10 = pneg %p5925_p5 }
 0xc73   : > { %p5932_p7 = por %p5931_p13, %p5930_p12 }
 0xc75   : > { %p5933_p9 = pnand %p5932_p7, %p5926_p10 }
 0xc77   : > { %5936 = shalt.err (!%p5933_p9)
}
 0xc78   : > { %s6149_s22 = smov 64   ;;  %s6150_s21 = smov 4  }
 0xc79   : > { %5036 = dma.vmem_to_hbm [thread:$0]  (%p7543_p8), %s7467_s14, 128, %s7465_s10, %s4582_s8, %s6149_s22, %s6149_s22, %s6150_s21  }
 0xc7a PF: > { %s4610_s30 = sand.u32 1, %s6047_s24   ;;  %p7544_p4 = scmp.ne.s32.totalorder %s7531_s20, 0 }
 0xc7b   : > { %p7545_p3 = scmp.ge.s32.totalorder %s6059_s27, 2  ;;  %s4611_s28 = scalar_lea.sflag [#allocation11], %s4610_s30 }
 0xc7d   : > { %p5062_p0 = pnand %p7545_p3, %p7544_p4 }
 0xc7f   : > { %6042 = dma.done.wait (!%p5062_p0), %s4611_s28, 128  }
 0xc80   : > { %6044 = vsyncadd (!%p5062_p0), %s4611_s28, 4294967168  ;;  %p23_p2 = scmp.ge.s32.totalorder %s6385_s19, 4   ;;  %s7546_s24 = smov %s6051_s25 }
 0xc81   : > { %s7547_s25 = smov %s6055_s26  ;;  %s7548_s26 = smov %s6396_s17 }
 0xc82   : > { %s7549_s27 = smov %s6385_s19  ;;  %25 = sbr.rel (!%p23_p2) target bundleno = 8 (0x8), region = 289 }
 0xc89   :  { %4616 = vsyncpa [#allocation10], 1 }
 0xc8a   :  { %4618 = vsyncpa [#allocation10 + $0x1], 1 }
 0xc8b   :  { %4619 = vsyncpa [#allocation13], 1 }
 0xc8c   :  { %4620 = vsyncpa [#allocation16], 1 }
 0xc8d   :  { %4621 = vsyncpa [#allocation19], 1 }
 0xc8e   :  { %4622 = vsyncpa [#allocation11], 1 }
 0xc8f   :  { %4624 = vsyncpa [#allocation11 + $0x1], 1 }

</bundles_post_ra>
